<compile_context>
chip_gen: v5e
topology: v5e:2x2
jax: 0.10.0
libtpu: 0.0.40
codegen_flags: <defaults>
</compile_context>

<pallas_src>
import functools

import jax
import jax.numpy as jnp
from jax import lax
from jax.experimental import pallas as pl
from jax.experimental.pallas import tpu as pltpu

BN_EPS = 1e-5
LANE = 128


def _round_up(x, m):
    return (x + m - 1) // m * m


def _pad_axis(a, axis, target):
    pad = target - a.shape[axis]
    if pad == 0:
        return a
    widths = [(0, 0)] * a.ndim
    widths[axis] = (0, pad)
    return jnp.pad(a, widths)


def _fold_bn(bn):
    gamma, beta, mean, var = bn
    scale = gamma / jnp.sqrt(var + BN_EPS)
    bias = beta - mean * scale
    return scale, bias


# ----------------------------------------------------------------------------
# Kernel
# ----------------------------------------------------------------------------
def bottleneck_kernel(x_ref, w1_ref, b1_ref, w2_ref, b2_ref, w3_ref, b3_ref,
                      o_ref, pad_ref, *, H, W):
    # x_ref:  (1, H*W, Ci)   input, channels lane-dense (padded to 128k), f32
    # w1_ref: (Ci, Cp)       bn1-scaled 1x1 conv weight (compute dtype)
    # w2_ref: (9, Cp, Cp)    bn2-scaled 3x3 conv weight, one (Cin, Cout) slab
    #                        per tap, tap index = kh*3 + kw
    # w3_ref: (Cp, Co)       bn3-scaled 1x1 conv weight
    # b*_ref: (1, C)         folded BatchNorm biases (f32)
    # pad_ref:(H+2, W+2, Cp) f32 halo scratch for the 3x3 conv
    HW = H * W
    Cp = w1_ref.shape[1]
    cdt = w1_ref.dtype                       # matmul compute dtype (bf16 or f32)

    x = x_ref[0]                             # (HW, Ci) f32, kept for residual

    # ---- conv1 (1x1) + folded bn1 bias + relu : one MXU matmul ----
    t1 = jnp.dot(x.astype(cdt), w1_ref[...], preferred_element_type=jnp.float32)
    t1 = jnp.maximum(t1 + b1_ref[...], 0.0)                      # (HW, Cp) f32

    # ---- halo scratch: zero only the 1-pixel border, then write interior.
    #      (Fully rewritten every grid step -> safe under "parallel".) ----
    pad_ref[0:1, :, :] = jnp.zeros((1, W + 2, Cp), jnp.float32)
    pad_ref[H + 1:H + 2, :, :] = jnp.zeros((1, W + 2, Cp), jnp.float32)
    pad_ref[1:H + 1, 0:1, :] = jnp.zeros((H, 1, Cp), jnp.float32)
    pad_ref[1:H + 1, W + 1:W + 2, :] = jnp.zeros((H, 1, Cp), jnp.float32)
    pad_ref[1:H + 1, 1:W + 1, :] = t1.reshape(H, W, Cp)

    # ---- conv2 (3x3, stride 1, pad 1): nine shifted-tap matmuls (K = Cp
    #      each, full v5e MXU depth) accumulated into one f32 accumulator.
    #      No im2col concat, no whole-matrix cast, one small operand live. ----
    acc = None
    for kh in range(3):
        for kw in range(3):
            tap = pad_ref[kh:kh + H, kw:kw + W, :].reshape(HW, Cp)
            contrib = jnp.dot(tap.astype(cdt), w2_ref[kh * 3 + kw],
                              preferred_element_type=jnp.float32)
            acc = contrib if acc is None else acc + contrib
    t2 = jnp.maximum(acc + b2_ref[...], 0.0)                     # (HW, Cp) f32

    # ---- conv3 (1x1) + bn3 bias + residual add + relu ----
    t3 = jnp.dot(t2.astype(cdt), w3_ref[...],
                 preferred_element_type=jnp.float32)
    o_ref[0] = jnp.maximum(t3 + b3_ref[...] + x, 0.0).astype(o_ref.dtype)


# ----------------------------------------------------------------------------
# Parameter preparation (done ONCE at init, not per forward call)
# ----------------------------------------------------------------------------
def prepare_bottleneck_params(w1_t, w2_t, w3_t, bn1, bn2, bn3,
                              *, compute_dtype=jnp.bfloat16):
    """Fold BN scales into the conv weights and pad channels to lane multiples."""
    P, Cin = w1_t.shape[0], w1_t.shape[1]
    Cout = w3_t.shape[0]
    Ci = _round_up(Cin, LANE)
    Cp = _round_up(P, LANE)
    Co = _round_up(Cout, LANE)

    s1, b1 = _fold_bn(bn1)
    s2, b2 = _fold_bn(bn2)
    s3, b3 = _fold_bn(bn3)

    # conv1: (P, Cin, 1, 1) -> (Cin, P), fold bn1 scale into output channels.
    w1 = jnp.transpose(w1_t[:, :, 0, 0], (1, 0)) * s1[None, :]
    w1 = _pad_axis(_pad_axis(w1, 0, Ci), 1, Cp).astype(compute_dtype)
    b1p = _pad_axis(b1, 0, Cp)[None, :].astype(jnp.float32)

    # conv2: (P, P, 3, 3) -> (kh, kw, I, O), fold bn2 scale, pad, reshape to
    # (9, Cp, Cp) with tap index kh*3 + kw.
    w2 = jnp.transpose(w2_t, (2, 3, 1, 0)) * s2[None, None, None, :]
    w2 = _pad_axis(_pad_axis(w2, 2, Cp), 3, Cp)
    w2 = w2.reshape(9, Cp, Cp).astype(compute_dtype)
    b2p = _pad_axis(b2, 0, Cp)[None, :].astype(jnp.float32)

    # conv3: (Cout, P, 1, 1) -> (P, Cout), fold bn3 scale.
    w3 = jnp.transpose(w3_t[:, :, 0, 0], (1, 0)) * s3[None, :]
    w3 = _pad_axis(_pad_axis(w3, 0, Cp), 1, Co).astype(compute_dtype)
    b3p = _pad_axis(b3, 0, Co)[None, :].astype(jnp.float32)

    return dict(w1=w1, b1=b1p, w2=w2, b2=b2p, w3=w3, b3=b3p,
                Cin=Cin, P=P, Cout=Cout, Ci=Ci, Cp=Cp, Co=Co)


# ----------------------------------------------------------------------------
# pallas_call wrappers
# ----------------------------------------------------------------------------
def _bottleneck_call(x_slab, params, H, W, *, single_buffer_weights):
    N, HW, Ci = x_slab.shape
    Cp, Co = params["Cp"], params["Co"]
    w1, b1, w2, b2, w3, b3 = (params[k] for k in ("w1", "b1", "w2", "b2", "w3", "b3"))
    cdt_bytes = w1.dtype.itemsize

    def const_spec(shape):
        index_map = lambda n: (0,) * len(shape)
        if single_buffer_weights:
            # Grid-invariant inputs: no need to double-buffer across the grid.
            return pl.BlockSpec(shape, index_map, pipeline_mode=pl.Buffered(1))
        return pl.BlockSpec(shape, index_map)

    # Explicit scoped-VMEM budget from the real per-step footprint
    # (x/out blocks are double-buffered across the batch grid).
    wbufs = 1 if single_buffer_weights else 2
    est = (2 * HW * (Ci + Co) * 4                                   # x / out blocks
           + wbufs * ((Ci * Cp + 9 * Cp * Cp + Cp * Co) * cdt_bytes
                      + (2 * Cp + Co) * 4)                          # weights + biases
           + (H + 2) * (W + 2) * Cp * 4                             # halo scratch
           + HW * Cp * 24)                                          # t1/acc/tap temps
    vmem_limit = int(min(max(est * 3 // 2, 16 << 20), 96 << 20))

    kernel = functools.partial(bottleneck_kernel, H=H, W=W)
    return pl.pallas_call(
        kernel,
        out_shape=jax.ShapeDtypeStruct((N, HW, Co), x_slab.dtype),
        grid_spec=pltpu.PrefetchScalarGridSpec(
            num_scalar_prefetch=0,
            grid=(N,),
            in_specs=[
                pl.BlockSpec((1, HW, Ci), lambda n: (n, 0, 0)),
                const_spec((Ci, Cp)),
                const_spec((1, Cp)),
                const_spec((9, Cp, Cp)),
                const_spec((1, Cp)),
                const_spec((Cp, Co)),
                const_spec((1, Co)),
            ],
            out_specs=pl.BlockSpec((1, HW, Co), lambda n: (n, 0, 0)),
            scratch_shapes=[pltpu.VMEM((H + 2, W + 2, Cp), jnp.float32)],
        ),
        compiler_params=pltpu.CompilerParams(
            dimension_semantics=("parallel",),
            vmem_limit_bytes=vmem_limit),
    )(x_slab, w1, b1, w2, b2, w3, b3)


def bottleneck_forward_slab(x_slab, params, H, W):
    """Lane-dense entry point: x_slab (N, H*W, Ci_pad) f32 -> (N, H*W, Co_pad).

    This is the layout consecutive Bottleneck blocks should chain in (no
    per-block NCHW<->NHWC HBM round trips)."""
    try:
        return _bottleneck_call(x_slab, params, H, W, single_buffer_weights=True)
    except Exception:
        # Fallback for jax versions without BlockSpec(pipeline_mode=...) /
        # Buffered(1) support: identical semantics, default double buffering.
        return _bottleneck_call(x_slab, params, H, W, single_buffer_weights=False)


def bottleneck_forward_nchw(x_nchw, params):
    """PyTorch-parity wrapper (NCHW in / NCHW out).

    NOTE: the transpose / pad / slice below are per-call HBM passes; in a full
    network keep activations in the lane-dense slab and call
    bottleneck_forward_slab directly."""
    N, Cin, H, W = x_nchw.shape
    # TODO(synk): stride>1 / downsample branch not implemented.
    assert Cin == params["Cin"] and params["Cout"] == Cin, \
        "identity residual requires inplanes == planes * expansion"
    Ci, Co, Cout = params["Ci"], params["Co"], params["Cout"]

    x = jnp.transpose(x_nchw, (0, 2, 3, 1))
    x = _pad_axis(x, 3, Ci).reshape(N, H * W, Ci)
    out = bottleneck_forward_slab(x, params, H, W)
    out = out.reshape(N, H, W, Co)[:, :, :, :Cout]
    return jnp.transpose(out, (0, 3, 1, 2))                  # back to NCHW


# ----------------------------------------------------------------------------
# Pure-JAX reference (inference-mode BatchNorm)
# ----------------------------------------------------------------------------
def reference(x, w1_t, w2_t, w3_t, bn1, bn2, bn3):
    def bn(y, p):
        g, b, m, v = p
        sc = (g / jnp.sqrt(v + BN_EPS))[None, :, None, None]
        return (y - m[None, :, None, None]) * sc + b[None, :, None, None]

    dn = ('NCHW', 'OIHW', 'NCHW')
    out = lax.conv_general_dilated(x, w1_t, (1, 1), 'VALID', dimension_numbers=dn)
    out = jax.nn.relu(bn(out, bn1))
    out = lax.conv_general_dilated(out, w2_t, (1, 1), ((1, 1), (1, 1)),
                                   dimension_numbers=dn)
    out = jax.nn.relu(bn(out, bn2))
    out = lax.conv_general_dilated(out, w3_t, (1, 1), 'VALID', dimension_numbers=dn)
    out = bn(out, bn3)
    return jax.nn.relu(out + x)


if __name__ == "__main__":
    key = jax.random.PRNGKey(0)
    keys = jax.random.split(key, 16)

    # Small shapes consistent with the module: inplanes = planes * expansion.
    N, planes, H, W = 2, 8, 16, 16
    expansion = 4
    inplanes = planes * expansion          # 32 -> identity residual, downsample=None
    Cout = planes * expansion

    x = jax.random.normal(keys[0], (N, inplanes, H, W), jnp.float32)

    # Deterministic synthetic parameters (PyTorch conv layout: O, I, kh, kw).
    w1_t = 0.1 * jax.random.normal(keys[1], (planes, inplanes, 1, 1), jnp.float32)
    w2_t = 0.1 * jax.random.normal(keys[2], (planes, planes, 3, 3), jnp.float32)
    w3_t = 0.1 * jax.random.normal(keys[3], (Cout, planes, 1, 1), jnp.float32)

    def make_bn(kg, kb, km, kv, c):
        gamma = 1.0 + 0.1 * jax.random.normal(kg, (c,), jnp.float32)
        beta = 0.1 * jax.random.normal(kb, (c,), jnp.float32)
        mean = 0.1 * jax.random.normal(km, (c,), jnp.float32)
        var = jnp.abs(jax.random.normal(kv, (c,), jnp.float32)) + 0.5
        return gamma, beta, mean, var

    bn1 = make_bn(keys[4], keys[5], keys[6], keys[7], planes)
    bn2 = make_bn(keys[8], keys[9], keys[10], keys[11], planes)
    bn3 = make_bn(keys[12], keys[13], keys[14], keys[15], Cout)

    # Default fast path: bf16 matmuls with f32 accumulation.
    params_bf16 = prepare_bottleneck_params(w1_t, w2_t, w3_t, bn1, bn2, bn3,
                                            compute_dtype=jnp.bfloat16)
    out_bf16 = bottleneck_forward_nchw(x, params_bf16)
    out_bf16 = jax.block_until_ready(out_bf16)

    # Exact-precision path (verifies layout / tap-shift / padding logic tightly).
    params_f32 = prepare_bottleneck_params(w1_t, w2_t, w3_t, bn1, bn2, bn3,
                                           compute_dtype=jnp.float32)
    out_f32 = bottleneck_forward_nchw(x, params_f32)
    out_f32 = jax.block_until_ready(out_f32)

    ref = reference(x, w1_t, w2_t, w3_t, bn1, bn2, bn3)

    assert out_bf16.shape == (N, Cout, H, W), out_bf16.shape
    assert out_f32.shape == (N, Cout, H, W), out_f32.shape
    assert jnp.allclose(out_f32, ref, atol=1e-4, rtol=1e-4), \
        f"f32 max abs err = {jnp.max(jnp.abs(out_f32 - ref))}"
    assert jnp.allclose(out_bf16, ref, atol=5e-2, rtol=5e-2), \
        f"bf16 max abs err = {jnp.max(jnp.abs(out_bf16 - ref))}"

    print("KERNEL_OK")
</pallas_src>

<mosaic_0001>
module attributes {stable_mosaic.version = 11 : i64} {
  func.func @bottleneck_kernel(%arg0: i32, %arg1: memref<1x256x128xf32, #tpu.memory_space<vmem>>, %arg2: memref<128x128xbf16, #tpu.memory_space<vmem>>, %arg3: memref<1x128xf32, #tpu.memory_space<vmem>>, %arg4: memref<9x128x128xbf16, #tpu.memory_space<vmem>>, %arg5: memref<1x128xf32, #tpu.memory_space<vmem>>, %arg6: memref<128x128xbf16, #tpu.memory_space<vmem>>, %arg7: memref<1x128xf32, #tpu.memory_space<vmem>>, %arg8: memref<1x256x128xf32, #tpu.memory_space<vmem>>, %arg9: memref<18x18x128xf32, #tpu.memory_space<vmem>>) attributes {dimension_semantics = [#tpu.dimension_semantics<parallel>], iteration_bounds = array<i64: 2>, scalar_prefetch = 0 : i64, scratch_operands = 1 : i64, tpu.core_type = #tpu.core_type<tc>, window_params = [{transform_indices = @transform_0, window_bounds = array<i64: 1, 256, 128>}, {pipeline_mode = #tpu.pipeline_mode<synchronous>, transform_indices = @transform_1, window_bounds = array<i64: 128, 128>}, {pipeline_mode = #tpu.pipeline_mode<synchronous>, transform_indices = @transform_2, window_bounds = array<i64: 1, 128>}, {pipeline_mode = #tpu.pipeline_mode<synchronous>, transform_indices = @transform_3, window_bounds = array<i64: 9, 128, 128>}, {pipeline_mode = #tpu.pipeline_mode<synchronous>, transform_indices = @transform_4, window_bounds = array<i64: 1, 128>}, {pipeline_mode = #tpu.pipeline_mode<synchronous>, transform_indices = @transform_5, window_bounds = array<i64: 128, 128>}, {pipeline_mode = #tpu.pipeline_mode<synchronous>, transform_indices = @transform_6, window_bounds = array<i64: 1, 128>}, {transform_indices = @transform_7, window_bounds = array<i64: 1, 256, 128>}]} {
    %c0 = arith.constant 0 : index
    %c0_0 = arith.constant 0 : index
    %c0_1 = arith.constant 0 : index
    %0 = vector.load %arg1[%c0, %c0_0, %c0_1] : memref<1x256x128xf32, #tpu.memory_space<vmem>>, vector<1x256x128xf32>
    %1 = vector.shape_cast %0 : vector<1x256x128xf32> to vector<256x128xf32>
    %2 = arith.truncf %1 : vector<256x128xf32> to vector<256x128xbf16>
    %c0_2 = arith.constant 0 : index
    %c0_3 = arith.constant 0 : index
    %3 = vector.load %arg2[%c0_2, %c0_3] : memref<128x128xbf16, #tpu.memory_space<vmem>>, vector<128x128xbf16>
    %cst = arith.constant dense<0.000000e+00> : vector<256x128xf32>
    %4 = tpu.matmul %2, %3, %cst {dimension_numbers = #tpu.dot_dimension_numbers<[1], [0], [0], [1], [0, 0, 1, 1], [], []>} : vector<256x128xbf16>, vector<128x128xbf16>, vector<256x128xf32> -> vector<256x128xf32>
    %c0_4 = arith.constant 0 : index
    %c0_5 = arith.constant 0 : index
    %5 = vector.load %arg3[%c0_4, %c0_5] : memref<1x128xf32, #tpu.memory_space<vmem>>, vector<1x128xf32>
    %6 = vector.broadcast %5 : vector<1x128xf32> to vector<256x128xf32>
    %7 = arith.addf %4, %6 : vector<256x128xf32>
    %cst_6 = arith.constant 0.000000e+00 : f32
    %8 = vector.broadcast %cst_6 : f32 to vector<256x128xf32>
    %9 = arith.maximumf %7, %8 : vector<256x128xf32>
    %cst_7 = arith.constant 0.000000e+00 : f32
    %10 = vector.broadcast %cst_7 : f32 to vector<1x18x128xf32>
    %c0_8 = arith.constant 0 : index
    %c0_9 = arith.constant 0 : index
    %c0_10 = arith.constant 0 : index
    %11 = vector.load %arg9[%c0_8, %c0_9, %c0_10] : memref<18x18x128xf32, #tpu.memory_space<vmem>>, vector<1x18x128xf32>
    tpu.vector_store %arg9[%c0_8, %c0_9, %c0_10], %10 {strides = array<i32>} : memref<18x18x128xf32, #tpu.memory_space<vmem>>, vector<1x18x128xf32>,
    %cst_11 = arith.constant 0.000000e+00 : f32
    %12 = vector.broadcast %cst_11 : f32 to vector<1x18x128xf32>
    %c17 = arith.constant 17 : index
    %c0_12 = arith.constant 0 : index
    %c0_13 = arith.constant 0 : index
    %13 = vector.load %arg9[%c17, %c0_12, %c0_13] : memref<18x18x128xf32, #tpu.memory_space<vmem>>, vector<1x18x128xf32>
    tpu.vector_store %arg9[%c17, %c0_12, %c0_13], %12 {strides = array<i32>} : memref<18x18x128xf32, #tpu.memory_space<vmem>>, vector<1x18x128xf32>,
    %cst_14 = arith.constant 0.000000e+00 : f32
    %14 = vector.broadcast %cst_14 : f32 to vector<16x1x128xf32>
    %c1 = arith.constant 1 : index
    %c0_15 = arith.constant 0 : index
    %c0_16 = arith.constant 0 : index
    %15 = vector.load %arg9[%c1, %c0_15, %c0_16] : memref<18x18x128xf32, #tpu.memory_space<vmem>>, vector<16x1x128xf32>
    tpu.vector_store %arg9[%c1, %c0_15, %c0_16], %14 {strides = array<i32>} : memref<18x18x128xf32, #tpu.memory_space<vmem>>, vector<16x1x128xf32>,
    %cst_17 = arith.constant 0.000000e+00 : f32
    %16 = vector.broadcast %cst_17 : f32 to vector<16x1x128xf32>
    %c1_18 = arith.constant 1 : index
    %c17_19 = arith.constant 17 : index
    %c0_20 = arith.constant 0 : index
    %17 = vector.load %arg9[%c1_18, %c17_19, %c0_20] : memref<18x18x128xf32, #tpu.memory_space<vmem>>, vector<16x1x128xf32>
    tpu.vector_store %arg9[%c1_18, %c17_19, %c0_20], %16 {strides = array<i32>} : memref<18x18x128xf32, #tpu.memory_space<vmem>>, vector<16x1x128xf32>,
    %18 = vector.shape_cast %9 : vector<256x128xf32> to vector<16x16x128xf32>
    %c1_21 = arith.constant 1 : index
    %c1_22 = arith.constant 1 : index
    %c0_23 = arith.constant 0 : index
    %19 = vector.load %arg9[%c1_21, %c1_22, %c0_23] : memref<18x18x128xf32, #tpu.memory_space<vmem>>, vector<16x16x128xf32>
    tpu.vector_store %arg9[%c1_21, %c1_22, %c0_23], %18 {strides = array<i32>} : memref<18x18x128xf32, #tpu.memory_space<vmem>>, vector<16x16x128xf32>,
    %c0_24 = arith.constant 0 : index
    %c0_25 = arith.constant 0 : index
    %c0_26 = arith.constant 0 : index
    %20 = vector.load %arg9[%c0_24, %c0_25, %c0_26] : memref<18x18x128xf32, #tpu.memory_space<vmem>>, vector<16x16x128xf32>
    %21 = vector.shape_cast %20 : vector<16x16x128xf32> to vector<256x128xf32>
    %22 = arith.truncf %21 : vector<256x128xf32> to vector<256x128xbf16>
    %c0_27 = arith.constant 0 : index
    %c0_28 = arith.constant 0 : index
    %c0_29 = arith.constant 0 : index
    %23 = vector.load %arg4[%c0_27, %c0_28, %c0_29] : memref<9x128x128xbf16, #tpu.memory_space<vmem>>, vector<1x128x128xbf16>
    %24 = vector.shape_cast %23 : vector<1x128x128xbf16> to vector<128x128xbf16>
    %cst_30 = arith.constant dense<0.000000e+00> : vector<256x128xf32>
    %25 = tpu.matmul %22, %24, %cst_30 {dimension_numbers = #tpu.dot_dimension_numbers<[1], [0], [0], [1], [0, 0, 1, 1], [], []>} : vector<256x128xbf16>, vector<128x128xbf16>, vector<256x128xf32> -> vector<256x128xf32>
    %c0_31 = arith.constant 0 : index
    %c1_32 = arith.constant 1 : index
    %c0_33 = arith.constant 0 : index
    %26 = vector.load %arg9[%c0_31, %c1_32, %c0_33] : memref<18x18x128xf32, #tpu.memory_space<vmem>>, vector<16x16x128xf32>
    %27 = vector.shape_cast %26 : vector<16x16x128xf32> to vector<256x128xf32>
    %28 = arith.truncf %27 : vector<256x128xf32> to vector<256x128xbf16>
    %c1_34 = arith.constant 1 : index
    %c0_35 = arith.constant 0 : index
    %c0_36 = arith.constant 0 : index
    %29 = vector.load %arg4[%c1_34, %c0_35, %c0_36] : memref<9x128x128xbf16, #tpu.memory_space<vmem>>, vector<1x128x128xbf16>
    %30 = vector.shape_cast %29 : vector<1x128x128xbf16> to vector<128x128xbf16>
    %cst_37 = arith.constant dense<0.000000e+00> : vector<256x128xf32>
    %31 = tpu.matmul %28, %30, %cst_37 {dimension_numbers = #tpu.dot_dimension_numbers<[1], [0], [0], [1], [0, 0, 1, 1], [], []>} : vector<256x128xbf16>, vector<128x128xbf16>, vector<256x128xf32> -> vector<256x128xf32>
    %32 = arith.addf %25, %31 : vector<256x128xf32>
    %c0_38 = arith.constant 0 : index
    %c2 = arith.constant 2 : index
    %c0_39 = arith.constant 0 : index
    %33 = vector.load %arg9[%c0_38, %c2, %c0_39] : memref<18x18x128xf32, #tpu.memory_space<vmem>>, vector<16x16x128xf32>
    %34 = vector.shape_cast %33 : vector<16x16x128xf32> to vector<256x128xf32>
    %35 = arith.truncf %34 : vector<256x128xf32> to vector<256x128xbf16>
    %c2_40 = arith.constant 2 : index
    %c0_41 = arith.constant 0 : index
    %c0_42 = arith.constant 0 : index
    %36 = vector.load %arg4[%c2_40, %c0_41, %c0_42] : memref<9x128x128xbf16, #tpu.memory_space<vmem>>, vector<1x128x128xbf16>
    %37 = vector.shape_cast %36 : vector<1x128x128xbf16> to vector<128x128xbf16>
    %cst_43 = arith.constant dense<0.000000e+00> : vector<256x128xf32>
    %38 = tpu.matmul %35, %37, %cst_43 {dimension_numbers = #tpu.dot_dimension_numbers<[1], [0], [0], [1], [0, 0, 1, 1], [], []>} : vector<256x128xbf16>, vector<128x128xbf16>, vector<256x128xf32> -> vector<256x128xf32>
    %39 = arith.addf %32, %38 : vector<256x128xf32>
    %c1_44 = arith.constant 1 : index
    %c0_45 = arith.constant 0 : index
    %c0_46 = arith.constant 0 : index
    %40 = vector.load %arg9[%c1_44, %c0_45, %c0_46] : memref<18x18x128xf32, #tpu.memory_space<vmem>>, vector<16x16x128xf32>
    %41 = vector.shape_cast %40 : vector<16x16x128xf32> to vector<256x128xf32>
    %42 = arith.truncf %41 : vector<256x128xf32> to vector<256x128xbf16>
    %c3 = arith.constant 3 : index
    %c0_47 = arith.constant 0 : index
    %c0_48 = arith.constant 0 : index
    %43 = vector.load %arg4[%c3, %c0_47, %c0_48] : memref<9x128x128xbf16, #tpu.memory_space<vmem>>, vector<1x128x128xbf16>
    %44 = vector.shape_cast %43 : vector<1x128x128xbf16> to vector<128x128xbf16>
    %cst_49 = arith.constant dense<0.000000e+00> : vector<256x128xf32>
    %45 = tpu.matmul %42, %44, %cst_49 {dimension_numbers = #tpu.dot_dimension_numbers<[1], [0], [0], [1], [0, 0, 1, 1], [], []>} : vector<256x128xbf16>, vector<128x128xbf16>, vector<256x128xf32> -> vector<256x128xf32>
    %46 = arith.addf %39, %45 : vector<256x128xf32>
    %c1_50 = arith.constant 1 : index
    %c1_51 = arith.constant 1 : index
    %c0_52 = arith.constant 0 : index
    %47 = vector.load %arg9[%c1_50, %c1_51, %c0_52] : memref<18x18x128xf32, #tpu.memory_space<vmem>>, vector<16x16x128xf32>
    %48 = vector.shape_cast %47 : vector<16x16x128xf32> to vector<256x128xf32>
    %49 = arith.truncf %48 : vector<256x128xf32> to vector<256x128xbf16>
    %c4 = arith.constant 4 : index
    %c0_53 = arith.constant 0 : index
    %c0_54 = arith.constant 0 : index
    %50 = vector.load %arg4[%c4, %c0_53, %c0_54] : memref<9x128x128xbf16, #tpu.memory_space<vmem>>, vector<1x128x128xbf16>
    %51 = vector.shape_cast %50 : vector<1x128x128xbf16> to vector<128x128xbf16>
    %cst_55 = arith.constant dense<0.000000e+00> : vector<256x128xf32>
    %52 = tpu.matmul %49, %51, %cst_55 {dimension_numbers = #tpu.dot_dimension_numbers<[1], [0], [0], [1], [0, 0, 1, 1], [], []>} : vector<256x128xbf16>, vector<128x128xbf16>, vector<256x128xf32> -> vector<256x128xf32>
    %53 = arith.addf %46, %52 : vector<256x128xf32>
    %c1_56 = arith.constant 1 : index
    %c2_57 = arith.constant 2 : index
    %c0_58 = arith.constant 0 : index
    %54 = vector.load %arg9[%c1_56, %c2_57, %c0_58] : memref<18x18x128xf32, #tpu.memory_space<vmem>>, vector<16x16x128xf32>
    %55 = vector.shape_cast %54 : vector<16x16x128xf32> to vector<256x128xf32>
    %56 = arith.truncf %55 : vector<256x128xf32> to vector<256x128xbf16>
    %c5 = arith.constant 5 : index
    %c0_59 = arith.constant 0 : index
    %c0_60 = arith.constant 0 : index
    %57 = vector.load %arg4[%c5, %c0_59, %c0_60] : memref<9x128x128xbf16, #tpu.memory_space<vmem>>, vector<1x128x128xbf16>
    %58 = vector.shape_cast %57 : vector<1x128x128xbf16> to vector<128x128xbf16>
    %cst_61 = arith.constant dense<0.000000e+00> : vector<256x128xf32>
    %59 = tpu.matmul %56, %58, %cst_61 {dimension_numbers = #tpu.dot_dimension_numbers<[1], [0], [0], [1], [0, 0, 1, 1], [], []>} : vector<256x128xbf16>, vector<128x128xbf16>, vector<256x128xf32> -> vector<256x128xf32>
    %60 = arith.addf %53, %59 : vector<256x128xf32>
    %c2_62 = arith.constant 2 : index
    %c0_63 = arith.constant 0 : index
    %c0_64 = arith.constant 0 : index
    %61 = vector.load %arg9[%c2_62, %c0_63, %c0_64] : memref<18x18x128xf32, #tpu.memory_space<vmem>>, vector<16x16x128xf32>
    %62 = vector.shape_cast %61 : vector<16x16x128xf32> to vector<256x128xf32>
    %63 = arith.truncf %62 : vector<256x128xf32> to vector<256x128xbf16>
    %c6 = arith.constant 6 : index
    %c0_65 = arith.constant 0 : index
    %c0_66 = arith.constant 0 : index
    %64 = vector.load %arg4[%c6, %c0_65, %c0_66] : memref<9x128x128xbf16, #tpu.memory_space<vmem>>, vector<1x128x128xbf16>
    %65 = vector.shape_cast %64 : vector<1x128x128xbf16> to vector<128x128xbf16>
    %cst_67 = arith.constant dense<0.000000e+00> : vector<256x128xf32>
    %66 = tpu.matmul %63, %65, %cst_67 {dimension_numbers = #tpu.dot_dimension_numbers<[1], [0], [0], [1], [0, 0, 1, 1], [], []>} : vector<256x128xbf16>, vector<128x128xbf16>, vector<256x128xf32> -> vector<256x128xf32>
    %67 = arith.addf %60, %66 : vector<256x128xf32>
    %c2_68 = arith.constant 2 : index
    %c1_69 = arith.constant 1 : index
    %c0_70 = arith.constant 0 : index
    %68 = vector.load %arg9[%c2_68, %c1_69, %c0_70] : memref<18x18x128xf32, #tpu.memory_space<vmem>>, vector<16x16x128xf32>
    %69 = vector.shape_cast %68 : vector<16x16x128xf32> to vector<256x128xf32>
    %70 = arith.truncf %69 : vector<256x128xf32> to vector<256x128xbf16>
    %c7 = arith.constant 7 : index
    %c0_71 = arith.constant 0 : index
    %c0_72 = arith.constant 0 : index
    %71 = vector.load %arg4[%c7, %c0_71, %c0_72] : memref<9x128x128xbf16, #tpu.memory_space<vmem>>, vector<1x128x128xbf16>
    %72 = vector.shape_cast %71 : vector<1x128x128xbf16> to vector<128x128xbf16>
    %cst_73 = arith.constant dense<0.000000e+00> : vector<256x128xf32>
    %73 = tpu.matmul %70, %72, %cst_73 {dimension_numbers = #tpu.dot_dimension_numbers<[1], [0], [0], [1], [0, 0, 1, 1], [], []>} : vector<256x128xbf16>, vector<128x128xbf16>, vector<256x128xf32> -> vector<256x128xf32>
    %74 = arith.addf %67, %73 : vector<256x128xf32>
    %c2_74 = arith.constant 2 : index
    %c2_75 = arith.constant 2 : index
    %c0_76 = arith.constant 0 : index
    %75 = vector.load %arg9[%c2_74, %c2_75, %c0_76] : memref<18x18x128xf32, #tpu.memory_space<vmem>>, vector<16x16x128xf32>
    %76 = vector.shape_cast %75 : vector<16x16x128xf32> to vector<256x128xf32>
    %77 = arith.truncf %76 : vector<256x128xf32> to vector<256x128xbf16>
    %c8 = arith.constant 8 : index
    %c0_77 = arith.constant 0 : index
    %c0_78 = arith.constant 0 : index
    %78 = vector.load %arg4[%c8, %c0_77, %c0_78] : memref<9x128x128xbf16, #tpu.memory_space<vmem>>, vector<1x128x128xbf16>
    %79 = vector.shape_cast %78 : vector<1x128x128xbf16> to vector<128x128xbf16>
    %cst_79 = arith.constant dense<0.000000e+00> : vector<256x128xf32>
    %80 = tpu.matmul %77, %79, %cst_79 {dimension_numbers = #tpu.dot_dimension_numbers<[1], [0], [0], [1], [0, 0, 1, 1], [], []>} : vector<256x128xbf16>, vector<128x128xbf16>, vector<256x128xf32> -> vector<256x128xf32>
    %81 = arith.addf %74, %80 : vector<256x128xf32>
    %c0_80 = arith.constant 0 : index
    %c0_81 = arith.constant 0 : index
    %82 = vector.load %arg5[%c0_80, %c0_81] : memref<1x128xf32, #tpu.memory_space<vmem>>, vector<1x128xf32>
    %83 = vector.broadcast %82 : vector<1x128xf32> to vector<256x128xf32>
    %84 = arith.addf %81, %83 : vector<256x128xf32>
    %cst_82 = arith.constant 0.000000e+00 : f32
    %85 = vector.broadcast %cst_82 : f32 to vector<256x128xf32>
    %86 = arith.maximumf %84, %85 : vector<256x128xf32>
    %87 = arith.truncf %86 : vector<256x128xf32> to vector<256x128xbf16>
    %c0_83 = arith.constant 0 : index
    %c0_84 = arith.constant 0 : index
    %88 = vector.load %arg6[%c0_83, %c0_84] : memref<128x128xbf16, #tpu.memory_space<vmem>>, vector<128x128xbf16>
    %cst_85 = arith.constant dense<0.000000e+00> : vector<256x128xf32>
    %89 = tpu.matmul %87, %88, %cst_85 {dimension_numbers = #tpu.dot_dimension_numbers<[1], [0], [0], [1], [0, 0, 1, 1], [], []>} : vector<256x128xbf16>, vector<128x128xbf16>, vector<256x128xf32> -> vector<256x128xf32>
    %c0_86 = arith.constant 0 : index
    %c0_87 = arith.constant 0 : index
    %90 = vector.load %arg7[%c0_86, %c0_87] : memref<1x128xf32, #tpu.memory_space<vmem>>, vector<1x128xf32>
    %91 = vector.broadcast %90 : vector<1x128xf32> to vector<256x128xf32>
    %92 = arith.addf %89, %91 : vector<256x128xf32>
    %93 = arith.addf %92, %1 : vector<256x128xf32>
    %cst_88 = arith.constant 0.000000e+00 : f32
    %94 = vector.broadcast %cst_88 : f32 to vector<256x128xf32>
    %95 = arith.maximumf %93, %94 : vector<256x128xf32>
    %c0_89 = arith.constant 0 : index
    %c0_90 = arith.constant 0 : index
    %c0_91 = arith.constant 0 : index
    %96 = vector.load %arg8[%c0_89, %c0_90, %c0_91] : memref<1x256x128xf32, #tpu.memory_space<vmem>>, vector<1x256x128xf32>
    %97 = vector.shape_cast %96 : vector<1x256x128xf32> to vector<256x128xf32>
    %98 = vector.shape_cast %95 : vector<256x128xf32> to vector<1x256x128xf32>
    tpu.vector_store %arg8[%c0_89, %c0_90, %c0_91], %98 {strides = array<i32>} : memref<1x256x128xf32, #tpu.memory_space<vmem>>, vector<1x256x128xf32>,
    return
  }
  func.func @transform_0(%arg0: i32) -> (i32, i32, i32) {
    %c0_i32 = arith.constant 0 : i32
    %c0_i32_0 = arith.constant 0 : i32
    %c0_i32_1 = arith.constant 0 : i32
    return %arg0, %c0_i32, %c0_i32_0 : i32, i32, i32
  }
  func.func @transform_1(%arg0: i32) -> (i32, i32) {
    %c0_i32 = arith.constant 0 : i32
    %c0_i32_0 = arith.constant 0 : i32
    %c0_i32_1 = arith.constant 0 : i32
    return %c0_i32, %c0_i32_0 : i32, i32
  }
  func.func @transform_2(%arg0: i32) -> (i32, i32) {
    %c0_i32 = arith.constant 0 : i32
    %c0_i32_0 = arith.constant 0 : i32
    %c0_i32_1 = arith.constant 0 : i32
    return %c0_i32, %c0_i32_0 : i32, i32
  }
  func.func @transform_3(%arg0: i32) -> (i32, i32, i32) {
    %c0_i32 = arith.constant 0 : i32
    %c0_i32_0 = arith.constant 0 : i32
    %c0_i32_1 = arith.constant 0 : i32
    %c0_i32_2 = arith.constant 0 : i32
    return %c0_i32, %c0_i32_0, %c0_i32_1 : i32, i32, i32
  }
  func.func @transform_4(%arg0: i32) -> (i32, i32) {
    %c0_i32 = arith.constant 0 : i32
    %c0_i32_0 = arith.constant 0 : i32
    %c0_i32_1 = arith.constant 0 : i32
    return %c0_i32, %c0_i32_0 : i32, i32
  }
  func.func @transform_5(%arg0: i32) -> (i32, i32) {
    %c0_i32 = arith.constant 0 : i32
    %c0_i32_0 = arith.constant 0 : i32
    %c0_i32_1 = arith.constant 0 : i32
    return %c0_i32, %c0_i32_0 : i32, i32
  }
  func.func @transform_6(%arg0: i32) -> (i32, i32) {
    %c0_i32 = arith.constant 0 : i32
    %c0_i32_0 = arith.constant 0 : i32
    %c0_i32_1 = arith.constant 0 : i32
    return %c0_i32, %c0_i32_0 : i32, i32
  }
  func.func @transform_7(%arg0: i32) -> (i32, i32, i32) {
    %c0_i32 = arith.constant 0 : i32
    %c0_i32_0 = arith.constant 0 : i32
    %c0_i32_1 = arith.constant 0 : i32
    return %arg0, %c0_i32, %c0_i32_0 : i32, i32, i32
  }
}

module attributes {stable_mosaic.version = 11 : i64} {
  func.func @bottleneck_kernel(%arg0: i32, %arg1: memref<1x256x128xf32, #tpu.memory_space<vmem>>, %arg2: memref<128x128xbf16, #tpu.memory_space<vmem>>, %arg3: memref<1x128xf32, #tpu.memory_space<vmem>>, %arg4: memref<9x128x128xbf16, #tpu.memory_space<vmem>>, %arg5: memref<1x128xf32, #tpu.memory_space<vmem>>, %arg6: memref<128x128xbf16, #tpu.memory_space<vmem>>, %arg7: memref<1x128xf32, #tpu.memory_space<vmem>>, %arg8: memref<1x256x128xf32, #tpu.memory_space<vmem>>, %arg9: memref<18x18x128xf32, #tpu.memory_space<vmem>>) attributes {dimension_semantics = [#tpu.dimension_semantics<parallel>], iteration_bounds = array<i64: 2>, scalar_prefetch = 0 : i64, scratch_operands = 1 : i64, tpu.core_type = #tpu.core_type<tc>, window_params = [{transform_indices = @transform_0, window_bounds = array<i64: 1, 256, 128>}, {pipeline_mode = #tpu.pipeline_mode<synchronous>, transform_indices = @transform_1, window_bounds = array<i64: 128, 128>}, {pipeline_mode = #tpu.pipeline_mode<synchronous>, transform_indices = @transform_2, window_bounds = array<i64: 1, 128>}, {pipeline_mode = #tpu.pipeline_mode<synchronous>, transform_indices = @transform_3, window_bounds = array<i64: 9, 128, 128>}, {pipeline_mode = #tpu.pipeline_mode<synchronous>, transform_indices = @transform_4, window_bounds = array<i64: 1, 128>}, {pipeline_mode = #tpu.pipeline_mode<synchronous>, transform_indices = @transform_5, window_bounds = array<i64: 128, 128>}, {pipeline_mode = #tpu.pipeline_mode<synchronous>, transform_indices = @transform_6, window_bounds = array<i64: 1, 128>}, {transform_indices = @transform_7, window_bounds = array<i64: 1, 256, 128>}]} {
    %c0 = arith.constant 0 : index
    %c0_0 = arith.constant 0 : index
    %c0_1 = arith.constant 0 : index
    %0 = vector.load %arg1[%c0, %c0_0, %c0_1] : memref<1x256x128xf32, #tpu.memory_space<vmem>>, vector<1x256x128xf32>
    %1 = vector.shape_cast %0 : vector<1x256x128xf32> to vector<256x128xf32>
    %2 = arith.truncf %1 : vector<256x128xf32> to vector<256x128xbf16>
    %c0_2 = arith.constant 0 : index
    %c0_3 = arith.constant 0 : index
    %3 = vector.load %arg2[%c0_2, %c0_3] : memref<128x128xbf16, #tpu.memory_space<vmem>>, vector<128x128xbf16>
    %cst = arith.constant dense<0.000000e+00> : vector<256x128xf32>
    %4 = tpu.matmul %2, %3, %cst {dimension_numbers = #tpu.dot_dimension_numbers<[1], [0], [0], [1], [0, 0, 1, 1], [], []>} : vector<256x128xbf16>, vector<128x128xbf16>, vector<256x128xf32> -> vector<256x128xf32>
    %c0_4 = arith.constant 0 : index
    %c0_5 = arith.constant 0 : index
    %5 = vector.load %arg3[%c0_4, %c0_5] : memref<1x128xf32, #tpu.memory_space<vmem>>, vector<1x128xf32>
    %6 = vector.broadcast %5 : vector<1x128xf32> to vector<256x128xf32>
    %7 = arith.addf %4, %6 : vector<256x128xf32>
    %cst_6 = arith.constant 0.000000e+00 : f32
    %8 = vector.broadcast %cst_6 : f32 to vector<256x128xf32>
    %9 = arith.maximumf %7, %8 : vector<256x128xf32>
    %cst_7 = arith.constant 0.000000e+00 : f32
    %10 = vector.broadcast %cst_7 : f32 to vector<1x18x128xf32>
    %c0_8 = arith.constant 0 : index
    %c0_9 = arith.constant 0 : index
    %c0_10 = arith.constant 0 : index
    %11 = vector.load %arg9[%c0_8, %c0_9, %c0_10] : memref<18x18x128xf32, #tpu.memory_space<vmem>>, vector<1x18x128xf32>
    tpu.vector_store %arg9[%c0_8, %c0_9, %c0_10], %10 {strides = array<i32>} : memref<18x18x128xf32, #tpu.memory_space<vmem>>, vector<1x18x128xf32>,
    %cst_11 = arith.constant 0.000000e+00 : f32
    %12 = vector.broadcast %cst_11 : f32 to vector<1x18x128xf32>
    %c17 = arith.constant 17 : index
    %c0_12 = arith.constant 0 : index
    %c0_13 = arith.constant 0 : index
    %13 = vector.load %arg9[%c17, %c0_12, %c0_13] : memref<18x18x128xf32, #tpu.memory_space<vmem>>, vector<1x18x128xf32>
    tpu.vector_store %arg9[%c17, %c0_12, %c0_13], %12 {strides = array<i32>} : memref<18x18x128xf32, #tpu.memory_space<vmem>>, vector<1x18x128xf32>,
    %cst_14 = arith.constant 0.000000e+00 : f32
    %14 = vector.broadcast %cst_14 : f32 to vector<16x1x128xf32>
    %c1 = arith.constant 1 : index
    %c0_15 = arith.constant 0 : index
    %c0_16 = arith.constant 0 : index
    %15 = vector.load %arg9[%c1, %c0_15, %c0_16] : memref<18x18x128xf32, #tpu.memory_space<vmem>>, vector<16x1x128xf32>
    tpu.vector_store %arg9[%c1, %c0_15, %c0_16], %14 {strides = array<i32>} : memref<18x18x128xf32, #tpu.memory_space<vmem>>, vector<16x1x128xf32>,
    %cst_17 = arith.constant 0.000000e+00 : f32
    %16 = vector.broadcast %cst_17 : f32 to vector<16x1x128xf32>
    %c1_18 = arith.constant 1 : index
    %c17_19 = arith.constant 17 : index
    %c0_20 = arith.constant 0 : index
    %17 = vector.load %arg9[%c1_18, %c17_19, %c0_20] : memref<18x18x128xf32, #tpu.memory_space<vmem>>, vector<16x1x128xf32>
    tpu.vector_store %arg9[%c1_18, %c17_19, %c0_20], %16 {strides = array<i32>} : memref<18x18x128xf32, #tpu.memory_space<vmem>>, vector<16x1x128xf32>,
    %18 = vector.shape_cast %9 : vector<256x128xf32> to vector<16x16x128xf32>
    %c1_21 = arith.constant 1 : index
    %c1_22 = arith.constant 1 : index
    %c0_23 = arith.constant 0 : index
    %19 = vector.load %arg9[%c1_21, %c1_22, %c0_23] : memref<18x18x128xf32, #tpu.memory_space<vmem>>, vector<16x16x128xf32>
    tpu.vector_store %arg9[%c1_21, %c1_22, %c0_23], %18 {strides = array<i32>} : memref<18x18x128xf32, #tpu.memory_space<vmem>>, vector<16x16x128xf32>,
    %c0_24 = arith.constant 0 : index
    %c0_25 = arith.constant 0 : index
    %c0_26 = arith.constant 0 : index
    %20 = vector.load %arg9[%c0_24, %c0_25, %c0_26] : memref<18x18x128xf32, #tpu.memory_space<vmem>>, vector<16x16x128xf32>
    %21 = vector.shape_cast %20 : vector<16x16x128xf32> to vector<256x128xf32>
    %22 = arith.truncf %21 : vector<256x128xf32> to vector<256x128xbf16>
    %c0_27 = arith.constant 0 : index
    %c0_28 = arith.constant 0 : index
    %c0_29 = arith.constant 0 : index
    %23 = vector.load %arg4[%c0_27, %c0_28, %c0_29] : memref<9x128x128xbf16, #tpu.memory_space<vmem>>, vector<1x128x128xbf16>
    %24 = vector.shape_cast %23 : vector<1x128x128xbf16> to vector<128x128xbf16>
    %cst_30 = arith.constant dense<0.000000e+00> : vector<256x128xf32>
    %25 = tpu.matmul %22, %24, %cst_30 {dimension_numbers = #tpu.dot_dimension_numbers<[1], [0], [0], [1], [0, 0, 1, 1], [], []>} : vector<256x128xbf16>, vector<128x128xbf16>, vector<256x128xf32> -> vector<256x128xf32>
    %c0_31 = arith.constant 0 : index
    %c1_32 = arith.constant 1 : index
    %c0_33 = arith.constant 0 : index
    %26 = vector.load %arg9[%c0_31, %c1_32, %c0_33] : memref<18x18x128xf32, #tpu.memory_space<vmem>>, vector<16x16x128xf32>
    %27 = vector.shape_cast %26 : vector<16x16x128xf32> to vector<256x128xf32>
    %28 = arith.truncf %27 : vector<256x128xf32> to vector<256x128xbf16>
    %c1_34 = arith.constant 1 : index
    %c0_35 = arith.constant 0 : index
    %c0_36 = arith.constant 0 : index
    %29 = vector.load %arg4[%c1_34, %c0_35, %c0_36] : memref<9x128x128xbf16, #tpu.memory_space<vmem>>, vector<1x128x128xbf16>
    %30 = vector.shape_cast %29 : vector<1x128x128xbf16> to vector<128x128xbf16>
    %cst_37 = arith.constant dense<0.000000e+00> : vector<256x128xf32>
    %31 = tpu.matmul %28, %30, %cst_37 {dimension_numbers = #tpu.dot_dimension_numbers<[1], [0], [0], [1], [0, 0, 1, 1], [], []>} : vector<256x128xbf16>, vector<128x128xbf16>, vector<256x128xf32> -> vector<256x128xf32>
    %32 = arith.addf %25, %31 : vector<256x128xf32>
    %c0_38 = arith.constant 0 : index
    %c2 = arith.constant 2 : index
    %c0_39 = arith.constant 0 : index
    %33 = vector.load %arg9[%c0_38, %c2, %c0_39] : memref<18x18x128xf32, #tpu.memory_space<vmem>>, vector<16x16x128xf32>
    %34 = vector.shape_cast %33 : vector<16x16x128xf32> to vector<256x128xf32>
    %35 = arith.truncf %34 : vector<256x128xf32> to vector<256x128xbf16>
    %c2_40 = arith.constant 2 : index
    %c0_41 = arith.constant 0 : index
    %c0_42 = arith.constant 0 : index
    %36 = vector.load %arg4[%c2_40, %c0_41, %c0_42] : memref<9x128x128xbf16, #tpu.memory_space<vmem>>, vector<1x128x128xbf16>
    %37 = vector.shape_cast %36 : vector<1x128x128xbf16> to vector<128x128xbf16>
    %cst_43 = arith.constant dense<0.000000e+00> : vector<256x128xf32>
    %38 = tpu.matmul %35, %37, %cst_43 {dimension_numbers = #tpu.dot_dimension_numbers<[1], [0], [0], [1], [0, 0, 1, 1], [], []>} : vector<256x128xbf16>, vector<128x128xbf16>, vector<256x128xf32> -> vector<256x128xf32>
    %39 = arith.addf %32, %38 : vector<256x128xf32>
    %c1_44 = arith.constant 1 : index
    %c0_45 = arith.constant 0 : index
    %c0_46 = arith.constant 0 : index
    %40 = vector.load %arg9[%c1_44, %c0_45, %c0_46] : memref<18x18x128xf32, #tpu.memory_space<vmem>>, vector<16x16x128xf32>
    %41 = vector.shape_cast %40 : vector<16x16x128xf32> to vector<256x128xf32>
    %42 = arith.truncf %41 : vector<256x128xf32> to vector<256x128xbf16>
    %c3 = arith.constant 3 : index
    %c0_47 = arith.constant 0 : index
    %c0_48 = arith.constant 0 : index
    %43 = vector.load %arg4[%c3, %c0_47, %c0_48] : memref<9x128x128xbf16, #tpu.memory_space<vmem>>, vector<1x128x128xbf16>
    %44 = vector.shape_cast %43 : vector<1x128x128xbf16> to vector<128x128xbf16>
    %cst_49 = arith.constant dense<0.000000e+00> : vector<256x128xf32>
    %45 = tpu.matmul %42, %44, %cst_49 {dimension_numbers = #tpu.dot_dimension_numbers<[1], [0], [0], [1], [0, 0, 1, 1], [], []>} : vector<256x128xbf16>, vector<128x128xbf16>, vector<256x128xf32> -> vector<256x128xf32>
    %46 = arith.addf %39, %45 : vector<256x128xf32>
    %c1_50 = arith.constant 1 : index
    %c1_51 = arith.constant 1 : index
    %c0_52 = arith.constant 0 : index
    %47 = vector.load %arg9[%c1_50, %c1_51, %c0_52] : memref<18x18x128xf32, #tpu.memory_space<vmem>>, vector<16x16x128xf32>
    %48 = vector.shape_cast %47 : vector<16x16x128xf32> to vector<256x128xf32>
    %49 = arith.truncf %48 : vector<256x128xf32> to vector<256x128xbf16>
    %c4 = arith.constant 4 : index
    %c0_53 = arith.constant 0 : index
    %c0_54 = arith.constant 0 : index
    %50 = vector.load %arg4[%c4, %c0_53, %c0_54] : memref<9x128x128xbf16, #tpu.memory_space<vmem>>, vector<1x128x128xbf16>
    %51 = vector.shape_cast %50 : vector<1x128x128xbf16> to vector<128x128xbf16>
    %cst_55 = arith.constant dense<0.000000e+00> : vector<256x128xf32>
    %52 = tpu.matmul %49, %51, %cst_55 {dimension_numbers = #tpu.dot_dimension_numbers<[1], [0], [0], [1], [0, 0, 1, 1], [], []>} : vector<256x128xbf16>, vector<128x128xbf16>, vector<256x128xf32> -> vector<256x128xf32>
    %53 = arith.addf %46, %52 : vector<256x128xf32>
    %c1_56 = arith.constant 1 : index
    %c2_57 = arith.constant 2 : index
    %c0_58 = arith.constant 0 : index
    %54 = vector.load %arg9[%c1_56, %c2_57, %c0_58] : memref<18x18x128xf32, #tpu.memory_space<vmem>>, vector<16x16x128xf32>
    %55 = vector.shape_cast %54 : vector<16x16x128xf32> to vector<256x128xf32>
    %56 = arith.truncf %55 : vector<256x128xf32> to vector<256x128xbf16>
    %c5 = arith.constant 5 : index
    %c0_59 = arith.constant 0 : index
    %c0_60 = arith.constant 0 : index
    %57 = vector.load %arg4[%c5, %c0_59, %c0_60] : memref<9x128x128xbf16, #tpu.memory_space<vmem>>, vector<1x128x128xbf16>
    %58 = vector.shape_cast %57 : vector<1x128x128xbf16> to vector<128x128xbf16>
    %cst_61 = arith.constant dense<0.000000e+00> : vector<256x128xf32>
    %59 = tpu.matmul %56, %58, %cst_61 {dimension_numbers = #tpu.dot_dimension_numbers<[1], [0], [0], [1], [0, 0, 1, 1], [], []>} : vector<256x128xbf16>, vector<128x128xbf16>, vector<256x128xf32> -> vector<256x128xf32>
    %60 = arith.addf %53, %59 : vector<256x128xf32>
    %c2_62 = arith.constant 2 : index
    %c0_63 = arith.constant 0 : index
    %c0_64 = arith.constant 0 : index
    %61 = vector.load %arg9[%c2_62, %c0_63, %c0_64] : memref<18x18x128xf32, #tpu.memory_space<vmem>>, vector<16x16x128xf32>
    %62 = vector.shape_cast %61 : vector<16x16x128xf32> to vector<256x128xf32>
    %63 = arith.truncf %62 : vector<256x128xf32> to vector<256x128xbf16>
    %c6 = arith.constant 6 : index
    %c0_65 = arith.constant 0 : index
    %c0_66 = arith.constant 0 : index
    %64 = vector.load %arg4[%c6, %c0_65, %c0_66] : memref<9x128x128xbf16, #tpu.memory_space<vmem>>, vector<1x128x128xbf16>
    %65 = vector.shape_cast %64 : vector<1x128x128xbf16> to vector<128x128xbf16>
    %cst_67 = arith.constant dense<0.000000e+00> : vector<256x128xf32>
    %66 = tpu.matmul %63, %65, %cst_67 {dimension_numbers = #tpu.dot_dimension_numbers<[1], [0], [0], [1], [0, 0, 1, 1], [], []>} : vector<256x128xbf16>, vector<128x128xbf16>, vector<256x128xf32> -> vector<256x128xf32>
    %67 = arith.addf %60, %66 : vector<256x128xf32>
    %c2_68 = arith.constant 2 : index
    %c1_69 = arith.constant 1 : index
    %c0_70 = arith.constant 0 : index
    %68 = vector.load %arg9[%c2_68, %c1_69, %c0_70] : memref<18x18x128xf32, #tpu.memory_space<vmem>>, vector<16x16x128xf32>
    %69 = vector.shape_cast %68 : vector<16x16x128xf32> to vector<256x128xf32>
    %70 = arith.truncf %69 : vector<256x128xf32> to vector<256x128xbf16>
    %c7 = arith.constant 7 : index
    %c0_71 = arith.constant 0 : index
    %c0_72 = arith.constant 0 : index
    %71 = vector.load %arg4[%c7, %c0_71, %c0_72] : memref<9x128x128xbf16, #tpu.memory_space<vmem>>, vector<1x128x128xbf16>
    %72 = vector.shape_cast %71 : vector<1x128x128xbf16> to vector<128x128xbf16>
    %cst_73 = arith.constant dense<0.000000e+00> : vector<256x128xf32>
    %73 = tpu.matmul %70, %72, %cst_73 {dimension_numbers = #tpu.dot_dimension_numbers<[1], [0], [0], [1], [0, 0, 1, 1], [], []>} : vector<256x128xbf16>, vector<128x128xbf16>, vector<256x128xf32> -> vector<256x128xf32>
    %74 = arith.addf %67, %73 : vector<256x128xf32>
    %c2_74 = arith.constant 2 : index
    %c2_75 = arith.constant 2 : index
    %c0_76 = arith.constant 0 : index
    %75 = vector.load %arg9[%c2_74, %c2_75, %c0_76] : memref<18x18x128xf32, #tpu.memory_space<vmem>>, vector<16x16x128xf32>
    %76 = vector.shape_cast %75 : vector<16x16x128xf32> to vector<256x128xf32>
    %77 = arith.truncf %76 : vector<256x128xf32> to vector<256x128xbf16>
    %c8 = arith.constant 8 : index
    %c0_77 = arith.constant 0 : index
    %c0_78 = arith.constant 0 : index
    %78 = vector.load %arg4[%c8, %c0_77, %c0_78] : memref<9x128x128xbf16, #tpu.memory_space<vmem>>, vector<1x128x128xbf16>
    %79 = vector.shape_cast %78 : vector<1x128x128xbf16> to vector<128x128xbf16>
    %cst_79 = arith.constant dense<0.000000e+00> : vector<256x128xf32>
    %80 = tpu.matmul %77, %79, %cst_79 {dimension_numbers = #tpu.dot_dimension_numbers<[1], [0], [0], [1], [0, 0, 1, 1], [], []>} : vector<256x128xbf16>, vector<128x128xbf16>, vector<256x128xf32> -> vector<256x128xf32>
    %81 = arith.addf %74, %80 : vector<256x128xf32>
    %c0_80 = arith.constant 0 : index
    %c0_81 = arith.constant 0 : index
    %82 = vector.load %arg5[%c0_80, %c0_81] : memref<1x128xf32, #tpu.memory_space<vmem>>, vector<1x128xf32>
    %83 = vector.broadcast %82 : vector<1x128xf32> to vector<256x128xf32>
    %84 = arith.addf %81, %83 : vector<256x128xf32>
    %cst_82 = arith.constant 0.000000e+00 : f32
    %85 = vector.broadcast %cst_82 : f32 to vector<256x128xf32>
    %86 = arith.maximumf %84, %85 : vector<256x128xf32>
    %87 = arith.truncf %86 : vector<256x128xf32> to vector<256x128xbf16>
    %c0_83 = arith.constant 0 : index
    %c0_84 = arith.constant 0 : index
    %88 = vector.load %arg6[%c0_83, %c0_84] : memref<128x128xbf16, #tpu.memory_space<vmem>>, vector<128x128xbf16>
    %cst_85 = arith.constant dense<0.000000e+00> : vector<256x128xf32>
    %89 = tpu.matmul %87, %88, %cst_85 {dimension_numbers = #tpu.dot_dimension_numbers<[1], [0], [0], [1], [0, 0, 1, 1], [], []>} : vector<256x128xbf16>, vector<128x128xbf16>, vector<256x128xf32> -> vector<256x128xf32>
    %c0_86 = arith.constant 0 : index
    %c0_87 = arith.constant 0 : index
    %90 = vector.load %arg7[%c0_86, %c0_87] : memref<1x128xf32, #tpu.memory_space<vmem>>, vector<1x128xf32>
    %91 = vector.broadcast %90 : vector<1x128xf32> to vector<256x128xf32>
    %92 = arith.addf %89, %91 : vector<256x128xf32>
    %93 = arith.addf %92, %1 : vector<256x128xf32>
    %cst_88 = arith.constant 0.000000e+00 : f32
    %94 = vector.broadcast %cst_88 : f32 to vector<256x128xf32>
    %95 = arith.maximumf %93, %94 : vector<256x128xf32>
    %c0_89 = arith.constant 0 : index
    %c0_90 = arith.constant 0 : index
    %c0_91 = arith.constant 0 : index
    %96 = vector.load %arg8[%c0_89, %c0_90, %c0_91] : memref<1x256x128xf32, #tpu.memory_space<vmem>>, vector<1x256x128xf32>
    %97 = vector.shape_cast %96 : vector<1x256x128xf32> to vector<256x128xf32>
    %98 = vector.shape_cast %95 : vector<256x128xf32> to vector<1x256x128xf32>
    tpu.vector_store %arg8[%c0_89, %c0_90, %c0_91], %98 {strides = array<i32>} : memref<1x256x128xf32, #tpu.memory_space<vmem>>, vector<1x256x128xf32>,
    return
  }
  func.func @transform_0(%arg0: i32) -> (i32, i32, i32) {
    %c0_i32 = arith.constant 0 : i32
    %c0_i32_0 = arith.constant 0 : i32
    %c0_i32_1 = arith.constant 0 : i32
    return %arg0, %c0_i32, %c0_i32_0 : i32, i32, i32
  }
  func.func @transform_1(%arg0: i32) -> (i32, i32) {
    %c0_i32 = arith.constant 0 : i32
    %c0_i32_0 = arith.constant 0 : i32
    %c0_i32_1 = arith.constant 0 : i32
    return %c0_i32, %c0_i32_0 : i32, i32
  }
  func.func @transform_2(%arg0: i32) -> (i32, i32) {
    %c0_i32 = arith.constant 0 : i32
    %c0_i32_0 = arith.constant 0 : i32
    %c0_i32_1 = arith.constant 0 : i32
    return %c0_i32, %c0_i32_0 : i32, i32
  }
  func.func @transform_3(%arg0: i32) -> (i32, i32, i32) {
    %c0_i32 = arith.constant 0 : i32
    %c0_i32_0 = arith.constant 0 : i32
    %c0_i32_1 = arith.constant 0 : i32
    %c0_i32_2 = arith.constant 0 : i32
    return %c0_i32, %c0_i32_0, %c0_i32_1 : i32, i32, i32
  }
  func.func @transform_4(%arg0: i32) -> (i32, i32) {
    %c0_i32 = arith.constant 0 : i32
    %c0_i32_0 = arith.constant 0 : i32
    %c0_i32_1 = arith.constant 0 : i32
    return %c0_i32, %c0_i32_0 : i32, i32
  }
  func.func @transform_5(%arg0: i32) -> (i32, i32) {
    %c0_i32 = arith.constant 0 : i32
    %c0_i32_0 = arith.constant 0 : i32
    %c0_i32_1 = arith.constant 0 : i32
    return %c0_i32, %c0_i32_0 : i32, i32
  }
  func.func @transform_6(%arg0: i32) -> (i32, i32) {
    %c0_i32 = arith.constant 0 : i32
    %c0_i32_0 = arith.constant 0 : i32
    %c0_i32_1 = arith.constant 0 : i32
    return %c0_i32, %c0_i32_0 : i32, i32
  }
  func.func @transform_7(%arg0: i32) -> (i32, i32, i32) {
    %c0_i32 = arith.constant 0 : i32
    %c0_i32_0 = arith.constant 0 : i32
    %c0_i32_1 = arith.constant 0 : i32
    return %arg0, %c0_i32, %c0_i32_0 : i32, i32, i32
  }
}

</mosaic_0001>

<bundles_post_ra>
// kernel: tpu_custom_call.1
= control target key start
LH: loop header
LB: loop body
LE: loop exit
PB: predicated region body
PF: predicated region fallthrough
CT: control target
= control target key end

     0   :  { %s5245_s0 = inlined_call_operand.hbm [shape: f32[2,256,128], index: 0, kind: input, shape index: {}]   ;;  %s5246_s1 = inlined_call_operand.hbm [shape: bf16[128,128], index: 1, kind: input, shape index: {}]   ;;  %s5247_s2 = inlined_call_operand.vmem [shape: f32[1,128], index: 2, kind: input, shape index: {}]   ;;  %s5248_s3 = inlined_call_operand.hbm [shape: bf16[9,128,128], index: 3, kind: input, shape index: {}]   ;;  %s5249_s4 = inlined_call_operand.vmem [shape: f32[1,128], index: 4, kind: input, shape index: {}]   ;;  %s5250_s5 = inlined_call_operand.hbm [shape: bf16[128,128], index: 5, kind: input, shape index: {}]   ;;  %s5251_s6 = inlined_call_operand.vmem [shape: f32[1,128], index: 6, kind: input, shape index: {}]   ;;  %s5252_s7 = inlined_call_operand.hbm [shape: f32[2,256,128], index: 7, kind: output, shape index: {}]  }
   0x1   :  { %5253 = sst [smem:[#allocation93_spill]] %s5246_s1 }
   0x2   :  { %12 = vsyncpa [#allocation4], 0 }
   0x3   :  { %14 = vsyncpa [#allocation4 + $0x1], 0 }
   0x4   :  { %15 = vsyncpa [#allocation7], 0 }
   0x5   :  { %16 = vsyncpa [#allocation10], 0 }
   0x6   :  { %17 = vsyncpa [#allocation5], 0 }
   0x7   :  { %19 = vsyncpa [#allocation5 + $0x1], 0  ;;  %s4008_s24 = smov 0   ;;  %s4010_s25 = smov 0  }
   0x8   :  { %s4012_s26 = smov 0   ;;  %s4014_s27 = smov 0  }
   0x9 LB: > { %s4029_s28 = sadd.s32 4294967295, %s3955_s27   ;;  %s3155_s29 = sadd.s32 4294967294, %s3955_s27   ;;  %s3955_s27 = sphi %s4014_s27, %s5419_s27   ;;  %s3951_s26 = sphi %s4012_s26, %s5418_s26   ;;  %s3947_s25 = sphi %s4010_s25, %s5417_s25   ;;  %s3943_s24 = sphi %s4008_s24, %s5416_s24  }
   0xa   : > { %p45_p0 = scmp.ne.s32.totalorder %s3947_s25, %s3943_s24  ;;  %p46_p1 = scmp.eq.s32.totalorder %s4029_s28, 0 }
   0xb   : > { %p195_p2 = scmp.eq.s32.totalorder %s4029_s28, 1  ;;  %p201_p3 = scmp.eq.s32.totalorder %s3155_s29, 1 }
   0xc   : > { %p4038_p4 = por %p46_p1, %p45_p0  ;;  %p3156_p5 = scmp.ge.s32.totalorder %s3955_s27, 1 }
   0xd   : > { %p4043_p6 = por %p201_p3, %p45_p0  ;;  %p208_p7 = scmp.lt.s32.totalorder %s3955_s27, 3 }
   0xe   : > { %s5256_s1 = sld [smem:[#allocation93_spill]]  ;;  %s3957_s13 = smov [#allocation6]  }
   0xf   : > { %p4051_p8 = pnand %p3156_p5, %p208_p7  ;;  %s221_s14 = sshll.u32 %s3957_s13, 4  ;;  %s222_s14 = int_to_ptr.vmem [resolvable:$true] %s221_s14 }
  0x10   : > { %s236_s18 = sshll.u32 %s5248_s3, 4  ;;  %s3958_s19 = smov 64   ;;  %s237_s18 = int_to_ptr.hbm [resolvable:$true] %s236_s18 }
  0x11   : > { %p3657_p9 = pneg %p4051_p8  ;;  %s3959_s20 = smov 4  }
  0x12   : > { %s3960_s21 = smov [#allocation8]   ;;  %s253_s9 = sshll.u32 %s5250_s5, 4  ;;  %s254_s9 = int_to_ptr.hbm [resolvable:$true] %s253_s9 }
  0x13   : > { %p4059_p10 = pnand %p3657_p9, %p46_p1  ;;  %s238_s22 = sshll.u32 %s3960_s21, 4  ;;  %s239_s22 = int_to_ptr.vmem [resolvable:$true] %s238_s22 }
  0x14   : > { %s219_s11 = sshll.u32 %s5256_s1, 4  ;;  %s3961_s10 = smov [#allocation9]   ;;  %s220_s11 = int_to_ptr.hbm [resolvable:$true] %s219_s11 }
  0x15   : > { %3660 = dma.hbm_to_vmem [thread:$0]  (!%p4059_p10), %s220_s11, 1024, %s222_s14, [#allocation7], %s3958_s19, %s3958_s19, %s3959_s20  }
  0x16   : > { %3663 = dma.hbm_to_vmem [thread:$0]  (!%p4059_p10), %s237_s18, 9216, %s239_s22, [#allocation7], %s3958_s19, %s3958_s19, %s3959_s20  }
  0x17   : > { %s255_s13 = sshll.u32 %s3961_s10, 4  ;;  %s4075_s11 = sadd.s32 1, %s3955_s27   ;;  %s256_s13 = int_to_ptr.vmem [resolvable:$true] %s255_s13 }
  0x18   : > { %3666 = dma.hbm_to_vmem [thread:$0]  (!%p4059_p10), %s254_s9, 1024, %s256_s13, [#allocation10], %s3958_s19, %s3958_s19, %s3959_s20  }
  0x19   : > { %s29_s14 = ssub.s32 %s3955_s27, %s4075_s11  ;;  %s32_s16 = sadd.s32 1, %s3951_s26 }
  0x1a   : > { %p30_p12 = scmp.eq.s32.totalorder %s29_s14, 0  ;;  %p39_p13 = scmp.ne.s32.totalorder %s3951_s26, %s3947_s25 }
  0x1b   : > { %p40_p0 = scmp.eq.s32.totalorder %s3955_s27, 0  ;;  %p3678_p3 = scmp.lt.s32.totalorder %s3955_s27, 2 }
  0x1c   : > { %s4087_s17 = scalar_select %p30_p12, %s3951_s26, %s32_s16  }
  0x1d   : > { %p41_p5 = por %p40_p0, %p39_p13  ;;  %p4091_p7 = por %p195_p2, %p39_p13 }
  0x1e   : > { %s272_s21 = sand.u32 1, %s3951_s26   ;;  %s3527_s22 = sshll.u32 %s3955_s27, 8 }
  0x1f   : > { %s3161_s15 = sshll.u32 %s272_s21, 8  ;;  %s281_s20 = scalar_lea.hbm %s5245_s0, %s3527_s22 }
  0x20   : > { %s282_s29 = sshll.u32 %s281_s20, 4  ;;  %s276_s9 = scalar_lea.vmem [#allocation3], %s3161_s15  ;;  %s283_s29 = int_to_ptr.hbm [resolvable:$true] %s282_s29 }
  0x21   : > { %s284_s10 = sshll.u32 %s276_s9, 4  ;;  %p4102_p9 = pnand %p3678_p3, %p41_p5  ;;  %s285_s10 = int_to_ptr.vmem [resolvable:$true] %s284_s10 }
  0x22   : > { %s273_s14 = scalar_lea.sflag [#allocation4], %s272_s21  ;;  %s3851_s16 = sshra.s32 %s283_s29, 4  ;;  %s3852_s16 = int_to_ptr.hbm [resolvable:$true] %s3851_s16 }
  0x23   : > { %s3853_s1 = scalar_lea.hbm %s3852_s16, 256  ;;  %p3855_p10 = pneg %p4102_p9 }
  0x24   : > { %p3854_p2 = scmp.ne.s32.totalorder %s3852_s16, %s3853_s1  ;;  %s3858_s23 = scalar_lea.hbm %s5245_s0, 512 }
  0x25   : > { %p3859_p0 = scmp.lt.s32.totalorder %s3852_s16, %s5245_s0  ;;  %p3860_p3 = scmp.lt.s32.totalorder %s3858_s23, %s3853_s1 }
  0x26   : > { %p3856_p12 = pnand %p3855_p10, %p3854_p2 }
  0x27   : > { %p3861_p5 = por %p3860_p3, %p3859_p0 }
  0x28   : > { %p3857_p13 = pneg %p3856_p12 }
  0x2a   : > { %p3862_p11 = pnand %p3861_p5, %p3857_p13 }
  0x2c   : > { %3865 = shalt.err (!%p3862_p11)
}
  0x2d   : > { %s3962_s21 = smov 128   ;;  %s3963_s9 = smov 8  }
  0x2e   : > { %3670 = dma.hbm_to_vmem [thread:$0]  (!%p4102_p9), %s283_s29, 4096, %s285_s10, %s273_s14, %s3962_s21, %s3962_s21, %s3963_s9  }
  0x2f   : > { %296 = sbr.rel (%p4051_p8) target bundleno = 1334 (0x536), region = 48 }
  0x34   : > { %s4119_s22 = sand.u32 1, %s3947_s25  }
  0x35   : > { %s3165_s16 = sshll.u32 %s4119_s22, 8  ;;  %s299_s1 = scalar_lea.sflag [#allocation4], %s4119_s22 }
  0x36   : > { %s4125_s15 = scalar_lea.vmem [#allocation3], %s3165_s16 }
  0x37   : > { %3926 = dma.done.wait (%p4038_p4), %s299_s1, 4096  }
  0x38   : > { %3928 = vsyncadd (%p4038_p4), %s299_s1, 4294963200 }
  0x39   : > { %3930 = dma.done.wait (%p46_p1), [#allocation7], 10240  }
  0x3a   : > { %3932 = vsyncadd (%p46_p1), [#allocation7], 4294957056 }
  0x3b   : > { %3934 = dma.done.wait (%p46_p1), [#allocation10], 1024  }
  0x3c   : > { %3936 = vsyncadd (%p46_p1), [#allocation10], 4294966272  ;;  %v3535_v0 = vld [vmem:[#allocation6 + $0x38] sm:$0xff]  ;;  %v3534_v1 = vld [vmem:[#allocation6 + $0x30] sm:$0xff]  ;;  %v3964_v37 = vmov 0.0   ;;  %v3965_v49 = vmov 0.0|0.0  }
  0x3d   : > { %465 = vmatpush.bf16.msra.mxu0 %v3535_v0  ;;  %3617 = vmatpush.bf16.msra.mxu3 %v3535_v0  ;;  %v3533_v2 = vld [vmem:[#allocation6 + $0x28] sm:$0xff]  ;;  %v3532_v3 = vld [vmem:[#allocation6 + $0x20] sm:$0xff]  ;;  %v3531_v4 = vld [vmem:[#allocation6 + $0x18] sm:$0xff]  ;;  %586 = vst [vmem:[#allocation2] sm:$0xff] %v3964_v37  ;;  %s5059_s23 = scalar_lea.vmem [#allocation11], %s3165_s16  ;;  %s3616_s19 = sshll.u32 %s4029_s28, 8 }
  0x3e   : > { %v3530_v5 = vld [vmem:[#allocation6 + $0x10] sm:$0xff]  ;;  %v3529_v6 = vld [vmem:[#allocation6 + $0x8] sm:$0xff]  ;;  %v3528_v7 = vld [vmem:[#allocation6] sm:$0xff]  ;;  %587 = vst [vmem:[#allocation2 + $0x8] sm:$0xff] %v3964_v37  ;;  %s3049_s9 = scalar_lea.hbm %s5252_s7, %s3616_s19  ;;  %s3050_s16 = sshll.u32 %s5059_s23, 4  ;;  %s3051_s16 = int_to_ptr.vmem [resolvable:$true] %s3050_s16 }
  0x3f   : > { %v349_v8 = vld [vmem:[%s4125_s15] sm:$0xff]  ;;  %v350_v9 = vld [vmem:[%s4125_s15 + $0x8] sm:$0xff]  ;;  %v351_v11 = vld [vmem:[%s4125_s15 + $0x10] sm:$0xff]  ;;  %588 = vst [vmem:[#allocation2 + $0x10] sm:$0x3] %v3964_v37  ;;  %s3052_s1 = sshll.u32 %s3049_s9, 4  ;;  %s3053_s1 = int_to_ptr.hbm [resolvable:$true] %s3052_s1 }
  0x40   : > { %v381_v10 = vpack.c.bf16 %v350_v9, %v349_v8  ;;  %v352_v12 = vld [vmem:[%s4125_s15 + $0x18] sm:$0xff]  ;;  %v353_v14 = vld [vmem:[%s4125_s15 + $0x20] sm:$0xff]  ;;  %v354_v15 = vld [vmem:[%s4125_s15 + $0x28] sm:$0xff]  ;;  %590 = vst [vmem:[#allocation2 + $0x198] sm:$0xff] %v3964_v37  ;;  %s3038_s30 = scalar_lea.sflag [#allocation5], %s4119_s22  ;;  %s3895_s28 = sshra.s32 %s3053_s1, 4  ;;  %s3896_s28 = int_to_ptr.hbm [resolvable:$true] %s3895_s28 }
  0x41   : > { %466 = vmatpush.bf16.msra.mxu0 %v3534_v1  ;;  %3618 = vmatpush.bf16.msra.mxu3 %v3534_v1  ;;  %v382_v13 = vpack.c.bf16 %v352_v12, %v351_v11  ;;  %v383_v16 = vpack.c.bf16 %v354_v15, %v353_v14  ;;  %v355_v17 = vld [vmem:[%s4125_s15 + $0x30] sm:$0xff]  ;;  %v356_v18 = vld [vmem:[%s4125_s15 + $0x38] sm:$0xff]  ;;  %v357_v20 = vld [vmem:[%s4125_s15 + $0x40] sm:$0xff]  ;;  %591 = vst [vmem:[#allocation2 + $0x1a0] sm:$0xff] %v3964_v37  ;;  %s3897_s12 = scalar_lea.hbm %s3896_s28, 256  ;;  %s3901_s13 = scalar_lea.hbm %s5252_s7, 512 }
  0x42   : > { %v384_v19 = vpack.c.bf16 %v356_v18, %v355_v17  ;;  %v358_v21 = vld [vmem:[%s4125_s15 + $0x48] sm:$0xff]  ;;  %v3551_v22 = vld [vmem:[#allocation8 + $0x78] sm:$0xff]  ;;  %v3550_v24 = vld [vmem:[#allocation8 + $0x70] sm:$0xff]  ;;  %592 = vst [vmem:[#allocation2 + $0x1a8] sm:$0x3] %v3964_v37  ;;  %p3898_p1 = scmp.ne.s32.totalorder %s3896_s28, %s3897_s12  ;;  %p3902_p11 = scmp.lt.s32.totalorder %s3896_s28, %s5252_s7 }
  0x43   : > { %v385_v23 = vpack.c.bf16 %v358_v21, %v357_v20  ;;  %835 = vmatpush.bf16.msra.mxu1 %v3551_v22  ;;  %v4149_v25 = vld [vmem:[#allocation8 + $0x38] sm:$0xff]  ;;  %v3549_v26 = vld [vmem:[#allocation8 + $0x68] sm:$0xff]  ;;  %v4152_v27 = vld [vmem:[#allocation8 + $0x30] sm:$0xff]  ;;  %594 = vst [vmem:[#allocation2 + $0x18] sm:$0x1] %v3964_v37  ;;  %p3903_p9 = scmp.lt.s32.totalorder %s3901_s13, %s3897_s12 }
  0x44   : > { %972 = vmatpush.bf16.msra.mxu2 %v4149_v25  ;;  %v4155_v28 = vld [vmem:[#allocation8 + $0x28] sm:$0xff]  ;;  %v3548_v29 = vld [vmem:[#allocation8 + $0x60] sm:$0xff]  ;;  %v359_v30 = vld [vmem:[%s4125_s15 + $0x50] sm:$0xff]  ;;  %595 = vst [vmem:[#allocation2 + $0x30] sm:$0x1] %v3964_v37  ;;  %p3899_p4 = pnand %p3898_p1, %p4091_p7 }
  0x45   : > { %467 = vmatpush.bf16.msra.mxu0 %v3533_v2  ;;  %3619 = vmatpush.bf16.msra.mxu3 %v3533_v2  ;;  %v360_v31 = vld [vmem:[%s4125_s15 + $0x58] sm:$0xff]  ;;  %v4160_v34 = vld [vmem:[#allocation8 + $0x20] sm:$0xff]  ;;  %v3546_v35 = vld [vmem:[#allocation8 + $0x50] sm:$0xff]  ;;  %596 = vst [vmem:[#allocation2 + $0x48] sm:$0x1] %v3964_v37  ;;  %p3904_p2 = por %p3903_p9, %p3902_p11 }
  0x46   : > { %v3547_v32 = vld [vmem:[#allocation8 + $0x58] sm:$0xff]  ;;  %v386_v33 = vpack.c.bf16 %v360_v31, %v359_v30  ;;  %v3545_v38 = vld [vmem:[#allocation8 + $0x48] sm:$0xff]  ;;  %v4169_v39 = vld [vmem:[#allocation8 + $0x10] sm:$0xff]  ;;  %597 = vst [vmem:[#allocation2 + $0x60] sm:$0x1] %v3964_v37  ;;  %p3900_p8 = pneg %p3899_p4 }
  0x47   : > { %836 = vmatpush.bf16.msra.mxu1 %v3550_v24  ;;  %v4163_v36 = vld [vmem:[#allocation8 + $0x18] sm:$0xff]  ;;  %v3544_v40 = vld [vmem:[#allocation8 + $0x40] sm:$0xff]  ;;  %v362_v42 = vld [vmem:[%s4125_s15 + $0x68] sm:$0xff]  ;;  %598 = vst [vmem:[#allocation2 + $0x78] sm:$0x1] %v3964_v37 }
  0x48   : > { %973 = vmatpush.bf16.msra.mxu2 %v4152_v27  ;;  %v361_v41 = vld [vmem:[%s4125_s15 + $0x60] sm:$0xff]  ;;  %v722_v43 = vld [vmem:[#allocation2 + $0x1] sm:$0xff]  ;;  %v4180_v44 = vld [vmem:[#allocation8 + $0x8] sm:$0xff]  ;;  %599 = vst [vmem:[#allocation2 + $0x90] sm:$0x1] %v3964_v37  ;;  %p3905_p10 = pnand %p3904_p2, %p3900_p8 }
  0x49   : > { %468 = vmatpush.bf16.msra.mxu0 %v3532_v3  ;;  %3620 = vmatpush.bf16.msra.mxu3 %v3532_v3  ;;  %v723_v45 = vld [vmem:[#allocation2 + $0x9] sm:$0xff]  ;;  %v387_v46 = vpack.c.bf16 %v362_v42, %v361_v41  ;;  %600 = vst [vmem:[#allocation2 + $0xa8] sm:$0x1] %v3964_v37  ;;  %v363_v50 = vld [vmem:[%s4125_s15 + $0x70] sm:$0xff]  ;;  %v366_v54 = vld [vmem:[%s4125_s15 + $0x88] sm:$0xff] }
  0x4a   : > { %v754_v47 = vpack.c.bf16 %v723_v45, %v722_v43  ;;  %v4187_v48 = vld [vmem:[#allocation8] sm:$0xff]  ;;  %601 = vst [vmem:[#allocation2 + $0xc0] sm:$0x1] %v3964_v37  ;;  %v364_v51 = vld [vmem:[%s4125_s15 + $0x78] sm:$0xff]  ;;  %v4222_v55 = vld [vmem:[%s5247_s2] ss:$0 sm:$0xff] }
  0x4b   : > { %837 = vmatpush.bf16.msra.mxu1 %v3549_v26  ;;  %602 = vst [vmem:[#allocation2 + $0xd8] sm:$0x1] %v3964_v37  ;;  %v388_v52 = vpack.c.bf16 %v364_v51, %v363_v50  ;;  %v365_v53 = vld [vmem:[%s4125_s15 + $0x80] sm:$0xff]  ;;  %v3567_v59 = vld [vmem:[#allocation8 + $0xf8] sm:$0xff]  ;;  %v3566_v61 = vld [vmem:[#allocation8 + $0xf0] sm:$0xff] }
  0x4c   : > { %974 = vmatpush.bf16.msra.mxu2 %v4155_v28  ;;  %603 = vst [vmem:[#allocation2 + $0xf0] sm:$0x1] %v3964_v37  ;;  %v389_v56 = vpack.c.bf16 %v366_v54, %v365_v53  ;;  %v3565_v0 = vld [vmem:[#allocation8 + $0xe8] sm:$0xff]  ;;  %v367_v2 = vld [vmem:[%s4125_s15 + $0x90] sm:$0xff]  ;;  %v368_v3 = vld [vmem:[%s4125_s15 + $0x98] sm:$0xff] }
  0x4d   : > { %469 = vmatpush.bf16.msra.mxu0 %v3531_v4  ;;  %3621 = vmatpush.bf16.msra.mxu3 %v3531_v4  ;;  %604 = vst [vmem:[#allocation2 + $0x108] sm:$0x1] %v3964_v37  ;;  %v3563_v9 = vld [vmem:[#allocation8 + $0xd8] sm:$0xff]  ;;  %v374_v11 = vld [vmem:[%s4125_s15 + $0xc8] sm:$0xff]  ;;  %v3562_v17 = vld [vmem:[#allocation8 + $0xd0] sm:$0xff] }
  0x4e   : > { %605 = vst [vmem:[#allocation2 + $0x120] sm:$0x1] %v3964_v37  ;;  %v3561_v20 = vld [vmem:[#allocation8 + $0xc8] sm:$0xff]  ;;  %v375_v31 = vld [vmem:[%s4125_s15 + $0xd0] sm:$0xff]  ;;  %v372_v42 = vld [vmem:[%s4125_s15 + $0xb8] sm:$0xff] }
  0x4f   : > { %838 = vmatpush.bf16.msra.mxu1 %v3548_v29  ;;  %606 = vst [vmem:[#allocation2 + $0x138] sm:$0x1] %v3964_v37  ;;  %v371_v41 = vld [vmem:[%s4125_s15 + $0xb0] sm:$0xff] }
  0x50   : > { %975 = vmatpush.bf16.msra.mxu2 %v4160_v34  ;;  %607 = vst [vmem:[#allocation2 + $0x150] sm:$0x1] %v3964_v37  ;;  %v392_v45 = vpack.c.bf16 %v372_v42, %v371_v41 }
  0x51   : > { %470 = vmatpush.bf16.msra.mxu0 %v3530_v5  ;;  %3622 = vmatpush.bf16.msra.mxu3 %v3530_v5  ;;  %608 = vst [vmem:[#allocation2 + $0x168] sm:$0x1] %v3964_v37  ;;  %v3564_v5 = vld [vmem:[#allocation8 + $0xe0] sm:$0xff] }
  0x52   : > { %609 = vst [vmem:[#allocation2 + $0x180] sm:$0x1] %v3964_v37 }
  0x53   : > { %839 = vmatpush.bf16.msra.mxu1 %v3547_v32  ;;  %610 = vst [vmem:[#allocation2 + $0x29] sm:$0x1] %v3964_v37 }
  0x54   : > { %976 = vmatpush.bf16.msra.mxu2 %v4163_v36  ;;  %611 = vst [vmem:[#allocation2 + $0x41] sm:$0x1] %v3964_v37 }
  0x55   : > { %471 = vmatpush.bf16.msra.mxu0 %v3529_v6  ;;  %3623 = vmatpush.bf16.msra.mxu3 %v3529_v6  ;;  %612 = vst [vmem:[#allocation2 + $0x59] sm:$0x1] %v3964_v37  ;;  %v390_v6 = vpack.c.bf16 %v368_v3, %v367_v2 }
  0x56   : > { %613 = vst [vmem:[#allocation2 + $0x71] sm:$0x1] %v3964_v37 }
  0x57   : > { %840 = vmatpush.bf16.msra.mxu1 %v3546_v35  ;;  %614 = vst [vmem:[#allocation2 + $0x89] sm:$0x1] %v3964_v37 }
  0x58   : > { %977 = vmatpush.bf16.msra.mxu2 %v4169_v39  ;;  %615 = vst [vmem:[#allocation2 + $0xa1] sm:$0x1] %v3964_v37 }
  0x59   : > { %472 = vmatpush.bf16.msra.mxu0 %v3528_v7  ;;  %3624 = vmatpush.bf16.msra.mxu3 %v3528_v7  ;;  %616 = vst [vmem:[#allocation2 + $0xb9] sm:$0x1] %v3964_v37 }
  0x5a   : > { %617 = vst [vmem:[#allocation2 + $0xd1] sm:$0x1] %v3964_v37 }
  0x5b   : > { %841 = vmatpush.bf16.msra.mxu1 %v3545_v38  ;;  %618 = vst [vmem:[#allocation2 + $0xe9] sm:$0x1] %v3964_v37 }
  0x5c   : > { %473 = vmatmul.bf16.vlgmr.msra.gmra.mxu0 %v381_v10  ;;  %978 = vmatpush.bf16.msra.mxu2 %v4180_v44  ;;  %619 = vst [vmem:[#allocation2 + $0x101] sm:$0x1] %v3964_v37  ;;  %v373_v10 = vld [vmem:[%s4125_s15 + $0xc0] sm:$0xff] }
  0x5d   : > { %3625 = vmatpush.bf16.msrb.mxu3 %v3551_v22  ;;  %620 = vst [vmem:[#allocation2 + $0x119] sm:$0x1] %v3964_v37  ;;  %1408 = vmatpush.bf16.msrb.mxu0 %v3567_v59  ;;  %v369_v22 = vld [vmem:[%s4125_s15 + $0xa0] sm:$0xff] }
  0x5e   : > { %621 = vst [vmem:[#allocation2 + $0x131] sm:$0x1] %v3964_v37 }
  0x5f   : > { %842 = vmatpush.bf16.msra.mxu1 %v3544_v40  ;;  %622 = vst [vmem:[#allocation2 + $0x149] sm:$0x1] %v3964_v37 }
  0x60   : > { %979 = vmatpush.bf16.msra.mxu2 %v4187_v48  ;;  %623 = vst [vmem:[#allocation2 + $0x161] sm:$0x1] %v3964_v37 }
  0x61   : > { %3626 = vmatpush.bf16.msrb.mxu3 %v3550_v24  ;;  %624 = vst [vmem:[#allocation2 + $0x179] sm:$0x1] %v3964_v37  ;;  %1409 = vmatpush.bf16.msrb.mxu0 %v3566_v61 }
  0x62   : > { %843 = vmatmul.bf16.vlgmr.msra.gmra.mxu1 %v754_v47  ;;  %625 = vst [vmem:[#allocation2 + $0x191] sm:$0x1] %v3964_v37  ;;  %v377_v47 = vld [vmem:[%s4125_s15 + $0xe0] sm:$0xff] }
  0x63   : > { %980 = vmatmul.bf16.vlgmr.msra.gmra.mxu2 %v3965_v49  ;;  %v378_v49 = vld [vmem:[%s4125_s15 + $0xe8] sm:$0xff] }
  0x65   : > { %3627 = vmatpush.bf16.msrb.mxu3 %v3549_v26  ;;  %1410 = vmatpush.bf16.msrb.mxu0 %v3565_v0  ;;  %v3560_v26 = vld [vmem:[#allocation8 + $0xc0] sm:$0xff] }
  0x69   : > { %3628 = vmatpush.bf16.msrb.mxu3 %v3548_v29  ;;  %1411 = vmatpush.bf16.msrb.mxu0 %v3564_v5 }
  0x6c   : > { %478 = vmatmul.bf16.gmra.mxu0 %v382_v13  ;;  %v393_v13 = vpack.c.bf16 %v374_v11, %v373_v10 }
  0x6d   : > { %3629 = vmatpush.bf16.msrb.mxu3 %v3547_v32  ;;  %1412 = vmatpush.bf16.msrb.mxu0 %v3563_v9  ;;  %v376_v32 = vld [vmem:[%s4125_s15 + $0xd8] sm:$0xff] }
  0x6e   : > { %533 = vmatmul.bf16.vlgmr.msra.gmra.mxu3 %v393_v13 }
  0x71   : > { %3630 = vmatpush.bf16.msrb.mxu3 %v3546_v35  ;;  %1413 = vmatpush.bf16.msrb.mxu0 %v3562_v17 }
  0x75   : > { %3631 = vmatpush.bf16.msrb.mxu3 %v3545_v38  ;;  %1414 = vmatpush.bf16.msrb.mxu0 %v3561_v20 }
  0x79   : > { %3632 = vmatpush.bf16.msrb.mxu3 %v3544_v40  ;;  %1415 = vmatpush.bf16.msrb.mxu0 %v3560_v26 }
  0x7c   : > { %483 = vmatmul.bf16.gmra.mxu0 %v383_v16 }
  0x7d   : > { %3633 = vmatpush.bf16.msra.mxu3 %v4149_v25 }
  0x81   : > { %3634 = vmatpush.bf16.msra.mxu3 %v4152_v27 }
  0x85   : > { %3635 = vmatpush.bf16.msra.mxu3 %v4155_v28 }
  0x89   : > { %3636 = vmatpush.bf16.msra.mxu3 %v4160_v34 }
  0x8c   : > { %488 = vmatmul.bf16.gmra.mxu0 %v384_v19 }
  0x8d   : > { %3637 = vmatpush.bf16.msra.mxu3 %v4163_v36 }
  0x91   : > { %3638 = vmatpush.bf16.msra.mxu3 %v4169_v39  ;;  %v395_v39 = vpack.c.bf16 %v378_v49, %v377_v47  ;;  %v3574_v49 = vld [vmem:[#allocation8 + $0x130] sm:$0xff] }
  0x95   : > { %3639 = vmatpush.bf16.msra.mxu3 %v4180_v44 }
  0x99   : > { %3640 = vmatpush.bf16.msra.mxu3 %v4187_v48 }
  0x9c   : > { %493 = vmatmul.bf16.gmra.mxu0 %v385_v23  ;;  %v370_v23 = vld [vmem:[%s4125_s15 + $0xa8] sm:$0xff] }
  0x9d   : > { %v391_v25 = vpack.c.bf16 %v370_v23, %v369_v22 }
  0xac   : > { %498 = vmatmul.bf16.gmra.mxu0 %v386_v33  ;;  %v394_v33 = vpack.c.bf16 %v376_v32, %v375_v31 }
  0xae   : > { %538 = vmatmul.bf16.gmra.mxu3 %v394_v33 }
  0xbc   : > { %503 = vmatmul.bf16.gmra.mxu0 %v387_v46 }
  0xbe   : > { %543 = vmatmul.bf16.gmra.mxu3 %v395_v39 }
  0xcc   : > { %508 = vmatmul.bf16.gmra.mxu0 %v388_v52 }
  0xd9   : > { %v474_v57 = vpop.f32.mrf.mxu0 }
  0xda   : > { %v475_v58 = vadd.f32 %v4222_v55, %v474_v57 }
  0xdc   : > { %v554_v60 = vmax.f32 %v475_v58, 0.0  ;;  %513 = vmatmul.bf16.gmra.mxu0 %v389_v56 }
  0xde   : > { %626 = vst [vmem:[#allocation2 + $0x19] sm:$0xff] %v554_v60 }
  0xdf   : > { %v844_v23 = vpop.f32.mrf.mxu1 }
  0xe1   : > { %v476_v62 = vpop.f32.mrf.mxu0 }
  0xe2   : > { %v477_v63 = vadd.f32 %v4222_v55, %v476_v62 }
  0xe4   : > { %v555_v1 = vmax.f32 %v477_v63, 0.0 }
  0xe5   : > { %v660_v14 = vld [vmem:[#allocation2 + $0x18] sm:$0xff] }
  0xe6   : > { %627 = vst [vmem:[#allocation2 + $0x21] sm:$0xff] %v555_v1  ;;  %v4228_v4 = vpack.c.bf16 %v555_v1, %v554_v60  ;;  %v981_v26 = vpop.f32.mrf.mxu2 }
  0xe7   : > { %v4299_v47 = vpop.f32.mrf.mxu1 }
  0xe8   : > { %848 = vmatmul.bf16.gmra.mxu1 %v4228_v4 }
  0xe9   : > { %v479_v7 = vpop.f32.mrf.mxu0 }
  0xea   : > { %v480_v8 = vadd.f32 %v4222_v55, %v479_v7 }
  0xec   : > { %v556_v12 = vmax.f32 %v480_v8, 0.0  ;;  %518 = vmatmul.bf16.gmra.mxu0 %v390_v6 }
  0xed   : > { %v661_v15 = vld [vmem:[#allocation2 + $0x20] sm:$0xff] }
  0xee   : > { %628 = vst [vmem:[#allocation2 + $0x31] sm:$0xff] %v556_v12  ;;  %v4234_v16 = vpack.c.bf16 %v661_v15, %v660_v14 }
  0xf0   : > { %985 = vmatmul.bf16.gmra.mxu2 %v4234_v16 }
  0xf1   : > { %v481_v18 = vpop.f32.mrf.mxu0 }
  0xf2   : > { %v482_v19 = vadd.f32 %v4222_v55, %v481_v18 }
  0xf4   : > { %v557_v21 = vmax.f32 %v482_v19, 0.0 }
  0xf5   : > { %v662_v35 = vld [vmem:[#allocation2 + $0x30] sm:$0xff] }
  0xf6   : > { %629 = vst [vmem:[#allocation2 + $0x39] sm:$0xff] %v557_v21  ;;  %v4242_v24 = vpack.c.bf16 %v557_v21, %v556_v12 }
  0xf8   : > { %853 = vmatmul.bf16.gmra.mxu1 %v4242_v24 }
  0xf9   : > { %v484_v29 = vpop.f32.mrf.mxu0 }
  0xfa   : > { %v485_v30 = vadd.f32 %v4222_v55, %v484_v29  ;;  %v4285_v29 = vadd.f32 %v981_v26, %v844_v23 }
  0xfc   : > { %v558_v27 = vmax.f32 %v485_v30, 0.0  ;;  %523 = vmatmul.bf16.gmra.mxu0 %v391_v25 }
  0xfd   : > { %v663_v37 = vld [vmem:[#allocation2 + $0x38] sm:$0xff] }
  0xfe   : > { %630 = vst [vmem:[#allocation2 + $0x49] sm:$0xff] %v558_v27  ;;  %v692_v28 = vpack.c.bf16 %v663_v37, %v662_v35  ;;  %v3575_v37 = vld [vmem:[#allocation8 + $0x138] sm:$0xff] }
  0xff   : > { %1642 = vmatpush.bf16.msrb.mxu1 %v3575_v37 }
 0x100   : > { %990 = vmatmul.bf16.gmra.mxu2 %v692_v28 }
 0x101   : > { %v486_v38 = vpop.f32.mrf.mxu0 }
 0x102   : > { %v487_v40 = vadd.f32 %v4222_v55, %v486_v38  ;;  %v380_v38 = vld [vmem:[%s4125_s15 + $0xf8] sm:$0xff] }
 0x103   : > { %1643 = vmatpush.bf16.msrb.mxu1 %v3574_v49 }
 0x104   : > { %v559_v34 = vmax.f32 %v487_v40, 0.0 }
 0x105   : > { %v664_v51 = vld [vmem:[#allocation2 + $0x48] sm:$0xff] }
 0x106   : > { %631 = vst [vmem:[#allocation2 + $0x51] sm:$0xff] %v559_v34  ;;  %v4255_v43 = vpack.c.bf16 %v559_v34, %v558_v27 }
 0x108   : > { %858 = vmatmul.bf16.gmra.mxu1 %v4255_v43 }
 0x109   : > { %v489_v46 = vpop.f32.mrf.mxu0 }
 0x10a   : > { %v490_v36 = vadd.f32 %v4222_v55, %v489_v46 }
 0x10c   : > { %v560_v50 = vmax.f32 %v490_v36, 0.0  ;;  %528 = vmatmul.bf16.gmra.mxu0 %v392_v45 }
 0x10d   : > { %v665_v52 = vld [vmem:[#allocation2 + $0x50] sm:$0xff] }
 0x10e   : > { %632 = vst [vmem:[#allocation2 + $0x61] sm:$0xff] %v560_v50  ;;  %v693_v53 = vpack.c.bf16 %v665_v52, %v664_v51 }
 0x110   : > { %995 = vmatmul.bf16.gmra.mxu2 %v693_v53 }
 0x111   : > { %v491_v44 = vpop.f32.mrf.mxu0 }
 0x112   : > { %v492_v54 = vadd.f32 %v4222_v55, %v491_v44  ;;  %v3573_v44 = vld [vmem:[#allocation8 + $0x128] sm:$0xff] }
 0x113   : > { %1644 = vmatpush.bf16.msrb.mxu1 %v3573_v44 }
 0x114   : > { %v561_v56 = vmax.f32 %v492_v54, 0.0 }
 0x115   : > { %v666_v60 = vld [vmem:[#allocation2 + $0x60] sm:$0xff] }
 0x116   : > { %633 = vst [vmem:[#allocation2 + $0x69] sm:$0xff] %v561_v56  ;;  %v4264_v57 = vpack.c.bf16 %v561_v56, %v560_v50 }
 0x118   : > { %863 = vmatmul.bf16.gmra.mxu1 %v4264_v57 }
 0x119   : > { %v494_v58 = vpop.f32.mrf.mxu0 }
 0x11a   : > { %v495_v48 = vadd.f32 %v4222_v55, %v494_v58  ;;  %v3582_v58 = vld [vmem:[#allocation8 + $0x170] sm:$0xff] }
 0x11c   : > { %v562_v59 = vmax.f32 %v495_v48, 0.0  ;;  %1416 = vmatmul.bf16.vlgmr.msrb.gmra.mxu0 %v4234_v16  ;;  %v3572_v48 = vld [vmem:[#allocation8 + $0x120] sm:$0xff] }
 0x11d   : > { %v667_v61 = vld [vmem:[#allocation2 + $0x68] sm:$0xff]  ;;  %1645 = vmatpush.bf16.msrb.mxu1 %v3572_v48 }
 0x11e   : > { %634 = vst [vmem:[#allocation2 + $0x79] sm:$0xff] %v562_v59  ;;  %v694_v62 = vpack.c.bf16 %v667_v61, %v666_v60 }
 0x120   : > { %1000 = vmatmul.bf16.gmra.mxu2 %v694_v62 }
 0x121   : > { %v496_v63 = vpop.f32.mrf.mxu0 }
 0x122   : > { %v497_v0 = vadd.f32 %v4222_v55, %v496_v63  ;;  %v3571_v63 = vld [vmem:[#allocation8 + $0x118] sm:$0xff] }
 0x123   : > { %1646 = vmatpush.bf16.msrb.mxu1 %v3571_v63 }
 0x124   : > { %v563_v1 = vmax.f32 %v497_v0, 0.0 }
 0x125   : > { %v668_v7 = vld [vmem:[#allocation2 + $0x78] sm:$0xff] }
 0x126   : > { %635 = vst [vmem:[#allocation2 + $0x81] sm:$0xff] %v563_v1  ;;  %v4270_v2 = vpack.c.bf16 %v563_v1, %v562_v59  ;;  %v4308_v1 = vpop.f32.mrf.mxu2 }
 0x128   : > { %868 = vmatmul.bf16.gmra.mxu1 %v4270_v2 }
 0x129   : > { %v499_v3 = vpop.f32.mrf.mxu0 }
 0x12a   : > { %v500_v5 = vadd.f32 %v4222_v55, %v499_v3 }
 0x12c   : > { %v564_v6 = vmax.f32 %v500_v5, 0.0  ;;  %1421 = vmatmul.bf16.gmra.mxu0 %v692_v28  ;;  %v379_v28 = vld [vmem:[%s4125_s15 + $0xf0] sm:$0xff]  ;;  %v3580_v5 = vld [vmem:[#allocation8 + $0x160] sm:$0xff] }
 0x12d   : > { %v669_v8 = vld [vmem:[#allocation2 + $0x80] sm:$0xff]  ;;  %v396_v40 = vpack.c.bf16 %v380_v38, %v379_v28 }
 0x12e   : > { %636 = vst [vmem:[#allocation2 + $0x91] sm:$0xff] %v564_v6  ;;  %v695_v9 = vpack.c.bf16 %v669_v8, %v668_v7 }
 0x12f   : > { %548 = vmatmul.bf16.gmra.mxu3 %v396_v40  ;;  %v3576_v40 = vld [vmem:[#allocation8 + $0x140] sm:$0xff] }
 0x130   : > { %1005 = vmatmul.bf16.gmra.mxu2 %v695_v9 }
 0x131   : > { %v501_v10 = vpop.f32.mrf.mxu0 }
 0x132   : > { %v502_v11 = vadd.f32 %v4222_v55, %v501_v10 }
 0x134   : > { %v565_v12 = vmax.f32 %v502_v11, 0.0 }
 0x135   : > { %v670_v17 = vld [vmem:[#allocation2 + $0x90] sm:$0xff] }
 0x136   : > { %637 = vst [vmem:[#allocation2 + $0x99] sm:$0xff] %v565_v12  ;;  %v4275_v13 = vpack.c.bf16 %v565_v12, %v564_v6  ;;  %v3570_v6 = vld [vmem:[#allocation8 + $0x110] sm:$0xff]  ;;  %v3579_v12 = vld [vmem:[#allocation8 + $0x158] sm:$0xff] }
 0x137   : > { %1647 = vmatpush.bf16.msrb.mxu1 %v3570_v6 }
 0x138   : > { %873 = vmatmul.bf16.gmra.mxu1 %v4275_v13 }
 0x139   : > { %v504_v14 = vpop.f32.mrf.mxu0 }
 0x13a   : > { %v505_v15 = vadd.f32 %v4222_v55, %v504_v14  ;;  %v3569_v14 = vld [vmem:[#allocation8 + $0x108] sm:$0xff] }
 0x13b   : > { %1648 = vmatpush.bf16.msrb.mxu1 %v3569_v14 }
 0x13c   : > { %v566_v16 = vmax.f32 %v505_v15, 0.0  ;;  %1426 = vmatmul.bf16.gmra.mxu0 %v693_v53  ;;  %v3583_v53 = vld [vmem:[#allocation8 + $0x178] sm:$0xff] }
 0x13d   : > { %v671_v18 = vld [vmem:[#allocation2 + $0x98] sm:$0xff]  ;;  %1876 = vmatpush.bf16.msrb.mxu2 %v3583_v53 }
 0x13e   : > { %638 = vst [vmem:[#allocation2 + $0xa9] sm:$0xff] %v566_v16  ;;  %v4279_v19 = vpack.c.bf16 %v671_v18, %v670_v17 }
 0x140   : > { %1010 = vmatmul.bf16.gmra.mxu2 %v4279_v19 }
 0x141   : > { %v506_v20 = vpop.f32.mrf.mxu0  ;;  %1877 = vmatpush.bf16.msrb.mxu2 %v3582_v58 }
 0x142   : > { %v507_v21 = vadd.f32 %v4222_v55, %v506_v20  ;;  %v3568_v20 = vld [vmem:[#allocation8 + $0x100] sm:$0xff] }
 0x143   : > { %1649 = vmatpush.bf16.msrb.mxu1 %v3568_v20 }
 0x144   : > { %v567_v22 = vmax.f32 %v507_v21, 0.0 }
 0x145   : > { %v672_v27 = vld [vmem:[#allocation2 + $0xa8] sm:$0xff] }
 0x146   : > { %639 = vst [vmem:[#allocation2 + $0xb1] sm:$0xff] %v567_v22  ;;  %v4283_v25 = vpack.c.bf16 %v567_v22, %v566_v16  ;;  %v534_v16 = vpop.f32.mrf.mxu3 }
 0x148   : > { %878 = vmatmul.bf16.gmra.mxu1 %v4283_v25 }
 0x149   : > { %v509_v30 = vpop.f32.mrf.mxu0 }
 0x14a   : > { %v510_v31 = vadd.f32 %v4222_v55, %v509_v30  ;;  %v4321_v30 = vadd.f32 %v4222_v55, %v534_v16 }
 0x14c   : > { %v568_v32 = vmax.f32 %v510_v31, 0.0  ;;  %1431 = vmatmul.bf16.gmra.mxu0 %v694_v62  ;;  %v3581_v62 = vld [vmem:[#allocation8 + $0x168] sm:$0xff] }
 0x14d   : > { %v673_v33 = vld [vmem:[#allocation2 + $0xb0] sm:$0xff]  ;;  %1878 = vmatpush.bf16.msrb.mxu2 %v3581_v62  ;;  %v3577_v31 = vld [vmem:[#allocation8 + $0x148] sm:$0xff] }
 0x14e   : > { %640 = vst [vmem:[#allocation2 + $0xc1] sm:$0xff] %v568_v32  ;;  %v4289_v35 = vpack.c.bf16 %v673_v33, %v672_v27  ;;  %v536_v33 = vpop.f32.mrf.mxu3 }
 0x14f   : > { %v4329_v28 = vadd.f32 %v4222_v55, %v536_v33 }
 0x150   : > { %1015 = vmatmul.bf16.gmra.mxu2 %v4289_v35 }
 0x151   : > { %v511_v34 = vpop.f32.mrf.mxu0  ;;  %1879 = vmatpush.bf16.msrb.mxu2 %v3580_v5 }
 0x152   : > { %v512_v41 = vadd.f32 %v4222_v55, %v511_v34 }
 0x154   : > { %v569_v42 = vmax.f32 %v512_v41, 0.0 }
 0x155   : > { %v674_v39 = vld [vmem:[#allocation2 + $0xc0] sm:$0xff]  ;;  %1880 = vmatpush.bf16.msrb.mxu2 %v3579_v12 }
 0x156   : > { %641 = vst [vmem:[#allocation2 + $0xc9] sm:$0xff] %v569_v42  ;;  %v4295_v45 = vpack.c.bf16 %v569_v42, %v568_v32  ;;  %v578_v32 = vmax.f32 %v4321_v30, 0.0  ;;  %v579_v42 = vmax.f32 %v4329_v28, 0.0 }
 0x158   : > { %883 = vmatmul.bf16.gmra.mxu1 %v4295_v45  ;;  %650 = vst [vmem:[#allocation2 + $0x139] sm:$0xff] %v578_v32 }
 0x159   : > { %v514_v46 = vpop.f32.mrf.mxu0  ;;  %651 = vst [vmem:[#allocation2 + $0x141] sm:$0xff] %v579_v42 }
 0x15a   : > { %v515_v36 = vadd.f32 %v4222_v55, %v514_v46 }
 0x15c   : > { %v570_v50 = vmax.f32 %v515_v36, 0.0  ;;  %1436 = vmatmul.bf16.gmra.mxu0 %v695_v9 }
 0x15d   : > { %v675_v51 = vld [vmem:[#allocation2 + $0xc8] sm:$0xff] }
 0x15e   : > { %642 = vst [vmem:[#allocation2 + $0xd9] sm:$0xff] %v570_v50  ;;  %v4301_v52 = vpack.c.bf16 %v675_v51, %v674_v39  ;;  %v539_v51 = vpop.f32.mrf.mxu3 }
 0x160   : > { %1020 = vmatmul.bf16.gmra.mxu2 %v4301_v52 }
 0x161   : > { %v516_v54 = vpop.f32.mrf.mxu0 }
 0x162   : > { %v517_v56 = vadd.f32 %v4222_v55, %v516_v54 }
 0x164   : > { %v571_v59 = vmax.f32 %v517_v56, 0.0 }
 0x165   : > { %v849_v60 = vpop.f32.mrf.mxu1  ;;  %v676_v8 = vld [vmem:[#allocation2 + $0xd8] sm:$0xff] }
 0x166   : > { %643 = vst [vmem:[#allocation2 + $0xe1] sm:$0xff] %v571_v59  ;;  %v4305_v61 = vpack.c.bf16 %v571_v59, %v570_v50  ;;  %v541_v62 = vpop.f32.mrf.mxu3 }
 0x168   : > { %888 = vmatmul.bf16.gmra.mxu1 %v4305_v61 }
 0x169   : > { %v519_v0 = vpop.f32.mrf.mxu0 }
 0x16a   : > { %v520_v3 = vadd.f32 %v4222_v55, %v519_v0  ;;  %v542_v0 = vadd.f32 %v4222_v55, %v541_v62 }
 0x16c   : > { %v572_v7 = vmax.f32 %v520_v3, 0.0  ;;  %1441 = vmatmul.bf16.gmra.mxu0 %v4279_v19  ;;  %v3578_v19 = vld [vmem:[#allocation8 + $0x150] sm:$0xff] }
 0x16d   : > { %v677_v9 = vld [vmem:[#allocation2 + $0xe0] sm:$0xff]  ;;  %v851_v10 = vpop.f32.mrf.mxu1  ;;  %1881 = vmatpush.bf16.msrb.mxu2 %v3578_v19 }
 0x16e   : > { %644 = vst [vmem:[#allocation2 + $0xf1] sm:$0xff] %v572_v7  ;;  %v4312_v11 = vpack.c.bf16 %v677_v9, %v676_v8 }
 0x170   : > { %1025 = vmatmul.bf16.gmra.mxu2 %v4312_v11 }
 0x171   : > { %v521_v15 = vpop.f32.mrf.mxu0  ;;  %1882 = vmatpush.bf16.msrb.mxu2 %v3577_v31 }
 0x172   : > { %v522_v17 = vadd.f32 %v4222_v55, %v521_v15  ;;  %v544_v15 = vpop.f32.mrf.mxu3 }
 0x173   : > { %v986_v18 = vpop.f32.mrf.mxu2 }
 0x174   : > { %v573_v21 = vmax.f32 %v522_v17, 0.0  ;;  %v4316_v22 = vadd.f32 %v986_v18, %v849_v60  ;;  %v4359_v17 = vadd.f32 %v4222_v55, %v544_v15 }
 0x175   : > { %v854_v23 = vpop.f32.mrf.mxu1  ;;  %v678_v46 = vld [vmem:[#allocation2 + $0xf0] sm:$0xff]  ;;  %1883 = vmatpush.bf16.msrb.mxu2 %v3576_v40  ;;  %v1764_v40 = vld [vmem:[#allocation2 + $0x22] sm:$0xff] }
 0x176   : > { %645 = vst [vmem:[#allocation2 + $0xf9] sm:$0xff] %v573_v21  ;;  %v4318_v26 = vpack.c.bf16 %v573_v21, %v572_v7  ;;  %v581_v7 = vmax.f32 %v542_v0, 0.0 }
 0x178   : > { %893 = vmatmul.bf16.gmra.mxu1 %v4318_v26  ;;  %653 = vst [vmem:[#allocation2 + $0x159] sm:$0xff] %v581_v7 }
 0x179   : > { %v524_v27 = vpop.f32.mrf.mxu0 }
 0x17a   : > { %v525_v37 = vadd.f32 %v4222_v55, %v524_v27  ;;  %v546_v27 = vpop.f32.mrf.mxu3 }
 0x17b   : > { %v988_v38 = vpop.f32.mrf.mxu2  ;;  %v547_v33 = vadd.f32 %v4222_v55, %v546_v27 }
 0x17c   : > { %v574_v34 = vmax.f32 %v525_v37, 0.0  ;;  %v4331_v41 = vadd.f32 %v988_v38, %v851_v10  ;;  %1446 = vmatmul.bf16.gmra.mxu0 %v4289_v35  ;;  %v4342_v35 = vadd.f32 %v4222_v55, %v539_v51  ;;  %v1763_v38 = vld [vmem:[#allocation2 + $0x1a] sm:$0xff] }
 0x17d   : > { %v679_v36 = vld [vmem:[#allocation2 + $0xf8] sm:$0xff]  ;;  %v856_v49 = vpop.f32.mrf.mxu1 }
 0x17e   : > { %646 = vst [vmem:[#allocation2 + $0x109] sm:$0xff] %v574_v34  ;;  %v4335_v50 = vpack.c.bf16 %v679_v36, %v678_v46  ;;  %v580_v58 = vmax.f32 %v4342_v35, 0.0  ;;  %v583_v46 = vmax.f32 %v547_v33, 0.0  ;;  %v1769_v33 = vld [vmem:[#allocation2 + $0x62] sm:$0xff] }
 0x180   : > { %1030 = vmatmul.bf16.gmra.mxu2 %v4335_v50  ;;  %652 = vst [vmem:[#allocation2 + $0x151] sm:$0xff] %v580_v58 }
 0x181   : > { %v526_v39 = vpop.f32.mrf.mxu0  ;;  %655 = vst [vmem:[#allocation2 + $0x171] sm:$0xff] %v583_v46 }
 0x182   : > { %v527_v53 = vadd.f32 %v4222_v55, %v526_v39 }
 0x183   : > { %v991_v44 = vpop.f32.mrf.mxu2 }
 0x184   : > { %v575_v54 = vmax.f32 %v527_v53, 0.0  ;;  %v4344_v56 = vadd.f32 %v991_v44, %v854_v23  ;;  %v4385_v44 = vpack.c.bf16 %v579_v42, %v578_v32  ;;  %v4403_v42 = vpack.c.bf16 %v581_v7, %v580_v58 }
 0x185   : > { %v859_v48 = vpop.f32.mrf.mxu1  ;;  %v680_v8 = vld [vmem:[#allocation2 + $0x108] sm:$0xff] }
 0x186   : > { %647 = vst [vmem:[#allocation2 + $0x111] sm:$0xff] %v575_v54  ;;  %v4347_v59 = vpack.c.bf16 %v575_v54, %v574_v34 }
 0x188   : > { %898 = vmatmul.bf16.gmra.mxu1 %v4347_v59 }
 0x189   : > { %v529_v60 = vpop.f32.mrf.mxu0 }
 0x18a   : > { %v530_v63 = vadd.f32 %v4222_v55, %v529_v60  ;;  %v1766_v60 = vld [vmem:[#allocation2 + $0x3a] sm:$0xff] }
 0x18b   : > { %v993_v3 = vpop.f32.mrf.mxu2 }
 0x18c   : > { %v576_v5 = vmax.f32 %v530_v63, 0.0  ;;  %v4354_v6 = vadd.f32 %v993_v3, %v856_v49  ;;  %1451 = vmatmul.bf16.gmra.mxu0 %v4301_v52  ;;  %v582_v52 = vmax.f32 %v4359_v17, 0.0  ;;  %v4374_v49 = vpack.c.bf16 %v1764_v40, %v1763_v38  ;;  %v3557_v40 = vld [vmem:[#allocation8 + $0xa8] sm:$0xff] }
 0x18d   : > { %v681_v9 = vld [vmem:[#allocation2 + $0x110] sm:$0xff]  ;;  %v861_v10 = vpop.f32.mrf.mxu1 }
 0x18e   : > { %648 = vst [vmem:[#allocation2 + $0x121] sm:$0xff] %v576_v5  ;;  %v701_v12 = vpack.c.bf16 %v681_v9, %v680_v8  ;;  %v1768_v8 = vld [vmem:[#allocation2 + $0x52] sm:$0xff]  ;;  %v4418_v17 = vpack.c.bf16 %v583_v46, %v582_v52 }
 0x18f   : > { %654 = vst [vmem:[#allocation2 + $0x169] sm:$0xff] %v582_v52 }
 0x190   : > { %1035 = vmatmul.bf16.gmra.mxu2 %v701_v12 }
 0x191   : > { %v531_v14 = vpop.f32.mrf.mxu0 }
 0x192   : > { %v532_v16 = vadd.f32 %v4222_v55, %v531_v14 }
 0x193   : > { %v996_v18 = vpop.f32.mrf.mxu2 }
 0x194   : > { %v577_v19 = vmax.f32 %v532_v16, 0.0  ;;  %v4361_v20 = vadd.f32 %v996_v18, %v859_v48  ;;  %v1765_v48 = vld [vmem:[#allocation2 + $0x32] sm:$0xff] }
 0x195   : > { %v864_v21 = vpop.f32.mrf.mxu1  ;;  %v4394_v0 = vpack.c.bf16 %v1766_v60, %v1765_v48 }
 0x196   : > { %649 = vst [vmem:[#allocation2 + $0x129] sm:$0xff] %v577_v19  ;;  %v4364_v23 = vpack.c.bf16 %v577_v19, %v576_v5  ;;  %v1767_v5 = vld [vmem:[#allocation2 + $0x4a] sm:$0xff]  ;;  %v1317_v19 = vld [vmem:[#allocation2 + $0x120] sm:$0xff] }
 0x197   : > { %v4411_v15 = vpack.c.bf16 %v1768_v8, %v1767_v5 }
 0x198   : > { %903 = vmatmul.bf16.vlgmr.msrb.gmra.mxu3 %v4364_v23  ;;  %1650 = vmatmul.bf16.vlgmr.msrb.gmra.mxu1 %v4228_v4 }
 0x199   : > { %v4368_v31 = vpop.f32.mrf.mxu0 }
 0x19b   : > { %v998_v37 = vpop.f32.mrf.mxu2 }
 0x19c   : > { %v4371_v34 = vadd.f32 %v998_v37, %v861_v10  ;;  %1456 = vmatmul.bf16.gmra.mxu0 %v4312_v11  ;;  %v3559_v10 = vld [vmem:[#allocation8 + $0xb8] sm:$0xff] }
 0x19d   : > { %v866_v36 = vpop.f32.mrf.mxu1  ;;  %1174 = vmatpush.bf16.msrb.mxu3 %v3559_v10  ;;  %v1318_v18 = vld [vmem:[#allocation2 + $0x128] sm:$0xff]  ;;  %v1771_v10 = vld [vmem:[#allocation2 + $0x7a] sm:$0xff] }
 0x19e   : > { %v1770_v37 = vld [vmem:[#allocation2 + $0x6a] sm:$0xff] }
 0x19f   : > { %v4426_v52 = vpack.c.bf16 %v1770_v37, %v1769_v33 }
 0x1a0   : > { %1884 = vmatmul.bf16.vlgmr.msrb.gmra.mxu2 %v4374_v49 }
 0x1a1   : > { %v4377_v4 = vpop.f32.mrf.mxu0 }
 0x1a3   : > { %v1001_v39 = vpop.f32.mrf.mxu2 }
 0x1a4   : > { %v4379_v51 = vadd.f32 %v1001_v39, %v864_v21  ;;  %v1338_v21 = vpack.c.bf16 %v1318_v18, %v1317_v19 }
 0x1a5   : > { %v869_v53 = vpop.f32.mrf.mxu1 }
 0x1a8   : > { %908 = vmatmul.bf16.gmra.mxu3 %v4385_v44  ;;  %1655 = vmatmul.bf16.gmra.mxu1 %v4242_v24 }
 0x1a9   : > { %v4389_v11 = vpop.f32.mrf.mxu0 }
 0x1aa   : > { %5261 = vst [vmem:[#allocation16_spill] sm:$0xff] %v4389_v11 }
 0x1ab   : > { %v1003_v54 = vpop.f32.mrf.mxu2 }
 0x1ac   : > { %v4391_v62 = vadd.f32 %v1003_v54, %v866_v36  ;;  %1461 = vmatmul.bf16.gmra.mxu0 %v4335_v50 }
 0x1ad   : > { %v871_v63 = vpop.f32.mrf.mxu1 }
 0x1b0   : > { %1889 = vmatmul.bf16.gmra.mxu2 %v4394_v0 }
 0x1b1   : > { %v4397_v30 = vpop.f32.mrf.mxu0 }
 0x1b2   : > { %5262 = vst [vmem:[#allocation17_spill] sm:$0xff] %v4397_v30  ;;  %v549_v48 = vpop.f32.mrf.mxu3 }
 0x1b3   : > { %v1006_v32 = vpop.f32.mrf.mxu2  ;;  %v550_v60 = vadd.f32 %v4222_v55, %v549_v48 }
 0x1b4   : > { %v4399_v28 = vadd.f32 %v1006_v32, %v869_v53  ;;  %v3556_v53 = vld [vmem:[#allocation8 + $0xa0] sm:$0xff]  ;;  %v1320_v32 = vld [vmem:[#allocation2 + $0x140] sm:$0xff] }
 0x1b5   : > { %v874_v24 = vpop.f32.mrf.mxu1 }
 0x1b8   : > { %913 = vmatmul.bf16.gmra.mxu3 %v4403_v42  ;;  %1660 = vmatmul.bf16.gmra.mxu1 %v4255_v43  ;;  %v3558_v43 = vld [vmem:[#allocation8 + $0xb0] sm:$0xff] }
 0x1b9   : > { %v4407_v50 = vpop.f32.mrf.mxu0  ;;  %1175 = vmatpush.bf16.msrb.mxu3 %v3558_v43 }
 0x1ba   : > { %5263 = vst [vmem:[#allocation18_spill] sm:$0xff] %v4407_v50  ;;  %v551_v19 = vpop.f32.mrf.mxu3 }
 0x1bb   : > { %v1008_v3 = vpop.f32.mrf.mxu2 }
 0x1bc   : > { %v4409_v9 = vadd.f32 %v1008_v3, %v871_v63  ;;  %1466 = vmatmul.bf16.gmra.mxu0 %v701_v12  ;;  %v1319_v63 = vld [vmem:[#allocation2 + $0x138] sm:$0xff] }
 0x1bd   : > { %v876_v14 = vpop.f32.mrf.mxu1  ;;  %1176 = vmatpush.bf16.msrb.mxu3 %v3557_v40  ;;  %v1339_v5 = vpack.c.bf16 %v1320_v32, %v1319_v63  ;;  %v3597_v40 = vld [vmem:[#allocation8 + $0x1e8] sm:$0xff]  ;;  %v3596_v63 = vld [vmem:[#allocation8 + $0x1e0] sm:$0xff] }
 0x1c0   : > { %1894 = vmatmul.bf16.gmra.mxu2 %v4411_v15 }
 0x1c1   : > { %v4414_v35 = vpop.f32.mrf.mxu0  ;;  %1177 = vmatpush.bf16.msrb.mxu3 %v3556_v53  ;;  %v3554_v53 = vld [vmem:[#allocation8 + $0x90] sm:$0xff] }
 0x1c2   : > { %5264 = vst [vmem:[#allocation19_spill] sm:$0xff] %v4414_v35 }
 0x1c3   : > { %v1011_v58 = vpop.f32.mrf.mxu2 }
 0x1c4   : > { %v4416_v7 = vadd.f32 %v1011_v58, %v874_v24  ;;  %v584_v24 = vmax.f32 %v550_v60, 0.0  ;;  %v3599_v58 = vld [vmem:[#allocation8 + $0x1f8] sm:$0xff]  ;;  %v1322_v60 = vld [vmem:[#allocation2 + $0x158] sm:$0xff] }
 0x1c5   : > { %v879_v16 = vpop.f32.mrf.mxu1  ;;  %2345 = vmatpush.bf16.msra.mxu0 %v3599_v58  ;;  %v3595_v58 = vld [vmem:[#allocation8 + $0x1d8] sm:$0xff] }
 0x1c6   : > { %656 = vst [vmem:[#allocation2 + $0x181] sm:$0xff] %v584_v24 }
 0x1c8   : > { %918 = vmatmul.bf16.gmra.mxu3 %v4418_v17  ;;  %1665 = vmatmul.bf16.gmra.mxu1 %v4264_v57 }
 0x1c9   : > { %v4422_v12 = vpop.f32.mrf.mxu0 }
 0x1ca   : > { %5265 = vst [vmem:[#allocation20_spill] sm:$0xff] %v4422_v12 }
 0x1cb   : > { %v1013_v27 = vpop.f32.mrf.mxu2 }
 0x1cc   : > { %v4424_v38 = vadd.f32 %v1013_v27, %v876_v14  ;;  %1471 = vmatmul.bf16.gmra.mxu0 %v1338_v21  ;;  %v1772_v14 = vld [vmem:[#allocation2 + $0x82] sm:$0xff] }
 0x1cd   : > { %v881_v36 = vpop.f32.mrf.mxu1  ;;  %v4439_v27 = vpack.c.bf16 %v1772_v14, %v1771_v10  ;;  %v1773_v10 = vld [vmem:[#allocation2 + $0x92] sm:$0xff]  ;;  %v1774_v14 = vld [vmem:[#allocation2 + $0x9a] sm:$0xff] }
 0x1d0   : > { %1899 = vmatmul.bf16.gmra.mxu2 %v4426_v52 }
 0x1d1   : > { %v4429_v46 = vpop.f32.mrf.mxu0 }
 0x1d2   : > { %5266 = vst [vmem:[#allocation21_spill] sm:$0xff] %v4429_v46 }
 0x1d3   : > { %v1016_v57 = vpop.f32.mrf.mxu2 }
 0x1d4   : > { %v4431_v39 = vadd.f32 %v1016_v57, %v879_v16  ;;  %v3555_v16 = vld [vmem:[#allocation8 + $0x98] sm:$0xff] }
 0x1d5   : > { %v884_v54 = vpop.f32.mrf.mxu1  ;;  %1178 = vmatpush.bf16.msrb.mxu3 %v3555_v16 }
 0x1d8   : > { %1040 = vmatmul.bf16.vlgmr.msra.gmra.mxu3 %v1338_v21  ;;  %1670 = vmatmul.bf16.gmra.mxu1 %v4270_v2  ;;  %v552_v2 = vadd.f32 %v4222_v55, %v551_v19  ;;  %v3598_v21 = vld [vmem:[#allocation8 + $0x1f0] sm:$0xff]  ;;  %v1321_v55 = vld [vmem:[#allocation2 + $0x150] sm:$0xff] }
 0x1d9   : > { %v4435_v3 = vpop.f32.mrf.mxu0  ;;  %2346 = vmatpush.bf16.msra.mxu0 %v3598_v21  ;;  %1179 = vmatpush.bf16.msrb.mxu3 %v3554_v53  ;;  %v1340_v32 = vpack.c.bf16 %v1322_v60, %v1321_v55  ;;  %v4455_v21 = vpack.c.bf16 %v1774_v14, %v1773_v10  ;;  %v1323_v60 = vld [vmem:[#allocation2 + $0x168] sm:$0xff] }
 0x1da   : > { %5267 = vst [vmem:[#allocation22_spill] sm:$0xff] %v4435_v3  ;;  %v4443_v33 = vmax.f32 %v552_v2, 0.0 }
 0x1db   : > { %v1018_v8 = vpop.f32.mrf.mxu2 }
 0x1dc   : > { %v4437_v43 = vadd.f32 %v1018_v8, %v881_v36  ;;  %1476 = vmatmul.bf16.gmra.mxu0 %v1339_v5  ;;  %657 = vst [vmem:[#allocation2 + $0x189] sm:$0xff] %v4443_v33 }
 0x1dd   : > { %v886_v18 = vpop.f32.mrf.mxu1  ;;  %2347 = vmatpush.bf16.msra.mxu0 %v3597_v40  ;;  %v3593_v40 = vld [vmem:[#allocation8 + $0x1c8] sm:$0xff] }
 0x1e0   : > { %1904 = vmatmul.bf16.gmra.mxu2 %v4439_v27 }
 0x1e1   : > { %v4446_v36 = vpop.f32.mrf.mxu0  ;;  %2348 = vmatpush.bf16.msra.mxu0 %v3596_v63  ;;  %v1324_v63 = vld [vmem:[#allocation2 + $0x170] sm:$0xff] }
 0x1e2   : > { %5268 = vst [vmem:[#allocation23_spill] sm:$0xff] %v4446_v36  ;;  %v1341_v14 = vpack.c.bf16 %v1324_v63, %v1323_v60 }
 0x1e3   : > { %v1021_v37 = vpop.f32.mrf.mxu2  ;;  %v1326_v60 = vld [vmem:[#allocation2 + $0x188] sm:$0xff] }
 0x1e4   : > { %v4448_v57 = vadd.f32 %v1021_v37, %v884_v54  ;;  %v3553_v54 = vld [vmem:[#allocation8 + $0x88] sm:$0xff] }
 0x1e5   : > { %v889_v48 = vpop.f32.mrf.mxu1  ;;  %2349 = vmatpush.bf16.msra.mxu0 %v3595_v58  ;;  %1180 = vmatpush.bf16.msrb.mxu3 %v3553_v54  ;;  %v1775_v58 = vld [vmem:[#allocation2 + $0xaa] sm:$0xff]  ;;  %v1776_v54 = vld [vmem:[#allocation2 + $0xb2] sm:$0xff] }
 0x1e8   : > { %1045 = vmatmul.bf16.gmra.mxu3 %v1339_v5  ;;  %1675 = vmatmul.bf16.gmra.mxu1 %v4275_v13  ;;  %v3594_v5 = vld [vmem:[#allocation8 + $0x1d0] sm:$0xff]  ;;  %v4459_v13 = vpack.c.bf16 %v4443_v33, %v584_v24 }
 0x1e9   : > { %v4453_v2 = vpop.f32.mrf.mxu0  ;;  %2350 = vmatpush.bf16.msra.mxu0 %v3594_v5 }
 0x1ea   : > { %5269 = vst [vmem:[#allocation24_spill] sm:$0xff] %v4453_v2 }
 0x1eb   : > { %v1023_v8 = vpop.f32.mrf.mxu2 }
 0x1ec   : > { %v4451_v16 = vadd.f32 %v1023_v8, %v886_v18  ;;  %1481 = vmatmul.bf16.gmra.mxu0 %v1340_v32  ;;  %v3552_v18 = vld [vmem:[#allocation8 + $0x80] sm:$0xff] }
 0x1ed   : > { %v891_v19 = vpop.f32.mrf.mxu1  ;;  %2351 = vmatpush.bf16.msra.mxu0 %v3593_v40  ;;  %1181 = vmatpush.bf16.msrb.mxu3 %v3552_v18  ;;  %v3592_v8 = vld [vmem:[#allocation8 + $0x1c0] sm:$0xff]  ;;  %v3591_v40 = vld [vmem:[#allocation8 + $0x1b8] sm:$0xff] }
 0x1f0   : > { %1909 = vmatmul.bf16.gmra.mxu2 %v4455_v21 }
 0x1f1   : > { %v4463_v10 = vpop.f32.mrf.mxu0  ;;  %2352 = vmatpush.bf16.msra.mxu0 %v3592_v8  ;;  %2111 = vmatpush.bf16.msra.mxu3 %v3591_v40 }
 0x1f2   : > { %5270 = vst [vmem:[#allocation25_spill] sm:$0xff] %v4463_v10 }
 0x1f3   : > { %v1026_v37 = vpop.f32.mrf.mxu2 }
 0x1f4   : > { %v4461_v53 = vadd.f32 %v1026_v37, %v889_v48  ;;  %v4468_v37 = vpack.c.bf16 %v1776_v54, %v1775_v58  ;;  %v1777_v58 = vld [vmem:[#allocation2 + $0xc2] sm:$0xff]  ;;  %v1778_v54 = vld [vmem:[#allocation2 + $0xca] sm:$0xff] }
 0x1f5   : > { %v894_v55 = vpop.f32.mrf.mxu1 }
 0x1f8   : > { %1050 = vmatmul.bf16.gmra.mxu3 %v1340_v32  ;;  %1680 = vmatmul.bf16.gmra.mxu1 %v4283_v25  ;;  %v1325_v25 = vld [vmem:[#allocation2 + $0x180] sm:$0xff] }
 0x1f9   : > { %v4471_v18 = vpop.f32.mrf.mxu0  ;;  %v1342_v8 = vpack.c.bf16 %v1326_v60, %v1325_v25  ;;  %v1062_v25 = vld [vmem:[#allocation2 + $0xa] sm:$0xff] }
 0x1fa   : > { %5271 = vst [vmem:[#allocation26_spill] sm:$0xff] %v4471_v18 }
 0x1fb   : > { %v1028_v24 = vpop.f32.mrf.mxu2 }
 0x1fc   : > { %v4466_v5 = vadd.f32 %v1028_v24, %v891_v19  ;;  %1486 = vmatmul.bf16.gmra.mxu0 %v1341_v14  ;;  %v3607_v19 = vld [vmem:[#allocation8 + $0x238] sm:$0xff] }
 0x1fd   : > { %v896_v48 = vpop.f32.mrf.mxu1  ;;  %2579 = vmatpush.bf16.msra.mxu1 %v3607_v19  ;;  %v2233_v19 = vld [vmem:[#allocation2 + $0x39] sm:$0xff] }
 0x200   : > { %1914 = vmatmul.bf16.gmra.mxu2 %v4468_v37 }
 0x201   : > { %v4476_v2 = vpop.f32.mrf.mxu0 }
 0x202   : > { %5272 = vst [vmem:[#allocation27_spill] sm:$0xff] %v4476_v2 }
 0x203   : > { %v1031_v32 = vpop.f32.mrf.mxu2 }
 0x204   : > { %v4473_v10 = vadd.f32 %v1031_v32, %v894_v55  ;;  %v4480_v55 = vpack.c.bf16 %v1778_v54, %v1777_v58  ;;  %v1061_v32 = vld [vmem:[#allocation2 + $0x2] sm:$0xff]  ;;  %v1779_v58 = vld [vmem:[#allocation2 + $0xda] sm:$0xff] }
 0x205   : > { %v899_v63 = vpop.f32.mrf.mxu1  ;;  %v1780_v54 = vld [vmem:[#allocation2 + $0xe2] sm:$0xff] }
 0x208   : > { %1055 = vmatmul.bf16.gmra.mxu3 %v1341_v14  ;;  %1685 = vmatmul.bf16.gmra.mxu1 %v4295_v45  ;;  %v1093_v45 = vpack.c.bf16 %v1062_v25, %v1061_v32  ;;  %v4496_v32 = vpack.c.bf16 %v1780_v54, %v1779_v58  ;;  %v1781_v58 = vld [vmem:[#allocation2 + $0xf2] sm:$0xff]  ;;  %v1782_v54 = vld [vmem:[#allocation2 + $0xfa] sm:$0xff] }
 0x209   : > { %v4487_v3 = vpop.f32.mrf.mxu0 }
 0x20a   : > { %5273 = vst [vmem:[#allocation28_spill] sm:$0xff] %v4487_v3  ;;  %v4513_v3 = vpack.c.bf16 %v1782_v54, %v1781_v58 }
 0x20b   : > { %v1033_v24 = vpop.f32.mrf.mxu2 }
 0x20c   : > { %v4478_v36 = vadd.f32 %v1033_v24, %v896_v48  ;;  %1491 = vmatmul.bf16.gmra.mxu0 %v1342_v8  ;;  %v2232_v48 = vld [vmem:[#allocation2 + $0x31] sm:$0xff] }
 0x20d   : > { %v901_v40 = vpop.f32.mrf.mxu1  ;;  %v2264_v8 = vpack.c.bf16 %v2233_v19, %v2232_v48  ;;  %v2235_v19 = vld [vmem:[#allocation2 + $0x51] sm:$0xff]  ;;  %v3606_v48 = vld [vmem:[#allocation8 + $0x230] sm:$0xff] }
 0x20e   : > { %2580 = vmatpush.bf16.msra.mxu1 %v3606_v48  ;;  %v1783_v48 = vld [vmem:[#allocation2 + $0x10a] sm:$0xff] }
 0x210   : > { %1919 = vmatmul.bf16.gmra.mxu2 %v4480_v55 }
 0x211   : > { %v4498_v25 = vpop.f32.mrf.mxu0 }
 0x212   : > { %5275 = vst [vmem:[#allocation30_spill] sm:$0xff] %v4498_v25 }
 0x213   : > { %v1036_v14 = vpop.f32.mrf.mxu2 }
 0x214   : > { %v4483_v60 = vadd.f32 %v1036_v14, %v899_v63  ;;  %v3590_v14 = vld [vmem:[#allocation8 + $0x1b0] sm:$0xff] }
 0x215   : > { %v4485_v18 = vpop.f32.mrf.mxu1  ;;  %2112 = vmatpush.bf16.msra.mxu3 %v3590_v14 }
 0x218   : > { %1182 = vmatmul.bf16.vlgmr.msrb.gmra.mxu3 %v1093_v45  ;;  %1690 = vmatmul.bf16.gmra.mxu1 %v4305_v61 }
 0x21b   : > { %v1038_v24 = vpop.f32.mrf.mxu2  ;;  %v4490_v2 = vpop.f32.mrf.mxu3 }
 0x21c   : > { %v4492_v46 = vadd.f32 %v1038_v24, %v901_v40  ;;  %2353 = vmatmul.bf16.vlgmr.msra.gmra.mxu0 %v2264_v8  ;;  %v2234_v40 = vld [vmem:[#allocation2 + $0x49] sm:$0xff]  ;;  %v4507_v8 = vpop.f32.mrf.mxu0 }
 0x21d   : > { %v4494_v63 = vpop.f32.mrf.mxu1  ;;  %5277 = vst [vmem:[#allocation32_spill] sm:$0xff] %v4507_v8  ;;  %v2265_v24 = vpack.c.bf16 %v2235_v19, %v2234_v40  ;;  %v2237_v8 = vld [vmem:[#allocation2 + $0x69] sm:$0xff]  ;;  %v2236_v19 = vld [vmem:[#allocation2 + $0x61] sm:$0xff] }
 0x21e   : > { %5274 = vst [vmem:[#allocation29_spill] sm:$0xff] %v4494_v63  ;;  %v2266_v40 = vpack.c.bf16 %v2237_v8, %v2236_v19  ;;  %v2239_v8 = vld [vmem:[#allocation2 + $0x81] sm:$0xff] }
 0x220   : > { %1924 = vmatmul.bf16.gmra.mxu2 %v4496_v32 }
 0x223   : > { %v4501_v61 = vpop.f32.mrf.mxu3 }
 0x225   : > { %v4503_v45 = vpop.f32.mrf.mxu1 }
 0x226   : > { %5276 = vst [vmem:[#allocation31_spill] sm:$0xff] %v4503_v45 }
 0x228   : > { %1187 = vmatmul.bf16.gmra.mxu3 %v4374_v49  ;;  %1695 = vmatmul.bf16.gmra.mxu1 %v4318_v26  ;;  %v4518_v26 = vpop.f32.mrf.mxu0 }
 0x229   : > { %5279 = vst [vmem:[#allocation34_spill] sm:$0xff] %v4518_v26  ;;  %v3589_v26 = vld [vmem:[#allocation8 + $0x1a8] sm:$0xff] }
 0x22a   : > { %2113 = vmatpush.bf16.msra.mxu3 %v3589_v26 }
 0x22b   : > { %v4509_v25 = vpop.f32.mrf.mxu3 }
 0x22c   : > { %2358 = vmatmul.bf16.gmra.mxu0 %v2265_v24  ;;  %v1784_v24 = vld [vmem:[#allocation2 + $0x112] sm:$0xff] }
 0x22d   : > { %v4511_v14 = vpop.f32.mrf.mxu1  ;;  %v4530_v50 = vpack.c.bf16 %v1784_v24, %v1783_v48  ;;  %v1785_v24 = vld [vmem:[#allocation2 + $0x122] sm:$0xff] }
 0x22e   : > { %5278 = vst [vmem:[#allocation33_spill] sm:$0xff] %v4511_v14  ;;  %v1786_v14 = vld [vmem:[#allocation2 + $0x12a] sm:$0xff] }
 0x230   : > { %1929 = vmatmul.bf16.gmra.mxu2 %v4513_v3  ;;  %v4528_v54 = vpop.f32.mrf.mxu0 }
 0x231   : > { %5282 = vst [vmem:[#allocation37_spill] sm:$0xff] %v4528_v54  ;;  %v4541_v54 = vpop.f32.mrf.mxu2 }
 0x232   : > { %5285 = vst [vmem:[#allocation40_spill] sm:$0xff] %v4541_v54  ;;  %v3604_v54 = vld [vmem:[#allocation8 + $0x220] sm:$0xff] }
 0x233   : > { %v4516_v49 = vpop.f32.mrf.mxu3 }
 0x235   : > { %v4520_v12 = vpop.f32.mrf.mxu1 }
 0x236   : > { %5280 = vst [vmem:[#allocation35_spill] sm:$0xff] %v4520_v12 }
 0x238   : > { %1192 = vmatmul.bf16.gmra.mxu3 %v4394_v0  ;;  %1700 = vmatmul.bf16.gmra.mxu1 %v4347_v59  ;;  %v4537_v19 = vpop.f32.mrf.mxu0 }
 0x239   : > { %5284 = vst [vmem:[#allocation39_spill] sm:$0xff] %v4537_v19  ;;  %v4554_v45 = vpop.f32.mrf.mxu2 }
 0x23a   : > { %5288 = vst [vmem:[#allocation43_spill] sm:$0xff] %v4554_v45 }
 0x23b   : > { %v4524_v35 = vpop.f32.mrf.mxu3 }
 0x23c   : > { %2363 = vmatmul.bf16.gmra.mxu0 %v2266_v40  ;;  %v2238_v40 = vld [vmem:[#allocation2 + $0x79] sm:$0xff] }
 0x23d   : > { %v4526_v58 = vpop.f32.mrf.mxu1  ;;  %v2267_v48 = vpack.c.bf16 %v2239_v8, %v2238_v40  ;;  %v2241_v8 = vld [vmem:[#allocation2 + $0x99] sm:$0xff] }
 0x23e   : > { %5281 = vst [vmem:[#allocation36_spill] sm:$0xff] %v4526_v58  ;;  %v3605_v58 = vld [vmem:[#allocation8 + $0x228] sm:$0xff] }
 0x23f   : > { %2581 = vmatpush.bf16.msra.mxu1 %v3605_v58  ;;  %v2240_v58 = vld [vmem:[#allocation2 + $0x91] sm:$0xff] }
 0x240   : > { %1934 = vmatmul.bf16.gmra.mxu2 %v4530_v50  ;;  %v4550_v19 = vpop.f32.mrf.mxu0  ;;  %v2268_v40 = vpack.c.bf16 %v2241_v8, %v2240_v58 }
 0x241   : > { %5287 = vst [vmem:[#allocation42_spill] sm:$0xff] %v4550_v19  ;;  %v4565_v63 = vpop.f32.mrf.mxu2 }
 0x242   : > { %5291 = vst [vmem:[#allocation46_spill] sm:$0xff] %v4565_v63 }
 0x243   : > { %v4533_v12 = vpop.f32.mrf.mxu3  ;;  %2582 = vmatpush.bf16.msra.mxu1 %v3604_v54  ;;  %v3602_v54 = vld [vmem:[#allocation8 + $0x210] sm:$0xff] }
 0x245   : > { %v4535_v59 = vpop.f32.mrf.mxu1 }
 0x246   : > { %5283 = vst [vmem:[#allocation38_spill] sm:$0xff] %v4535_v59  ;;  %v4547_v59 = vpack.c.bf16 %v1786_v14, %v1785_v24  ;;  %v1788_v14 = vld [vmem:[#allocation2 + $0x142] sm:$0xff] }
 0x248   : > { %1197 = vmatmul.bf16.gmra.mxu3 %v4411_v15  ;;  %1705 = vmatmul.bf16.gmra.mxu1 %v4364_v23 }
 0x24b   : > { %v4543_v30 = vpop.f32.mrf.mxu3 }
 0x24c   : > { %2368 = vmatmul.bf16.gmra.mxu0 %v2267_v48  ;;  %v1787_v48 = vld [vmem:[#allocation2 + $0x13a] sm:$0xff] }
 0x24d   : > { %v4545_v26 = vpop.f32.mrf.mxu1  ;;  %v4567_v45 = vpack.c.bf16 %v1788_v14, %v1787_v48  ;;  %v3603_v48 = vld [vmem:[#allocation8 + $0x218] sm:$0xff] }
 0x24e   : > { %5286 = vst [vmem:[#allocation41_spill] sm:$0xff] %v4545_v26  ;;  %v4560_v26 = vpop.f32.mrf.mxu0  ;;  %v2242_v14 = vld [vmem:[#allocation2 + $0xa9] sm:$0xff]  ;;  %2583 = vmatpush.bf16.msra.mxu1 %v3603_v48 }
 0x24f   : > { %5290 = vst [vmem:[#allocation45_spill] sm:$0xff] %v4560_v26 }
 0x250   : > { %1939 = vmatmul.bf16.gmra.mxu2 %v4547_v59 }
 0x252   : > { %2584 = vmatpush.bf16.msra.mxu1 %v3602_v54 }
 0x253   : > { %v4552_v23 = vpop.f32.mrf.mxu3 }
 0x255   : > { %v4556_v11 = vpop.f32.mrf.mxu1 }
 0x256   : > { %5289 = vst [vmem:[#allocation44_spill] sm:$0xff] %v4556_v11  ;;  %v4575_v26 = vpop.f32.mrf.mxu0 }
 0x257   : > { %5293 = vst [vmem:[#allocation48_spill] sm:$0xff] %v4575_v26 }
 0x258   : > { %1202 = vmatmul.bf16.gmra.mxu3 %v4426_v52  ;;  %1710 = vmatmul.bf16.gmra.mxu1 %v4385_v44  ;;  %v3588_v44 = vld [vmem:[#allocation8 + $0x1a0] sm:$0xff] }
 0x259   : > { %2114 = vmatpush.bf16.msra.mxu3 %v3588_v44  ;;  %v1789_v44 = vld [vmem:[#allocation2 + $0x152] sm:$0xff] }
 0x25b   : > { %v1041_v24 = vpop.f32.mrf.mxu3 }
 0x25c   : > { %2373 = vmatmul.bf16.gmra.mxu0 %v2268_v40  ;;  %v4563_v19 = vadd.f32 %v1041_v24, %v4490_v2  ;;  %v2243_v2 = vld [vmem:[#allocation2 + $0xb1] sm:$0xff]  ;;  %v4577_v40 = vpop.f32.mrf.mxu2 }
 0x25d   : > { %v4570_v11 = vpop.f32.mrf.mxu1  ;;  %5294 = vst [vmem:[#allocation49_spill] sm:$0xff] %v4577_v40  ;;  %v2269_v24 = vpack.c.bf16 %v2243_v2, %v2242_v14 }
 0x25e   : > { %5292 = vst [vmem:[#allocation47_spill] sm:$0xff] %v4570_v11  ;;  %v4588_v40 = vpop.f32.mrf.mxu0 }
 0x25f   : > { %5296 = vst [vmem:[#allocation51_spill] sm:$0xff] %v4588_v40  ;;  %v1791_v40 = vld [vmem:[#allocation2 + $0x16a] sm:$0xff] }
 0x260   : > { %1944 = vmatmul.bf16.gmra.mxu2 %v4567_v45 }
 0x263   : > { %v1043_v8 = vpop.f32.mrf.mxu3 }
 0x264   : > { %v4573_v58 = vadd.f32 %v1043_v8, %v4501_v61  ;;  %v1790_v61 = vld [vmem:[#allocation2 + $0x15a] sm:$0xff]  ;;  %v4591_v2 = vpop.f32.mrf.mxu2 }
 0x265   : > { %v4581_v11 = vpop.f32.mrf.mxu1  ;;  %v4586_v63 = vpack.c.bf16 %v1790_v61, %v1789_v44  ;;  %5297 = vst [vmem:[#allocation52_spill] sm:$0xff] %v4591_v2  ;;  %v2244_v44 = vld [vmem:[#allocation2 + $0xc1] sm:$0xff] }
 0x266   : > { %5295 = vst [vmem:[#allocation50_spill] sm:$0xff] %v4581_v11  ;;  %v4600_v61 = vpop.f32.mrf.mxu0  ;;  %v1792_v11 = vld [vmem:[#allocation2 + $0x172] sm:$0xff] }
 0x267   : > { %5299 = vst [vmem:[#allocation54_spill] sm:$0xff] %v4600_v61 }
 0x268   : > { %1207 = vmatmul.bf16.gmra.mxu3 %v4439_v27  ;;  %1715 = vmatmul.bf16.gmra.mxu1 %v4403_v42  ;;  %v3601_v42 = vld [vmem:[#allocation8 + $0x208] sm:$0xff] }
 0x269   : > { %2585 = vmatpush.bf16.msra.mxu1 %v3601_v42 }
 0x26b   : > { %v1046_v8 = vpop.f32.mrf.mxu3 }
 0x26c   : > { %2378 = vmatmul.bf16.gmra.mxu0 %v2269_v24  ;;  %v4584_v26 = vadd.f32 %v1046_v8, %v4509_v25  ;;  %v3600_v25 = vld [vmem:[#allocation8 + $0x200] sm:$0xff]  ;;  %v4602_v2 = vpop.f32.mrf.mxu2 }
 0x26d   : > { %v4593_v14 = vpop.f32.mrf.mxu1  ;;  %2586 = vmatpush.bf16.msra.mxu1 %v3600_v25  ;;  %v2245_v8 = vld [vmem:[#allocation2 + $0xc9] sm:$0xff]  ;;  %5300 = vst [vmem:[#allocation55_spill] sm:$0xff] %v4602_v2 }
 0x26e   : > { %5298 = vst [vmem:[#allocation53_spill] sm:$0xff] %v4593_v14  ;;  %v2270_v54 = vpack.c.bf16 %v2245_v8, %v2244_v44  ;;  %v4609_v14 = vpack.c.bf16 %v1792_v11, %v1791_v40  ;;  %v4612_v61 = vpop.f32.mrf.mxu0  ;;  %v2246_v11 = vld [vmem:[#allocation2 + $0xd9] sm:$0xff]  ;;  %v1793_v40 = vld [vmem:[#allocation2 + $0x182] sm:$0xff] }
 0x26f   : > { %5302 = vst [vmem:[#allocation57_spill] sm:$0xff] %v4612_v61 }
 0x270   : > { %1949 = vmatmul.bf16.gmra.mxu2 %v4586_v63 }
 0x273   : > { %v1048_v48 = vpop.f32.mrf.mxu3 }
 0x274   : > { %v4596_v24 = vadd.f32 %v1048_v48, %v4516_v49  ;;  %v3587_v48 = vld [vmem:[#allocation8 + $0x198] sm:$0xff]  ;;  %v4617_v44 = vpop.f32.mrf.mxu2 }
 0x275   : > { %v4607_v25 = vpop.f32.mrf.mxu1  ;;  %2115 = vmatpush.bf16.msra.mxu3 %v3587_v48  ;;  %5303 = vst [vmem:[#allocation58_spill] sm:$0xff] %v4617_v44  ;;  %v3615_v44 = vld [vmem:[#allocation9 + $0x38] sm:$0xff] }
 0x276   : > { %5301 = vst [vmem:[#allocation56_spill] sm:$0xff] %v4607_v25  ;;  %2852 = vmatpush.bf16.msra.mxu2 %v3615_v44 }
 0x278   : > { %1212 = vmatmul.bf16.gmra.mxu3 %v4455_v21  ;;  %1720 = vmatmul.bf16.gmra.mxu1 %v4418_v17 }
 0x27b   : > { %v1051_v42 = vpop.f32.mrf.mxu3 }
 0x27c   : > { %2383 = vmatmul.bf16.gmra.mxu0 %v2270_v54  ;;  %v4605_v49 = vadd.f32 %v1051_v42, %v4524_v35  ;;  %v2247_v54 = vld [vmem:[#allocation2 + $0xe1] sm:$0xff]  ;;  %v1794_v42 = vld [vmem:[#allocation2 + $0x18a] sm:$0xff]  ;;  %v4630_v25 = vpop.f32.mrf.mxu2 }
 0x27d   : > { %v4619_v2 = vpop.f32.mrf.mxu1  ;;  %v2271_v35 = vpack.c.bf16 %v2247_v54, %v2246_v11  ;;  %5306 = vst [vmem:[#allocation61_spill] sm:$0xff] %v4630_v25  ;;  %v2249_v11 = vld [vmem:[#allocation2 + $0xf9] sm:$0xff] }
 0x27e   : > { %5304 = vst [vmem:[#allocation59_spill] sm:$0xff] %v4619_v2 }
 0x280   : > { %1954 = vmatmul.bf16.gmra.mxu2 %v4609_v14 }
 0x283   : > { %v1053_v17 = vpop.f32.mrf.mxu3 }
 0x284   : > { %v4615_v8 = vadd.f32 %v1053_v17, %v4533_v12  ;;  %v4626_v12 = vpop.f32.mrf.mxu0  ;;  %v4628_v17 = vpack.c.bf16 %v1794_v42, %v1793_v40 }
 0x285   : > { %5305 = vst [vmem:[#allocation60_spill] sm:$0xff] %v4626_v12  ;;  %v4633_v2 = vpop.f32.mrf.mxu1 }
 0x286   : > { %5307 = vst [vmem:[#allocation62_spill] sm:$0xff] %v4633_v2  ;;  %v3586_v2 = vld [vmem:[#allocation8 + $0x190] sm:$0xff] }
 0x287   : > { %2116 = vmatpush.bf16.msra.mxu3 %v3586_v2 }
 0x288   : > { %1217 = vmatmul.bf16.gmra.mxu3 %v4468_v37  ;;  %1725 = vmatmul.bf16.gmra.mxu1 %v4459_v13 }
 0x28b   : > { %v1056_v48 = vpop.f32.mrf.mxu3 }
 0x28c   : > { %2388 = vmatmul.bf16.gmra.mxu0 %v2271_v35  ;;  %v4624_v61 = vadd.f32 %v1056_v48, %v4543_v30  ;;  %v4638_v35 = vpop.f32.mrf.mxu0  ;;  %v2248_v30 = vld [vmem:[#allocation2 + $0xf1] sm:$0xff] }
 0x28d   : > { %5308 = vst [vmem:[#allocation63_spill] sm:$0xff] %v4638_v35  ;;  %v2272_v40 = vpack.c.bf16 %v2249_v11, %v2248_v30  ;;  %v4642_v48 = vpop.f32.mrf.mxu1  ;;  %v2251_v35 = vld [vmem:[#allocation2 + $0x111] sm:$0xff] }
 0x28e   : > { %5309 = vst [vmem:[#allocation64_spill] sm:$0xff] %v4642_v48 }
 0x290   : > { %1959 = vmatmul.bf16.gmra.mxu2 %v4628_v17 }
 0x293   : > { %v1058_v13 = vpop.f32.mrf.mxu3 }
 0x294   : > { %v4636_v54 = vadd.f32 %v1058_v13, %v4552_v23  ;;  %v4647_v23 = vpop.f32.mrf.mxu0 }
 0x295   : > { %5310 = vst [vmem:[#allocation65_spill] sm:$0xff] %v4647_v23  ;;  %v4651_v13 = vpop.f32.mrf.mxu1  ;;  %v3614_v23 = vld [vmem:[#allocation9 + $0x30] sm:$0xff] }
 0x296   : > { %5311 = vst [vmem:[#allocation66_spill] sm:$0xff] %v4651_v13  ;;  %2853 = vmatpush.bf16.msra.mxu2 %v3614_v23 }
 0x298   : > { %1222 = vmatmul.bf16.gmra.mxu3 %v4480_v55  ;;  %2587 = vmatmul.bf16.vlgmr.msra.gmra.mxu1 %v4394_v0  ;;  %v2250_v0 = vld [vmem:[#allocation2 + $0x109] sm:$0xff] }
 0x299   : > { %v2273_v11 = vpack.c.bf16 %v2251_v35, %v2250_v0  ;;  %v2252_v35 = vld [vmem:[#allocation2 + $0x121] sm:$0xff] }
 0x29b   : > { %v1183_v42 = vpop.f32.mrf.mxu3 }
 0x29c   : > { %2393 = vmatmul.bf16.gmra.mxu0 %v2272_v40  ;;  %v4645_v12 = vadd.f32 %v1183_v42, %v4285_v29  ;;  %v4655_v40 = vpop.f32.mrf.mxu0 }
 0x29d   : > { %5312 = vst [vmem:[#allocation67_spill] sm:$0xff] %v4655_v40  ;;  %v4660_v2 = vpop.f32.mrf.mxu1  ;;  %v3585_v40 = vld [vmem:[#allocation8 + $0x188] sm:$0xff] }
 0x29e   : > { %5313 = vst [vmem:[#allocation68_spill] sm:$0xff] %v4660_v2  ;;  %2117 = vmatpush.bf16.msra.mxu3 %v3585_v40  ;;  %v2255_v2 = vld [vmem:[#allocation2 + $0x141] sm:$0xff] }
 0x2a3   : > { %v4649_v44 = vpop.f32.mrf.mxu3 }
 0x2a4   : > { %v4665_v48 = vpop.f32.mrf.mxu0 }
 0x2a5   : > { %5314 = vst [vmem:[#allocation69_spill] sm:$0xff] %v4665_v48  ;;  %v4669_v0 = vpop.f32.mrf.mxu1 }
 0x2a6   : > { %5315 = vst [vmem:[#allocation70_spill] sm:$0xff] %v4669_v0 }
 0x2a8   : > { %1227 = vmatmul.bf16.gmra.mxu3 %v4496_v32  ;;  %2592 = vmatmul.bf16.gmra.mxu1 %v4411_v15  ;;  %v2253_v15 = vld [vmem:[#allocation2 + $0x129] sm:$0xff] }
 0x2ab   : > { %v1188_v30 = vpop.f32.mrf.mxu3 }
 0x2ac   : > { %2398 = vmatmul.bf16.gmra.mxu0 %v2273_v11  ;;  %v4658_v29 = vadd.f32 %v1188_v30, %v4316_v22  ;;  %v2274_v22 = vpack.c.bf16 %v2253_v15, %v2252_v35 }
 0x2b3   : > { %v1190_v42 = vpop.f32.mrf.mxu3 }
 0x2b4   : > { %v4663_v13 = vadd.f32 %v1190_v42, %v4331_v41  ;;  %v4674_v41 = vpop.f32.mrf.mxu0  ;;  %v4676_v42 = vpop.f32.mrf.mxu1 }
 0x2b5   : > { %5316 = vst [vmem:[#allocation71_spill] sm:$0xff] %v4674_v41  ;;  %v3613_v41 = vld [vmem:[#allocation9 + $0x28] sm:$0xff] }
 0x2b6   : > { %5317 = vst [vmem:[#allocation72_spill] sm:$0xff] %v4676_v42  ;;  %2854 = vmatpush.bf16.msra.mxu2 %v3613_v41  ;;  %v2256_v42 = vld [vmem:[#allocation2 + $0x151] sm:$0xff] }
 0x2b8   : > { %1232 = vmatmul.bf16.gmra.mxu3 %v4513_v3  ;;  %2597 = vmatmul.bf16.gmra.mxu1 %v4426_v52  ;;  %v2254_v52 = vld [vmem:[#allocation2 + $0x139] sm:$0xff] }
 0x2bb   : > { %v1193_v11 = vpop.f32.mrf.mxu3 }
 0x2bc   : > { %2403 = vmatmul.bf16.gmra.mxu0 %v2274_v22  ;;  %v4672_v30 = vadd.f32 %v1193_v11, %v4344_v56  ;;  %v4683_v15 = vpop.f32.mrf.mxu0  ;;  %v2275_v56 = vpack.c.bf16 %v2255_v2, %v2254_v52  ;;  %v4688_v22 = vpop.f32.mrf.mxu1 }
 0x2bd   : > { %5318 = vst [vmem:[#allocation73_spill] sm:$0xff] %v4688_v22  ;;  %v2259_v22 = vld [vmem:[#allocation2 + $0x171] sm:$0xff] }
 0x2c3   : > { %v1195_v23 = vpop.f32.mrf.mxu3 }
 0x2c4   : > { %v4679_v48 = vadd.f32 %v1195_v23, %v4354_v6  ;;  %v4690_v6 = vpop.f32.mrf.mxu0  ;;  %v4695_v0 = vpop.f32.mrf.mxu1 }
 0x2c5   : > { %5319 = vst [vmem:[#allocation74_spill] sm:$0xff] %v4695_v0  ;;  %v2258_v0 = vld [vmem:[#allocation2 + $0x169] sm:$0xff] }
 0x2c8   : > { %1237 = vmatmul.bf16.gmra.mxu3 %v4530_v50  ;;  %2602 = vmatmul.bf16.gmra.mxu1 %v4439_v27  ;;  %v2257_v27 = vld [vmem:[#allocation2 + $0x159] sm:$0xff] }
 0x2cb   : > { %v1198_v35 = vpop.f32.mrf.mxu3 }
 0x2cc   : > { %2408 = vmatmul.bf16.gmra.mxu0 %v2275_v56  ;;  %v4686_v40 = vadd.f32 %v1198_v35, %v4361_v20  ;;  %v2276_v20 = vpack.c.bf16 %v2257_v27, %v2256_v42  ;;  %v3584_v56 = vld [vmem:[#allocation8 + $0x180] sm:$0xff]  ;;  %v4702_v35 = vpop.f32.mrf.mxu0 }
 0x2cd   : > { %2118 = vmatpush.bf16.msra.mxu3 %v3584_v56 }
 0x2d3   : > { %v1200_v11 = vpop.f32.mrf.mxu3 }
 0x2d4   : > { %v4693_v23 = vadd.f32 %v1200_v11, %v4371_v34  ;;  %v4704_v34 = vpop.f32.mrf.mxu1  ;;  %v4709_v25 = vpop.f32.mrf.mxu0 }
 0x2d5   : > { %5320 = vst [vmem:[#allocation75_spill] sm:$0xff] %v4704_v34  ;;  %v2260_v34 = vld [vmem:[#allocation2 + $0x181] sm:$0xff] }
 0x2d8   : > { %1242 = vmatmul.bf16.gmra.mxu3 %v4547_v59  ;;  %2607 = vmatmul.bf16.gmra.mxu1 %v4455_v21 }
 0x2db   : > { %v1203_v2 = vpop.f32.mrf.mxu3 }
 0x2dc   : > { %2413 = vmatmul.bf16.gmra.mxu0 %v2276_v20  ;;  %v4700_v52 = vadd.f32 %v1203_v2, %v4379_v51  ;;  %v2277_v51 = vpack.c.bf16 %v2259_v22, %v2258_v0  ;;  %v4713_v42 = vpop.f32.mrf.mxu1  ;;  %v4718_v20 = vpop.f32.mrf.mxu0  ;;  %v3612_v2 = vld [vmem:[#allocation9 + $0x20] sm:$0xff] }
 0x2dd   : > { %5321 = vst [vmem:[#allocation76_spill] sm:$0xff] %v4713_v42  ;;  %2855 = vmatpush.bf16.msra.mxu2 %v3612_v2  ;;  %v2011_v42 = vld [vmem:[#allocation2 + $0xc8] sm:$0xff] }
 0x2e3   : > { %v1205_v41 = vpop.f32.mrf.mxu3 }
 0x2e4   : > { %v4707_v11 = vadd.f32 %v1205_v41, %v4391_v62  ;;  %v4723_v41 = vpop.f32.mrf.mxu1 }
 0x2e5   : > { %5322 = vst [vmem:[#allocation77_spill] sm:$0xff] %v4723_v41 }
 0x2e8   : > { %1247 = vmatmul.bf16.gmra.mxu3 %v4567_v45  ;;  %2612 = vmatmul.bf16.gmra.mxu1 %v4468_v37  ;;  %v2278_v37 = vpack.c.bf16 %v4443_v33, %v2260_v34 }
 0x2eb   : > { %v1208_v21 = vpop.f32.mrf.mxu3 }
 0x2ec   : > { %2418 = vmatmul.bf16.gmra.mxu0 %v2277_v51  ;;  %v4716_v27 = vadd.f32 %v1208_v21, %v4399_v28  ;;  %v4728_v28 = vpop.f32.mrf.mxu0  ;;  %v4733_v51 = vpop.f32.mrf.mxu1 }
 0x2ed   : > { %5323 = vst [vmem:[#allocation78_spill] sm:$0xff] %v4733_v51  ;;  %v2001_v51 = vld [vmem:[#allocation2 + $0x50] sm:$0xff] }
 0x2f3   : > { %v1210_v62 = vpop.f32.mrf.mxu3 }
 0x2f4   : > { %v4721_v56 = vadd.f32 %v1210_v62, %v4409_v9  ;;  %v3611_v62 = vld [vmem:[#allocation9 + $0x18] sm:$0xff] }
 0x2f5   : > { %2856 = vmatpush.bf16.msra.mxu2 %v3611_v62 }
 0x2f8   : > { %1252 = vmatmul.bf16.gmra.mxu3 %v4586_v63  ;;  %2617 = vmatmul.bf16.gmra.mxu1 %v4480_v55  ;;  %v4740_v55 = vpop.f32.mrf.mxu1 }
 0x2f9   : > { %5324 = vst [vmem:[#allocation79_spill] sm:$0xff] %v4740_v55 }
 0x2fb   : > { %v1213_v0 = vpop.f32.mrf.mxu3 }
 0x2fc   : > { %2423 = vmatmul.bf16.gmra.mxu0 %v2278_v37  ;;  %v4731_v22 = vadd.f32 %v1213_v0, %v4416_v7  ;;  %v1999_v7 = vld [vmem:[#allocation2 + $0x38] sm:$0xff] }
 0x300   : > { %v4745_v37 = vpop.f32.mrf.mxu1 }
 0x301   : > { %5325 = vst [vmem:[#allocation80_spill] sm:$0xff] %v4745_v37  ;;  %v2000_v37 = vld [vmem:[#allocation2 + $0x48] sm:$0xff] }
 0x302   : > { %v2031_v41 = vpack.c.bf16 %v2001_v51, %v2000_v37 }
 0x303   : > { %v1215_v9 = vpop.f32.mrf.mxu3 }
 0x304   : > { %v4736_v21 = vadd.f32 %v1215_v9, %v4424_v38  ;;  %v1998_v38 = vld [vmem:[#allocation2 + $0x30] sm:$0xff] }
 0x305   : > { %v2030_v9 = vpack.c.bf16 %v1999_v7, %v1998_v38 }
 0x308   : > { %1257 = vmatmul.bf16.gmra.mxu3 %v4609_v14  ;;  %2622 = vmatmul.bf16.gmra.mxu1 %v4496_v32 }
 0x30b   : > { %v1218_v33 = vpop.f32.mrf.mxu3 }
 0x30c   : > { %v4743_v34 = vadd.f32 %v1218_v33, %v4431_v39  ;;  %v4754_v39 = vpop.f32.mrf.mxu1 }
 0x30d   : > { %5326 = vst [vmem:[#allocation81_spill] sm:$0xff] %v4754_v39 }
 0x313   : > { %v1220_v2 = vpop.f32.mrf.mxu3 }
 0x314   : > { %v4748_v0 = vadd.f32 %v1220_v2, %v4437_v43  ;;  %v4759_v43 = vpop.f32.mrf.mxu1 }
 0x315   : > { %5327 = vst [vmem:[#allocation82_spill] sm:$0xff] %v4759_v43 }
 0x318   : > { %2119 = vmatmul.bf16.vlgmr.msra.gmra.mxu3 %v2030_v9  ;;  %2627 = vmatmul.bf16.gmra.mxu1 %v4513_v3  ;;  %v2003_v9 = vld [vmem:[#allocation2 + $0x68] sm:$0xff] }
 0x31b   : > { %v1223_v32 = vpop.f32.mrf.mxu3 }
 0x31c   : > { %v4752_v55 = vadd.f32 %v1223_v32, %v4448_v57  ;;  %v3610_v57 = vld [vmem:[#allocation9 + $0x10] sm:$0xff]  ;;  %v4765_v7 = vpop.f32.mrf.mxu1 }
 0x31d   : > { %5328 = vst [vmem:[#allocation83_spill] sm:$0xff] %v4765_v7  ;;  %2857 = vmatpush.bf16.msra.mxu2 %v3610_v57  ;;  %v2002_v32 = vld [vmem:[#allocation2 + $0x60] sm:$0xff]  ;;  %v4779_v57 = vpop.f32.mrf.mxu2  ;;  %v2006_v7 = vld [vmem:[#allocation2 + $0x90] sm:$0xff] }
 0x31e   : > { %v2032_v51 = vpack.c.bf16 %v2003_v9, %v2002_v32 }
 0x323   : > { %v1225_v33 = vpop.f32.mrf.mxu3 }
 0x324   : > { %v4757_v62 = vadd.f32 %v1225_v33, %v4451_v16  ;;  %v2005_v33 = vld [vmem:[#allocation2 + $0x80] sm:$0xff] }
 0x328   : > { %2124 = vmatmul.bf16.gmra.mxu3 %v2031_v41  ;;  %2632 = vmatmul.bf16.gmra.mxu1 %v4530_v50  ;;  %v4771_v50 = vpop.f32.mrf.mxu1 }
 0x329   : > { %5329 = vst [vmem:[#allocation84_spill] sm:$0xff] %v4771_v50 }
 0x32b   : > { %v1228_v2 = vpop.f32.mrf.mxu3 }
 0x32c   : > { %v4763_v3 = vadd.f32 %v1228_v2, %v4461_v53 }
 0x333   : > { %v1230_v38 = vpop.f32.mrf.mxu3 }
 0x334   : > { %v4768_v16 = vadd.f32 %v1230_v38, %v4466_v5  ;;  %v2004_v5 = vld [vmem:[#allocation2 + $0x78] sm:$0xff]  ;;  %v4781_v38 = vpop.f32.mrf.mxu1 }
 0x335   : > { %v2033_v9 = vpack.c.bf16 %v2005_v33, %v2004_v5 }
 0x338   : > { %2129 = vmatmul.bf16.gmra.mxu3 %v2032_v51  ;;  %2637 = vmatmul.bf16.gmra.mxu1 %v4547_v59 }
 0x33b   : > { %v1233_v41 = vpop.f32.mrf.mxu3 }
 0x33c   : > { %v4774_v53 = vadd.f32 %v1233_v41, %v4473_v10  ;;  %v4787_v10 = vpop.f32.mrf.mxu2  ;;  %v4789_v51 = vpop.f32.mrf.mxu1  ;;  %v3609_v41 = vld [vmem:[#allocation9 + $0x8] sm:$0xff] }
 0x33d   : > { %2858 = vmatpush.bf16.msra.mxu2 %v3609_v41  ;;  %v2009_v41 = vld [vmem:[#allocation2 + $0xb0] sm:$0xff] }
 0x343   : > { %v1235_v37 = vpop.f32.mrf.mxu3 }
 0x344   : > { %v4777_v2 = vadd.f32 %v1235_v37, %v4478_v36  ;;  %v2007_v37 = vld [vmem:[#allocation2 + $0x98] sm:$0xff] }
 0x345   : > { %v2034_v33 = vpack.c.bf16 %v2007_v37, %v2006_v7  ;;  %v2008_v7 = vld [vmem:[#allocation2 + $0xa8] sm:$0xff] }
 0x348   : > { %2134 = vmatmul.bf16.gmra.mxu3 %v2033_v9  ;;  %2642 = vmatmul.bf16.gmra.mxu1 %v4567_v45  ;;  %v4795_v45 = vpop.f32.mrf.mxu2 }
 0x34b   : > { %v1238_v59 = vpop.f32.mrf.mxu3 }
 0x34c   : > { %v4785_v32 = vadd.f32 %v1238_v59, %v4483_v60  ;;  %v4797_v60 = vpop.f32.mrf.mxu1 }
 0x350   : > { %v4802_v59 = vpop.f32.mrf.mxu2 }
 0x353   : > { %v1240_v36 = vpop.f32.mrf.mxu3 }
 0x354   : > { %v4792_v50 = vadd.f32 %v1240_v36, %v4492_v46  ;;  %v4804_v39 = vpop.f32.mrf.mxu1  ;;  %v2035_v36 = vpack.c.bf16 %v2009_v41, %v2008_v7 }
 0x358   : > { %2139 = vmatmul.bf16.gmra.mxu3 %v2034_v33  ;;  %2647 = vmatmul.bf16.gmra.mxu1 %v4586_v63 }
 0x35b   : > { %v1243_v5 = vpop.f32.mrf.mxu3 }
 0x35c   : > { %v4800_v9 = vadd.f32 %v1243_v5, %v4563_v19  ;;  %v4813_v19 = vpop.f32.mrf.mxu2  ;;  %v4815_v33 = vpop.f32.mrf.mxu1  ;;  %v3608_v5 = vld [vmem:[#allocation9] sm:$0xff] }
 0x35d   : > { %2859 = vmatpush.bf16.msra.mxu2 %v3608_v5 }
 0x35e   : > { %5330 = vst [vmem:[#allocation85_spill] sm:$0xff] %v4800_v9 }
 0x363   : > { %v1245_v43 = vpop.f32.mrf.mxu3 }
 0x364   : > { %v4807_v46 = vadd.f32 %v1245_v43, %v4573_v58  ;;  %v2010_v43 = vld [vmem:[#allocation2 + $0xc0] sm:$0xff]  ;;  %v4820_v7 = vpop.f32.mrf.mxu2 }
 0x365   : > { %v2036_v41 = vpack.c.bf16 %v2011_v42, %v2010_v43 }
 0x366   : > { %5331 = vst [vmem:[#allocation86_spill] sm:$0xff] %v4807_v46 }
 0x368   : > { %2144 = vmatmul.bf16.gmra.mxu3 %v2035_v36  ;;  %2652 = vmatmul.bf16.gmra.mxu1 %v4609_v14  ;;  %v4822_v14 = vpop.f32.mrf.mxu1 }
 0x36b   : > { %v1248_v63 = vpop.f32.mrf.mxu3 }
 0x36c   : > { %v4811_v37 = vadd.f32 %v1248_v63, %v4584_v26  ;;  %v4828_v63 = vpop.f32.mrf.mxu2 }
 0x36e   : > { %5332 = vst [vmem:[#allocation87_spill] sm:$0xff] %v4811_v37  ;;  %v2013_v37 = vld [vmem:[#allocation2 + $0xe0] sm:$0xff] }
 0x373   : > { %v1250_v9 = vpop.f32.mrf.mxu3 }
 0x374   : > { %v4818_v58 = vadd.f32 %v1250_v9, %v4596_v24  ;;  %v2012_v9 = vld [vmem:[#allocation2 + $0xd8] sm:$0xff]  ;;  %v4833_v43 = vpop.f32.mrf.mxu2 }
 0x375   : > { %v2037_v42 = vpack.c.bf16 %v2013_v37, %v2012_v9  ;;  %v2014_v37 = vld [vmem:[#allocation2 + $0xf0] sm:$0xff] }
 0x376   : > { %5333 = vst [vmem:[#allocation88_spill] sm:$0xff] %v4818_v58 }
 0x378   : > { %2149 = vmatmul.bf16.gmra.mxu3 %v2036_v41  ;;  %2657 = vmatmul.bf16.gmra.mxu1 %v4628_v17 }
 0x37b   : > { %v1253_v26 = vpop.f32.mrf.mxu3 }
 0x37c   : > { %v4826_v36 = vadd.f32 %v1253_v26, %v4605_v49  ;;  %v1497_v49 = vadd.f32 %v4368_v31, %v4645_v12  ;;  %v2015_v26 = vld [vmem:[#allocation2 + $0xf8] sm:$0xff]  ;;  %v5338_v31 = vld [vmem:[#allocation40_spill] sm:$0xff] }
 0x37e   : > { %5334 = vst [vmem:[#allocation89_spill] sm:$0xff] %v4826_v36  ;;  %v984_v36 = vadd.f32 %v4308_v1, %v4299_v47  ;;  %v4853_v1 = vpop.f32.mrf.mxu1 }
 0x380   : > { %v1264_v9 = vadd.f32 %v4649_v44, %v984_v36  ;;  %v5340_v36 = vld [vmem:[#allocation16_spill] sm:$0xff] }
 0x383   : > { %v1255_v5 = vpop.f32.mrf.mxu3 }
 0x384   : > { %v4831_v24 = vadd.f32 %v1255_v5, %v4615_v8  ;;  %v4845_v5 = vpop.f32.mrf.mxu2 }
 0x386   : > { %5335 = vst [vmem:[#allocation90_spill] sm:$0xff] %v4831_v24  ;;  %v4851_v24 = vpop.f32.mrf.mxu0 }
 0x388   : > { %2154 = vmatmul.bf16.gmra.mxu3 %v2037_v42  ;;  %v2038_v42 = vpack.c.bf16 %v2015_v26, %v2014_v37  ;;  %v2017_v37 = vld [vmem:[#allocation2 + $0x110] sm:$0xff] }
 0x38b   : > { %v1258_v58 = vpop.f32.mrf.mxu3 }
 0x38c   : > { %v4836_v41 = vadd.f32 %v1258_v58, %v4624_v61  ;;  %v1731_v61 = vadd.f32 %v4485_v18, %v1497_v49  ;;  %v1498_v58 = vadd.f32 %v4377_v4, %v1264_v9  ;;  %v1499_v18 = vadd.f32 %v5340_v36, %v4658_v29  ;;  %v5341_v49 = vld [vmem:[#allocation43_spill] sm:$0xff] }
 0x38e   : > { %5336 = vst [vmem:[#allocation91_spill] sm:$0xff] %v4836_v41  ;;  %v1965_v12 = vadd.f32 %v5338_v31, %v1731_v61  ;;  %v2016_v61 = vld [vmem:[#allocation2 + $0x108] sm:$0xff] }
 0x38f   : > { %v2039_v31 = vpack.c.bf16 %v2017_v37, %v2016_v61 }
 0x393   : > { %v1260_v17 = vpop.f32.mrf.mxu3 }
 0x394   : > { %v4843_v8 = vadd.f32 %v1260_v17, %v4636_v54  ;;  %v5339_v54 = vld [vmem:[#allocation29_spill] sm:$0xff] }
 0x395   : > { %v1732_v17 = vadd.f32 %v5339_v54, %v1498_v58  ;;  %v4868_v58 = vpop.f32.mrf.mxu0 }
 0x396   : > { %5337 = vst [vmem:[#allocation92_spill] sm:$0xff] %v4843_v8  ;;  %v4856_v8 = vpop.f32.mrf.mxu2 }
 0x397   : > { %v1966_v26 = vadd.f32 %v5341_v49, %v1732_v17 }
 0x398   : > { %2159 = vmatmul.bf16.gmra.mxu3 %v2038_v42 }
 0x39b   : > { %v2120_v41 = vpop.f32.mrf.mxu3 }
 0x39c   : > { %v2200_v47 = vadd.f32 %v2120_v41, %v1965_v12  ;;  %v4866_v41 = vld [vmem:[%s5249_s4] ss:$0 sm:$0xff]  ;;  %v5342_v12 = vld [vmem:[#allocation31_spill] sm:$0xff] }
 0x39d   : > { %v1733_v29 = vadd.f32 %v5342_v12, %v1499_v18  ;;  %v5345_v12 = vld [vmem:[#allocation33_spill] sm:$0xff] }
 0x39e   : > { %v2434_v44 = vadd.f32 %v4683_v15, %v2200_v47  ;;  %v4872_v47 = vpop.f32.mrf.mxu1  ;;  %v4876_v17 = vpop.f32.mrf.mxu2 }
 0x3a0   : > { %v2668_v9 = vadd.f32 %v4781_v38, %v2434_v44  ;;  %v5343_v44 = vld [vmem:[#allocation17_spill] sm:$0xff] }
 0x3a1   : > { %v1500_v36 = vadd.f32 %v5343_v44, %v4663_v13 }
 0x3a2   : > { %v2704_v54 = vadd.f32 %v4866_v41, %v2668_v9  ;;  %v4883_v9 = vpop.f32.mrf.mxu0 }
 0x3a3   : > { %v2122_v4 = vpop.f32.mrf.mxu3  ;;  %v1734_v46 = vadd.f32 %v5345_v12, %v1500_v36  ;;  %v2018_v36 = vld [vmem:[#allocation2 + $0x120] sm:$0xff] }
 0x3a4   : > { %v2201_v42 = vadd.f32 %v2122_v4, %v1966_v26  ;;  %v5344_v26 = vld [vmem:[#allocation46_spill] sm:$0xff]  ;;  %v2736_v37 = vmax.f32 %v2704_v54, 0.0 }
 0x3a5   : > { %v1967_v4 = vadd.f32 %v5344_v26, %v1733_v29 }
 0x3a6   : > { %v2435_v15 = vadd.f32 %v4690_v6, %v2201_v42  ;;  %v4888_v13 = vpop.f32.mrf.mxu1  ;;  %v4891_v29 = vpop.f32.mrf.mxu2 }
 0x3a8   : > { %v2669_v38 = vadd.f32 %v4789_v51, %v2435_v15  ;;  %2164 = vmatmul.bf16.gmra.mxu3 %v2039_v31  ;;  %v5346_v15 = vld [vmem:[#allocation18_spill] sm:$0xff] }
 0x3a9   : > { %v1501_v31 = vadd.f32 %v5346_v15, %v4672_v30  ;;  %v5350_v15 = vld [vmem:[#allocation52_spill] sm:$0xff] }
 0x3aa   : > { %v2705_v49 = vadd.f32 %v4866_v41, %v2669_v38  ;;  %v5347_v38 = vld [vmem:[#allocation49_spill] sm:$0xff]  ;;  %v4900_v12 = vpop.f32.mrf.mxu0 }
 0x3ab   : > { %v2125_v6 = vpop.f32.mrf.mxu3  ;;  %v1968_v44 = vadd.f32 %v5347_v38, %v1734_v46  ;;  %v5349_v46 = vld [vmem:[#allocation19_spill] sm:$0xff] }
 0x3ac   : > { %v2737_v42 = vmax.f32 %v2705_v49, 0.0  ;;  %v2202_v18 = vadd.f32 %v2125_v6, %v1967_v4  ;;  %v2019_v49 = vld [vmem:[#allocation2 + $0x128] sm:$0xff] }
 0x3ae   : > { %v2768_v61 = vpack.c.bf16 %v2737_v42, %v2736_v37  ;;  %v2436_v51 = vadd.f32 %v4702_v35, %v2202_v18  ;;  %v2040_v37 = vpack.c.bf16 %v2019_v49, %v2018_v36  ;;  %v5348_v35 = vld [vmem:[#allocation35_spill] sm:$0xff]  ;;  %v4906_v49 = vpop.f32.mrf.mxu2 }
 0x3af   : > { %v1735_v42 = vadd.f32 %v5348_v35, %v1501_v31 }
 0x3b0   : > { %2860 = vmatmul.bf16.vlgmr.msra.gmra.mxu2 %v2768_v61  ;;  %v2670_v26 = vadd.f32 %v4797_v60, %v2436_v51  ;;  %v1502_v61 = vadd.f32 %v5349_v46, %v4679_v48  ;;  %v5352_v48 = vld [vmem:[#allocation20_spill] sm:$0xff]  ;;  %v2021_v46 = vld [vmem:[#allocation2 + $0x140] sm:$0xff] }
 0x3b1   : > { %v1969_v38 = vadd.f32 %v5350_v15, %v1735_v42 }
 0x3b2   : > { %v2706_v30 = vadd.f32 %v4866_v41, %v2670_v26  ;;  %v4913_v15 = vpop.f32.mrf.mxu0 }
 0x3b3   : > { %v2127_v54 = vpop.f32.mrf.mxu3 }
 0x3b4   : > { %v2203_v4 = vadd.f32 %v2127_v54, %v1968_v44  ;;  %v4904_v44 = vpop.f32.mrf.mxu1  ;;  %v2738_v54 = vmax.f32 %v2706_v30, 0.0 }
 0x3b6   : > { %v2437_v6 = vadd.f32 %v4709_v25, %v2203_v4  ;;  %v5351_v4 = vld [vmem:[#allocation36_spill] sm:$0xff] }
 0x3b7   : > { %v1736_v26 = vadd.f32 %v5351_v4, %v1502_v61 }
 0x3b8   : > { %v2671_v18 = vadd.f32 %v4804_v39, %v2437_v6  ;;  %2169 = vmatmul.bf16.gmra.mxu3 %v2040_v37  ;;  %v1503_v6 = vadd.f32 %v5352_v48, %v4686_v40  ;;  %v5353_v37 = vld [vmem:[#allocation55_spill] sm:$0xff] }
 0x3b9   : > { %v1970_v35 = vadd.f32 %v5353_v37, %v1736_v26  ;;  %v5356_v26 = vld [vmem:[#allocation58_spill] sm:$0xff] }
 0x3ba   : > { %v2707_v60 = vadd.f32 %v4866_v41, %v2671_v18  ;;  %v2020_v18 = vld [vmem:[#allocation2 + $0x138] sm:$0xff] }
 0x3bb   : > { %v2130_v51 = vpop.f32.mrf.mxu3 }
 0x3bc   : > { %v2204_v25 = vadd.f32 %v2130_v51, %v1969_v38  ;;  %v2739_v31 = vmax.f32 %v2707_v60, 0.0  ;;  %v4916_v60 = vpop.f32.mrf.mxu1  ;;  %v2041_v51 = vpack.c.bf16 %v2021_v46, %v2020_v18  ;;  %v5357_v18 = vld [vmem:[#allocation41_spill] sm:$0xff] }
 0x3be   : > { %v2769_v39 = vpack.c.bf16 %v2739_v31, %v2738_v54  ;;  %v2438_v36 = vadd.f32 %v4718_v20, %v2204_v25  ;;  %v5354_v20 = vld [vmem:[#allocation38_spill] sm:$0xff]  ;;  %v4920_v54 = vpop.f32.mrf.mxu2 }
 0x3bf   : > { %v1737_v25 = vadd.f32 %v5354_v20, %v1503_v6 }
 0x3c0   : > { %2865 = vmatmul.bf16.gmra.mxu2 %v2769_v39  ;;  %v2672_v30 = vadd.f32 %v4815_v33, %v2438_v36  ;;  %v5355_v39 = vld [vmem:[#allocation21_spill] sm:$0xff] }
 0x3c1   : > { %v1504_v4 = vadd.f32 %v5355_v39, %v4693_v23  ;;  %v1971_v33 = vadd.f32 %v5356_v26, %v1737_v25  ;;  %v5358_v23 = vld [vmem:[#allocation22_spill] sm:$0xff] }
 0x3c2   : > { %v2708_v31 = vadd.f32 %v4866_v41, %v2672_v30 }
 0x3c3   : > { %v2132_v42 = vpop.f32.mrf.mxu3  ;;  %v1738_v46 = vadd.f32 %v5357_v18, %v1504_v4 }
 0x3c4   : > { %v2205_v38 = vadd.f32 %v2132_v42, %v1970_v35  ;;  %v4928_v42 = vpop.f32.mrf.mxu0 }
 0x3c6   : > { %v2439_v61 = vadd.f32 %v4728_v28, %v2205_v38  ;;  %v2740_v28 = vmax.f32 %v2708_v31, 0.0  ;;  %v4934_v38 = vpop.f32.mrf.mxu2  ;;  %v2023_v31 = vld [vmem:[#allocation2 + $0x158] sm:$0xff] }
 0x3c8   : > { %v2673_v40 = vadd.f32 %v4822_v14, %v2439_v61  ;;  %2174 = vmatmul.bf16.gmra.mxu3 %v2041_v51  ;;  %v4931_v14 = vpop.f32.mrf.mxu1  ;;  %v1505_v61 = vadd.f32 %v5358_v23, %v4700_v52  ;;  %v5359_v51 = vld [vmem:[#allocation61_spill] sm:$0xff] }
 0x3c9   : > { %v1972_v20 = vadd.f32 %v5359_v51, %v1738_v46 }
 0x3ca   : > { %v2709_v36 = vadd.f32 %v4866_v41, %v2673_v40  ;;  %v2022_v40 = vld [vmem:[#allocation2 + $0x150] sm:$0xff] }
 0x3cb   : > { %v2135_v48 = vpop.f32.mrf.mxu3 }
 0x3cc   : > { %v2206_v37 = vadd.f32 %v2135_v48, %v1971_v33  ;;  %v2741_v35 = vmax.f32 %v2709_v36, 0.0  ;;  %v2042_v33 = vpack.c.bf16 %v2023_v31, %v2022_v40  ;;  %v5360_v36 = vld [vmem:[#allocation44_spill] sm:$0xff] }
 0x3cd   : > { %v1739_v48 = vadd.f32 %v5360_v36, %v1505_v61 }
 0x3ce   : > { %v2770_v6 = vpack.c.bf16 %v2741_v35, %v2740_v28  ;;  %v2440_v30 = vadd.f32 %v4851_v24, %v2206_v37  ;;  %v4942_v24 = vpop.f32.mrf.mxu0  ;;  %v5361_v28 = vld [vmem:[#allocation23_spill] sm:$0xff] }
 0x3cf   : > { %v1506_v35 = vadd.f32 %v5361_v28, %v4707_v11  ;;  %v5363_v11 = vld [vmem:[#allocation24_spill] sm:$0xff]  ;;  %v5364_v28 = vld [vmem:[#allocation50_spill] sm:$0xff] }
 0x3d0   : > { %2870 = vmatmul.bf16.gmra.mxu2 %v2770_v6  ;;  %v2674_v39 = vadd.f32 %v4853_v1, %v2440_v30  ;;  %v4948_v6 = vpop.f32.mrf.mxu1  ;;  %v1973_v1 = vadd.f32 %v4779_v57, %v1739_v48  ;;  %v1507_v40 = vadd.f32 %v5363_v11, %v4716_v27  ;;  %v2262_v27 = vld [vmem:[#allocation2 + $0x199] sm:$0xff] }
 0x3d2   : > { %v2710_v52 = vadd.f32 %v4866_v41, %v2674_v39 }
 0x3d3   : > { %v2137_v25 = vpop.f32.mrf.mxu3 }
 0x3d4   : > { %v2207_v26 = vadd.f32 %v2137_v25, %v1972_v20  ;;  %v2742_v23 = vmax.f32 %v2710_v52, 0.0 }
 0x3d6   : > { %v2441_v4 = vadd.f32 %v4868_v58, %v2207_v26  ;;  %v4952_v58 = vpop.f32.mrf.mxu2  ;;  %v4958_v31 = vpop.f32.mrf.mxu0  ;;  %v2024_v26 = vld [vmem:[#allocation2 + $0x168] sm:$0xff] }
 0x3d8   : > { %v2675_v37 = vadd.f32 %v4872_v47, %v2441_v4  ;;  %2179 = vmatmul.bf16.gmra.mxu3 %v2042_v33  ;;  %v5362_v47 = vld [vmem:[#allocation47_spill] sm:$0xff]  ;;  %v2025_v4 = vld [vmem:[#allocation2 + $0x170] sm:$0xff]  ;;  %v4961_v33 = vpop.f32.mrf.mxu1 }
 0x3d9   : > { %v1740_v20 = vadd.f32 %v5362_v47, %v1506_v35  ;;  %v2043_v52 = vpack.c.bf16 %v2025_v4, %v2024_v26  ;;  %v1741_v35 = vadd.f32 %v5364_v28, %v1507_v40  ;;  %v5366_v26 = vld [vmem:[#allocation53_spill] sm:$0xff]  ;;  %v2026_v28 = vld [vmem:[#allocation2 + $0x180] sm:$0xff] }
 0x3da   : > { %v2711_v18 = vadd.f32 %v4866_v41, %v2675_v37 }
 0x3db   : > { %v2140_v46 = vpop.f32.mrf.mxu3  ;;  %v1974_v57 = vadd.f32 %v4787_v10, %v1740_v20  ;;  %v1975_v47 = vadd.f32 %v4795_v45, %v1741_v35  ;;  %v5367_v45 = vld [vmem:[#allocation26_spill] sm:$0xff]  ;;  %v2027_v35 = vld [vmem:[#allocation2 + $0x188] sm:$0xff] }
 0x3dc   : > { %v2208_v30 = vadd.f32 %v2140_v46, %v1973_v1  ;;  %v2743_v61 = vmax.f32 %v2711_v18, 0.0  ;;  %v2263_v1 = vld [vmem:[#allocation2 + $0x1a1] sm:$0xff] }
 0x3dd   : > { %v2279_v46 = vpack.c.bf16 %v2263_v1, %v2262_v27 }
 0x3de   : > { %v2771_v51 = vpack.c.bf16 %v2743_v61, %v2742_v23  ;;  %v2442_v25 = vadd.f32 %v4883_v9, %v2208_v30  ;;  %v4964_v37 = vpop.f32.mrf.mxu2  ;;  %v2496_v30 = vld [vmem:[#allocation2 + $0x19a] sm:$0xff]  ;;  %v2497_v23 = vld [vmem:[#allocation2 + $0x1a2] sm:$0xff] }
 0x3df   : > { %v2513_v61 = vpack.c.bf16 %v2497_v23, %v2496_v30  ;;  %2428 = vmatmul.bf16.gmra.mxu0 %v2279_v46  ;;  %v2044_v46 = vpack.c.bf16 %v2027_v35, %v2026_v28  ;;  %v5368_v30 = vld [vmem:[#allocation56_spill] sm:$0xff]  ;;  %v3728_v28 = vld [vmem:[#allocation2] sm:$0xff] }
 0x3e0   : > { %2875 = vmatmul.bf16.gmra.mxu2 %v2771_v51  ;;  %v2676_v36 = vadd.f32 %v4888_v13, %v2442_v25  ;;  %v5365_v13 = vld [vmem:[#allocation25_spill] sm:$0xff]  ;;  %v4974_v25 = vpop.f32.mrf.mxu0  ;;  %v2045_v35 = vpack.c.bf16 %v3728_v28, %v3728_v28 }
 0x3e1   : > { %v1508_v51 = vadd.f32 %v5365_v13, %v4721_v56  ;;  %2662 = vmatmul.bf16.gmra.mxu1 %v2513_v61 }
 0x3e2   : > { %v2712_v10 = vadd.f32 %v4866_v41, %v2676_v36 }
 0x3e3   : > { %v2142_v39 = vpop.f32.mrf.mxu3  ;;  %v1742_v4 = vadd.f32 %v5366_v26, %v1508_v51 }
 0x3e4   : > { %v2209_v48 = vadd.f32 %v2142_v39, %v1974_v57  ;;  %v2744_v11 = vmax.f32 %v2712_v10, 0.0  ;;  %v4976_v57 = vpop.f32.mrf.mxu1 }
 0x3e6   : > { %v2443_v9 = vadd.f32 %v4900_v12, %v2209_v48  ;;  %v4979_v36 = vpop.f32.mrf.mxu2  ;;  %v1509_v48 = vadd.f32 %v5367_v45, %v4731_v22 }
 0x3e8   : > { %v2677_v18 = vadd.f32 %v4904_v44, %v2443_v9  ;;  %2184 = vmatmul.bf16.gmra.mxu3 %v2043_v52  ;;  %v1976_v9 = vadd.f32 %v4802_v59, %v1742_v4  ;;  %v1743_v23 = vadd.f32 %v5368_v30, %v1509_v48  ;;  %v5369_v59 = vld [vmem:[#allocation27_spill] sm:$0xff]  ;;  %v5371_v4 = vld [vmem:[#allocation28_spill] sm:$0xff] }
 0x3e9   : > { %v1510_v51 = vadd.f32 %v5369_v59, %v4736_v21 }
 0x3ea   : > { %v2713_v12 = vadd.f32 %v4866_v41, %v2677_v18  ;;  %v2391_v18 = vpop.f32.mrf.mxu0 }
 0x3eb   : > { %v2145_v20 = vpop.f32.mrf.mxu3 }
 0x3ec   : > { %v2210_v44 = vadd.f32 %v2145_v20, %v1975_v47  ;;  %v2745_v40 = vmax.f32 %v2713_v12, 0.0  ;;  %v2625_v61 = vpop.f32.mrf.mxu1 }
 0x3ee   : > { %v2772_v39 = vpack.c.bf16 %v2745_v40, %v2744_v11  ;;  %v2444_v56 = vadd.f32 %v4913_v15, %v2210_v44  ;;  %v4990_v13 = vpop.f32.mrf.mxu2  ;;  %v5370_v40 = vld [vmem:[#allocation59_spill] sm:$0xff] }
 0x3f0   : > { %2880 = vmatmul.bf16.gmra.mxu2 %v2772_v39  ;;  %v2678_v27 = vadd.f32 %v4916_v60, %v2444_v56  ;;  %v1977_v60 = vadd.f32 %v4813_v19, %v1743_v23  ;;  %v1744_v39 = vadd.f32 %v5370_v40, %v1510_v51  ;;  %v1511_v56 = vadd.f32 %v5371_v4, %v4743_v34 }
 0x3f2   : > { %v2714_v22 = vadd.f32 %v4866_v41, %v2678_v27  ;;  %v1978_v21 = vadd.f32 %v4820_v7, %v1744_v39 }
 0x3f3   : > { %v2147_v52 = vpop.f32.mrf.mxu3 }
 0x3f4   : > { %v2211_v1 = vadd.f32 %v2147_v52, %v1976_v9  ;;  %v2746_v20 = vmax.f32 %v2714_v22, 0.0  ;;  %v2628_v45 = vpop.f32.mrf.mxu1 }
 0x3f6   : > { %v2445_v10 = vadd.f32 %v4928_v42, %v2211_v1  ;;  %v5001_v19 = vpop.f32.mrf.mxu2  ;;  %v5372_v1 = vld [vmem:[#allocation62_spill] sm:$0xff] }
 0x3f8   : > { %v2679_v15 = vadd.f32 %v4931_v14, %v2445_v10  ;;  %2189 = vmatmul.bf16.gmra.mxu3 %v2044_v46  ;;  %v2394_v14 = vpop.f32.mrf.mxu0  ;;  %v1745_v10 = vadd.f32 %v5372_v1, %v1511_v56  ;;  %v5373_v46 = vld [vmem:[#allocation30_spill] sm:$0xff] }
 0x3f9   : > { %v1512_v7 = vadd.f32 %v5373_v46, %v4748_v0  ;;  %v5375_v0 = vld [vmem:[#allocation32_spill] sm:$0xff]  ;;  %v5376_v56 = vld [vmem:[#allocation66_spill] sm:$0xff] }
 0x3fa   : > { %v2715_v47 = vadd.f32 %v4866_v41, %v2679_v15  ;;  %v1979_v23 = vadd.f32 %v4828_v63, %v1745_v10 }
 0x3fb   : > { %v2150_v12 = vpop.f32.mrf.mxu3 }
 0x3fc   : > { %v2212_v42 = vadd.f32 %v2150_v12, %v1977_v60  ;;  %v2747_v44 = vmax.f32 %v2715_v47, 0.0  ;;  %v2630_v22 = vpop.f32.mrf.mxu1 }
 0x3fe   : > { %v2773_v11 = vpack.c.bf16 %v2747_v44, %v2746_v20  ;;  %v2446_v26 = vadd.f32 %v4942_v24, %v2212_v42  ;;  %v5012_v60 = vpop.f32.mrf.mxu2  ;;  %v1513_v20 = vadd.f32 %v5375_v0, %v4752_v55 }
 0x400   : > { %2885 = vmatmul.bf16.gmra.mxu2 %v2773_v11  ;;  %v2680_v9 = vadd.f32 %v4948_v6, %v2446_v26  ;;  %v2396_v30 = vpop.f32.mrf.mxu0 }
 0x402   : > { %v2716_v34 = vadd.f32 %v4866_v41, %v2680_v9 }
 0x403   : > { %v2152_v48 = vpop.f32.mrf.mxu3 }
 0x404   : > { %v2213_v52 = vadd.f32 %v2152_v48, %v1978_v21  ;;  %v2748_v51 = vmax.f32 %v2716_v34, 0.0  ;;  %v2633_v26 = vpop.f32.mrf.mxu1  ;;  %v1747_v21 = vadd.f32 %v5376_v56, %v1513_v20 }
 0x406   : > { %v2447_v27 = vadd.f32 %v4958_v31, %v2213_v52  ;;  %v5021_v48 = vpop.f32.mrf.mxu2  ;;  %v5377_v52 = vld [vmem:[#allocation34_spill] sm:$0xff]  ;;  %v1981_v55 = vadd.f32 %v4845_v5, %v1747_v21 }
 0x407   : > { %v1514_v28 = vadd.f32 %v5377_v52, %v4757_v62  ;;  %v5383_v21 = vld [vmem:[#allocation42_spill] sm:$0xff] }
 0x408   : > { %v2681_v24 = vadd.f32 %v4961_v33, %v2447_v27  ;;  %2194 = vmatmul.bf16.gmra.mxu3 %v2045_v35  ;;  %v5374_v33 = vld [vmem:[#allocation64_spill] sm:$0xff]  ;;  %v2399_v11 = vpop.f32.mrf.mxu0 }
 0x409   : > { %v1746_v12 = vadd.f32 %v5374_v33, %v1512_v7 }
 0x40a   : > { %v2717_v6 = vadd.f32 %v4866_v41, %v2681_v24  ;;  %v5378_v24 = vld [vmem:[#allocation68_spill] sm:$0xff] }
 0x40b   : > { %v2155_v15 = vpop.f32.mrf.mxu3  ;;  %v1980_v63 = vadd.f32 %v4833_v43, %v1746_v12  ;;  %v1748_v34 = vadd.f32 %v5378_v24, %v1514_v28 }
 0x40c   : > { %v2214_v59 = vadd.f32 %v2155_v15, %v1979_v23  ;;  %v2749_v31 = vmax.f32 %v2717_v6, 0.0  ;;  %v2635_v46 = vpop.f32.mrf.mxu1  ;;  %v5379_v23 = vld [vmem:[#allocation37_spill] sm:$0xff] }
 0x40d   : > { %v1515_v62 = vadd.f32 %v5379_v23, %v4763_v3  ;;  %v1982_v5 = vadd.f32 %v4856_v8, %v1748_v34  ;;  %v5385_v23 = vld [vmem:[#allocation45_spill] sm:$0xff] }
 0x40e   : > { %v2774_v47 = vpack.c.bf16 %v2749_v31, %v2748_v51  ;;  %v2448_v42 = vadd.f32 %v4974_v25, %v2214_v59  ;;  %v5380_v31 = vld [vmem:[#allocation70_spill] sm:$0xff] }
 0x410   : > { %2890 = vmatmul.bf16.gmra.mxu2 %v2774_v47  ;;  %v2682_v40 = vadd.f32 %v4976_v57, %v2448_v42  ;;  %v2401_v10 = vpop.f32.mrf.mxu0  ;;  %v1749_v47 = vadd.f32 %v5380_v31, %v1515_v62 }
 0x412   : > { %v2718_v25 = vadd.f32 %v4866_v41, %v2682_v40 }
 0x413   : > { %v2157_v44 = vpop.f32.mrf.mxu3 }
 0x414   : > { %v2215_v39 = vadd.f32 %v2157_v44, %v1980_v63  ;;  %v2750_v57 = vmax.f32 %v2718_v25, 0.0  ;;  %v2638_v20 = vpop.f32.mrf.mxu1  ;;  %v1983_v63 = vadd.f32 %v4876_v17, %v1749_v47 }
 0x416   : > { %v2449_v4 = vadd.f32 %v2391_v18, %v2215_v39 }
 0x418   : > { %v2683_v9 = vadd.f32 %v2625_v61, %v2449_v4  ;;  %v5029_v61 = vpop.f32.mrf.mxu2  ;;  %v2404_v33 = vpop.f32.mrf.mxu0  ;;  %v5382_v4 = vld [vmem:[#allocation72_spill] sm:$0xff] }
 0x41a   : > { %v2719_v43 = vadd.f32 %v4866_v41, %v2683_v9  ;;  %v1517_v9 = vadd.f32 %v5383_v21, %v4774_v53  ;;  %v3731_v21 = vld [vmem:[%s4125_s15 + $0x10] sm:$0xff] }
 0x41b   : > { %v2160_v35 = vpop.f32.mrf.mxu3 }
 0x41c   : > { %v2216_v27 = vadd.f32 %v2160_v35, %v1981_v55  ;;  %v2751_v1 = vmax.f32 %v2719_v43, 0.0  ;;  %v2640_v55 = vpop.f32.mrf.mxu1 }
 0x41e   : > { %v2775_v18 = vpack.c.bf16 %v2751_v1, %v2750_v57  ;;  %v2450_v7 = vadd.f32 %v2394_v14, %v2216_v27  ;;  %v5381_v14 = vld [vmem:[#allocation39_spill] sm:$0xff]  ;;  %v3729_v57 = vld [vmem:[%s4125_s15] sm:$0xff] }
 0x41f   : > { %v1516_v0 = vadd.f32 %v5381_v14, %v4768_v16  ;;  %v5046_v16 = vld [vmem:[%s5251_s6] ss:$0 sm:$0xff] }
 0x420   : > { %2895 = vmatmul.bf16.gmra.mxu2 %v2775_v18  ;;  %v2684_v15 = vadd.f32 %v2628_v45, %v2450_v7  ;;  %v5040_v44 = vpop.f32.mrf.mxu2  ;;  %v2406_v17 = vpop.f32.mrf.mxu0  ;;  %v5384_v18 = vld [vmem:[#allocation73_spill] sm:$0xff] }
 0x421   : > { %v1751_v24 = vadd.f32 %v5384_v18, %v1517_v9 }
 0x422   : > { %v2720_v42 = vadd.f32 %v4866_v41, %v2684_v15 }
 0x423   : > { %v2162_v6 = vpop.f32.mrf.mxu3 }
 0x424   : > { %v2217_v59 = vadd.f32 %v2162_v6, %v1982_v5  ;;  %v2752_v40 = vmax.f32 %v2720_v42, 0.0  ;;  %v2643_v31 = vpop.f32.mrf.mxu1  ;;  %v5386_v42 = vld [vmem:[#allocation74_spill] sm:$0xff] }
 0x426   : > { %v2451_v51 = vadd.f32 %v2396_v30, %v2217_v59 }
 0x428   : > { %v2685_v12 = vadd.f32 %v2630_v22, %v2451_v51  ;;  %v1750_v22 = vadd.f32 %v5382_v4, %v1516_v0 }
 0x42a   : > { %v2721_v3 = vadd.f32 %v4866_v41, %v2685_v12  ;;  %v1984_v25 = vadd.f32 %v4891_v29, %v1750_v22  ;;  %v1518_v29 = vadd.f32 %v5385_v23, %v4777_v2  ;;  %v3730_v2 = vld [vmem:[%s4125_s15 + $0x8] sm:$0xff] }
 0x42b   : > { %v2165_v8 = vpop.f32.mrf.mxu3 }
 0x42c   : > { %v2218_v45 = vadd.f32 %v2165_v8, %v1983_v63  ;;  %v2753_v30 = vmax.f32 %v2721_v3, 0.0  ;;  %v1752_v14 = vadd.f32 %v5386_v42, %v1518_v29  ;;  %v5387_v63 = vld [vmem:[#allocation48_spill] sm:$0xff] }
 0x42d   : > { %v1519_v3 = vadd.f32 %v5387_v63, %v4785_v32  ;;  %v3733_v42 = vld [vmem:[%s4125_s15 + $0x20] sm:$0xff] }
 0x42e   : > { %v2776_v39 = vpack.c.bf16 %v2753_v30, %v2752_v40  ;;  %v2452_v56 = vadd.f32 %v2399_v11, %v2218_v45  ;;  %v1986_v8 = vadd.f32 %v4920_v54, %v1752_v14  ;;  %v5389_v54 = vld [vmem:[#allocation51_spill] sm:$0xff] }
 0x430   : > { %2900 = vmatmul.bf16.gmra.mxu2 %v2776_v39  ;;  %v2686_v43 = vadd.f32 %v2633_v26, %v2452_v56  ;;  %v1985_v26 = vadd.f32 %v4906_v49, %v1751_v24 }
 0x432   : > { %v2722_v53 = vadd.f32 %v4866_v41, %v2686_v43 }
 0x433   : > { %v2167_v52 = vpop.f32.mrf.mxu3  ;;  %v2861_v28 = vpop.f32.mrf.mxu2 }
 0x434   : > { %v2219_v35 = vadd.f32 %v2167_v52, %v1984_v25  ;;  %v2862_v11 = vadd.f32 %v5046_v16, %v2861_v28  ;;  %v2754_v59 = vmax.f32 %v2722_v53, 0.0  ;;  %v2645_v52 = vpop.f32.mrf.mxu1  ;;  %v5390_v53 = vld [vmem:[#allocation76_spill] sm:$0xff] }
 0x436   : > { %v2453_v27 = vadd.f32 %v2401_v10, %v2219_v35  ;;  %v2941_v1 = vadd.f32 %v3729_v57, %v2862_v11  ;;  %v1520_v35 = vadd.f32 %v5389_v54, %v4792_v50 }
 0x438   : > { %v2687_v34 = vadd.f32 %v2635_v46, %v2453_v27  ;;  %v2973_v7 = vmax.f32 %v2941_v1, 0.0  ;;  %v2409_v46 = vpop.f32.mrf.mxu0  ;;  %v1754_v23 = vadd.f32 %v5390_v53, %v1520_v35  ;;  %v3735_v53 = vld [vmem:[%s4125_s15 + $0x30] sm:$0xff] }
 0x43a   : > { %3005 = vst [vmem:[%s5059_s23] sm:$0xff] %v2973_v7  ;;  %v2723_v10 = vadd.f32 %v4866_v41, %v2687_v34 }
 0x43b   : > { %v2170_v62 = vpop.f32.mrf.mxu3  ;;  %v2863_v5 = vpop.f32.mrf.mxu2 }
 0x43c   : > { %v2220_v6 = vadd.f32 %v2170_v62, %v1985_v26  ;;  %v2864_v15 = vadd.f32 %v5046_v16, %v2863_v5  ;;  %v2755_v51 = vmax.f32 %v2723_v10, 0.0  ;;  %v5392_v10 = vld [vmem:[#allocation54_spill] sm:$0xff]  ;;  %v2648_v5 = vpop.f32.mrf.mxu1 }
 0x43e   : > { %v2942_v47 = vadd.f32 %v3730_v2, %v2864_v15  ;;  %v2777_v12 = vpack.c.bf16 %v2755_v51, %v2754_v59  ;;  %v2454_v0 = vadd.f32 %v2404_v33, %v2220_v6  ;;  %v5388_v33 = vld [vmem:[#allocation75_spill] sm:$0xff]  ;;  %v1988_v6 = vadd.f32 %v4952_v58, %v1754_v23 }
 0x43f   : > { %v1753_v25 = vadd.f32 %v5388_v33, %v1519_v3 }
 0x440   : > { %v2974_v49 = vmax.f32 %v2942_v47, 0.0  ;;  %2905 = vmatmul.bf16.gmra.mxu2 %v2777_v12  ;;  %v2688_v30 = vadd.f32 %v2638_v20, %v2454_v0  ;;  %v2411_v22 = vpop.f32.mrf.mxu0 }
 0x441   : > { %v1987_v20 = vadd.f32 %v4934_v38, %v1753_v25  ;;  %v5391_v38 = vld [vmem:[#allocation85_spill] sm:$0xff] }
 0x442   : > { %3006 = vst [vmem:[%s5059_s23 + $0x8] sm:$0xff] %v2974_v49  ;;  %v2724_v43 = vadd.f32 %v4866_v41, %v2688_v30  ;;  %v1521_v62 = vadd.f32 %v5392_v10, %v5391_v38  ;;  %v3734_v25 = vld [vmem:[%s4125_s15 + $0x28] sm:$0xff] }
 0x443   : > { %v2172_v45 = vpop.f32.mrf.mxu3  ;;  %v2866_v40 = vpop.f32.mrf.mxu2 }
 0x444   : > { %v2221_v39 = vadd.f32 %v2172_v45, %v1986_v8  ;;  %v2867_v4 = vadd.f32 %v5046_v16, %v2866_v40  ;;  %v2756_v18 = vmax.f32 %v2724_v43, 0.0  ;;  %v5394_v45 = vld [vmem:[#allocation86_spill] sm:$0xff]  ;;  %v5395_v40 = vld [vmem:[#allocation57_spill] sm:$0xff] }
 0x445   : > { %v1522_v58 = vadd.f32 %v5395_v40, %v5394_v45  ;;  %v5403_v40 = vld [vmem:[#allocation89_spill] sm:$0xff] }
 0x446   : > { %v2455_v56 = vadd.f32 %v2406_v17, %v2221_v39  ;;  %v2943_v9 = vadd.f32 %v3731_v21, %v2867_v4 }
 0x448   : > { %v2689_v28 = vadd.f32 %v2640_v55, %v2455_v56  ;;  %v2975_v32 = vmax.f32 %v2943_v9, 0.0  ;;  %v3732_v55 = vld [vmem:[%s4125_s15 + $0x18] sm:$0xff]  ;;  %v2414_v50 = vpop.f32.mrf.mxu0 }
 0x44a   : > { %3007 = vst [vmem:[%s5059_s23 + $0x10] sm:$0xff] %v2975_v32  ;;  %v2725_v11 = vadd.f32 %v4866_v41, %v2689_v28  ;;  %v5396_v32 = vld [vmem:[#allocation78_spill] sm:$0xff] }
 0x44b   : > { %v2175_v27 = vpop.f32.mrf.mxu3  ;;  %v2868_v17 = vpop.f32.mrf.mxu2  ;;  %v1756_v43 = vadd.f32 %v5396_v32, %v1522_v58  ;;  %v5404_v58 = vld [vmem:[#allocation65_spill] sm:$0xff] }
 0x44c   : > { %v2222_v57 = vadd.f32 %v2175_v27, %v1987_v20  ;;  %v2869_v1 = vadd.f32 %v5046_v16, %v2868_v17  ;;  %v2757_v24 = vmax.f32 %v2725_v11, 0.0  ;;  %v5398_v20 = vld [vmem:[#allocation60_spill] sm:$0xff] }
 0x44d   : > { %v1990_v27 = vadd.f32 %v4979_v36, %v1756_v43  ;;  %v5400_v36 = vld [vmem:[#allocation88_spill] sm:$0xff] }
 0x44e   : > { %v2944_v34 = vadd.f32 %v3732_v55, %v2869_v1  ;;  %v2778_v7 = vpack.c.bf16 %v2757_v24, %v2756_v18  ;;  %v2456_v29 = vadd.f32 %v2409_v46, %v2222_v57  ;;  %v5393_v46 = vld [vmem:[#allocation77_spill] sm:$0xff] }
 0x44f   : > { %v1755_v0 = vadd.f32 %v5393_v46, %v1521_v62  ;;  %v5401_v62 = vld [vmem:[#allocation63_spill] sm:$0xff] }
 0x450   : > { %v2976_v26 = vmax.f32 %v2944_v34, 0.0  ;;  %2910 = vmatmul.bf16.gmra.mxu2 %v2778_v7  ;;  %v2690_v51 = vadd.f32 %v2643_v31, %v2456_v29  ;;  %v2416_v8 = vpop.f32.mrf.mxu0  ;;  %v3736_v46 = vld [vmem:[%s4125_s15 + $0x38] sm:$0xff] }
 0x451   : > { %v1989_v31 = vadd.f32 %v4964_v37, %v1755_v0  ;;  %v5397_v37 = vld [vmem:[#allocation87_spill] sm:$0xff] }
 0x452   : > { %3008 = vst [vmem:[%s5059_s23 + $0x18] sm:$0xff] %v2976_v26  ;;  %v2726_v3 = vadd.f32 %v4866_v41, %v2690_v51  ;;  %v1523_v11 = vadd.f32 %v5398_v20, %v5397_v37  ;;  %v5406_v37 = vld [vmem:[#allocation90_spill] sm:$0xff] }
 0x453   : > { %v2177_v15 = vpop.f32.mrf.mxu3  ;;  %v2871_v59 = vpop.f32.mrf.mxu2 }
 0x454   : > { %v2223_v2 = vadd.f32 %v2177_v15, %v1988_v6  ;;  %v2872_v47 = vadd.f32 %v5046_v16, %v2871_v59  ;;  %v2758_v9 = vmax.f32 %v2726_v3, 0.0  ;;  %v1524_v6 = vadd.f32 %v5401_v62, %v5400_v36  ;;  %v5410_v36 = vld [vmem:[#allocation69_spill] sm:$0xff] }
 0x456   : > { %v2457_v12 = vadd.f32 %v2411_v22, %v2223_v2  ;;  %v2945_v14 = vadd.f32 %v3733_v42, %v2872_v47  ;;  %v2650_v22 = vpop.f32.mrf.mxu1 }
 0x458   : > { %v2691_v49 = vadd.f32 %v2645_v52, %v2457_v12  ;;  %v2977_v63 = vmax.f32 %v2945_v14, 0.0  ;;  %v2419_v1 = vpop.f32.mrf.mxu0 }
 0x45a   : > { %3009 = vst [vmem:[%s5059_s23 + $0x20] sm:$0xff] %v2977_v63  ;;  %v2727_v30 = vadd.f32 %v4866_v41, %v2691_v49  ;;  %v5402_v63 = vld [vmem:[#allocation80_spill] sm:$0xff] }
 0x45b   : > { %v2180_v39 = vpop.f32.mrf.mxu3  ;;  %v2873_v4 = vpop.f32.mrf.mxu2  ;;  %v1758_v3 = vadd.f32 %v5402_v63, %v1524_v6 }
 0x45c   : > { %v2224_v56 = vadd.f32 %v2180_v39, %v1989_v31  ;;  %v2874_v21 = vadd.f32 %v5046_v16, %v2873_v4  ;;  %v2759_v33 = vmax.f32 %v2727_v30, 0.0  ;;  %v1525_v31 = vadd.f32 %v5404_v58, %v5403_v40 }
 0x45d   : > { %v1992_v30 = vadd.f32 %v5001_v19, %v1758_v3  ;;  %v5407_v19 = vld [vmem:[#allocation67_spill] sm:$0xff] }
 0x45e   : > { %v2946_v52 = vadd.f32 %v3734_v25, %v2874_v21  ;;  %v2779_v28 = vpack.c.bf16 %v2759_v33, %v2758_v9  ;;  %v2458_v54 = vadd.f32 %v2414_v50, %v2224_v56  ;;  %v2653_v34 = vpop.f32.mrf.mxu1  ;;  %v5399_v50 = vld [vmem:[#allocation79_spill] sm:$0xff]  ;;  %v3737_v33 = vld [vmem:[%s4125_s15 + $0x40] sm:$0xff]  ;;  %v1526_v20 = vadd.f32 %v5407_v19, %v5406_v37 }
 0x45f   : > { %v1757_v29 = vadd.f32 %v5399_v50, %v1523_v11  ;;  %v5408_v50 = vld [vmem:[#allocation82_spill] sm:$0xff] }
 0x460   : > { %v2978_v35 = vmax.f32 %v2946_v52, 0.0  ;;  %2915 = vmatmul.bf16.gmra.mxu2 %v2779_v28  ;;  %v2692_v18 = vadd.f32 %v2648_v5, %v2458_v54  ;;  %v2421_v14 = vpop.f32.mrf.mxu0  ;;  %v5405_v52 = vld [vmem:[#allocation81_spill] sm:$0xff] }
 0x461   : > { %v1991_v5 = vadd.f32 %v4990_v13, %v1757_v29  ;;  %v1759_v28 = vadd.f32 %v5405_v52, %v1525_v31  ;;  %v1760_v29 = vadd.f32 %v5408_v50, %v1526_v20  ;;  %v5414_v52 = vld [vmem:[#allocation84_spill] sm:$0xff]  ;;  %v3742_v50 = vld [vmem:[%s4125_s15 + $0x68] sm:$0xff] }
 0x462   : > { %3010 = vst [vmem:[%s5059_s23 + $0x28] sm:$0xff] %v2978_v35  ;;  %v2728_v10 = vadd.f32 %v4866_v41, %v2692_v18 }
 0x463   : > { %v2182_v17 = vpop.f32.mrf.mxu3  ;;  %v2876_v57 = vpop.f32.mrf.mxu2  ;;  %v1994_v6 = vadd.f32 %v5021_v48, %v1760_v29 }
 0x464   : > { %v2225_v24 = vadd.f32 %v2182_v17, %v1990_v27  ;;  %v2877_v55 = vadd.f32 %v5046_v16, %v2876_v57  ;;  %v2760_v12 = vmax.f32 %v2728_v10, 0.0  ;;  %v1993_v27 = vadd.f32 %v5012_v60, %v1759_v28  ;;  %v5409_v10 = vld [vmem:[#allocation91_spill] sm:$0xff] }
 0x465   : > { %v1527_v62 = vadd.f32 %v5410_v36, %v5409_v10 }
 0x466   : > { %v2459_v7 = vadd.f32 %v2416_v8, %v2225_v24  ;;  %v2947_v23 = vadd.f32 %v3735_v53, %v2877_v55  ;;  %v2655_v8 = vpop.f32.mrf.mxu1 }
 0x468   : > { %v2693_v26 = vadd.f32 %v2650_v22, %v2459_v7  ;;  %v2979_v38 = vmax.f32 %v2947_v23, 0.0  ;;  %v2424_v32 = vpop.f32.mrf.mxu0  ;;  %v3738_v7 = vld [vmem:[%s4125_s15 + $0x48] sm:$0xff] }
 0x46a   : > { %3011 = vst [vmem:[%s5059_s23 + $0x30] sm:$0xff] %v2979_v38  ;;  %v2729_v15 = vadd.f32 %v4866_v41, %v2693_v26 }
 0x46b   : > { %v2185_v59 = vpop.f32.mrf.mxu3  ;;  %v2878_v51 = vpop.f32.mrf.mxu2 }
 0x46c   : > { %v2226_v2 = vadd.f32 %v2185_v59, %v1991_v5  ;;  %v2879_v47 = vadd.f32 %v5046_v16, %v2878_v51  ;;  %v2761_v42 = vmax.f32 %v2729_v15, 0.0 }
 0x46e   : > { %v2948_v0 = vadd.f32 %v3736_v46, %v2879_v47  ;;  %v2780_v49 = vpack.c.bf16 %v2761_v42, %v2760_v12  ;;  %v2460_v45 = vadd.f32 %v2419_v1, %v2226_v2  ;;  %v2658_v11 = vpop.f32.mrf.mxu1  ;;  %v3739_v42 = vld [vmem:[%s4125_s15 + $0x50] sm:$0xff]  ;;  %v5411_v46 = vld [vmem:[#allocation83_spill] sm:$0xff] }
 0x470   : > { %v2980_v13 = vmax.f32 %v2948_v0, 0.0  ;;  %2920 = vmatmul.bf16.gmra.mxu2 %v2780_v49  ;;  %v2694_v22 = vadd.f32 %v2653_v34, %v2460_v45  ;;  %v2426_v60 = vpop.f32.mrf.mxu0  ;;  %v1761_v0 = vadd.f32 %v5411_v46, %v1527_v62  ;;  %v5413_v45 = vld [vmem:[#allocation71_spill] sm:$0xff] }
 0x472   : > { %3012 = vst [vmem:[%s5059_s23 + $0x38] sm:$0xff] %v2980_v13  ;;  %v2730_v35 = vadd.f32 %v4866_v41, %v2694_v22  ;;  %v1995_v40 = vadd.f32 %v5029_v61, %v1761_v0 }
 0x473   : > { %v2187_v39 = vpop.f32.mrf.mxu3  ;;  %v2881_v4 = vpop.f32.mrf.mxu2 }
 0x474   : > { %v2227_v56 = vadd.f32 %v2187_v39, %v1992_v30  ;;  %v2882_v21 = vadd.f32 %v5046_v16, %v2881_v4  ;;  %v2762_v55 = vmax.f32 %v2730_v35, 0.0 }
 0x476   : > { %v2461_v9 = vadd.f32 %v2421_v14, %v2227_v56  ;;  %v2949_v25 = vadd.f32 %v3737_v33, %v2882_v21  ;;  %v2660_v47 = vpop.f32.mrf.mxu1 }
 0x478   : > { %v2695_v43 = vadd.f32 %v2655_v8, %v2461_v9  ;;  %v2981_v54 = vmax.f32 %v2949_v25, 0.0  ;;  %v5412_v8 = vld [vmem:[#allocation92_spill] sm:$0xff]  ;;  %v2429_v13 = vpop.f32.mrf.mxu0  ;;  %v3740_v9 = vld [vmem:[%s4125_s15 + $0x58] sm:$0xff] }
 0x479   : > { %v1528_v48 = vadd.f32 %v5413_v45, %v5412_v8 }
 0x47a   : > { %3013 = vst [vmem:[%s5059_s23 + $0x40] sm:$0xff] %v2981_v54  ;;  %v2731_v17 = vadd.f32 %v4866_v41, %v2695_v43 }
 0x47b   : > { %v2190_v57 = vpop.f32.mrf.mxu3  ;;  %v2883_v1 = vpop.f32.mrf.mxu2  ;;  %v1762_v28 = vadd.f32 %v5414_v52, %v1528_v48  ;;  %v3747_v48 = vld [vmem:[%s4125_s15 + $0x90] sm:$0xff] }
 0x47c   : > { %v2228_v18 = vadd.f32 %v2190_v57, %v1993_v27  ;;  %v2884_v24 = vadd.f32 %v5046_v16, %v2883_v1  ;;  %v2763_v34 = vmax.f32 %v2731_v17, 0.0  ;;  %v3741_v17 = vld [vmem:[%s4125_s15 + $0x60] sm:$0xff] }
 0x47d   : > { %v1996_v61 = vadd.f32 %v5040_v44, %v1762_v28  ;;  %v3750_v28 = vld [vmem:[%s4125_s15 + $0xa8] sm:$0xff] }
 0x47e   : > { %v2950_v53 = vadd.f32 %v3738_v7, %v2884_v24  ;;  %v2781_v23 = vpack.c.bf16 %v2763_v34, %v2762_v55  ;;  %v2462_v26 = vadd.f32 %v2424_v32, %v2228_v18  ;;  %v2663_v21 = vpop.f32.mrf.mxu1 }
 0x480   : > { %v2982_v38 = vmax.f32 %v2950_v53, 0.0  ;;  %2925 = vmatmul.bf16.gmra.mxu2 %v2781_v23  ;;  %v2696_v59 = vadd.f32 %v2658_v11, %v2462_v26  ;;  %v2431_v11 = vpop.f32.mrf.mxu0 }
 0x482   : > { %3014 = vst [vmem:[%s5059_s23 + $0x48] sm:$0xff] %v2982_v38  ;;  %v2732_v3 = vadd.f32 %v4866_v41, %v2696_v59 }
 0x483   : > { %v2192_v5 = vpop.f32.mrf.mxu3  ;;  %v2886_v15 = vpop.f32.mrf.mxu2 }
 0x484   : > { %v2229_v51 = vadd.f32 %v2192_v5, %v1994_v6  ;;  %v2887_v2 = vadd.f32 %v5046_v16, %v2886_v15  ;;  %v2764_v22 = vmax.f32 %v2732_v3, 0.0  ;;  %v3744_v15 = vld [vmem:[%s4125_s15 + $0x78] sm:$0xff] }
 0x486   : > { %v2463_v12 = vadd.f32 %v2426_v60, %v2229_v51  ;;  %v2951_v14 = vadd.f32 %v3739_v42, %v2887_v2  ;;  %v2665_v1 = vpop.f32.mrf.mxu1 }
 0x488   : > { %v2697_v49 = vadd.f32 %v2660_v47, %v2463_v12  ;;  %v2983_v63 = vmax.f32 %v2951_v14, 0.0  ;;  %v3745_v12 = vld [vmem:[%s4125_s15 + $0x80] sm:$0xff] }
 0x48a   : > { %3015 = vst [vmem:[%s5059_s23 + $0x50] sm:$0xff] %v2983_v63  ;;  %v2733_v58 = vadd.f32 %v4866_v41, %v2697_v49  ;;  %v3746_v49 = vld [vmem:[%s4125_s15 + $0x88] sm:$0xff] }
 0x48b   : > { %v2195_v31 = vpop.f32.mrf.mxu3  ;;  %v2888_v30 = vpop.f32.mrf.mxu2 }
 0x48c   : > { %v2230_v39 = vadd.f32 %v2195_v31, %v1995_v40  ;;  %v2889_v4 = vadd.f32 %v5046_v16, %v2888_v30  ;;  %v2765_v56 = vmax.f32 %v2733_v58, 0.0  ;;  %v3748_v30 = vld [vmem:[%s4125_s15 + $0x98] sm:$0xff] }
 0x48e   : > { %v2952_v33 = vadd.f32 %v3740_v9, %v2889_v4  ;;  %v2782_v25 = vpack.c.bf16 %v2765_v56, %v2764_v22  ;;  %v2464_v32 = vadd.f32 %v2429_v13, %v2230_v39 }
 0x490   : > { %v2984_v43 = vmax.f32 %v2952_v33, 0.0  ;;  %2930 = vmatmul.bf16.gmra.mxu2 %v2782_v25  ;;  %v2698_v37 = vadd.f32 %v2663_v21, %v2464_v32  ;;  %v3749_v21 = vld [vmem:[%s4125_s15 + $0xa0] sm:$0xff] }
 0x492   : > { %3016 = vst [vmem:[%s5059_s23 + $0x58] sm:$0xff] %v2984_v43  ;;  %v2734_v55 = vadd.f32 %v4866_v41, %v2698_v37 }
 0x493   : > { %v2197_v54 = vpop.f32.mrf.mxu3  ;;  %v2891_v35 = vpop.f32.mrf.mxu2 }
 0x494   : > { %v2231_v19 = vadd.f32 %v2197_v54, %v1996_v61  ;;  %v2892_v20 = vadd.f32 %v5046_v16, %v2891_v35  ;;  %v2766_v53 = vmax.f32 %v2734_v55, 0.0  ;;  %v3751_v35 = vld [vmem:[%s4125_s15 + $0xb0] sm:$0xff] }
 0x496   : > { %v2465_v27 = vadd.f32 %v2431_v11, %v2231_v19  ;;  %v2953_v57 = vadd.f32 %v3741_v17, %v2892_v20 }
 0x498   : > { %v2699_v18 = vadd.f32 %v2665_v1, %v2465_v27  ;;  %v2985_v24 = vmax.f32 %v2953_v57, 0.0  ;;  %v3752_v27 = vld [vmem:[%s4125_s15 + $0xb8] sm:$0xff] }
 0x49a   : > { %3017 = vst [vmem:[%s5059_s23 + $0x60] sm:$0xff] %v2985_v24  ;;  %v2735_v44 = vadd.f32 %v4866_v41, %v2699_v18  ;;  %v3743_v41 = vld [vmem:[%s4125_s15 + $0x70] sm:$0xff]  ;;  %v3753_v24 = vld [vmem:[%s4125_s15 + $0xc0] sm:$0xff] }
 0x49b   : > { %v2893_v34 = vpop.f32.mrf.mxu2 }
 0x49c   : > { %v2894_v7 = vadd.f32 %v5046_v16, %v2893_v34  ;;  %v2767_v23 = vmax.f32 %v2735_v44, 0.0 }
 0x49e   : > { %v2954_v29 = vadd.f32 %v3742_v50, %v2894_v7  ;;  %v2783_v26 = vpack.c.bf16 %v2767_v23, %v2766_v53  ;;  %v3754_v53 = vld [vmem:[%s4125_s15 + $0xc8] sm:$0xff] }
 0x4a0   : > { %v2986_v38 = vmax.f32 %v2954_v29, 0.0  ;;  %2935 = vmatmul.bf16.gmra.mxu2 %v2783_v26 }
 0x4a2   : > { %3018 = vst [vmem:[%s5059_s23 + $0x68] sm:$0xff] %v2986_v38  ;;  %v3755_v38 = vld [vmem:[%s4125_s15 + $0xd0] sm:$0xff] }
 0x4a3   : > { %v2896_v60 = vpop.f32.mrf.mxu2 }
 0x4a4   : > { %v2897_v10 = vadd.f32 %v5046_v16, %v2896_v60 }
 0x4a6   : > { %v2955_v36 = vadd.f32 %v3743_v41, %v2897_v10 }
 0x4a8   : > { %v2987_v62 = vmax.f32 %v2955_v36, 0.0 }
 0x4aa   : > { %3019 = vst [vmem:[%s5059_s23 + $0x70] sm:$0xff] %v2987_v62  ;;  %v3756_v62 = vld [vmem:[%s4125_s15 + $0xd8] sm:$0xff] }
 0x4ab   : > { %v2898_v6 = vpop.f32.mrf.mxu2 }
 0x4ac   : > { %v2899_v5 = vadd.f32 %v5046_v16, %v2898_v6 }
 0x4ae   : > { %v2956_v59 = vadd.f32 %v3744_v15, %v2899_v5 }
 0x4b0   : > { %v2988_v51 = vmax.f32 %v2956_v59, 0.0 }
 0x4b2   : > { %3020 = vst [vmem:[%s5059_s23 + $0x78] sm:$0xff] %v2988_v51  ;;  %v3757_v51 = vld [vmem:[%s4125_s15 + $0xe0] sm:$0xff] }
 0x4b3   : > { %v2901_v2 = vpop.f32.mrf.mxu2 }
 0x4b4   : > { %v2902_v47 = vadd.f32 %v5046_v16, %v2901_v2 }
 0x4b6   : > { %v2957_v42 = vadd.f32 %v3745_v12, %v2902_v47 }
 0x4b8   : > { %v2989_v14 = vmax.f32 %v2957_v42, 0.0 }
 0x4ba   : > { %3021 = vst [vmem:[%s5059_s23 + $0x80] sm:$0xff] %v2989_v14  ;;  %v3758_v14 = vld [vmem:[%s4125_s15 + $0xe8] sm:$0xff] }
 0x4bb   : > { %v2903_v46 = vpop.f32.mrf.mxu2 }
 0x4bc   : > { %v2904_v0 = vadd.f32 %v5046_v16, %v2903_v46 }
 0x4be   : > { %v2958_v63 = vadd.f32 %v3746_v49, %v2904_v0 }
 0x4c0   : > { %v2990_v3 = vmax.f32 %v2958_v63, 0.0 }
 0x4c2   : > { %3022 = vst [vmem:[%s5059_s23 + $0x88] sm:$0xff] %v2990_v3  ;;  %v3759_v3 = vld [vmem:[%s4125_s15 + $0xf0] sm:$0xff] }
 0x4c3   : > { %v2906_v8 = vpop.f32.mrf.mxu2 }
 0x4c4   : > { %v2907_v45 = vadd.f32 %v5046_v16, %v2906_v8 }
 0x4c6   : > { %v2959_v13 = vadd.f32 %v3747_v48, %v2907_v45 }
 0x4c8   : > { %v2991_v40 = vmax.f32 %v2959_v13, 0.0 }
 0x4ca   : > { %3023 = vst [vmem:[%s5059_s23 + $0x90] sm:$0xff] %v2991_v40  ;;  %v3760_v40 = vld [vmem:[%s4125_s15 + $0xf8] sm:$0xff] }
 0x4cb   : > { %v2908_v58 = vpop.f32.mrf.mxu2 }
 0x4cc   : > { %v2909_v31 = vadd.f32 %v5046_v16, %v2908_v58 }
 0x4ce   : > { %v2960_v39 = vadd.f32 %v3748_v30, %v2909_v31 }
 0x4d0   : > { %v2992_v4 = vmax.f32 %v2960_v39, 0.0 }
 0x4d2   : > { %3024 = vst [vmem:[%s5059_s23 + $0x98] sm:$0xff] %v2992_v4 }
 0x4d3   : > { %v2911_v22 = vpop.f32.mrf.mxu2 }
 0x4d4   : > { %v2912_v56 = vadd.f32 %v5046_v16, %v2911_v22 }
 0x4d6   : > { %v2961_v9 = vadd.f32 %v3749_v21, %v2912_v56 }
 0x4d8   : > { %v2993_v33 = vmax.f32 %v2961_v9, 0.0 }
 0x4da   : > { %3025 = vst [vmem:[%s5059_s23 + $0xa0] sm:$0xff] %v2993_v33 }
 0x4db   : > { %v2913_v25 = vpop.f32.mrf.mxu2 }
 0x4dc   : > { %v2914_v52 = vadd.f32 %v5046_v16, %v2913_v25 }
 0x4de   : > { %v2962_v32 = vadd.f32 %v3750_v28, %v2914_v52 }
 0x4e0   : > { %v2994_v43 = vmax.f32 %v2962_v32, 0.0 }
 0x4e2   : > { %3026 = vst [vmem:[%s5059_s23 + $0xa8] sm:$0xff] %v2994_v43 }
 0x4e3   : > { %v2916_v61 = vpop.f32.mrf.mxu2 }
 0x4e4   : > { %v2917_v54 = vadd.f32 %v5046_v16, %v2916_v61 }
 0x4e6   : > { %v2963_v37 = vadd.f32 %v3751_v35, %v2917_v54 }
 0x4e8   : > { %v2995_v19 = vmax.f32 %v2963_v37, 0.0 }
 0x4ea   : > { %3027 = vst [vmem:[%s5059_s23 + $0xb0] sm:$0xff] %v2995_v19 }
 0x4eb   : > { %v2918_v20 = vpop.f32.mrf.mxu2 }
 0x4ec   : > { %v2919_v11 = vadd.f32 %v5046_v16, %v2918_v20 }
 0x4ee   : > { %v2964_v17 = vadd.f32 %v3752_v27, %v2919_v11 }
 0x4f0   : > { %v2996_v57 = vmax.f32 %v2964_v17, 0.0 }
 0x4f2   : > { %3028 = vst [vmem:[%s5059_s23 + $0xb8] sm:$0xff] %v2996_v57 }
 0x4f3   : > { %v2921_v1 = vpop.f32.mrf.mxu2 }
 0x4f4   : > { %v2922_v18 = vadd.f32 %v5046_v16, %v2921_v1 }
 0x4f6   : > { %v2965_v55 = vadd.f32 %v3753_v24, %v2922_v18 }
 0x4f8   : > { %v2997_v44 = vmax.f32 %v2965_v55, 0.0 }
 0x4fa   : > { %3029 = vst [vmem:[%s5059_s23 + $0xc0] sm:$0xff] %v2997_v44 }
 0x4fb   : > { %v2923_v34 = vpop.f32.mrf.mxu2 }
 0x4fc   : > { %v2924_v7 = vadd.f32 %v5046_v16, %v2923_v34 }
 0x4fe   : > { %v2966_v23 = vadd.f32 %v3754_v53, %v2924_v7 }
 0x500   : > { %v2998_v50 = vmax.f32 %v2966_v23, 0.0 }
 0x502   : > { %3030 = vst [vmem:[%s5059_s23 + $0xc8] sm:$0xff] %v2998_v50 }
 0x503   : > { %v2926_v29 = vpop.f32.mrf.mxu2 }
 0x504   : > { %v2927_v26 = vadd.f32 %v5046_v16, %v2926_v29 }
 0x506   : > { %v2967_v60 = vadd.f32 %v3755_v38, %v2927_v26 }
 0x508   : > { %v2999_v10 = vmax.f32 %v2967_v60, 0.0 }
 0x50a   : > { %3031 = vst [vmem:[%s5059_s23 + $0xd0] sm:$0xff] %v2999_v10 }
 0x50b   : > { %v2928_v41 = vpop.f32.mrf.mxu2 }
 0x50c   : > { %v2929_v36 = vadd.f32 %v5046_v16, %v2928_v41 }
 0x50e   : > { %v2968_v6 = vadd.f32 %v3756_v62, %v2929_v36 }
 0x510   : > { %v3000_v5 = vmax.f32 %v2968_v6, 0.0 }
 0x512   : > { %3032 = vst [vmem:[%s5059_s23 + $0xd8] sm:$0xff] %v3000_v5 }
 0x513   : > { %v2931_v15 = vpop.f32.mrf.mxu2 }
 0x514   : > { %v2932_v59 = vadd.f32 %v5046_v16, %v2931_v15 }
 0x516   : > { %v2969_v2 = vadd.f32 %v3757_v51, %v2932_v59 }
 0x518   : > { %v3001_v47 = vmax.f32 %v2969_v2, 0.0 }
 0x51a   : > { %3033 = vst [vmem:[%s5059_s23 + $0xe0] sm:$0xff] %v3001_v47 }
 0x51b   : > { %v2933_v12 = vpop.f32.mrf.mxu2 }
 0x51c   : > { %v2934_v42 = vadd.f32 %v5046_v16, %v2933_v12 }
 0x51e   : > { %v2970_v46 = vadd.f32 %v3758_v14, %v2934_v42 }
 0x520   : > { %v3002_v0 = vmax.f32 %v2970_v46, 0.0 }
 0x522   : > { %3034 = vst [vmem:[%s5059_s23 + $0xe8] sm:$0xff] %v3002_v0 }
 0x523   : > { %v2936_v49 = vpop.f32.mrf.mxu2 }
 0x524   : > { %v2937_v63 = vadd.f32 %v5046_v16, %v2936_v49 }
 0x526   : > { %v2971_v8 = vadd.f32 %v3759_v3, %v2937_v63 }
 0x528   : > { %v3003_v45 = vmax.f32 %v2971_v8, 0.0 }
 0x52a   : > { %3035 = vst [vmem:[%s5059_s23 + $0xf0] sm:$0xff] %v3003_v45 }
 0x52b   : > { %v2938_v48 = vpop.f32.mrf.mxu2 }
 0x52c   : > { %v2939_v13 = vadd.f32 %v5046_v16, %v2938_v48 }
 0x52e   : > { %v2972_v58 = vadd.f32 %v3760_v40, %v2939_v13 }
 0x530   : > { %v3004_v31 = vmax.f32 %v2972_v58, 0.0 }
 0x532   : > { %3036 = vst [vmem:[%s5059_s23 + $0xf8] sm:$0xff] %v3004_v31 }
 0x533   : > { %3908 = shalt.err (!%p3905_p10)
}
 0x534   : > { %s3966_s22 = smov 128   ;;  %s3967_s15 = smov 8  }
 0x535   : > { %3655 = dma.vmem_to_hbm [thread:$0]  (%p4091_p7), %s3051_s16, 4096, %s3053_s1, %s3038_s30, %s3966_s22, %s3966_s22, %s3967_s15  }
 0x536 PF: > { %s3067_s23 = sand.u32 1, %s3943_s24   ;;  %p5415_p12 = scmp.ge.s32.totalorder %s3955_s27, 2 }
 0x537   : > { %s3068_s20 = scalar_lea.sflag [#allocation5], %s3067_s23 }
 0x538   : > { %p3672_p13 = pnand %p5415_p12, %p4043_p6 }
 0x53a   : > { %p3673_p0 = pneg %p3672_p13 }
 0x53c   : > { %3938 = dma.done.wait (%p3673_p0), %s3068_s20, 4096  }
 0x53d   : > { %3940 = vsyncadd (%p3673_p0), %s3068_s20, 4294963200  ;;  %p22_p3 = scmp.ge.s32.totalorder %s4075_s11, 4   ;;  %s5416_s24 = smov %s3947_s25 }
 0x53e   : > { %s5417_s25 = smov %s3951_s26  ;;  %s5418_s26 = smov %s4087_s17 }
 0x53f   : > { %s5419_s27 = smov %s4075_s11  ;;  %24 = sbr.rel (!%p22_p3) target bundleno = 9 (0x9), region = 116 }
 0x544   :  { %3074 = vsyncpa [#allocation4], 1 }
 0x545   :  { %3076 = vsyncpa [#allocation4 + $0x1], 1 }
 0x546   :  { %3077 = vsyncpa [#allocation7], 1 }
 0x547   :  { %3078 = vsyncpa [#allocation10], 1 }
 0x548   :  { %3079 = vsyncpa [#allocation5], 1 }
 0x549   :  { %3081 = vsyncpa [#allocation5 + $0x1], 1 }

// kernel: tpu_custom_call.1
= control target key start
LH: loop header
LB: loop body
LE: loop exit
PB: predicated region body
PF: predicated region fallthrough
CT: control target
= control target key end

     0   :  { %s5245_s0 = inlined_call_operand.hbm [shape: f32[2,256,128], index: 0, kind: input, shape index: {}]   ;;  %s5246_s1 = inlined_call_operand.hbm [shape: bf16[128,128], index: 1, kind: input, shape index: {}]   ;;  %s5247_s2 = inlined_call_operand.vmem [shape: f32[1,128], index: 2, kind: input, shape index: {}]   ;;  %s5248_s3 = inlined_call_operand.hbm [shape: bf16[9,128,128], index: 3, kind: input, shape index: {}]   ;;  %s5249_s4 = inlined_call_operand.vmem [shape: f32[1,128], index: 4, kind: input, shape index: {}]   ;;  %s5250_s5 = inlined_call_operand.hbm [shape: bf16[128,128], index: 5, kind: input, shape index: {}]   ;;  %s5251_s6 = inlined_call_operand.vmem [shape: f32[1,128], index: 6, kind: input, shape index: {}]   ;;  %s5252_s7 = inlined_call_operand.hbm [shape: f32[2,256,128], index: 7, kind: output, shape index: {}]  }
   0x1   :  { %5253 = sst [smem:[#allocation93_spill]] %s5246_s1 }
   0x2   :  { %12 = vsyncpa [#allocation4], 0 }
   0x3   :  { %14 = vsyncpa [#allocation4 + $0x1], 0 }
   0x4   :  { %15 = vsyncpa [#allocation7], 0 }
   0x5   :  { %16 = vsyncpa [#allocation10], 0 }
   0x6   :  { %17 = vsyncpa [#allocation5], 0 }
   0x7   :  { %19 = vsyncpa [#allocation5 + $0x1], 0  ;;  %s4008_s24 = smov 0   ;;  %s4010_s25 = smov 0  }
   0x8   :  { %s4012_s26 = smov 0   ;;  %s4014_s27 = smov 0  }
   0x9 LB: > { %s4029_s28 = sadd.s32 4294967295, %s3955_s27   ;;  %s3155_s29 = sadd.s32 4294967294, %s3955_s27   ;;  %s3955_s27 = sphi %s4014_s27, %s5419_s27   ;;  %s3951_s26 = sphi %s4012_s26, %s5418_s26   ;;  %s3947_s25 = sphi %s4010_s25, %s5417_s25   ;;  %s3943_s24 = sphi %s4008_s24, %s5416_s24  }
   0xa   : > { %p45_p0 = scmp.ne.s32.totalorder %s3947_s25, %s3943_s24  ;;  %p46_p1 = scmp.eq.s32.totalorder %s4029_s28, 0 }
   0xb   : > { %p195_p2 = scmp.eq.s32.totalorder %s4029_s28, 1  ;;  %p201_p3 = scmp.eq.s32.totalorder %s3155_s29, 1 }
   0xc   : > { %p4038_p4 = por %p46_p1, %p45_p0  ;;  %p3156_p5 = scmp.ge.s32.totalorder %s3955_s27, 1 }
   0xd   : > { %p4043_p6 = por %p201_p3, %p45_p0  ;;  %p208_p7 = scmp.lt.s32.totalorder %s3955_s27, 3 }
   0xe   : > { %s5256_s1 = sld [smem:[#allocation93_spill]]  ;;  %s3957_s13 = smov [#allocation6]  }
   0xf   : > { %p4051_p8 = pnand %p3156_p5, %p208_p7  ;;  %s221_s14 = sshll.u32 %s3957_s13, 4  ;;  %s222_s14 = int_to_ptr.vmem [resolvable:$true] %s221_s14 }
  0x10   : > { %s236_s18 = sshll.u32 %s5248_s3, 4  ;;  %s3958_s19 = smov 64   ;;  %s237_s18 = int_to_ptr.hbm [resolvable:$true] %s236_s18 }
  0x11   : > { %p3657_p9 = pneg %p4051_p8  ;;  %s3959_s20 = smov 4  }
  0x12   : > { %s3960_s21 = smov [#allocation8]   ;;  %s253_s9 = sshll.u32 %s5250_s5, 4  ;;  %s254_s9 = int_to_ptr.hbm [resolvable:$true] %s253_s9 }
  0x13   : > { %p4059_p10 = pnand %p3657_p9, %p46_p1  ;;  %s238_s22 = sshll.u32 %s3960_s21, 4  ;;  %s239_s22 = int_to_ptr.vmem [resolvable:$true] %s238_s22 }
  0x14   : > { %s219_s11 = sshll.u32 %s5256_s1, 4  ;;  %s3961_s10 = smov [#allocation9]   ;;  %s220_s11 = int_to_ptr.hbm [resolvable:$true] %s219_s11 }
  0x15   : > { %3660 = dma.hbm_to_vmem [thread:$0]  (!%p4059_p10), %s220_s11, 1024, %s222_s14, [#allocation7], %s3958_s19, %s3958_s19, %s3959_s20  }
  0x16   : > { %3663 = dma.hbm_to_vmem [thread:$0]  (!%p4059_p10), %s237_s18, 9216, %s239_s22, [#allocation7], %s3958_s19, %s3958_s19, %s3959_s20  }
  0x17   : > { %s255_s13 = sshll.u32 %s3961_s10, 4  ;;  %s4075_s11 = sadd.s32 1, %s3955_s27   ;;  %s256_s13 = int_to_ptr.vmem [resolvable:$true] %s255_s13 }
  0x18   : > { %3666 = dma.hbm_to_vmem [thread:$0]  (!%p4059_p10), %s254_s9, 1024, %s256_s13, [#allocation10], %s3958_s19, %s3958_s19, %s3959_s20  }
  0x19   : > { %s29_s14 = ssub.s32 %s3955_s27, %s4075_s11  ;;  %s32_s16 = sadd.s32 1, %s3951_s26 }
  0x1a   : > { %p30_p12 = scmp.eq.s32.totalorder %s29_s14, 0  ;;  %p39_p13 = scmp.ne.s32.totalorder %s3951_s26, %s3947_s25 }
  0x1b   : > { %p40_p0 = scmp.eq.s32.totalorder %s3955_s27, 0  ;;  %p3678_p3 = scmp.lt.s32.totalorder %s3955_s27, 2 }
  0x1c   : > { %s4087_s17 = scalar_select %p30_p12, %s3951_s26, %s32_s16  }
  0x1d   : > { %p41_p5 = por %p40_p0, %p39_p13  ;;  %p4091_p7 = por %p195_p2, %p39_p13 }
  0x1e   : > { %s272_s21 = sand.u32 1, %s3951_s26   ;;  %s3527_s22 = sshll.u32 %s3955_s27, 8 }
  0x1f   : > { %s3161_s15 = sshll.u32 %s272_s21, 8  ;;  %s281_s20 = scalar_lea.hbm %s5245_s0, %s3527_s22 }
  0x20   : > { %s282_s29 = sshll.u32 %s281_s20, 4  ;;  %s276_s9 = scalar_lea.vmem [#allocation3], %s3161_s15  ;;  %s283_s29 = int_to_ptr.hbm [resolvable:$true] %s282_s29 }
  0x21   : > { %s284_s10 = sshll.u32 %s276_s9, 4  ;;  %p4102_p9 = pnand %p3678_p3, %p41_p5  ;;  %s285_s10 = int_to_ptr.vmem [resolvable:$true] %s284_s10 }
  0x22   : > { %s273_s14 = scalar_lea.sflag [#allocation4], %s272_s21  ;;  %s3851_s16 = sshra.s32 %s283_s29, 4  ;;  %s3852_s16 = int_to_ptr.hbm [resolvable:$true] %s3851_s16 }
  0x23   : > { %s3853_s1 = scalar_lea.hbm %s3852_s16, 256  ;;  %p3855_p10 = pneg %p4102_p9 }
  0x24   : > { %p3854_p2 = scmp.ne.s32.totalorder %s3852_s16, %s3853_s1  ;;  %s3858_s23 = scalar_lea.hbm %s5245_s0, 512 }
  0x25   : > { %p3859_p0 = scmp.lt.s32.totalorder %s3852_s16, %s5245_s0  ;;  %p3860_p3 = scmp.lt.s32.totalorder %s3858_s23, %s3853_s1 }
  0x26   : > { %p3856_p12 = pnand %p3855_p10, %p3854_p2 }
  0x27   : > { %p3861_p5 = por %p3860_p3, %p3859_p0 }
  0x28   : > { %p3857_p13 = pneg %p3856_p12 }
  0x2a   : > { %p3862_p11 = pnand %p3861_p5, %p3857_p13 }
  0x2c   : > { %3865 = shalt.err (!%p3862_p11)
}
  0x2d   : > { %s3962_s21 = smov 128   ;;  %s3963_s9 = smov 8  }
  0x2e   : > { %3670 = dma.hbm_to_vmem [thread:$0]  (!%p4102_p9), %s283_s29, 4096, %s285_s10, %s273_s14, %s3962_s21, %s3962_s21, %s3963_s9  }
  0x2f   : > { %296 = sbr.rel (%p4051_p8) target bundleno = 1334 (0x536), region = 48 }
  0x34   : > { %s4119_s22 = sand.u32 1, %s3947_s25  }
  0x35   : > { %s3165_s16 = sshll.u32 %s4119_s22, 8  ;;  %s299_s1 = scalar_lea.sflag [#allocation4], %s4119_s22 }
  0x36   : > { %s4125_s15 = scalar_lea.vmem [#allocation3], %s3165_s16 }
  0x37   : > { %3926 = dma.done.wait (%p4038_p4), %s299_s1, 4096  }
  0x38   : > { %3928 = vsyncadd (%p4038_p4), %s299_s1, 4294963200 }
  0x39   : > { %3930 = dma.done.wait (%p46_p1), [#allocation7], 10240  }
  0x3a   : > { %3932 = vsyncadd (%p46_p1), [#allocation7], 4294957056 }
  0x3b   : > { %3934 = dma.done.wait (%p46_p1), [#allocation10], 1024  }
  0x3c   : > { %3936 = vsyncadd (%p46_p1), [#allocation10], 4294966272  ;;  %v3535_v0 = vld [vmem:[#allocation6 + $0x38] sm:$0xff]  ;;  %v3534_v1 = vld [vmem:[#allocation6 + $0x30] sm:$0xff]  ;;  %v3964_v37 = vmov 0.0   ;;  %v3965_v49 = vmov 0.0|0.0  }
  0x3d   : > { %465 = vmatpush.bf16.msra.mxu0 %v3535_v0  ;;  %3617 = vmatpush.bf16.msra.mxu3 %v3535_v0  ;;  %v3533_v2 = vld [vmem:[#allocation6 + $0x28] sm:$0xff]  ;;  %v3532_v3 = vld [vmem:[#allocation6 + $0x20] sm:$0xff]  ;;  %v3531_v4 = vld [vmem:[#allocation6 + $0x18] sm:$0xff]  ;;  %586 = vst [vmem:[#allocation2] sm:$0xff] %v3964_v37  ;;  %s5059_s23 = scalar_lea.vmem [#allocation11], %s3165_s16  ;;  %s3616_s19 = sshll.u32 %s4029_s28, 8 }
  0x3e   : > { %v3530_v5 = vld [vmem:[#allocation6 + $0x10] sm:$0xff]  ;;  %v3529_v6 = vld [vmem:[#allocation6 + $0x8] sm:$0xff]  ;;  %v3528_v7 = vld [vmem:[#allocation6] sm:$0xff]  ;;  %587 = vst [vmem:[#allocation2 + $0x8] sm:$0xff] %v3964_v37  ;;  %s3049_s9 = scalar_lea.hbm %s5252_s7, %s3616_s19  ;;  %s3050_s16 = sshll.u32 %s5059_s23, 4  ;;  %s3051_s16 = int_to_ptr.vmem [resolvable:$true] %s3050_s16 }
  0x3f   : > { %v349_v8 = vld [vmem:[%s4125_s15] sm:$0xff]  ;;  %v350_v9 = vld [vmem:[%s4125_s15 + $0x8] sm:$0xff]  ;;  %v351_v11 = vld [vmem:[%s4125_s15 + $0x10] sm:$0xff]  ;;  %588 = vst [vmem:[#allocation2 + $0x10] sm:$0x3] %v3964_v37  ;;  %s3052_s1 = sshll.u32 %s3049_s9, 4  ;;  %s3053_s1 = int_to_ptr.hbm [resolvable:$true] %s3052_s1 }
  0x40   : > { %v381_v10 = vpack.c.bf16 %v350_v9, %v349_v8  ;;  %v352_v12 = vld [vmem:[%s4125_s15 + $0x18] sm:$0xff]  ;;  %v353_v14 = vld [vmem:[%s4125_s15 + $0x20] sm:$0xff]  ;;  %v354_v15 = vld [vmem:[%s4125_s15 + $0x28] sm:$0xff]  ;;  %590 = vst [vmem:[#allocation2 + $0x198] sm:$0xff] %v3964_v37  ;;  %s3038_s30 = scalar_lea.sflag [#allocation5], %s4119_s22  ;;  %s3895_s28 = sshra.s32 %s3053_s1, 4  ;;  %s3896_s28 = int_to_ptr.hbm [resolvable:$true] %s3895_s28 }
  0x41   : > { %466 = vmatpush.bf16.msra.mxu0 %v3534_v1  ;;  %3618 = vmatpush.bf16.msra.mxu3 %v3534_v1  ;;  %v382_v13 = vpack.c.bf16 %v352_v12, %v351_v11  ;;  %v383_v16 = vpack.c.bf16 %v354_v15, %v353_v14  ;;  %v355_v17 = vld [vmem:[%s4125_s15 + $0x30] sm:$0xff]  ;;  %v356_v18 = vld [vmem:[%s4125_s15 + $0x38] sm:$0xff]  ;;  %v357_v20 = vld [vmem:[%s4125_s15 + $0x40] sm:$0xff]  ;;  %591 = vst [vmem:[#allocation2 + $0x1a0] sm:$0xff] %v3964_v37  ;;  %s3897_s12 = scalar_lea.hbm %s3896_s28, 256  ;;  %s3901_s13 = scalar_lea.hbm %s5252_s7, 512 }
  0x42   : > { %v384_v19 = vpack.c.bf16 %v356_v18, %v355_v17  ;;  %v358_v21 = vld [vmem:[%s4125_s15 + $0x48] sm:$0xff]  ;;  %v3551_v22 = vld [vmem:[#allocation8 + $0x78] sm:$0xff]  ;;  %v3550_v24 = vld [vmem:[#allocation8 + $0x70] sm:$0xff]  ;;  %592 = vst [vmem:[#allocation2 + $0x1a8] sm:$0x3] %v3964_v37  ;;  %p3898_p1 = scmp.ne.s32.totalorder %s3896_s28, %s3897_s12  ;;  %p3902_p11 = scmp.lt.s32.totalorder %s3896_s28, %s5252_s7 }
  0x43   : > { %v385_v23 = vpack.c.bf16 %v358_v21, %v357_v20  ;;  %835 = vmatpush.bf16.msra.mxu1 %v3551_v22  ;;  %v4149_v25 = vld [vmem:[#allocation8 + $0x38] sm:$0xff]  ;;  %v3549_v26 = vld [vmem:[#allocation8 + $0x68] sm:$0xff]  ;;  %v4152_v27 = vld [vmem:[#allocation8 + $0x30] sm:$0xff]  ;;  %594 = vst [vmem:[#allocation2 + $0x18] sm:$0x1] %v3964_v37  ;;  %p3903_p9 = scmp.lt.s32.totalorder %s3901_s13, %s3897_s12 }
  0x44   : > { %972 = vmatpush.bf16.msra.mxu2 %v4149_v25  ;;  %v4155_v28 = vld [vmem:[#allocation8 + $0x28] sm:$0xff]  ;;  %v3548_v29 = vld [vmem:[#allocation8 + $0x60] sm:$0xff]  ;;  %v359_v30 = vld [vmem:[%s4125_s15 + $0x50] sm:$0xff]  ;;  %595 = vst [vmem:[#allocation2 + $0x30] sm:$0x1] %v3964_v37  ;;  %p3899_p4 = pnand %p3898_p1, %p4091_p7 }
  0x45   : > { %467 = vmatpush.bf16.msra.mxu0 %v3533_v2  ;;  %3619 = vmatpush.bf16.msra.mxu3 %v3533_v2  ;;  %v360_v31 = vld [vmem:[%s4125_s15 + $0x58] sm:$0xff]  ;;  %v4160_v34 = vld [vmem:[#allocation8 + $0x20] sm:$0xff]  ;;  %v3546_v35 = vld [vmem:[#allocation8 + $0x50] sm:$0xff]  ;;  %596 = vst [vmem:[#allocation2 + $0x48] sm:$0x1] %v3964_v37  ;;  %p3904_p2 = por %p3903_p9, %p3902_p11 }
  0x46   : > { %v3547_v32 = vld [vmem:[#allocation8 + $0x58] sm:$0xff]  ;;  %v386_v33 = vpack.c.bf16 %v360_v31, %v359_v30  ;;  %v3545_v38 = vld [vmem:[#allocation8 + $0x48] sm:$0xff]  ;;  %v4169_v39 = vld [vmem:[#allocation8 + $0x10] sm:$0xff]  ;;  %597 = vst [vmem:[#allocation2 + $0x60] sm:$0x1] %v3964_v37  ;;  %p3900_p8 = pneg %p3899_p4 }
  0x47   : > { %836 = vmatpush.bf16.msra.mxu1 %v3550_v24  ;;  %v4163_v36 = vld [vmem:[#allocation8 + $0x18] sm:$0xff]  ;;  %v3544_v40 = vld [vmem:[#allocation8 + $0x40] sm:$0xff]  ;;  %v362_v42 = vld [vmem:[%s4125_s15 + $0x68] sm:$0xff]  ;;  %598 = vst [vmem:[#allocation2 + $0x78] sm:$0x1] %v3964_v37 }
  0x48   : > { %973 = vmatpush.bf16.msra.mxu2 %v4152_v27  ;;  %v361_v41 = vld [vmem:[%s4125_s15 + $0x60] sm:$0xff]  ;;  %v722_v43 = vld [vmem:[#allocation2 + $0x1] sm:$0xff]  ;;  %v4180_v44 = vld [vmem:[#allocation8 + $0x8] sm:$0xff]  ;;  %599 = vst [vmem:[#allocation2 + $0x90] sm:$0x1] %v3964_v37  ;;  %p3905_p10 = pnand %p3904_p2, %p3900_p8 }
  0x49   : > { %468 = vmatpush.bf16.msra.mxu0 %v3532_v3  ;;  %3620 = vmatpush.bf16.msra.mxu3 %v3532_v3  ;;  %v723_v45 = vld [vmem:[#allocation2 + $0x9] sm:$0xff]  ;;  %v387_v46 = vpack.c.bf16 %v362_v42, %v361_v41  ;;  %600 = vst [vmem:[#allocation2 + $0xa8] sm:$0x1] %v3964_v37  ;;  %v363_v50 = vld [vmem:[%s4125_s15 + $0x70] sm:$0xff]  ;;  %v366_v54 = vld [vmem:[%s4125_s15 + $0x88] sm:$0xff] }
  0x4a   : > { %v754_v47 = vpack.c.bf16 %v723_v45, %v722_v43  ;;  %v4187_v48 = vld [vmem:[#allocation8] sm:$0xff]  ;;  %601 = vst [vmem:[#allocation2 + $0xc0] sm:$0x1] %v3964_v37  ;;  %v364_v51 = vld [vmem:[%s4125_s15 + $0x78] sm:$0xff]  ;;  %v4222_v55 = vld [vmem:[%s5247_s2] ss:$0 sm:$0xff] }
  0x4b   : > { %837 = vmatpush.bf16.msra.mxu1 %v3549_v26  ;;  %602 = vst [vmem:[#allocation2 + $0xd8] sm:$0x1] %v3964_v37  ;;  %v388_v52 = vpack.c.bf16 %v364_v51, %v363_v50  ;;  %v365_v53 = vld [vmem:[%s4125_s15 + $0x80] sm:$0xff]  ;;  %v3567_v59 = vld [vmem:[#allocation8 + $0xf8] sm:$0xff]  ;;  %v3566_v61 = vld [vmem:[#allocation8 + $0xf0] sm:$0xff] }
  0x4c   : > { %974 = vmatpush.bf16.msra.mxu2 %v4155_v28  ;;  %603 = vst [vmem:[#allocation2 + $0xf0] sm:$0x1] %v3964_v37  ;;  %v389_v56 = vpack.c.bf16 %v366_v54, %v365_v53  ;;  %v3565_v0 = vld [vmem:[#allocation8 + $0xe8] sm:$0xff]  ;;  %v367_v2 = vld [vmem:[%s4125_s15 + $0x90] sm:$0xff]  ;;  %v368_v3 = vld [vmem:[%s4125_s15 + $0x98] sm:$0xff] }
  0x4d   : > { %469 = vmatpush.bf16.msra.mxu0 %v3531_v4  ;;  %3621 = vmatpush.bf16.msra.mxu3 %v3531_v4  ;;  %604 = vst [vmem:[#allocation2 + $0x108] sm:$0x1] %v3964_v37  ;;  %v3563_v9 = vld [vmem:[#allocation8 + $0xd8] sm:$0xff]  ;;  %v374_v11 = vld [vmem:[%s4125_s15 + $0xc8] sm:$0xff]  ;;  %v3562_v17 = vld [vmem:[#allocation8 + $0xd0] sm:$0xff] }
  0x4e   : > { %605 = vst [vmem:[#allocation2 + $0x120] sm:$0x1] %v3964_v37  ;;  %v3561_v20 = vld [vmem:[#allocation8 + $0xc8] sm:$0xff]  ;;  %v375_v31 = vld [vmem:[%s4125_s15 + $0xd0] sm:$0xff]  ;;  %v372_v42 = vld [vmem:[%s4125_s15 + $0xb8] sm:$0xff] }
  0x4f   : > { %838 = vmatpush.bf16.msra.mxu1 %v3548_v29  ;;  %606 = vst [vmem:[#allocation2 + $0x138] sm:$0x1] %v3964_v37  ;;  %v371_v41 = vld [vmem:[%s4125_s15 + $0xb0] sm:$0xff] }
  0x50   : > { %975 = vmatpush.bf16.msra.mxu2 %v4160_v34  ;;  %607 = vst [vmem:[#allocation2 + $0x150] sm:$0x1] %v3964_v37  ;;  %v392_v45 = vpack.c.bf16 %v372_v42, %v371_v41 }
  0x51   : > { %470 = vmatpush.bf16.msra.mxu0 %v3530_v5  ;;  %3622 = vmatpush.bf16.msra.mxu3 %v3530_v5  ;;  %608 = vst [vmem:[#allocation2 + $0x168] sm:$0x1] %v3964_v37  ;;  %v3564_v5 = vld [vmem:[#allocation8 + $0xe0] sm:$0xff] }
  0x52   : > { %609 = vst [vmem:[#allocation2 + $0x180] sm:$0x1] %v3964_v37 }
  0x53   : > { %839 = vmatpush.bf16.msra.mxu1 %v3547_v32  ;;  %610 = vst [vmem:[#allocation2 + $0x29] sm:$0x1] %v3964_v37 }
  0x54   : > { %976 = vmatpush.bf16.msra.mxu2 %v4163_v36  ;;  %611 = vst [vmem:[#allocation2 + $0x41] sm:$0x1] %v3964_v37 }
  0x55   : > { %471 = vmatpush.bf16.msra.mxu0 %v3529_v6  ;;  %3623 = vmatpush.bf16.msra.mxu3 %v3529_v6  ;;  %612 = vst [vmem:[#allocation2 + $0x59] sm:$0x1] %v3964_v37  ;;  %v390_v6 = vpack.c.bf16 %v368_v3, %v367_v2 }
  0x56   : > { %613 = vst [vmem:[#allocation2 + $0x71] sm:$0x1] %v3964_v37 }
  0x57   : > { %840 = vmatpush.bf16.msra.mxu1 %v3546_v35  ;;  %614 = vst [vmem:[#allocation2 + $0x89] sm:$0x1] %v3964_v37 }
  0x58   : > { %977 = vmatpush.bf16.msra.mxu2 %v4169_v39  ;;  %615 = vst [vmem:[#allocation2 + $0xa1] sm:$0x1] %v3964_v37 }
  0x59   : > { %472 = vmatpush.bf16.msra.mxu0 %v3528_v7  ;;  %3624 = vmatpush.bf16.msra.mxu3 %v3528_v7  ;;  %616 = vst [vmem:[#allocation2 + $0xb9] sm:$0x1] %v3964_v37 }
  0x5a   : > { %617 = vst [vmem:[#allocation2 + $0xd1] sm:$0x1] %v3964_v37 }
  0x5b   : > { %841 = vmatpush.bf16.msra.mxu1 %v3545_v38  ;;  %618 = vst [vmem:[#allocation2 + $0xe9] sm:$0x1] %v3964_v37 }
  0x5c   : > { %473 = vmatmul.bf16.vlgmr.msra.gmra.mxu0 %v381_v10  ;;  %978 = vmatpush.bf16.msra.mxu2 %v4180_v44  ;;  %619 = vst [vmem:[#allocation2 + $0x101] sm:$0x1] %v3964_v37  ;;  %v373_v10 = vld [vmem:[%s4125_s15 + $0xc0] sm:$0xff] }
  0x5d   : > { %3625 = vmatpush.bf16.msrb.mxu3 %v3551_v22  ;;  %620 = vst [vmem:[#allocation2 + $0x119] sm:$0x1] %v3964_v37  ;;  %1408 = vmatpush.bf16.msrb.mxu0 %v3567_v59  ;;  %v369_v22 = vld [vmem:[%s4125_s15 + $0xa0] sm:$0xff] }
  0x5e   : > { %621 = vst [vmem:[#allocation2 + $0x131] sm:$0x1] %v3964_v37 }
  0x5f   : > { %842 = vmatpush.bf16.msra.mxu1 %v3544_v40  ;;  %622 = vst [vmem:[#allocation2 + $0x149] sm:$0x1] %v3964_v37 }
  0x60   : > { %979 = vmatpush.bf16.msra.mxu2 %v4187_v48  ;;  %623 = vst [vmem:[#allocation2 + $0x161] sm:$0x1] %v3964_v37 }
  0x61   : > { %3626 = vmatpush.bf16.msrb.mxu3 %v3550_v24  ;;  %624 = vst [vmem:[#allocation2 + $0x179] sm:$0x1] %v3964_v37  ;;  %1409 = vmatpush.bf16.msrb.mxu0 %v3566_v61 }
  0x62   : > { %843 = vmatmul.bf16.vlgmr.msra.gmra.mxu1 %v754_v47  ;;  %625 = vst [vmem:[#allocation2 + $0x191] sm:$0x1] %v3964_v37  ;;  %v377_v47 = vld [vmem:[%s4125_s15 + $0xe0] sm:$0xff] }
  0x63   : > { %980 = vmatmul.bf16.vlgmr.msra.gmra.mxu2 %v3965_v49  ;;  %v378_v49 = vld [vmem:[%s4125_s15 + $0xe8] sm:$0xff] }
  0x65   : > { %3627 = vmatpush.bf16.msrb.mxu3 %v3549_v26  ;;  %1410 = vmatpush.bf16.msrb.mxu0 %v3565_v0  ;;  %v3560_v26 = vld [vmem:[#allocation8 + $0xc0] sm:$0xff] }
  0x69   : > { %3628 = vmatpush.bf16.msrb.mxu3 %v3548_v29  ;;  %1411 = vmatpush.bf16.msrb.mxu0 %v3564_v5 }
  0x6c   : > { %478 = vmatmul.bf16.gmra.mxu0 %v382_v13  ;;  %v393_v13 = vpack.c.bf16 %v374_v11, %v373_v10 }
  0x6d   : > { %3629 = vmatpush.bf16.msrb.mxu3 %v3547_v32  ;;  %1412 = vmatpush.bf16.msrb.mxu0 %v3563_v9  ;;  %v376_v32 = vld [vmem:[%s4125_s15 + $0xd8] sm:$0xff] }
  0x6e   : > { %533 = vmatmul.bf16.vlgmr.msra.gmra.mxu3 %v393_v13 }
  0x71   : > { %3630 = vmatpush.bf16.msrb.mxu3 %v3546_v35  ;;  %1413 = vmatpush.bf16.msrb.mxu0 %v3562_v17 }
  0x75   : > { %3631 = vmatpush.bf16.msrb.mxu3 %v3545_v38  ;;  %1414 = vmatpush.bf16.msrb.mxu0 %v3561_v20 }
  0x79   : > { %3632 = vmatpush.bf16.msrb.mxu3 %v3544_v40  ;;  %1415 = vmatpush.bf16.msrb.mxu0 %v3560_v26 }
  0x7c   : > { %483 = vmatmul.bf16.gmra.mxu0 %v383_v16 }
  0x7d   : > { %3633 = vmatpush.bf16.msra.mxu3 %v4149_v25 }
  0x81   : > { %3634 = vmatpush.bf16.msra.mxu3 %v4152_v27 }
  0x85   : > { %3635 = vmatpush.bf16.msra.mxu3 %v4155_v28 }
  0x89   : > { %3636 = vmatpush.bf16.msra.mxu3 %v4160_v34 }
  0x8c   : > { %488 = vmatmul.bf16.gmra.mxu0 %v384_v19 }
  0x8d   : > { %3637 = vmatpush.bf16.msra.mxu3 %v4163_v36 }
  0x91   : > { %3638 = vmatpush.bf16.msra.mxu3 %v4169_v39  ;;  %v395_v39 = vpack.c.bf16 %v378_v49, %v377_v47  ;;  %v3574_v49 = vld [vmem:[#allocation8 + $0x130] sm:$0xff] }
  0x95   : > { %3639 = vmatpush.bf16.msra.mxu3 %v4180_v44 }
  0x99   : > { %3640 = vmatpush.bf16.msra.mxu3 %v4187_v48 }
  0x9c   : > { %493 = vmatmul.bf16.gmra.mxu0 %v385_v23  ;;  %v370_v23 = vld [vmem:[%s4125_s15 + $0xa8] sm:$0xff] }
  0x9d   : > { %v391_v25 = vpack.c.bf16 %v370_v23, %v369_v22 }
  0xac   : > { %498 = vmatmul.bf16.gmra.mxu0 %v386_v33  ;;  %v394_v33 = vpack.c.bf16 %v376_v32, %v375_v31 }
  0xae   : > { %538 = vmatmul.bf16.gmra.mxu3 %v394_v33 }
  0xbc   : > { %503 = vmatmul.bf16.gmra.mxu0 %v387_v46 }
  0xbe   : > { %543 = vmatmul.bf16.gmra.mxu3 %v395_v39 }
  0xcc   : > { %508 = vmatmul.bf16.gmra.mxu0 %v388_v52 }
  0xd9   : > { %v474_v57 = vpop.f32.mrf.mxu0 }
  0xda   : > { %v475_v58 = vadd.f32 %v4222_v55, %v474_v57 }
  0xdc   : > { %v554_v60 = vmax.f32 %v475_v58, 0.0  ;;  %513 = vmatmul.bf16.gmra.mxu0 %v389_v56 }
  0xde   : > { %626 = vst [vmem:[#allocation2 + $0x19] sm:$0xff] %v554_v60 }
  0xdf   : > { %v844_v23 = vpop.f32.mrf.mxu1 }
  0xe1   : > { %v476_v62 = vpop.f32.mrf.mxu0 }
  0xe2   : > { %v477_v63 = vadd.f32 %v4222_v55, %v476_v62 }
  0xe4   : > { %v555_v1 = vmax.f32 %v477_v63, 0.0 }
  0xe5   : > { %v660_v14 = vld [vmem:[#allocation2 + $0x18] sm:$0xff] }
  0xe6   : > { %627 = vst [vmem:[#allocation2 + $0x21] sm:$0xff] %v555_v1  ;;  %v4228_v4 = vpack.c.bf16 %v555_v1, %v554_v60  ;;  %v981_v26 = vpop.f32.mrf.mxu2 }
  0xe7   : > { %v4299_v47 = vpop.f32.mrf.mxu1 }
  0xe8   : > { %848 = vmatmul.bf16.gmra.mxu1 %v4228_v4 }
  0xe9   : > { %v479_v7 = vpop.f32.mrf.mxu0 }
  0xea   : > { %v480_v8 = vadd.f32 %v4222_v55, %v479_v7 }
  0xec   : > { %v556_v12 = vmax.f32 %v480_v8, 0.0  ;;  %518 = vmatmul.bf16.gmra.mxu0 %v390_v6 }
  0xed   : > { %v661_v15 = vld [vmem:[#allocation2 + $0x20] sm:$0xff] }
  0xee   : > { %628 = vst [vmem:[#allocation2 + $0x31] sm:$0xff] %v556_v12  ;;  %v4234_v16 = vpack.c.bf16 %v661_v15, %v660_v14 }
  0xf0   : > { %985 = vmatmul.bf16.gmra.mxu2 %v4234_v16 }
  0xf1   : > { %v481_v18 = vpop.f32.mrf.mxu0 }
  0xf2   : > { %v482_v19 = vadd.f32 %v4222_v55, %v481_v18 }
  0xf4   : > { %v557_v21 = vmax.f32 %v482_v19, 0.0 }
  0xf5   : > { %v662_v35 = vld [vmem:[#allocation2 + $0x30] sm:$0xff] }
  0xf6   : > { %629 = vst [vmem:[#allocation2 + $0x39] sm:$0xff] %v557_v21  ;;  %v4242_v24 = vpack.c.bf16 %v557_v21, %v556_v12 }
  0xf8   : > { %853 = vmatmul.bf16.gmra.mxu1 %v4242_v24 }
  0xf9   : > { %v484_v29 = vpop.f32.mrf.mxu0 }
  0xfa   : > { %v485_v30 = vadd.f32 %v4222_v55, %v484_v29  ;;  %v4285_v29 = vadd.f32 %v981_v26, %v844_v23 }
  0xfc   : > { %v558_v27 = vmax.f32 %v485_v30, 0.0  ;;  %523 = vmatmul.bf16.gmra.mxu0 %v391_v25 }
  0xfd   : > { %v663_v37 = vld [vmem:[#allocation2 + $0x38] sm:$0xff] }
  0xfe   : > { %630 = vst [vmem:[#allocation2 + $0x49] sm:$0xff] %v558_v27  ;;  %v692_v28 = vpack.c.bf16 %v663_v37, %v662_v35  ;;  %v3575_v37 = vld [vmem:[#allocation8 + $0x138] sm:$0xff] }
  0xff   : > { %1642 = vmatpush.bf16.msrb.mxu1 %v3575_v37 }
 0x100   : > { %990 = vmatmul.bf16.gmra.mxu2 %v692_v28 }
 0x101   : > { %v486_v38 = vpop.f32.mrf.mxu0 }
 0x102   : > { %v487_v40 = vadd.f32 %v4222_v55, %v486_v38  ;;  %v380_v38 = vld [vmem:[%s4125_s15 + $0xf8] sm:$0xff] }
 0x103   : > { %1643 = vmatpush.bf16.msrb.mxu1 %v3574_v49 }
 0x104   : > { %v559_v34 = vmax.f32 %v487_v40, 0.0 }
 0x105   : > { %v664_v51 = vld [vmem:[#allocation2 + $0x48] sm:$0xff] }
 0x106   : > { %631 = vst [vmem:[#allocation2 + $0x51] sm:$0xff] %v559_v34  ;;  %v4255_v43 = vpack.c.bf16 %v559_v34, %v558_v27 }
 0x108   : > { %858 = vmatmul.bf16.gmra.mxu1 %v4255_v43 }
 0x109   : > { %v489_v46 = vpop.f32.mrf.mxu0 }
 0x10a   : > { %v490_v36 = vadd.f32 %v4222_v55, %v489_v46 }
 0x10c   : > { %v560_v50 = vmax.f32 %v490_v36, 0.0  ;;  %528 = vmatmul.bf16.gmra.mxu0 %v392_v45 }
 0x10d   : > { %v665_v52 = vld [vmem:[#allocation2 + $0x50] sm:$0xff] }
 0x10e   : > { %632 = vst [vmem:[#allocation2 + $0x61] sm:$0xff] %v560_v50  ;;  %v693_v53 = vpack.c.bf16 %v665_v52, %v664_v51 }
 0x110   : > { %995 = vmatmul.bf16.gmra.mxu2 %v693_v53 }
 0x111   : > { %v491_v44 = vpop.f32.mrf.mxu0 }
 0x112   : > { %v492_v54 = vadd.f32 %v4222_v55, %v491_v44  ;;  %v3573_v44 = vld [vmem:[#allocation8 + $0x128] sm:$0xff] }
 0x113   : > { %1644 = vmatpush.bf16.msrb.mxu1 %v3573_v44 }
 0x114   : > { %v561_v56 = vmax.f32 %v492_v54, 0.0 }
 0x115   : > { %v666_v60 = vld [vmem:[#allocation2 + $0x60] sm:$0xff] }
 0x116   : > { %633 = vst [vmem:[#allocation2 + $0x69] sm:$0xff] %v561_v56  ;;  %v4264_v57 = vpack.c.bf16 %v561_v56, %v560_v50 }
 0x118   : > { %863 = vmatmul.bf16.gmra.mxu1 %v4264_v57 }
 0x119   : > { %v494_v58 = vpop.f32.mrf.mxu0 }
 0x11a   : > { %v495_v48 = vadd.f32 %v4222_v55, %v494_v58  ;;  %v3582_v58 = vld [vmem:[#allocation8 + $0x170] sm:$0xff] }
 0x11c   : > { %v562_v59 = vmax.f32 %v495_v48, 0.0  ;;  %1416 = vmatmul.bf16.vlgmr.msrb.gmra.mxu0 %v4234_v16  ;;  %v3572_v48 = vld [vmem:[#allocation8 + $0x120] sm:$0xff] }
 0x11d   : > { %v667_v61 = vld [vmem:[#allocation2 + $0x68] sm:$0xff]  ;;  %1645 = vmatpush.bf16.msrb.mxu1 %v3572_v48 }
 0x11e   : > { %634 = vst [vmem:[#allocation2 + $0x79] sm:$0xff] %v562_v59  ;;  %v694_v62 = vpack.c.bf16 %v667_v61, %v666_v60 }
 0x120   : > { %1000 = vmatmul.bf16.gmra.mxu2 %v694_v62 }
 0x121   : > { %v496_v63 = vpop.f32.mrf.mxu0 }
 0x122   : > { %v497_v0 = vadd.f32 %v4222_v55, %v496_v63  ;;  %v3571_v63 = vld [vmem:[#allocation8 + $0x118] sm:$0xff] }
 0x123   : > { %1646 = vmatpush.bf16.msrb.mxu1 %v3571_v63 }
 0x124   : > { %v563_v1 = vmax.f32 %v497_v0, 0.0 }
 0x125   : > { %v668_v7 = vld [vmem:[#allocation2 + $0x78] sm:$0xff] }
 0x126   : > { %635 = vst [vmem:[#allocation2 + $0x81] sm:$0xff] %v563_v1  ;;  %v4270_v2 = vpack.c.bf16 %v563_v1, %v562_v59  ;;  %v4308_v1 = vpop.f32.mrf.mxu2 }
 0x128   : > { %868 = vmatmul.bf16.gmra.mxu1 %v4270_v2 }
 0x129   : > { %v499_v3 = vpop.f32.mrf.mxu0 }
 0x12a   : > { %v500_v5 = vadd.f32 %v4222_v55, %v499_v3 }
 0x12c   : > { %v564_v6 = vmax.f32 %v500_v5, 0.0  ;;  %1421 = vmatmul.bf16.gmra.mxu0 %v692_v28  ;;  %v379_v28 = vld [vmem:[%s4125_s15 + $0xf0] sm:$0xff]  ;;  %v3580_v5 = vld [vmem:[#allocation8 + $0x160] sm:$0xff] }
 0x12d   : > { %v669_v8 = vld [vmem:[#allocation2 + $0x80] sm:$0xff]  ;;  %v396_v40 = vpack.c.bf16 %v380_v38, %v379_v28 }
 0x12e   : > { %636 = vst [vmem:[#allocation2 + $0x91] sm:$0xff] %v564_v6  ;;  %v695_v9 = vpack.c.bf16 %v669_v8, %v668_v7 }
 0x12f   : > { %548 = vmatmul.bf16.gmra.mxu3 %v396_v40  ;;  %v3576_v40 = vld [vmem:[#allocation8 + $0x140] sm:$0xff] }
 0x130   : > { %1005 = vmatmul.bf16.gmra.mxu2 %v695_v9 }
 0x131   : > { %v501_v10 = vpop.f32.mrf.mxu0 }
 0x132   : > { %v502_v11 = vadd.f32 %v4222_v55, %v501_v10 }
 0x134   : > { %v565_v12 = vmax.f32 %v502_v11, 0.0 }
 0x135   : > { %v670_v17 = vld [vmem:[#allocation2 + $0x90] sm:$0xff] }
 0x136   : > { %637 = vst [vmem:[#allocation2 + $0x99] sm:$0xff] %v565_v12  ;;  %v4275_v13 = vpack.c.bf16 %v565_v12, %v564_v6  ;;  %v3570_v6 = vld [vmem:[#allocation8 + $0x110] sm:$0xff]  ;;  %v3579_v12 = vld [vmem:[#allocation8 + $0x158] sm:$0xff] }
 0x137   : > { %1647 = vmatpush.bf16.msrb.mxu1 %v3570_v6 }
 0x138   : > { %873 = vmatmul.bf16.gmra.mxu1 %v4275_v13 }
 0x139   : > { %v504_v14 = vpop.f32.mrf.mxu0 }
 0x13a   : > { %v505_v15 = vadd.f32 %v4222_v55, %v504_v14  ;;  %v3569_v14 = vld [vmem:[#allocation8 + $0x108] sm:$0xff] }
 0x13b   : > { %1648 = vmatpush.bf16.msrb.mxu1 %v3569_v14 }
 0x13c   : > { %v566_v16 = vmax.f32 %v505_v15, 0.0  ;;  %1426 = vmatmul.bf16.gmra.mxu0 %v693_v53  ;;  %v3583_v53 = vld [vmem:[#allocation8 + $0x178] sm:$0xff] }
 0x13d   : > { %v671_v18 = vld [vmem:[#allocation2 + $0x98] sm:$0xff]  ;;  %1876 = vmatpush.bf16.msrb.mxu2 %v3583_v53 }
 0x13e   : > { %638 = vst [vmem:[#allocation2 + $0xa9] sm:$0xff] %v566_v16  ;;  %v4279_v19 = vpack.c.bf16 %v671_v18, %v670_v17 }
 0x140   : > { %1010 = vmatmul.bf16.gmra.mxu2 %v4279_v19 }
 0x141   : > { %v506_v20 = vpop.f32.mrf.mxu0  ;;  %1877 = vmatpush.bf16.msrb.mxu2 %v3582_v58 }
 0x142   : > { %v507_v21 = vadd.f32 %v4222_v55, %v506_v20  ;;  %v3568_v20 = vld [vmem:[#allocation8 + $0x100] sm:$0xff] }
 0x143   : > { %1649 = vmatpush.bf16.msrb.mxu1 %v3568_v20 }
 0x144   : > { %v567_v22 = vmax.f32 %v507_v21, 0.0 }
 0x145   : > { %v672_v27 = vld [vmem:[#allocation2 + $0xa8] sm:$0xff] }
 0x146   : > { %639 = vst [vmem:[#allocation2 + $0xb1] sm:$0xff] %v567_v22  ;;  %v4283_v25 = vpack.c.bf16 %v567_v22, %v566_v16  ;;  %v534_v16 = vpop.f32.mrf.mxu3 }
 0x148   : > { %878 = vmatmul.bf16.gmra.mxu1 %v4283_v25 }
 0x149   : > { %v509_v30 = vpop.f32.mrf.mxu0 }
 0x14a   : > { %v510_v31 = vadd.f32 %v4222_v55, %v509_v30  ;;  %v4321_v30 = vadd.f32 %v4222_v55, %v534_v16 }
 0x14c   : > { %v568_v32 = vmax.f32 %v510_v31, 0.0  ;;  %1431 = vmatmul.bf16.gmra.mxu0 %v694_v62  ;;  %v3581_v62 = vld [vmem:[#allocation8 + $0x168] sm:$0xff] }
 0x14d   : > { %v673_v33 = vld [vmem:[#allocation2 + $0xb0] sm:$0xff]  ;;  %1878 = vmatpush.bf16.msrb.mxu2 %v3581_v62  ;;  %v3577_v31 = vld [vmem:[#allocation8 + $0x148] sm:$0xff] }
 0x14e   : > { %640 = vst [vmem:[#allocation2 + $0xc1] sm:$0xff] %v568_v32  ;;  %v4289_v35 = vpack.c.bf16 %v673_v33, %v672_v27  ;;  %v536_v33 = vpop.f32.mrf.mxu3 }
 0x14f   : > { %v4329_v28 = vadd.f32 %v4222_v55, %v536_v33 }
 0x150   : > { %1015 = vmatmul.bf16.gmra.mxu2 %v4289_v35 }
 0x151   : > { %v511_v34 = vpop.f32.mrf.mxu0  ;;  %1879 = vmatpush.bf16.msrb.mxu2 %v3580_v5 }
 0x152   : > { %v512_v41 = vadd.f32 %v4222_v55, %v511_v34 }
 0x154   : > { %v569_v42 = vmax.f32 %v512_v41, 0.0 }
 0x155   : > { %v674_v39 = vld [vmem:[#allocation2 + $0xc0] sm:$0xff]  ;;  %1880 = vmatpush.bf16.msrb.mxu2 %v3579_v12 }
 0x156   : > { %641 = vst [vmem:[#allocation2 + $0xc9] sm:$0xff] %v569_v42  ;;  %v4295_v45 = vpack.c.bf16 %v569_v42, %v568_v32  ;;  %v578_v32 = vmax.f32 %v4321_v30, 0.0  ;;  %v579_v42 = vmax.f32 %v4329_v28, 0.0 }
 0x158   : > { %883 = vmatmul.bf16.gmra.mxu1 %v4295_v45  ;;  %650 = vst [vmem:[#allocation2 + $0x139] sm:$0xff] %v578_v32 }
 0x159   : > { %v514_v46 = vpop.f32.mrf.mxu0  ;;  %651 = vst [vmem:[#allocation2 + $0x141] sm:$0xff] %v579_v42 }
 0x15a   : > { %v515_v36 = vadd.f32 %v4222_v55, %v514_v46 }
 0x15c   : > { %v570_v50 = vmax.f32 %v515_v36, 0.0  ;;  %1436 = vmatmul.bf16.gmra.mxu0 %v695_v9 }
 0x15d   : > { %v675_v51 = vld [vmem:[#allocation2 + $0xc8] sm:$0xff] }
 0x15e   : > { %642 = vst [vmem:[#allocation2 + $0xd9] sm:$0xff] %v570_v50  ;;  %v4301_v52 = vpack.c.bf16 %v675_v51, %v674_v39  ;;  %v539_v51 = vpop.f32.mrf.mxu3 }
 0x160   : > { %1020 = vmatmul.bf16.gmra.mxu2 %v4301_v52 }
 0x161   : > { %v516_v54 = vpop.f32.mrf.mxu0 }
 0x162   : > { %v517_v56 = vadd.f32 %v4222_v55, %v516_v54 }
 0x164   : > { %v571_v59 = vmax.f32 %v517_v56, 0.0 }
 0x165   : > { %v849_v60 = vpop.f32.mrf.mxu1  ;;  %v676_v8 = vld [vmem:[#allocation2 + $0xd8] sm:$0xff] }
 0x166   : > { %643 = vst [vmem:[#allocation2 + $0xe1] sm:$0xff] %v571_v59  ;;  %v4305_v61 = vpack.c.bf16 %v571_v59, %v570_v50  ;;  %v541_v62 = vpop.f32.mrf.mxu3 }
 0x168   : > { %888 = vmatmul.bf16.gmra.mxu1 %v4305_v61 }
 0x169   : > { %v519_v0 = vpop.f32.mrf.mxu0 }
 0x16a   : > { %v520_v3 = vadd.f32 %v4222_v55, %v519_v0  ;;  %v542_v0 = vadd.f32 %v4222_v55, %v541_v62 }
 0x16c   : > { %v572_v7 = vmax.f32 %v520_v3, 0.0  ;;  %1441 = vmatmul.bf16.gmra.mxu0 %v4279_v19  ;;  %v3578_v19 = vld [vmem:[#allocation8 + $0x150] sm:$0xff] }
 0x16d   : > { %v677_v9 = vld [vmem:[#allocation2 + $0xe0] sm:$0xff]  ;;  %v851_v10 = vpop.f32.mrf.mxu1  ;;  %1881 = vmatpush.bf16.msrb.mxu2 %v3578_v19 }
 0x16e   : > { %644 = vst [vmem:[#allocation2 + $0xf1] sm:$0xff] %v572_v7  ;;  %v4312_v11 = vpack.c.bf16 %v677_v9, %v676_v8 }
 0x170   : > { %1025 = vmatmul.bf16.gmra.mxu2 %v4312_v11 }
 0x171   : > { %v521_v15 = vpop.f32.mrf.mxu0  ;;  %1882 = vmatpush.bf16.msrb.mxu2 %v3577_v31 }
 0x172   : > { %v522_v17 = vadd.f32 %v4222_v55, %v521_v15  ;;  %v544_v15 = vpop.f32.mrf.mxu3 }
 0x173   : > { %v986_v18 = vpop.f32.mrf.mxu2 }
 0x174   : > { %v573_v21 = vmax.f32 %v522_v17, 0.0  ;;  %v4316_v22 = vadd.f32 %v986_v18, %v849_v60  ;;  %v4359_v17 = vadd.f32 %v4222_v55, %v544_v15 }
 0x175   : > { %v854_v23 = vpop.f32.mrf.mxu1  ;;  %v678_v46 = vld [vmem:[#allocation2 + $0xf0] sm:$0xff]  ;;  %1883 = vmatpush.bf16.msrb.mxu2 %v3576_v40  ;;  %v1764_v40 = vld [vmem:[#allocation2 + $0x22] sm:$0xff] }
 0x176   : > { %645 = vst [vmem:[#allocation2 + $0xf9] sm:$0xff] %v573_v21  ;;  %v4318_v26 = vpack.c.bf16 %v573_v21, %v572_v7  ;;  %v581_v7 = vmax.f32 %v542_v0, 0.0 }
 0x178   : > { %893 = vmatmul.bf16.gmra.mxu1 %v4318_v26  ;;  %653 = vst [vmem:[#allocation2 + $0x159] sm:$0xff] %v581_v7 }
 0x179   : > { %v524_v27 = vpop.f32.mrf.mxu0 }
 0x17a   : > { %v525_v37 = vadd.f32 %v4222_v55, %v524_v27  ;;  %v546_v27 = vpop.f32.mrf.mxu3 }
 0x17b   : > { %v988_v38 = vpop.f32.mrf.mxu2  ;;  %v547_v33 = vadd.f32 %v4222_v55, %v546_v27 }
 0x17c   : > { %v574_v34 = vmax.f32 %v525_v37, 0.0  ;;  %v4331_v41 = vadd.f32 %v988_v38, %v851_v10  ;;  %1446 = vmatmul.bf16.gmra.mxu0 %v4289_v35  ;;  %v4342_v35 = vadd.f32 %v4222_v55, %v539_v51  ;;  %v1763_v38 = vld [vmem:[#allocation2 + $0x1a] sm:$0xff] }
 0x17d   : > { %v679_v36 = vld [vmem:[#allocation2 + $0xf8] sm:$0xff]  ;;  %v856_v49 = vpop.f32.mrf.mxu1 }
 0x17e   : > { %646 = vst [vmem:[#allocation2 + $0x109] sm:$0xff] %v574_v34  ;;  %v4335_v50 = vpack.c.bf16 %v679_v36, %v678_v46  ;;  %v580_v58 = vmax.f32 %v4342_v35, 0.0  ;;  %v583_v46 = vmax.f32 %v547_v33, 0.0  ;;  %v1769_v33 = vld [vmem:[#allocation2 + $0x62] sm:$0xff] }
 0x180   : > { %1030 = vmatmul.bf16.gmra.mxu2 %v4335_v50  ;;  %652 = vst [vmem:[#allocation2 + $0x151] sm:$0xff] %v580_v58 }
 0x181   : > { %v526_v39 = vpop.f32.mrf.mxu0  ;;  %655 = vst [vmem:[#allocation2 + $0x171] sm:$0xff] %v583_v46 }
 0x182   : > { %v527_v53 = vadd.f32 %v4222_v55, %v526_v39 }
 0x183   : > { %v991_v44 = vpop.f32.mrf.mxu2 }
 0x184   : > { %v575_v54 = vmax.f32 %v527_v53, 0.0  ;;  %v4344_v56 = vadd.f32 %v991_v44, %v854_v23  ;;  %v4385_v44 = vpack.c.bf16 %v579_v42, %v578_v32  ;;  %v4403_v42 = vpack.c.bf16 %v581_v7, %v580_v58 }
 0x185   : > { %v859_v48 = vpop.f32.mrf.mxu1  ;;  %v680_v8 = vld [vmem:[#allocation2 + $0x108] sm:$0xff] }
 0x186   : > { %647 = vst [vmem:[#allocation2 + $0x111] sm:$0xff] %v575_v54  ;;  %v4347_v59 = vpack.c.bf16 %v575_v54, %v574_v34 }
 0x188   : > { %898 = vmatmul.bf16.gmra.mxu1 %v4347_v59 }
 0x189   : > { %v529_v60 = vpop.f32.mrf.mxu0 }
 0x18a   : > { %v530_v63 = vadd.f32 %v4222_v55, %v529_v60  ;;  %v1766_v60 = vld [vmem:[#allocation2 + $0x3a] sm:$0xff] }
 0x18b   : > { %v993_v3 = vpop.f32.mrf.mxu2 }
 0x18c   : > { %v576_v5 = vmax.f32 %v530_v63, 0.0  ;;  %v4354_v6 = vadd.f32 %v993_v3, %v856_v49  ;;  %1451 = vmatmul.bf16.gmra.mxu0 %v4301_v52  ;;  %v582_v52 = vmax.f32 %v4359_v17, 0.0  ;;  %v4374_v49 = vpack.c.bf16 %v1764_v40, %v1763_v38  ;;  %v3557_v40 = vld [vmem:[#allocation8 + $0xa8] sm:$0xff] }
 0x18d   : > { %v681_v9 = vld [vmem:[#allocation2 + $0x110] sm:$0xff]  ;;  %v861_v10 = vpop.f32.mrf.mxu1 }
 0x18e   : > { %648 = vst [vmem:[#allocation2 + $0x121] sm:$0xff] %v576_v5  ;;  %v701_v12 = vpack.c.bf16 %v681_v9, %v680_v8  ;;  %v1768_v8 = vld [vmem:[#allocation2 + $0x52] sm:$0xff]  ;;  %v4418_v17 = vpack.c.bf16 %v583_v46, %v582_v52 }
 0x18f   : > { %654 = vst [vmem:[#allocation2 + $0x169] sm:$0xff] %v582_v52 }
 0x190   : > { %1035 = vmatmul.bf16.gmra.mxu2 %v701_v12 }
 0x191   : > { %v531_v14 = vpop.f32.mrf.mxu0 }
 0x192   : > { %v532_v16 = vadd.f32 %v4222_v55, %v531_v14 }
 0x193   : > { %v996_v18 = vpop.f32.mrf.mxu2 }
 0x194   : > { %v577_v19 = vmax.f32 %v532_v16, 0.0  ;;  %v4361_v20 = vadd.f32 %v996_v18, %v859_v48  ;;  %v1765_v48 = vld [vmem:[#allocation2 + $0x32] sm:$0xff] }
 0x195   : > { %v864_v21 = vpop.f32.mrf.mxu1  ;;  %v4394_v0 = vpack.c.bf16 %v1766_v60, %v1765_v48 }
 0x196   : > { %649 = vst [vmem:[#allocation2 + $0x129] sm:$0xff] %v577_v19  ;;  %v4364_v23 = vpack.c.bf16 %v577_v19, %v576_v5  ;;  %v1767_v5 = vld [vmem:[#allocation2 + $0x4a] sm:$0xff]  ;;  %v1317_v19 = vld [vmem:[#allocation2 + $0x120] sm:$0xff] }
 0x197   : > { %v4411_v15 = vpack.c.bf16 %v1768_v8, %v1767_v5 }
 0x198   : > { %903 = vmatmul.bf16.vlgmr.msrb.gmra.mxu3 %v4364_v23  ;;  %1650 = vmatmul.bf16.vlgmr.msrb.gmra.mxu1 %v4228_v4 }
 0x199   : > { %v4368_v31 = vpop.f32.mrf.mxu0 }
 0x19b   : > { %v998_v37 = vpop.f32.mrf.mxu2 }
 0x19c   : > { %v4371_v34 = vadd.f32 %v998_v37, %v861_v10  ;;  %1456 = vmatmul.bf16.gmra.mxu0 %v4312_v11  ;;  %v3559_v10 = vld [vmem:[#allocation8 + $0xb8] sm:$0xff] }
 0x19d   : > { %v866_v36 = vpop.f32.mrf.mxu1  ;;  %1174 = vmatpush.bf16.msrb.mxu3 %v3559_v10  ;;  %v1318_v18 = vld [vmem:[#allocation2 + $0x128] sm:$0xff]  ;;  %v1771_v10 = vld [vmem:[#allocation2 + $0x7a] sm:$0xff] }
 0x19e   : > { %v1770_v37 = vld [vmem:[#allocation2 + $0x6a] sm:$0xff] }
 0x19f   : > { %v4426_v52 = vpack.c.bf16 %v1770_v37, %v1769_v33 }
 0x1a0   : > { %1884 = vmatmul.bf16.vlgmr.msrb.gmra.mxu2 %v4374_v49 }
 0x1a1   : > { %v4377_v4 = vpop.f32.mrf.mxu0 }
 0x1a3   : > { %v1001_v39 = vpop.f32.mrf.mxu2 }
 0x1a4   : > { %v4379_v51 = vadd.f32 %v1001_v39, %v864_v21  ;;  %v1338_v21 = vpack.c.bf16 %v1318_v18, %v1317_v19 }
 0x1a5   : > { %v869_v53 = vpop.f32.mrf.mxu1 }
 0x1a8   : > { %908 = vmatmul.bf16.gmra.mxu3 %v4385_v44  ;;  %1655 = vmatmul.bf16.gmra.mxu1 %v4242_v24 }
 0x1a9   : > { %v4389_v11 = vpop.f32.mrf.mxu0 }
 0x1aa   : > { %5261 = vst [vmem:[#allocation16_spill] sm:$0xff] %v4389_v11 }
 0x1ab   : > { %v1003_v54 = vpop.f32.mrf.mxu2 }
 0x1ac   : > { %v4391_v62 = vadd.f32 %v1003_v54, %v866_v36  ;;  %1461 = vmatmul.bf16.gmra.mxu0 %v4335_v50 }
 0x1ad   : > { %v871_v63 = vpop.f32.mrf.mxu1 }
 0x1b0   : > { %1889 = vmatmul.bf16.gmra.mxu2 %v4394_v0 }
 0x1b1   : > { %v4397_v30 = vpop.f32.mrf.mxu0 }
 0x1b2   : > { %5262 = vst [vmem:[#allocation17_spill] sm:$0xff] %v4397_v30  ;;  %v549_v48 = vpop.f32.mrf.mxu3 }
 0x1b3   : > { %v1006_v32 = vpop.f32.mrf.mxu2  ;;  %v550_v60 = vadd.f32 %v4222_v55, %v549_v48 }
 0x1b4   : > { %v4399_v28 = vadd.f32 %v1006_v32, %v869_v53  ;;  %v3556_v53 = vld [vmem:[#allocation8 + $0xa0] sm:$0xff]  ;;  %v1320_v32 = vld [vmem:[#allocation2 + $0x140] sm:$0xff] }
 0x1b5   : > { %v874_v24 = vpop.f32.mrf.mxu1 }
 0x1b8   : > { %913 = vmatmul.bf16.gmra.mxu3 %v4403_v42  ;;  %1660 = vmatmul.bf16.gmra.mxu1 %v4255_v43  ;;  %v3558_v43 = vld [vmem:[#allocation8 + $0xb0] sm:$0xff] }
 0x1b9   : > { %v4407_v50 = vpop.f32.mrf.mxu0  ;;  %1175 = vmatpush.bf16.msrb.mxu3 %v3558_v43 }
 0x1ba   : > { %5263 = vst [vmem:[#allocation18_spill] sm:$0xff] %v4407_v50  ;;  %v551_v19 = vpop.f32.mrf.mxu3 }
 0x1bb   : > { %v1008_v3 = vpop.f32.mrf.mxu2 }
 0x1bc   : > { %v4409_v9 = vadd.f32 %v1008_v3, %v871_v63  ;;  %1466 = vmatmul.bf16.gmra.mxu0 %v701_v12  ;;  %v1319_v63 = vld [vmem:[#allocation2 + $0x138] sm:$0xff] }
 0x1bd   : > { %v876_v14 = vpop.f32.mrf.mxu1  ;;  %1176 = vmatpush.bf16.msrb.mxu3 %v3557_v40  ;;  %v1339_v5 = vpack.c.bf16 %v1320_v32, %v1319_v63  ;;  %v3597_v40 = vld [vmem:[#allocation8 + $0x1e8] sm:$0xff]  ;;  %v3596_v63 = vld [vmem:[#allocation8 + $0x1e0] sm:$0xff] }
 0x1c0   : > { %1894 = vmatmul.bf16.gmra.mxu2 %v4411_v15 }
 0x1c1   : > { %v4414_v35 = vpop.f32.mrf.mxu0  ;;  %1177 = vmatpush.bf16.msrb.mxu3 %v3556_v53  ;;  %v3554_v53 = vld [vmem:[#allocation8 + $0x90] sm:$0xff] }
 0x1c2   : > { %5264 = vst [vmem:[#allocation19_spill] sm:$0xff] %v4414_v35 }
 0x1c3   : > { %v1011_v58 = vpop.f32.mrf.mxu2 }
 0x1c4   : > { %v4416_v7 = vadd.f32 %v1011_v58, %v874_v24  ;;  %v584_v24 = vmax.f32 %v550_v60, 0.0  ;;  %v3599_v58 = vld [vmem:[#allocation8 + $0x1f8] sm:$0xff]  ;;  %v1322_v60 = vld [vmem:[#allocation2 + $0x158] sm:$0xff] }
 0x1c5   : > { %v879_v16 = vpop.f32.mrf.mxu1  ;;  %2345 = vmatpush.bf16.msra.mxu0 %v3599_v58  ;;  %v3595_v58 = vld [vmem:[#allocation8 + $0x1d8] sm:$0xff] }
 0x1c6   : > { %656 = vst [vmem:[#allocation2 + $0x181] sm:$0xff] %v584_v24 }
 0x1c8   : > { %918 = vmatmul.bf16.gmra.mxu3 %v4418_v17  ;;  %1665 = vmatmul.bf16.gmra.mxu1 %v4264_v57 }
 0x1c9   : > { %v4422_v12 = vpop.f32.mrf.mxu0 }
 0x1ca   : > { %5265 = vst [vmem:[#allocation20_spill] sm:$0xff] %v4422_v12 }
 0x1cb   : > { %v1013_v27 = vpop.f32.mrf.mxu2 }
 0x1cc   : > { %v4424_v38 = vadd.f32 %v1013_v27, %v876_v14  ;;  %1471 = vmatmul.bf16.gmra.mxu0 %v1338_v21  ;;  %v1772_v14 = vld [vmem:[#allocation2 + $0x82] sm:$0xff] }
 0x1cd   : > { %v881_v36 = vpop.f32.mrf.mxu1  ;;  %v4439_v27 = vpack.c.bf16 %v1772_v14, %v1771_v10  ;;  %v1773_v10 = vld [vmem:[#allocation2 + $0x92] sm:$0xff]  ;;  %v1774_v14 = vld [vmem:[#allocation2 + $0x9a] sm:$0xff] }
 0x1d0   : > { %1899 = vmatmul.bf16.gmra.mxu2 %v4426_v52 }
 0x1d1   : > { %v4429_v46 = vpop.f32.mrf.mxu0 }
 0x1d2   : > { %5266 = vst [vmem:[#allocation21_spill] sm:$0xff] %v4429_v46 }
 0x1d3   : > { %v1016_v57 = vpop.f32.mrf.mxu2 }
 0x1d4   : > { %v4431_v39 = vadd.f32 %v1016_v57, %v879_v16  ;;  %v3555_v16 = vld [vmem:[#allocation8 + $0x98] sm:$0xff] }
 0x1d5   : > { %v884_v54 = vpop.f32.mrf.mxu1  ;;  %1178 = vmatpush.bf16.msrb.mxu3 %v3555_v16 }
 0x1d8   : > { %1040 = vmatmul.bf16.vlgmr.msra.gmra.mxu3 %v1338_v21  ;;  %1670 = vmatmul.bf16.gmra.mxu1 %v4270_v2  ;;  %v552_v2 = vadd.f32 %v4222_v55, %v551_v19  ;;  %v3598_v21 = vld [vmem:[#allocation8 + $0x1f0] sm:$0xff]  ;;  %v1321_v55 = vld [vmem:[#allocation2 + $0x150] sm:$0xff] }
 0x1d9   : > { %v4435_v3 = vpop.f32.mrf.mxu0  ;;  %2346 = vmatpush.bf16.msra.mxu0 %v3598_v21  ;;  %1179 = vmatpush.bf16.msrb.mxu3 %v3554_v53  ;;  %v1340_v32 = vpack.c.bf16 %v1322_v60, %v1321_v55  ;;  %v4455_v21 = vpack.c.bf16 %v1774_v14, %v1773_v10  ;;  %v1323_v60 = vld [vmem:[#allocation2 + $0x168] sm:$0xff] }
 0x1da   : > { %5267 = vst [vmem:[#allocation22_spill] sm:$0xff] %v4435_v3  ;;  %v4443_v33 = vmax.f32 %v552_v2, 0.0 }
 0x1db   : > { %v1018_v8 = vpop.f32.mrf.mxu2 }
 0x1dc   : > { %v4437_v43 = vadd.f32 %v1018_v8, %v881_v36  ;;  %1476 = vmatmul.bf16.gmra.mxu0 %v1339_v5  ;;  %657 = vst [vmem:[#allocation2 + $0x189] sm:$0xff] %v4443_v33 }
 0x1dd   : > { %v886_v18 = vpop.f32.mrf.mxu1  ;;  %2347 = vmatpush.bf16.msra.mxu0 %v3597_v40  ;;  %v3593_v40 = vld [vmem:[#allocation8 + $0x1c8] sm:$0xff] }
 0x1e0   : > { %1904 = vmatmul.bf16.gmra.mxu2 %v4439_v27 }
 0x1e1   : > { %v4446_v36 = vpop.f32.mrf.mxu0  ;;  %2348 = vmatpush.bf16.msra.mxu0 %v3596_v63  ;;  %v1324_v63 = vld [vmem:[#allocation2 + $0x170] sm:$0xff] }
 0x1e2   : > { %5268 = vst [vmem:[#allocation23_spill] sm:$0xff] %v4446_v36  ;;  %v1341_v14 = vpack.c.bf16 %v1324_v63, %v1323_v60 }
 0x1e3   : > { %v1021_v37 = vpop.f32.mrf.mxu2  ;;  %v1326_v60 = vld [vmem:[#allocation2 + $0x188] sm:$0xff] }
 0x1e4   : > { %v4448_v57 = vadd.f32 %v1021_v37, %v884_v54  ;;  %v3553_v54 = vld [vmem:[#allocation8 + $0x88] sm:$0xff] }
 0x1e5   : > { %v889_v48 = vpop.f32.mrf.mxu1  ;;  %2349 = vmatpush.bf16.msra.mxu0 %v3595_v58  ;;  %1180 = vmatpush.bf16.msrb.mxu3 %v3553_v54  ;;  %v1775_v58 = vld [vmem:[#allocation2 + $0xaa] sm:$0xff]  ;;  %v1776_v54 = vld [vmem:[#allocation2 + $0xb2] sm:$0xff] }
 0x1e8   : > { %1045 = vmatmul.bf16.gmra.mxu3 %v1339_v5  ;;  %1675 = vmatmul.bf16.gmra.mxu1 %v4275_v13  ;;  %v3594_v5 = vld [vmem:[#allocation8 + $0x1d0] sm:$0xff]  ;;  %v4459_v13 = vpack.c.bf16 %v4443_v33, %v584_v24 }
 0x1e9   : > { %v4453_v2 = vpop.f32.mrf.mxu0  ;;  %2350 = vmatpush.bf16.msra.mxu0 %v3594_v5 }
 0x1ea   : > { %5269 = vst [vmem:[#allocation24_spill] sm:$0xff] %v4453_v2 }
 0x1eb   : > { %v1023_v8 = vpop.f32.mrf.mxu2 }
 0x1ec   : > { %v4451_v16 = vadd.f32 %v1023_v8, %v886_v18  ;;  %1481 = vmatmul.bf16.gmra.mxu0 %v1340_v32  ;;  %v3552_v18 = vld [vmem:[#allocation8 + $0x80] sm:$0xff] }
 0x1ed   : > { %v891_v19 = vpop.f32.mrf.mxu1  ;;  %2351 = vmatpush.bf16.msra.mxu0 %v3593_v40  ;;  %1181 = vmatpush.bf16.msrb.mxu3 %v3552_v18  ;;  %v3592_v8 = vld [vmem:[#allocation8 + $0x1c0] sm:$0xff]  ;;  %v3591_v40 = vld [vmem:[#allocation8 + $0x1b8] sm:$0xff] }
 0x1f0   : > { %1909 = vmatmul.bf16.gmra.mxu2 %v4455_v21 }
 0x1f1   : > { %v4463_v10 = vpop.f32.mrf.mxu0  ;;  %2352 = vmatpush.bf16.msra.mxu0 %v3592_v8  ;;  %2111 = vmatpush.bf16.msra.mxu3 %v3591_v40 }
 0x1f2   : > { %5270 = vst [vmem:[#allocation25_spill] sm:$0xff] %v4463_v10 }
 0x1f3   : > { %v1026_v37 = vpop.f32.mrf.mxu2 }
 0x1f4   : > { %v4461_v53 = vadd.f32 %v1026_v37, %v889_v48  ;;  %v4468_v37 = vpack.c.bf16 %v1776_v54, %v1775_v58  ;;  %v1777_v58 = vld [vmem:[#allocation2 + $0xc2] sm:$0xff]  ;;  %v1778_v54 = vld [vmem:[#allocation2 + $0xca] sm:$0xff] }
 0x1f5   : > { %v894_v55 = vpop.f32.mrf.mxu1 }
 0x1f8   : > { %1050 = vmatmul.bf16.gmra.mxu3 %v1340_v32  ;;  %1680 = vmatmul.bf16.gmra.mxu1 %v4283_v25  ;;  %v1325_v25 = vld [vmem:[#allocation2 + $0x180] sm:$0xff] }
 0x1f9   : > { %v4471_v18 = vpop.f32.mrf.mxu0  ;;  %v1342_v8 = vpack.c.bf16 %v1326_v60, %v1325_v25  ;;  %v1062_v25 = vld [vmem:[#allocation2 + $0xa] sm:$0xff] }
 0x1fa   : > { %5271 = vst [vmem:[#allocation26_spill] sm:$0xff] %v4471_v18 }
 0x1fb   : > { %v1028_v24 = vpop.f32.mrf.mxu2 }
 0x1fc   : > { %v4466_v5 = vadd.f32 %v1028_v24, %v891_v19  ;;  %1486 = vmatmul.bf16.gmra.mxu0 %v1341_v14  ;;  %v3607_v19 = vld [vmem:[#allocation8 + $0x238] sm:$0xff] }
 0x1fd   : > { %v896_v48 = vpop.f32.mrf.mxu1  ;;  %2579 = vmatpush.bf16.msra.mxu1 %v3607_v19  ;;  %v2233_v19 = vld [vmem:[#allocation2 + $0x39] sm:$0xff] }
 0x200   : > { %1914 = vmatmul.bf16.gmra.mxu2 %v4468_v37 }
 0x201   : > { %v4476_v2 = vpop.f32.mrf.mxu0 }
 0x202   : > { %5272 = vst [vmem:[#allocation27_spill] sm:$0xff] %v4476_v2 }
 0x203   : > { %v1031_v32 = vpop.f32.mrf.mxu2 }
 0x204   : > { %v4473_v10 = vadd.f32 %v1031_v32, %v894_v55  ;;  %v4480_v55 = vpack.c.bf16 %v1778_v54, %v1777_v58  ;;  %v1061_v32 = vld [vmem:[#allocation2 + $0x2] sm:$0xff]  ;;  %v1779_v58 = vld [vmem:[#allocation2 + $0xda] sm:$0xff] }
 0x205   : > { %v899_v63 = vpop.f32.mrf.mxu1  ;;  %v1780_v54 = vld [vmem:[#allocation2 + $0xe2] sm:$0xff] }
 0x208   : > { %1055 = vmatmul.bf16.gmra.mxu3 %v1341_v14  ;;  %1685 = vmatmul.bf16.gmra.mxu1 %v4295_v45  ;;  %v1093_v45 = vpack.c.bf16 %v1062_v25, %v1061_v32  ;;  %v4496_v32 = vpack.c.bf16 %v1780_v54, %v1779_v58  ;;  %v1781_v58 = vld [vmem:[#allocation2 + $0xf2] sm:$0xff]  ;;  %v1782_v54 = vld [vmem:[#allocation2 + $0xfa] sm:$0xff] }
 0x209   : > { %v4487_v3 = vpop.f32.mrf.mxu0 }
 0x20a   : > { %5273 = vst [vmem:[#allocation28_spill] sm:$0xff] %v4487_v3  ;;  %v4513_v3 = vpack.c.bf16 %v1782_v54, %v1781_v58 }
 0x20b   : > { %v1033_v24 = vpop.f32.mrf.mxu2 }
 0x20c   : > { %v4478_v36 = vadd.f32 %v1033_v24, %v896_v48  ;;  %1491 = vmatmul.bf16.gmra.mxu0 %v1342_v8  ;;  %v2232_v48 = vld [vmem:[#allocation2 + $0x31] sm:$0xff] }
 0x20d   : > { %v901_v40 = vpop.f32.mrf.mxu1  ;;  %v2264_v8 = vpack.c.bf16 %v2233_v19, %v2232_v48  ;;  %v2235_v19 = vld [vmem:[#allocation2 + $0x51] sm:$0xff]  ;;  %v3606_v48 = vld [vmem:[#allocation8 + $0x230] sm:$0xff] }
 0x20e   : > { %2580 = vmatpush.bf16.msra.mxu1 %v3606_v48  ;;  %v1783_v48 = vld [vmem:[#allocation2 + $0x10a] sm:$0xff] }
 0x210   : > { %1919 = vmatmul.bf16.gmra.mxu2 %v4480_v55 }
 0x211   : > { %v4498_v25 = vpop.f32.mrf.mxu0 }
 0x212   : > { %5275 = vst [vmem:[#allocation30_spill] sm:$0xff] %v4498_v25 }
 0x213   : > { %v1036_v14 = vpop.f32.mrf.mxu2 }
 0x214   : > { %v4483_v60 = vadd.f32 %v1036_v14, %v899_v63  ;;  %v3590_v14 = vld [vmem:[#allocation8 + $0x1b0] sm:$0xff] }
 0x215   : > { %v4485_v18 = vpop.f32.mrf.mxu1  ;;  %2112 = vmatpush.bf16.msra.mxu3 %v3590_v14 }
 0x218   : > { %1182 = vmatmul.bf16.vlgmr.msrb.gmra.mxu3 %v1093_v45  ;;  %1690 = vmatmul.bf16.gmra.mxu1 %v4305_v61 }
 0x21b   : > { %v1038_v24 = vpop.f32.mrf.mxu2  ;;  %v4490_v2 = vpop.f32.mrf.mxu3 }
 0x21c   : > { %v4492_v46 = vadd.f32 %v1038_v24, %v901_v40  ;;  %2353 = vmatmul.bf16.vlgmr.msra.gmra.mxu0 %v2264_v8  ;;  %v2234_v40 = vld [vmem:[#allocation2 + $0x49] sm:$0xff]  ;;  %v4507_v8 = vpop.f32.mrf.mxu0 }
 0x21d   : > { %v4494_v63 = vpop.f32.mrf.mxu1  ;;  %5277 = vst [vmem:[#allocation32_spill] sm:$0xff] %v4507_v8  ;;  %v2265_v24 = vpack.c.bf16 %v2235_v19, %v2234_v40  ;;  %v2237_v8 = vld [vmem:[#allocation2 + $0x69] sm:$0xff]  ;;  %v2236_v19 = vld [vmem:[#allocation2 + $0x61] sm:$0xff] }
 0x21e   : > { %5274 = vst [vmem:[#allocation29_spill] sm:$0xff] %v4494_v63  ;;  %v2266_v40 = vpack.c.bf16 %v2237_v8, %v2236_v19  ;;  %v2239_v8 = vld [vmem:[#allocation2 + $0x81] sm:$0xff] }
 0x220   : > { %1924 = vmatmul.bf16.gmra.mxu2 %v4496_v32 }
 0x223   : > { %v4501_v61 = vpop.f32.mrf.mxu3 }
 0x225   : > { %v4503_v45 = vpop.f32.mrf.mxu1 }
 0x226   : > { %5276 = vst [vmem:[#allocation31_spill] sm:$0xff] %v4503_v45 }
 0x228   : > { %1187 = vmatmul.bf16.gmra.mxu3 %v4374_v49  ;;  %1695 = vmatmul.bf16.gmra.mxu1 %v4318_v26  ;;  %v4518_v26 = vpop.f32.mrf.mxu0 }
 0x229   : > { %5279 = vst [vmem:[#allocation34_spill] sm:$0xff] %v4518_v26  ;;  %v3589_v26 = vld [vmem:[#allocation8 + $0x1a8] sm:$0xff] }
 0x22a   : > { %2113 = vmatpush.bf16.msra.mxu3 %v3589_v26 }
 0x22b   : > { %v4509_v25 = vpop.f32.mrf.mxu3 }
 0x22c   : > { %2358 = vmatmul.bf16.gmra.mxu0 %v2265_v24  ;;  %v1784_v24 = vld [vmem:[#allocation2 + $0x112] sm:$0xff] }
 0x22d   : > { %v4511_v14 = vpop.f32.mrf.mxu1  ;;  %v4530_v50 = vpack.c.bf16 %v1784_v24, %v1783_v48  ;;  %v1785_v24 = vld [vmem:[#allocation2 + $0x122] sm:$0xff] }
 0x22e   : > { %5278 = vst [vmem:[#allocation33_spill] sm:$0xff] %v4511_v14  ;;  %v1786_v14 = vld [vmem:[#allocation2 + $0x12a] sm:$0xff] }
 0x230   : > { %1929 = vmatmul.bf16.gmra.mxu2 %v4513_v3  ;;  %v4528_v54 = vpop.f32.mrf.mxu0 }
 0x231   : > { %5282 = vst [vmem:[#allocation37_spill] sm:$0xff] %v4528_v54  ;;  %v4541_v54 = vpop.f32.mrf.mxu2 }
 0x232   : > { %5285 = vst [vmem:[#allocation40_spill] sm:$0xff] %v4541_v54  ;;  %v3604_v54 = vld [vmem:[#allocation8 + $0x220] sm:$0xff] }
 0x233   : > { %v4516_v49 = vpop.f32.mrf.mxu3 }
 0x235   : > { %v4520_v12 = vpop.f32.mrf.mxu1 }
 0x236   : > { %5280 = vst [vmem:[#allocation35_spill] sm:$0xff] %v4520_v12 }
 0x238   : > { %1192 = vmatmul.bf16.gmra.mxu3 %v4394_v0  ;;  %1700 = vmatmul.bf16.gmra.mxu1 %v4347_v59  ;;  %v4537_v19 = vpop.f32.mrf.mxu0 }
 0x239   : > { %5284 = vst [vmem:[#allocation39_spill] sm:$0xff] %v4537_v19  ;;  %v4554_v45 = vpop.f32.mrf.mxu2 }
 0x23a   : > { %5288 = vst [vmem:[#allocation43_spill] sm:$0xff] %v4554_v45 }
 0x23b   : > { %v4524_v35 = vpop.f32.mrf.mxu3 }
 0x23c   : > { %2363 = vmatmul.bf16.gmra.mxu0 %v2266_v40  ;;  %v2238_v40 = vld [vmem:[#allocation2 + $0x79] sm:$0xff] }
 0x23d   : > { %v4526_v58 = vpop.f32.mrf.mxu1  ;;  %v2267_v48 = vpack.c.bf16 %v2239_v8, %v2238_v40  ;;  %v2241_v8 = vld [vmem:[#allocation2 + $0x99] sm:$0xff] }
 0x23e   : > { %5281 = vst [vmem:[#allocation36_spill] sm:$0xff] %v4526_v58  ;;  %v3605_v58 = vld [vmem:[#allocation8 + $0x228] sm:$0xff] }
 0x23f   : > { %2581 = vmatpush.bf16.msra.mxu1 %v3605_v58  ;;  %v2240_v58 = vld [vmem:[#allocation2 + $0x91] sm:$0xff] }
 0x240   : > { %1934 = vmatmul.bf16.gmra.mxu2 %v4530_v50  ;;  %v4550_v19 = vpop.f32.mrf.mxu0  ;;  %v2268_v40 = vpack.c.bf16 %v2241_v8, %v2240_v58 }
 0x241   : > { %5287 = vst [vmem:[#allocation42_spill] sm:$0xff] %v4550_v19  ;;  %v4565_v63 = vpop.f32.mrf.mxu2 }
 0x242   : > { %5291 = vst [vmem:[#allocation46_spill] sm:$0xff] %v4565_v63 }
 0x243   : > { %v4533_v12 = vpop.f32.mrf.mxu3  ;;  %2582 = vmatpush.bf16.msra.mxu1 %v3604_v54  ;;  %v3602_v54 = vld [vmem:[#allocation8 + $0x210] sm:$0xff] }
 0x245   : > { %v4535_v59 = vpop.f32.mrf.mxu1 }
 0x246   : > { %5283 = vst [vmem:[#allocation38_spill] sm:$0xff] %v4535_v59  ;;  %v4547_v59 = vpack.c.bf16 %v1786_v14, %v1785_v24  ;;  %v1788_v14 = vld [vmem:[#allocation2 + $0x142] sm:$0xff] }
 0x248   : > { %1197 = vmatmul.bf16.gmra.mxu3 %v4411_v15  ;;  %1705 = vmatmul.bf16.gmra.mxu1 %v4364_v23 }
 0x24b   : > { %v4543_v30 = vpop.f32.mrf.mxu3 }
 0x24c   : > { %2368 = vmatmul.bf16.gmra.mxu0 %v2267_v48  ;;  %v1787_v48 = vld [vmem:[#allocation2 + $0x13a] sm:$0xff] }
 0x24d   : > { %v4545_v26 = vpop.f32.mrf.mxu1  ;;  %v4567_v45 = vpack.c.bf16 %v1788_v14, %v1787_v48  ;;  %v3603_v48 = vld [vmem:[#allocation8 + $0x218] sm:$0xff] }
 0x24e   : > { %5286 = vst [vmem:[#allocation41_spill] sm:$0xff] %v4545_v26  ;;  %v4560_v26 = vpop.f32.mrf.mxu0  ;;  %v2242_v14 = vld [vmem:[#allocation2 + $0xa9] sm:$0xff]  ;;  %2583 = vmatpush.bf16.msra.mxu1 %v3603_v48 }
 0x24f   : > { %5290 = vst [vmem:[#allocation45_spill] sm:$0xff] %v4560_v26 }
 0x250   : > { %1939 = vmatmul.bf16.gmra.mxu2 %v4547_v59 }
 0x252   : > { %2584 = vmatpush.bf16.msra.mxu1 %v3602_v54 }
 0x253   : > { %v4552_v23 = vpop.f32.mrf.mxu3 }
 0x255   : > { %v4556_v11 = vpop.f32.mrf.mxu1 }
 0x256   : > { %5289 = vst [vmem:[#allocation44_spill] sm:$0xff] %v4556_v11  ;;  %v4575_v26 = vpop.f32.mrf.mxu0 }
 0x257   : > { %5293 = vst [vmem:[#allocation48_spill] sm:$0xff] %v4575_v26 }
 0x258   : > { %1202 = vmatmul.bf16.gmra.mxu3 %v4426_v52  ;;  %1710 = vmatmul.bf16.gmra.mxu1 %v4385_v44  ;;  %v3588_v44 = vld [vmem:[#allocation8 + $0x1a0] sm:$0xff] }
 0x259   : > { %2114 = vmatpush.bf16.msra.mxu3 %v3588_v44  ;;  %v1789_v44 = vld [vmem:[#allocation2 + $0x152] sm:$0xff] }
 0x25b   : > { %v1041_v24 = vpop.f32.mrf.mxu3 }
 0x25c   : > { %2373 = vmatmul.bf16.gmra.mxu0 %v2268_v40  ;;  %v4563_v19 = vadd.f32 %v1041_v24, %v4490_v2  ;;  %v2243_v2 = vld [vmem:[#allocation2 + $0xb1] sm:$0xff]  ;;  %v4577_v40 = vpop.f32.mrf.mxu2 }
 0x25d   : > { %v4570_v11 = vpop.f32.mrf.mxu1  ;;  %5294 = vst [vmem:[#allocation49_spill] sm:$0xff] %v4577_v40  ;;  %v2269_v24 = vpack.c.bf16 %v2243_v2, %v2242_v14 }
 0x25e   : > { %5292 = vst [vmem:[#allocation47_spill] sm:$0xff] %v4570_v11  ;;  %v4588_v40 = vpop.f32.mrf.mxu0 }
 0x25f   : > { %5296 = vst [vmem:[#allocation51_spill] sm:$0xff] %v4588_v40  ;;  %v1791_v40 = vld [vmem:[#allocation2 + $0x16a] sm:$0xff] }
 0x260   : > { %1944 = vmatmul.bf16.gmra.mxu2 %v4567_v45 }
 0x263   : > { %v1043_v8 = vpop.f32.mrf.mxu3 }
 0x264   : > { %v4573_v58 = vadd.f32 %v1043_v8, %v4501_v61  ;;  %v1790_v61 = vld [vmem:[#allocation2 + $0x15a] sm:$0xff]  ;;  %v4591_v2 = vpop.f32.mrf.mxu2 }
 0x265   : > { %v4581_v11 = vpop.f32.mrf.mxu1  ;;  %v4586_v63 = vpack.c.bf16 %v1790_v61, %v1789_v44  ;;  %5297 = vst [vmem:[#allocation52_spill] sm:$0xff] %v4591_v2  ;;  %v2244_v44 = vld [vmem:[#allocation2 + $0xc1] sm:$0xff] }
 0x266   : > { %5295 = vst [vmem:[#allocation50_spill] sm:$0xff] %v4581_v11  ;;  %v4600_v61 = vpop.f32.mrf.mxu0  ;;  %v1792_v11 = vld [vmem:[#allocation2 + $0x172] sm:$0xff] }
 0x267   : > { %5299 = vst [vmem:[#allocation54_spill] sm:$0xff] %v4600_v61 }
 0x268   : > { %1207 = vmatmul.bf16.gmra.mxu3 %v4439_v27  ;;  %1715 = vmatmul.bf16.gmra.mxu1 %v4403_v42  ;;  %v3601_v42 = vld [vmem:[#allocation8 + $0x208] sm:$0xff] }
 0x269   : > { %2585 = vmatpush.bf16.msra.mxu1 %v3601_v42 }
 0x26b   : > { %v1046_v8 = vpop.f32.mrf.mxu3 }
 0x26c   : > { %2378 = vmatmul.bf16.gmra.mxu0 %v2269_v24  ;;  %v4584_v26 = vadd.f32 %v1046_v8, %v4509_v25  ;;  %v3600_v25 = vld [vmem:[#allocation8 + $0x200] sm:$0xff]  ;;  %v4602_v2 = vpop.f32.mrf.mxu2 }
 0x26d   : > { %v4593_v14 = vpop.f32.mrf.mxu1  ;;  %2586 = vmatpush.bf16.msra.mxu1 %v3600_v25  ;;  %v2245_v8 = vld [vmem:[#allocation2 + $0xc9] sm:$0xff]  ;;  %5300 = vst [vmem:[#allocation55_spill] sm:$0xff] %v4602_v2 }
 0x26e   : > { %5298 = vst [vmem:[#allocation53_spill] sm:$0xff] %v4593_v14  ;;  %v2270_v54 = vpack.c.bf16 %v2245_v8, %v2244_v44  ;;  %v4609_v14 = vpack.c.bf16 %v1792_v11, %v1791_v40  ;;  %v4612_v61 = vpop.f32.mrf.mxu0  ;;  %v2246_v11 = vld [vmem:[#allocation2 + $0xd9] sm:$0xff]  ;;  %v1793_v40 = vld [vmem:[#allocation2 + $0x182] sm:$0xff] }
 0x26f   : > { %5302 = vst [vmem:[#allocation57_spill] sm:$0xff] %v4612_v61 }
 0x270   : > { %1949 = vmatmul.bf16.gmra.mxu2 %v4586_v63 }
 0x273   : > { %v1048_v48 = vpop.f32.mrf.mxu3 }
 0x274   : > { %v4596_v24 = vadd.f32 %v1048_v48, %v4516_v49  ;;  %v3587_v48 = vld [vmem:[#allocation8 + $0x198] sm:$0xff]  ;;  %v4617_v44 = vpop.f32.mrf.mxu2 }
 0x275   : > { %v4607_v25 = vpop.f32.mrf.mxu1  ;;  %2115 = vmatpush.bf16.msra.mxu3 %v3587_v48  ;;  %5303 = vst [vmem:[#allocation58_spill] sm:$0xff] %v4617_v44  ;;  %v3615_v44 = vld [vmem:[#allocation9 + $0x38] sm:$0xff] }
 0x276   : > { %5301 = vst [vmem:[#allocation56_spill] sm:$0xff] %v4607_v25  ;;  %2852 = vmatpush.bf16.msra.mxu2 %v3615_v44 }
 0x278   : > { %1212 = vmatmul.bf16.gmra.mxu3 %v4455_v21  ;;  %1720 = vmatmul.bf16.gmra.mxu1 %v4418_v17 }
 0x27b   : > { %v1051_v42 = vpop.f32.mrf.mxu3 }
 0x27c   : > { %2383 = vmatmul.bf16.gmra.mxu0 %v2270_v54  ;;  %v4605_v49 = vadd.f32 %v1051_v42, %v4524_v35  ;;  %v2247_v54 = vld [vmem:[#allocation2 + $0xe1] sm:$0xff]  ;;  %v1794_v42 = vld [vmem:[#allocation2 + $0x18a] sm:$0xff]  ;;  %v4630_v25 = vpop.f32.mrf.mxu2 }
 0x27d   : > { %v4619_v2 = vpop.f32.mrf.mxu1  ;;  %v2271_v35 = vpack.c.bf16 %v2247_v54, %v2246_v11  ;;  %5306 = vst [vmem:[#allocation61_spill] sm:$0xff] %v4630_v25  ;;  %v2249_v11 = vld [vmem:[#allocation2 + $0xf9] sm:$0xff] }
 0x27e   : > { %5304 = vst [vmem:[#allocation59_spill] sm:$0xff] %v4619_v2 }
 0x280   : > { %1954 = vmatmul.bf16.gmra.mxu2 %v4609_v14 }
 0x283   : > { %v1053_v17 = vpop.f32.mrf.mxu3 }
 0x284   : > { %v4615_v8 = vadd.f32 %v1053_v17, %v4533_v12  ;;  %v4626_v12 = vpop.f32.mrf.mxu0  ;;  %v4628_v17 = vpack.c.bf16 %v1794_v42, %v1793_v40 }
 0x285   : > { %5305 = vst [vmem:[#allocation60_spill] sm:$0xff] %v4626_v12  ;;  %v4633_v2 = vpop.f32.mrf.mxu1 }
 0x286   : > { %5307 = vst [vmem:[#allocation62_spill] sm:$0xff] %v4633_v2  ;;  %v3586_v2 = vld [vmem:[#allocation8 + $0x190] sm:$0xff] }
 0x287   : > { %2116 = vmatpush.bf16.msra.mxu3 %v3586_v2 }
 0x288   : > { %1217 = vmatmul.bf16.gmra.mxu3 %v4468_v37  ;;  %1725 = vmatmul.bf16.gmra.mxu1 %v4459_v13 }
 0x28b   : > { %v1056_v48 = vpop.f32.mrf.mxu3 }
 0x28c   : > { %2388 = vmatmul.bf16.gmra.mxu0 %v2271_v35  ;;  %v4624_v61 = vadd.f32 %v1056_v48, %v4543_v30  ;;  %v4638_v35 = vpop.f32.mrf.mxu0  ;;  %v2248_v30 = vld [vmem:[#allocation2 + $0xf1] sm:$0xff] }
 0x28d   : > { %5308 = vst [vmem:[#allocation63_spill] sm:$0xff] %v4638_v35  ;;  %v2272_v40 = vpack.c.bf16 %v2249_v11, %v2248_v30  ;;  %v4642_v48 = vpop.f32.mrf.mxu1  ;;  %v2251_v35 = vld [vmem:[#allocation2 + $0x111] sm:$0xff] }
 0x28e   : > { %5309 = vst [vmem:[#allocation64_spill] sm:$0xff] %v4642_v48 }
 0x290   : > { %1959 = vmatmul.bf16.gmra.mxu2 %v4628_v17 }
 0x293   : > { %v1058_v13 = vpop.f32.mrf.mxu3 }
 0x294   : > { %v4636_v54 = vadd.f32 %v1058_v13, %v4552_v23  ;;  %v4647_v23 = vpop.f32.mrf.mxu0 }
 0x295   : > { %5310 = vst [vmem:[#allocation65_spill] sm:$0xff] %v4647_v23  ;;  %v4651_v13 = vpop.f32.mrf.mxu1  ;;  %v3614_v23 = vld [vmem:[#allocation9 + $0x30] sm:$0xff] }
 0x296   : > { %5311 = vst [vmem:[#allocation66_spill] sm:$0xff] %v4651_v13  ;;  %2853 = vmatpush.bf16.msra.mxu2 %v3614_v23 }
 0x298   : > { %1222 = vmatmul.bf16.gmra.mxu3 %v4480_v55  ;;  %2587 = vmatmul.bf16.vlgmr.msra.gmra.mxu1 %v4394_v0  ;;  %v2250_v0 = vld [vmem:[#allocation2 + $0x109] sm:$0xff] }
 0x299   : > { %v2273_v11 = vpack.c.bf16 %v2251_v35, %v2250_v0  ;;  %v2252_v35 = vld [vmem:[#allocation2 + $0x121] sm:$0xff] }
 0x29b   : > { %v1183_v42 = vpop.f32.mrf.mxu3 }
 0x29c   : > { %2393 = vmatmul.bf16.gmra.mxu0 %v2272_v40  ;;  %v4645_v12 = vadd.f32 %v1183_v42, %v4285_v29  ;;  %v4655_v40 = vpop.f32.mrf.mxu0 }
 0x29d   : > { %5312 = vst [vmem:[#allocation67_spill] sm:$0xff] %v4655_v40  ;;  %v4660_v2 = vpop.f32.mrf.mxu1  ;;  %v3585_v40 = vld [vmem:[#allocation8 + $0x188] sm:$0xff] }
 0x29e   : > { %5313 = vst [vmem:[#allocation68_spill] sm:$0xff] %v4660_v2  ;;  %2117 = vmatpush.bf16.msra.mxu3 %v3585_v40  ;;  %v2255_v2 = vld [vmem:[#allocation2 + $0x141] sm:$0xff] }
 0x2a3   : > { %v4649_v44 = vpop.f32.mrf.mxu3 }
 0x2a4   : > { %v4665_v48 = vpop.f32.mrf.mxu0 }
 0x2a5   : > { %5314 = vst [vmem:[#allocation69_spill] sm:$0xff] %v4665_v48  ;;  %v4669_v0 = vpop.f32.mrf.mxu1 }
 0x2a6   : > { %5315 = vst [vmem:[#allocation70_spill] sm:$0xff] %v4669_v0 }
 0x2a8   : > { %1227 = vmatmul.bf16.gmra.mxu3 %v4496_v32  ;;  %2592 = vmatmul.bf16.gmra.mxu1 %v4411_v15  ;;  %v2253_v15 = vld [vmem:[#allocation2 + $0x129] sm:$0xff] }
 0x2ab   : > { %v1188_v30 = vpop.f32.mrf.mxu3 }
 0x2ac   : > { %2398 = vmatmul.bf16.gmra.mxu0 %v2273_v11  ;;  %v4658_v29 = vadd.f32 %v1188_v30, %v4316_v22  ;;  %v2274_v22 = vpack.c.bf16 %v2253_v15, %v2252_v35 }
 0x2b3   : > { %v1190_v42 = vpop.f32.mrf.mxu3 }
 0x2b4   : > { %v4663_v13 = vadd.f32 %v1190_v42, %v4331_v41  ;;  %v4674_v41 = vpop.f32.mrf.mxu0  ;;  %v4676_v42 = vpop.f32.mrf.mxu1 }
 0x2b5   : > { %5316 = vst [vmem:[#allocation71_spill] sm:$0xff] %v4674_v41  ;;  %v3613_v41 = vld [vmem:[#allocation9 + $0x28] sm:$0xff] }
 0x2b6   : > { %5317 = vst [vmem:[#allocation72_spill] sm:$0xff] %v4676_v42  ;;  %2854 = vmatpush.bf16.msra.mxu2 %v3613_v41  ;;  %v2256_v42 = vld [vmem:[#allocation2 + $0x151] sm:$0xff] }
 0x2b8   : > { %1232 = vmatmul.bf16.gmra.mxu3 %v4513_v3  ;;  %2597 = vmatmul.bf16.gmra.mxu1 %v4426_v52  ;;  %v2254_v52 = vld [vmem:[#allocation2 + $0x139] sm:$0xff] }
 0x2bb   : > { %v1193_v11 = vpop.f32.mrf.mxu3 }
 0x2bc   : > { %2403 = vmatmul.bf16.gmra.mxu0 %v2274_v22  ;;  %v4672_v30 = vadd.f32 %v1193_v11, %v4344_v56  ;;  %v4683_v15 = vpop.f32.mrf.mxu0  ;;  %v2275_v56 = vpack.c.bf16 %v2255_v2, %v2254_v52  ;;  %v4688_v22 = vpop.f32.mrf.mxu1 }
 0x2bd   : > { %5318 = vst [vmem:[#allocation73_spill] sm:$0xff] %v4688_v22  ;;  %v2259_v22 = vld [vmem:[#allocation2 + $0x171] sm:$0xff] }
 0x2c3   : > { %v1195_v23 = vpop.f32.mrf.mxu3 }
 0x2c4   : > { %v4679_v48 = vadd.f32 %v1195_v23, %v4354_v6  ;;  %v4690_v6 = vpop.f32.mrf.mxu0  ;;  %v4695_v0 = vpop.f32.mrf.mxu1 }
 0x2c5   : > { %5319 = vst [vmem:[#allocation74_spill] sm:$0xff] %v4695_v0  ;;  %v2258_v0 = vld [vmem:[#allocation2 + $0x169] sm:$0xff] }
 0x2c8   : > { %1237 = vmatmul.bf16.gmra.mxu3 %v4530_v50  ;;  %2602 = vmatmul.bf16.gmra.mxu1 %v4439_v27  ;;  %v2257_v27 = vld [vmem:[#allocation2 + $0x159] sm:$0xff] }
 0x2cb   : > { %v1198_v35 = vpop.f32.mrf.mxu3 }
 0x2cc   : > { %2408 = vmatmul.bf16.gmra.mxu0 %v2275_v56  ;;  %v4686_v40 = vadd.f32 %v1198_v35, %v4361_v20  ;;  %v2276_v20 = vpack.c.bf16 %v2257_v27, %v2256_v42  ;;  %v3584_v56 = vld [vmem:[#allocation8 + $0x180] sm:$0xff]  ;;  %v4702_v35 = vpop.f32.mrf.mxu0 }
 0x2cd   : > { %2118 = vmatpush.bf16.msra.mxu3 %v3584_v56 }
 0x2d3   : > { %v1200_v11 = vpop.f32.mrf.mxu3 }
 0x2d4   : > { %v4693_v23 = vadd.f32 %v1200_v11, %v4371_v34  ;;  %v4704_v34 = vpop.f32.mrf.mxu1  ;;  %v4709_v25 = vpop.f32.mrf.mxu0 }
 0x2d5   : > { %5320 = vst [vmem:[#allocation75_spill] sm:$0xff] %v4704_v34  ;;  %v2260_v34 = vld [vmem:[#allocation2 + $0x181] sm:$0xff] }
 0x2d8   : > { %1242 = vmatmul.bf16.gmra.mxu3 %v4547_v59  ;;  %2607 = vmatmul.bf16.gmra.mxu1 %v4455_v21 }
 0x2db   : > { %v1203_v2 = vpop.f32.mrf.mxu3 }
 0x2dc   : > { %2413 = vmatmul.bf16.gmra.mxu0 %v2276_v20  ;;  %v4700_v52 = vadd.f32 %v1203_v2, %v4379_v51  ;;  %v2277_v51 = vpack.c.bf16 %v2259_v22, %v2258_v0  ;;  %v4713_v42 = vpop.f32.mrf.mxu1  ;;  %v4718_v20 = vpop.f32.mrf.mxu0  ;;  %v3612_v2 = vld [vmem:[#allocation9 + $0x20] sm:$0xff] }
 0x2dd   : > { %5321 = vst [vmem:[#allocation76_spill] sm:$0xff] %v4713_v42  ;;  %2855 = vmatpush.bf16.msra.mxu2 %v3612_v2  ;;  %v2011_v42 = vld [vmem:[#allocation2 + $0xc8] sm:$0xff] }
 0x2e3   : > { %v1205_v41 = vpop.f32.mrf.mxu3 }
 0x2e4   : > { %v4707_v11 = vadd.f32 %v1205_v41, %v4391_v62  ;;  %v4723_v41 = vpop.f32.mrf.mxu1 }
 0x2e5   : > { %5322 = vst [vmem:[#allocation77_spill] sm:$0xff] %v4723_v41 }
 0x2e8   : > { %1247 = vmatmul.bf16.gmra.mxu3 %v4567_v45  ;;  %2612 = vmatmul.bf16.gmra.mxu1 %v4468_v37  ;;  %v2278_v37 = vpack.c.bf16 %v4443_v33, %v2260_v34 }
 0x2eb   : > { %v1208_v21 = vpop.f32.mrf.mxu3 }
 0x2ec   : > { %2418 = vmatmul.bf16.gmra.mxu0 %v2277_v51  ;;  %v4716_v27 = vadd.f32 %v1208_v21, %v4399_v28  ;;  %v4728_v28 = vpop.f32.mrf.mxu0  ;;  %v4733_v51 = vpop.f32.mrf.mxu1 }
 0x2ed   : > { %5323 = vst [vmem:[#allocation78_spill] sm:$0xff] %v4733_v51  ;;  %v2001_v51 = vld [vmem:[#allocation2 + $0x50] sm:$0xff] }
 0x2f3   : > { %v1210_v62 = vpop.f32.mrf.mxu3 }
 0x2f4   : > { %v4721_v56 = vadd.f32 %v1210_v62, %v4409_v9  ;;  %v3611_v62 = vld [vmem:[#allocation9 + $0x18] sm:$0xff] }
 0x2f5   : > { %2856 = vmatpush.bf16.msra.mxu2 %v3611_v62 }
 0x2f8   : > { %1252 = vmatmul.bf16.gmra.mxu3 %v4586_v63  ;;  %2617 = vmatmul.bf16.gmra.mxu1 %v4480_v55  ;;  %v4740_v55 = vpop.f32.mrf.mxu1 }
 0x2f9   : > { %5324 = vst [vmem:[#allocation79_spill] sm:$0xff] %v4740_v55 }
 0x2fb   : > { %v1213_v0 = vpop.f32.mrf.mxu3 }
 0x2fc   : > { %2423 = vmatmul.bf16.gmra.mxu0 %v2278_v37  ;;  %v4731_v22 = vadd.f32 %v1213_v0, %v4416_v7  ;;  %v1999_v7 = vld [vmem:[#allocation2 + $0x38] sm:$0xff] }
 0x300   : > { %v4745_v37 = vpop.f32.mrf.mxu1 }
 0x301   : > { %5325 = vst [vmem:[#allocation80_spill] sm:$0xff] %v4745_v37  ;;  %v2000_v37 = vld [vmem:[#allocation2 + $0x48] sm:$0xff] }
 0x302   : > { %v2031_v41 = vpack.c.bf16 %v2001_v51, %v2000_v37 }
 0x303   : > { %v1215_v9 = vpop.f32.mrf.mxu3 }
 0x304   : > { %v4736_v21 = vadd.f32 %v1215_v9, %v4424_v38  ;;  %v1998_v38 = vld [vmem:[#allocation2 + $0x30] sm:$0xff] }
 0x305   : > { %v2030_v9 = vpack.c.bf16 %v1999_v7, %v1998_v38 }
 0x308   : > { %1257 = vmatmul.bf16.gmra.mxu3 %v4609_v14  ;;  %2622 = vmatmul.bf16.gmra.mxu1 %v4496_v32 }
 0x30b   : > { %v1218_v33 = vpop.f32.mrf.mxu3 }
 0x30c   : > { %v4743_v34 = vadd.f32 %v1218_v33, %v4431_v39  ;;  %v4754_v39 = vpop.f32.mrf.mxu1 }
 0x30d   : > { %5326 = vst [vmem:[#allocation81_spill] sm:$0xff] %v4754_v39 }
 0x313   : > { %v1220_v2 = vpop.f32.mrf.mxu3 }
 0x314   : > { %v4748_v0 = vadd.f32 %v1220_v2, %v4437_v43  ;;  %v4759_v43 = vpop.f32.mrf.mxu1 }
 0x315   : > { %5327 = vst [vmem:[#allocation82_spill] sm:$0xff] %v4759_v43 }
 0x318   : > { %2119 = vmatmul.bf16.vlgmr.msra.gmra.mxu3 %v2030_v9  ;;  %2627 = vmatmul.bf16.gmra.mxu1 %v4513_v3  ;;  %v2003_v9 = vld [vmem:[#allocation2 + $0x68] sm:$0xff] }
 0x31b   : > { %v1223_v32 = vpop.f32.mrf.mxu3 }
 0x31c   : > { %v4752_v55 = vadd.f32 %v1223_v32, %v4448_v57  ;;  %v3610_v57 = vld [vmem:[#allocation9 + $0x10] sm:$0xff]  ;;  %v4765_v7 = vpop.f32.mrf.mxu1 }
 0x31d   : > { %5328 = vst [vmem:[#allocation83_spill] sm:$0xff] %v4765_v7  ;;  %2857 = vmatpush.bf16.msra.mxu2 %v3610_v57  ;;  %v2002_v32 = vld [vmem:[#allocation2 + $0x60] sm:$0xff]  ;;  %v4779_v57 = vpop.f32.mrf.mxu2  ;;  %v2006_v7 = vld [vmem:[#allocation2 + $0x90] sm:$0xff] }
 0x31e   : > { %v2032_v51 = vpack.c.bf16 %v2003_v9, %v2002_v32 }
 0x323   : > { %v1225_v33 = vpop.f32.mrf.mxu3 }
 0x324   : > { %v4757_v62 = vadd.f32 %v1225_v33, %v4451_v16  ;;  %v2005_v33 = vld [vmem:[#allocation2 + $0x80] sm:$0xff] }
 0x328   : > { %2124 = vmatmul.bf16.gmra.mxu3 %v2031_v41  ;;  %2632 = vmatmul.bf16.gmra.mxu1 %v4530_v50  ;;  %v4771_v50 = vpop.f32.mrf.mxu1 }
 0x329   : > { %5329 = vst [vmem:[#allocation84_spill] sm:$0xff] %v4771_v50 }
 0x32b   : > { %v1228_v2 = vpop.f32.mrf.mxu3 }
 0x32c   : > { %v4763_v3 = vadd.f32 %v1228_v2, %v4461_v53 }
 0x333   : > { %v1230_v38 = vpop.f32.mrf.mxu3 }
 0x334   : > { %v4768_v16 = vadd.f32 %v1230_v38, %v4466_v5  ;;  %v2004_v5 = vld [vmem:[#allocation2 + $0x78] sm:$0xff]  ;;  %v4781_v38 = vpop.f32.mrf.mxu1 }
 0x335   : > { %v2033_v9 = vpack.c.bf16 %v2005_v33, %v2004_v5 }
 0x338   : > { %2129 = vmatmul.bf16.gmra.mxu3 %v2032_v51  ;;  %2637 = vmatmul.bf16.gmra.mxu1 %v4547_v59 }
 0x33b   : > { %v1233_v41 = vpop.f32.mrf.mxu3 }
 0x33c   : > { %v4774_v53 = vadd.f32 %v1233_v41, %v4473_v10  ;;  %v4787_v10 = vpop.f32.mrf.mxu2  ;;  %v4789_v51 = vpop.f32.mrf.mxu1  ;;  %v3609_v41 = vld [vmem:[#allocation9 + $0x8] sm:$0xff] }
 0x33d   : > { %2858 = vmatpush.bf16.msra.mxu2 %v3609_v41  ;;  %v2009_v41 = vld [vmem:[#allocation2 + $0xb0] sm:$0xff] }
 0x343   : > { %v1235_v37 = vpop.f32.mrf.mxu3 }
 0x344   : > { %v4777_v2 = vadd.f32 %v1235_v37, %v4478_v36  ;;  %v2007_v37 = vld [vmem:[#allocation2 + $0x98] sm:$0xff] }
 0x345   : > { %v2034_v33 = vpack.c.bf16 %v2007_v37, %v2006_v7  ;;  %v2008_v7 = vld [vmem:[#allocation2 + $0xa8] sm:$0xff] }
 0x348   : > { %2134 = vmatmul.bf16.gmra.mxu3 %v2033_v9  ;;  %2642 = vmatmul.bf16.gmra.mxu1 %v4567_v45  ;;  %v4795_v45 = vpop.f32.mrf.mxu2 }
 0x34b   : > { %v1238_v59 = vpop.f32.mrf.mxu3 }
 0x34c   : > { %v4785_v32 = vadd.f32 %v1238_v59, %v4483_v60  ;;  %v4797_v60 = vpop.f32.mrf.mxu1 }
 0x350   : > { %v4802_v59 = vpop.f32.mrf.mxu2 }
 0x353   : > { %v1240_v36 = vpop.f32.mrf.mxu3 }
 0x354   : > { %v4792_v50 = vadd.f32 %v1240_v36, %v4492_v46  ;;  %v4804_v39 = vpop.f32.mrf.mxu1  ;;  %v2035_v36 = vpack.c.bf16 %v2009_v41, %v2008_v7 }
 0x358   : > { %2139 = vmatmul.bf16.gmra.mxu3 %v2034_v33  ;;  %2647 = vmatmul.bf16.gmra.mxu1 %v4586_v63 }
 0x35b   : > { %v1243_v5 = vpop.f32.mrf.mxu3 }
 0x35c   : > { %v4800_v9 = vadd.f32 %v1243_v5, %v4563_v19  ;;  %v4813_v19 = vpop.f32.mrf.mxu2  ;;  %v4815_v33 = vpop.f32.mrf.mxu1  ;;  %v3608_v5 = vld [vmem:[#allocation9] sm:$0xff] }
 0x35d   : > { %2859 = vmatpush.bf16.msra.mxu2 %v3608_v5 }
 0x35e   : > { %5330 = vst [vmem:[#allocation85_spill] sm:$0xff] %v4800_v9 }
 0x363   : > { %v1245_v43 = vpop.f32.mrf.mxu3 }
 0x364   : > { %v4807_v46 = vadd.f32 %v1245_v43, %v4573_v58  ;;  %v2010_v43 = vld [vmem:[#allocation2 + $0xc0] sm:$0xff]  ;;  %v4820_v7 = vpop.f32.mrf.mxu2 }
 0x365   : > { %v2036_v41 = vpack.c.bf16 %v2011_v42, %v2010_v43 }
 0x366   : > { %5331 = vst [vmem:[#allocation86_spill] sm:$0xff] %v4807_v46 }
 0x368   : > { %2144 = vmatmul.bf16.gmra.mxu3 %v2035_v36  ;;  %2652 = vmatmul.bf16.gmra.mxu1 %v4609_v14  ;;  %v4822_v14 = vpop.f32.mrf.mxu1 }
 0x36b   : > { %v1248_v63 = vpop.f32.mrf.mxu3 }
 0x36c   : > { %v4811_v37 = vadd.f32 %v1248_v63, %v4584_v26  ;;  %v4828_v63 = vpop.f32.mrf.mxu2 }
 0x36e   : > { %5332 = vst [vmem:[#allocation87_spill] sm:$0xff] %v4811_v37  ;;  %v2013_v37 = vld [vmem:[#allocation2 + $0xe0] sm:$0xff] }
 0x373   : > { %v1250_v9 = vpop.f32.mrf.mxu3 }
 0x374   : > { %v4818_v58 = vadd.f32 %v1250_v9, %v4596_v24  ;;  %v2012_v9 = vld [vmem:[#allocation2 + $0xd8] sm:$0xff]  ;;  %v4833_v43 = vpop.f32.mrf.mxu2 }
 0x375   : > { %v2037_v42 = vpack.c.bf16 %v2013_v37, %v2012_v9  ;;  %v2014_v37 = vld [vmem:[#allocation2 + $0xf0] sm:$0xff] }
 0x376   : > { %5333 = vst [vmem:[#allocation88_spill] sm:$0xff] %v4818_v58 }
 0x378   : > { %2149 = vmatmul.bf16.gmra.mxu3 %v2036_v41  ;;  %2657 = vmatmul.bf16.gmra.mxu1 %v4628_v17 }
 0x37b   : > { %v1253_v26 = vpop.f32.mrf.mxu3 }
 0x37c   : > { %v4826_v36 = vadd.f32 %v1253_v26, %v4605_v49  ;;  %v1497_v49 = vadd.f32 %v4368_v31, %v4645_v12  ;;  %v2015_v26 = vld [vmem:[#allocation2 + $0xf8] sm:$0xff]  ;;  %v5338_v31 = vld [vmem:[#allocation40_spill] sm:$0xff] }
 0x37e   : > { %5334 = vst [vmem:[#allocation89_spill] sm:$0xff] %v4826_v36  ;;  %v984_v36 = vadd.f32 %v4308_v1, %v4299_v47  ;;  %v4853_v1 = vpop.f32.mrf.mxu1 }
 0x380   : > { %v1264_v9 = vadd.f32 %v4649_v44, %v984_v36  ;;  %v5340_v36 = vld [vmem:[#allocation16_spill] sm:$0xff] }
 0x383   : > { %v1255_v5 = vpop.f32.mrf.mxu3 }
 0x384   : > { %v4831_v24 = vadd.f32 %v1255_v5, %v4615_v8  ;;  %v4845_v5 = vpop.f32.mrf.mxu2 }
 0x386   : > { %5335 = vst [vmem:[#allocation90_spill] sm:$0xff] %v4831_v24  ;;  %v4851_v24 = vpop.f32.mrf.mxu0 }
 0x388   : > { %2154 = vmatmul.bf16.gmra.mxu3 %v2037_v42  ;;  %v2038_v42 = vpack.c.bf16 %v2015_v26, %v2014_v37  ;;  %v2017_v37 = vld [vmem:[#allocation2 + $0x110] sm:$0xff] }
 0x38b   : > { %v1258_v58 = vpop.f32.mrf.mxu3 }
 0x38c   : > { %v4836_v41 = vadd.f32 %v1258_v58, %v4624_v61  ;;  %v1731_v61 = vadd.f32 %v4485_v18, %v1497_v49  ;;  %v1498_v58 = vadd.f32 %v4377_v4, %v1264_v9  ;;  %v1499_v18 = vadd.f32 %v5340_v36, %v4658_v29  ;;  %v5341_v49 = vld [vmem:[#allocation43_spill] sm:$0xff] }
 0x38e   : > { %5336 = vst [vmem:[#allocation91_spill] sm:$0xff] %v4836_v41  ;;  %v1965_v12 = vadd.f32 %v5338_v31, %v1731_v61  ;;  %v2016_v61 = vld [vmem:[#allocation2 + $0x108] sm:$0xff] }
 0x38f   : > { %v2039_v31 = vpack.c.bf16 %v2017_v37, %v2016_v61 }
 0x393   : > { %v1260_v17 = vpop.f32.mrf.mxu3 }
 0x394   : > { %v4843_v8 = vadd.f32 %v1260_v17, %v4636_v54  ;;  %v5339_v54 = vld [vmem:[#allocation29_spill] sm:$0xff] }
 0x395   : > { %v1732_v17 = vadd.f32 %v5339_v54, %v1498_v58  ;;  %v4868_v58 = vpop.f32.mrf.mxu0 }
 0x396   : > { %5337 = vst [vmem:[#allocation92_spill] sm:$0xff] %v4843_v8  ;;  %v4856_v8 = vpop.f32.mrf.mxu2 }
 0x397   : > { %v1966_v26 = vadd.f32 %v5341_v49, %v1732_v17 }
 0x398   : > { %2159 = vmatmul.bf16.gmra.mxu3 %v2038_v42 }
 0x39b   : > { %v2120_v41 = vpop.f32.mrf.mxu3 }
 0x39c   : > { %v2200_v47 = vadd.f32 %v2120_v41, %v1965_v12  ;;  %v4866_v41 = vld [vmem:[%s5249_s4] ss:$0 sm:$0xff]  ;;  %v5342_v12 = vld [vmem:[#allocation31_spill] sm:$0xff] }
 0x39d   : > { %v1733_v29 = vadd.f32 %v5342_v12, %v1499_v18  ;;  %v5345_v12 = vld [vmem:[#allocation33_spill] sm:$0xff] }
 0x39e   : > { %v2434_v44 = vadd.f32 %v4683_v15, %v2200_v47  ;;  %v4872_v47 = vpop.f32.mrf.mxu1  ;;  %v4876_v17 = vpop.f32.mrf.mxu2 }
 0x3a0   : > { %v2668_v9 = vadd.f32 %v4781_v38, %v2434_v44  ;;  %v5343_v44 = vld [vmem:[#allocation17_spill] sm:$0xff] }
 0x3a1   : > { %v1500_v36 = vadd.f32 %v5343_v44, %v4663_v13 }
 0x3a2   : > { %v2704_v54 = vadd.f32 %v4866_v41, %v2668_v9  ;;  %v4883_v9 = vpop.f32.mrf.mxu0 }
 0x3a3   : > { %v2122_v4 = vpop.f32.mrf.mxu3  ;;  %v1734_v46 = vadd.f32 %v5345_v12, %v1500_v36  ;;  %v2018_v36 = vld [vmem:[#allocation2 + $0x120] sm:$0xff] }
 0x3a4   : > { %v2201_v42 = vadd.f32 %v2122_v4, %v1966_v26  ;;  %v5344_v26 = vld [vmem:[#allocation46_spill] sm:$0xff]  ;;  %v2736_v37 = vmax.f32 %v2704_v54, 0.0 }
 0x3a5   : > { %v1967_v4 = vadd.f32 %v5344_v26, %v1733_v29 }
 0x3a6   : > { %v2435_v15 = vadd.f32 %v4690_v6, %v2201_v42  ;;  %v4888_v13 = vpop.f32.mrf.mxu1  ;;  %v4891_v29 = vpop.f32.mrf.mxu2 }
 0x3a8   : > { %v2669_v38 = vadd.f32 %v4789_v51, %v2435_v15  ;;  %2164 = vmatmul.bf16.gmra.mxu3 %v2039_v31  ;;  %v5346_v15 = vld [vmem:[#allocation18_spill] sm:$0xff] }
 0x3a9   : > { %v1501_v31 = vadd.f32 %v5346_v15, %v4672_v30  ;;  %v5350_v15 = vld [vmem:[#allocation52_spill] sm:$0xff] }
 0x3aa   : > { %v2705_v49 = vadd.f32 %v4866_v41, %v2669_v38  ;;  %v5347_v38 = vld [vmem:[#allocation49_spill] sm:$0xff]  ;;  %v4900_v12 = vpop.f32.mrf.mxu0 }
 0x3ab   : > { %v2125_v6 = vpop.f32.mrf.mxu3  ;;  %v1968_v44 = vadd.f32 %v5347_v38, %v1734_v46  ;;  %v5349_v46 = vld [vmem:[#allocation19_spill] sm:$0xff] }
 0x3ac   : > { %v2737_v42 = vmax.f32 %v2705_v49, 0.0  ;;  %v2202_v18 = vadd.f32 %v2125_v6, %v1967_v4  ;;  %v2019_v49 = vld [vmem:[#allocation2 + $0x128] sm:$0xff] }
 0x3ae   : > { %v2768_v61 = vpack.c.bf16 %v2737_v42, %v2736_v37  ;;  %v2436_v51 = vadd.f32 %v4702_v35, %v2202_v18  ;;  %v2040_v37 = vpack.c.bf16 %v2019_v49, %v2018_v36  ;;  %v5348_v35 = vld [vmem:[#allocation35_spill] sm:$0xff]  ;;  %v4906_v49 = vpop.f32.mrf.mxu2 }
 0x3af   : > { %v1735_v42 = vadd.f32 %v5348_v35, %v1501_v31 }
 0x3b0   : > { %2860 = vmatmul.bf16.vlgmr.msra.gmra.mxu2 %v2768_v61  ;;  %v2670_v26 = vadd.f32 %v4797_v60, %v2436_v51  ;;  %v1502_v61 = vadd.f32 %v5349_v46, %v4679_v48  ;;  %v5352_v48 = vld [vmem:[#allocation20_spill] sm:$0xff]  ;;  %v2021_v46 = vld [vmem:[#allocation2 + $0x140] sm:$0xff] }
 0x3b1   : > { %v1969_v38 = vadd.f32 %v5350_v15, %v1735_v42 }
 0x3b2   : > { %v2706_v30 = vadd.f32 %v4866_v41, %v2670_v26  ;;  %v4913_v15 = vpop.f32.mrf.mxu0 }
 0x3b3   : > { %v2127_v54 = vpop.f32.mrf.mxu3 }
 0x3b4   : > { %v2203_v4 = vadd.f32 %v2127_v54, %v1968_v44  ;;  %v4904_v44 = vpop.f32.mrf.mxu1  ;;  %v2738_v54 = vmax.f32 %v2706_v30, 0.0 }
 0x3b6   : > { %v2437_v6 = vadd.f32 %v4709_v25, %v2203_v4  ;;  %v5351_v4 = vld [vmem:[#allocation36_spill] sm:$0xff] }
 0x3b7   : > { %v1736_v26 = vadd.f32 %v5351_v4, %v1502_v61 }
 0x3b8   : > { %v2671_v18 = vadd.f32 %v4804_v39, %v2437_v6  ;;  %2169 = vmatmul.bf16.gmra.mxu3 %v2040_v37  ;;  %v1503_v6 = vadd.f32 %v5352_v48, %v4686_v40  ;;  %v5353_v37 = vld [vmem:[#allocation55_spill] sm:$0xff] }
 0x3b9   : > { %v1970_v35 = vadd.f32 %v5353_v37, %v1736_v26  ;;  %v5356_v26 = vld [vmem:[#allocation58_spill] sm:$0xff] }
 0x3ba   : > { %v2707_v60 = vadd.f32 %v4866_v41, %v2671_v18  ;;  %v2020_v18 = vld [vmem:[#allocation2 + $0x138] sm:$0xff] }
 0x3bb   : > { %v2130_v51 = vpop.f32.mrf.mxu3 }
 0x3bc   : > { %v2204_v25 = vadd.f32 %v2130_v51, %v1969_v38  ;;  %v2739_v31 = vmax.f32 %v2707_v60, 0.0  ;;  %v4916_v60 = vpop.f32.mrf.mxu1  ;;  %v2041_v51 = vpack.c.bf16 %v2021_v46, %v2020_v18  ;;  %v5357_v18 = vld [vmem:[#allocation41_spill] sm:$0xff] }
 0x3be   : > { %v2769_v39 = vpack.c.bf16 %v2739_v31, %v2738_v54  ;;  %v2438_v36 = vadd.f32 %v4718_v20, %v2204_v25  ;;  %v5354_v20 = vld [vmem:[#allocation38_spill] sm:$0xff]  ;;  %v4920_v54 = vpop.f32.mrf.mxu2 }
 0x3bf   : > { %v1737_v25 = vadd.f32 %v5354_v20, %v1503_v6 }
 0x3c0   : > { %2865 = vmatmul.bf16.gmra.mxu2 %v2769_v39  ;;  %v2672_v30 = vadd.f32 %v4815_v33, %v2438_v36  ;;  %v5355_v39 = vld [vmem:[#allocation21_spill] sm:$0xff] }
 0x3c1   : > { %v1504_v4 = vadd.f32 %v5355_v39, %v4693_v23  ;;  %v1971_v33 = vadd.f32 %v5356_v26, %v1737_v25  ;;  %v5358_v23 = vld [vmem:[#allocation22_spill] sm:$0xff] }
 0x3c2   : > { %v2708_v31 = vadd.f32 %v4866_v41, %v2672_v30 }
 0x3c3   : > { %v2132_v42 = vpop.f32.mrf.mxu3  ;;  %v1738_v46 = vadd.f32 %v5357_v18, %v1504_v4 }
 0x3c4   : > { %v2205_v38 = vadd.f32 %v2132_v42, %v1970_v35  ;;  %v4928_v42 = vpop.f32.mrf.mxu0 }
 0x3c6   : > { %v2439_v61 = vadd.f32 %v4728_v28, %v2205_v38  ;;  %v2740_v28 = vmax.f32 %v2708_v31, 0.0  ;;  %v4934_v38 = vpop.f32.mrf.mxu2  ;;  %v2023_v31 = vld [vmem:[#allocation2 + $0x158] sm:$0xff] }
 0x3c8   : > { %v2673_v40 = vadd.f32 %v4822_v14, %v2439_v61  ;;  %2174 = vmatmul.bf16.gmra.mxu3 %v2041_v51  ;;  %v4931_v14 = vpop.f32.mrf.mxu1  ;;  %v1505_v61 = vadd.f32 %v5358_v23, %v4700_v52  ;;  %v5359_v51 = vld [vmem:[#allocation61_spill] sm:$0xff] }
 0x3c9   : > { %v1972_v20 = vadd.f32 %v5359_v51, %v1738_v46 }
 0x3ca   : > { %v2709_v36 = vadd.f32 %v4866_v41, %v2673_v40  ;;  %v2022_v40 = vld [vmem:[#allocation2 + $0x150] sm:$0xff] }
 0x3cb   : > { %v2135_v48 = vpop.f32.mrf.mxu3 }
 0x3cc   : > { %v2206_v37 = vadd.f32 %v2135_v48, %v1971_v33  ;;  %v2741_v35 = vmax.f32 %v2709_v36, 0.0  ;;  %v2042_v33 = vpack.c.bf16 %v2023_v31, %v2022_v40  ;;  %v5360_v36 = vld [vmem:[#allocation44_spill] sm:$0xff] }
 0x3cd   : > { %v1739_v48 = vadd.f32 %v5360_v36, %v1505_v61 }
 0x3ce   : > { %v2770_v6 = vpack.c.bf16 %v2741_v35, %v2740_v28  ;;  %v2440_v30 = vadd.f32 %v4851_v24, %v2206_v37  ;;  %v4942_v24 = vpop.f32.mrf.mxu0  ;;  %v5361_v28 = vld [vmem:[#allocation23_spill] sm:$0xff] }
 0x3cf   : > { %v1506_v35 = vadd.f32 %v5361_v28, %v4707_v11  ;;  %v5363_v11 = vld [vmem:[#allocation24_spill] sm:$0xff]  ;;  %v5364_v28 = vld [vmem:[#allocation50_spill] sm:$0xff] }
 0x3d0   : > { %2870 = vmatmul.bf16.gmra.mxu2 %v2770_v6  ;;  %v2674_v39 = vadd.f32 %v4853_v1, %v2440_v30  ;;  %v4948_v6 = vpop.f32.mrf.mxu1  ;;  %v1973_v1 = vadd.f32 %v4779_v57, %v1739_v48  ;;  %v1507_v40 = vadd.f32 %v5363_v11, %v4716_v27  ;;  %v2262_v27 = vld [vmem:[#allocation2 + $0x199] sm:$0xff] }
 0x3d2   : > { %v2710_v52 = vadd.f32 %v4866_v41, %v2674_v39 }
 0x3d3   : > { %v2137_v25 = vpop.f32.mrf.mxu3 }
 0x3d4   : > { %v2207_v26 = vadd.f32 %v2137_v25, %v1972_v20  ;;  %v2742_v23 = vmax.f32 %v2710_v52, 0.0 }
 0x3d6   : > { %v2441_v4 = vadd.f32 %v4868_v58, %v2207_v26  ;;  %v4952_v58 = vpop.f32.mrf.mxu2  ;;  %v4958_v31 = vpop.f32.mrf.mxu0  ;;  %v2024_v26 = vld [vmem:[#allocation2 + $0x168] sm:$0xff] }
 0x3d8   : > { %v2675_v37 = vadd.f32 %v4872_v47, %v2441_v4  ;;  %2179 = vmatmul.bf16.gmra.mxu3 %v2042_v33  ;;  %v5362_v47 = vld [vmem:[#allocation47_spill] sm:$0xff]  ;;  %v2025_v4 = vld [vmem:[#allocation2 + $0x170] sm:$0xff]  ;;  %v4961_v33 = vpop.f32.mrf.mxu1 }
 0x3d9   : > { %v1740_v20 = vadd.f32 %v5362_v47, %v1506_v35  ;;  %v2043_v52 = vpack.c.bf16 %v2025_v4, %v2024_v26  ;;  %v1741_v35 = vadd.f32 %v5364_v28, %v1507_v40  ;;  %v5366_v26 = vld [vmem:[#allocation53_spill] sm:$0xff]  ;;  %v2026_v28 = vld [vmem:[#allocation2 + $0x180] sm:$0xff] }
 0x3da   : > { %v2711_v18 = vadd.f32 %v4866_v41, %v2675_v37 }
 0x3db   : > { %v2140_v46 = vpop.f32.mrf.mxu3  ;;  %v1974_v57 = vadd.f32 %v4787_v10, %v1740_v20  ;;  %v1975_v47 = vadd.f32 %v4795_v45, %v1741_v35  ;;  %v5367_v45 = vld [vmem:[#allocation26_spill] sm:$0xff]  ;;  %v2027_v35 = vld [vmem:[#allocation2 + $0x188] sm:$0xff] }
 0x3dc   : > { %v2208_v30 = vadd.f32 %v2140_v46, %v1973_v1  ;;  %v2743_v61 = vmax.f32 %v2711_v18, 0.0  ;;  %v2263_v1 = vld [vmem:[#allocation2 + $0x1a1] sm:$0xff] }
 0x3dd   : > { %v2279_v46 = vpack.c.bf16 %v2263_v1, %v2262_v27 }
 0x3de   : > { %v2771_v51 = vpack.c.bf16 %v2743_v61, %v2742_v23  ;;  %v2442_v25 = vadd.f32 %v4883_v9, %v2208_v30  ;;  %v4964_v37 = vpop.f32.mrf.mxu2  ;;  %v2496_v30 = vld [vmem:[#allocation2 + $0x19a] sm:$0xff]  ;;  %v2497_v23 = vld [vmem:[#allocation2 + $0x1a2] sm:$0xff] }
 0x3df   : > { %v2513_v61 = vpack.c.bf16 %v2497_v23, %v2496_v30  ;;  %2428 = vmatmul.bf16.gmra.mxu0 %v2279_v46  ;;  %v2044_v46 = vpack.c.bf16 %v2027_v35, %v2026_v28  ;;  %v5368_v30 = vld [vmem:[#allocation56_spill] sm:$0xff]  ;;  %v3728_v28 = vld [vmem:[#allocation2] sm:$0xff] }
 0x3e0   : > { %2875 = vmatmul.bf16.gmra.mxu2 %v2771_v51  ;;  %v2676_v36 = vadd.f32 %v4888_v13, %v2442_v25  ;;  %v5365_v13 = vld [vmem:[#allocation25_spill] sm:$0xff]  ;;  %v4974_v25 = vpop.f32.mrf.mxu0  ;;  %v2045_v35 = vpack.c.bf16 %v3728_v28, %v3728_v28 }
 0x3e1   : > { %v1508_v51 = vadd.f32 %v5365_v13, %v4721_v56  ;;  %2662 = vmatmul.bf16.gmra.mxu1 %v2513_v61 }
 0x3e2   : > { %v2712_v10 = vadd.f32 %v4866_v41, %v2676_v36 }
 0x3e3   : > { %v2142_v39 = vpop.f32.mrf.mxu3  ;;  %v1742_v4 = vadd.f32 %v5366_v26, %v1508_v51 }
 0x3e4   : > { %v2209_v48 = vadd.f32 %v2142_v39, %v1974_v57  ;;  %v2744_v11 = vmax.f32 %v2712_v10, 0.0  ;;  %v4976_v57 = vpop.f32.mrf.mxu1 }
 0x3e6   : > { %v2443_v9 = vadd.f32 %v4900_v12, %v2209_v48  ;;  %v4979_v36 = vpop.f32.mrf.mxu2  ;;  %v1509_v48 = vadd.f32 %v5367_v45, %v4731_v22 }
 0x3e8   : > { %v2677_v18 = vadd.f32 %v4904_v44, %v2443_v9  ;;  %2184 = vmatmul.bf16.gmra.mxu3 %v2043_v52  ;;  %v1976_v9 = vadd.f32 %v4802_v59, %v1742_v4  ;;  %v1743_v23 = vadd.f32 %v5368_v30, %v1509_v48  ;;  %v5369_v59 = vld [vmem:[#allocation27_spill] sm:$0xff]  ;;  %v5371_v4 = vld [vmem:[#allocation28_spill] sm:$0xff] }
 0x3e9   : > { %v1510_v51 = vadd.f32 %v5369_v59, %v4736_v21 }
 0x3ea   : > { %v2713_v12 = vadd.f32 %v4866_v41, %v2677_v18  ;;  %v2391_v18 = vpop.f32.mrf.mxu0 }
 0x3eb   : > { %v2145_v20 = vpop.f32.mrf.mxu3 }
 0x3ec   : > { %v2210_v44 = vadd.f32 %v2145_v20, %v1975_v47  ;;  %v2745_v40 = vmax.f32 %v2713_v12, 0.0  ;;  %v2625_v61 = vpop.f32.mrf.mxu1 }
 0x3ee   : > { %v2772_v39 = vpack.c.bf16 %v2745_v40, %v2744_v11  ;;  %v2444_v56 = vadd.f32 %v4913_v15, %v2210_v44  ;;  %v4990_v13 = vpop.f32.mrf.mxu2  ;;  %v5370_v40 = vld [vmem:[#allocation59_spill] sm:$0xff] }
 0x3f0   : > { %2880 = vmatmul.bf16.gmra.mxu2 %v2772_v39  ;;  %v2678_v27 = vadd.f32 %v4916_v60, %v2444_v56  ;;  %v1977_v60 = vadd.f32 %v4813_v19, %v1743_v23  ;;  %v1744_v39 = vadd.f32 %v5370_v40, %v1510_v51  ;;  %v1511_v56 = vadd.f32 %v5371_v4, %v4743_v34 }
 0x3f2   : > { %v2714_v22 = vadd.f32 %v4866_v41, %v2678_v27  ;;  %v1978_v21 = vadd.f32 %v4820_v7, %v1744_v39 }
 0x3f3   : > { %v2147_v52 = vpop.f32.mrf.mxu3 }
 0x3f4   : > { %v2211_v1 = vadd.f32 %v2147_v52, %v1976_v9  ;;  %v2746_v20 = vmax.f32 %v2714_v22, 0.0  ;;  %v2628_v45 = vpop.f32.mrf.mxu1 }
 0x3f6   : > { %v2445_v10 = vadd.f32 %v4928_v42, %v2211_v1  ;;  %v5001_v19 = vpop.f32.mrf.mxu2  ;;  %v5372_v1 = vld [vmem:[#allocation62_spill] sm:$0xff] }
 0x3f8   : > { %v2679_v15 = vadd.f32 %v4931_v14, %v2445_v10  ;;  %2189 = vmatmul.bf16.gmra.mxu3 %v2044_v46  ;;  %v2394_v14 = vpop.f32.mrf.mxu0  ;;  %v1745_v10 = vadd.f32 %v5372_v1, %v1511_v56  ;;  %v5373_v46 = vld [vmem:[#allocation30_spill] sm:$0xff] }
 0x3f9   : > { %v1512_v7 = vadd.f32 %v5373_v46, %v4748_v0  ;;  %v5375_v0 = vld [vmem:[#allocation32_spill] sm:$0xff]  ;;  %v5376_v56 = vld [vmem:[#allocation66_spill] sm:$0xff] }
 0x3fa   : > { %v2715_v47 = vadd.f32 %v4866_v41, %v2679_v15  ;;  %v1979_v23 = vadd.f32 %v4828_v63, %v1745_v10 }
 0x3fb   : > { %v2150_v12 = vpop.f32.mrf.mxu3 }
 0x3fc   : > { %v2212_v42 = vadd.f32 %v2150_v12, %v1977_v60  ;;  %v2747_v44 = vmax.f32 %v2715_v47, 0.0  ;;  %v2630_v22 = vpop.f32.mrf.mxu1 }
 0x3fe   : > { %v2773_v11 = vpack.c.bf16 %v2747_v44, %v2746_v20  ;;  %v2446_v26 = vadd.f32 %v4942_v24, %v2212_v42  ;;  %v5012_v60 = vpop.f32.mrf.mxu2  ;;  %v1513_v20 = vadd.f32 %v5375_v0, %v4752_v55 }
 0x400   : > { %2885 = vmatmul.bf16.gmra.mxu2 %v2773_v11  ;;  %v2680_v9 = vadd.f32 %v4948_v6, %v2446_v26  ;;  %v2396_v30 = vpop.f32.mrf.mxu0 }
 0x402   : > { %v2716_v34 = vadd.f32 %v4866_v41, %v2680_v9 }
 0x403   : > { %v2152_v48 = vpop.f32.mrf.mxu3 }
 0x404   : > { %v2213_v52 = vadd.f32 %v2152_v48, %v1978_v21  ;;  %v2748_v51 = vmax.f32 %v2716_v34, 0.0  ;;  %v2633_v26 = vpop.f32.mrf.mxu1  ;;  %v1747_v21 = vadd.f32 %v5376_v56, %v1513_v20 }
 0x406   : > { %v2447_v27 = vadd.f32 %v4958_v31, %v2213_v52  ;;  %v5021_v48 = vpop.f32.mrf.mxu2  ;;  %v5377_v52 = vld [vmem:[#allocation34_spill] sm:$0xff]  ;;  %v1981_v55 = vadd.f32 %v4845_v5, %v1747_v21 }
 0x407   : > { %v1514_v28 = vadd.f32 %v5377_v52, %v4757_v62  ;;  %v5383_v21 = vld [vmem:[#allocation42_spill] sm:$0xff] }
 0x408   : > { %v2681_v24 = vadd.f32 %v4961_v33, %v2447_v27  ;;  %2194 = vmatmul.bf16.gmra.mxu3 %v2045_v35  ;;  %v5374_v33 = vld [vmem:[#allocation64_spill] sm:$0xff]  ;;  %v2399_v11 = vpop.f32.mrf.mxu0 }
 0x409   : > { %v1746_v12 = vadd.f32 %v5374_v33, %v1512_v7 }
 0x40a   : > { %v2717_v6 = vadd.f32 %v4866_v41, %v2681_v24  ;;  %v5378_v24 = vld [vmem:[#allocation68_spill] sm:$0xff] }
 0x40b   : > { %v2155_v15 = vpop.f32.mrf.mxu3  ;;  %v1980_v63 = vadd.f32 %v4833_v43, %v1746_v12  ;;  %v1748_v34 = vadd.f32 %v5378_v24, %v1514_v28 }
 0x40c   : > { %v2214_v59 = vadd.f32 %v2155_v15, %v1979_v23  ;;  %v2749_v31 = vmax.f32 %v2717_v6, 0.0  ;;  %v2635_v46 = vpop.f32.mrf.mxu1  ;;  %v5379_v23 = vld [vmem:[#allocation37_spill] sm:$0xff] }
 0x40d   : > { %v1515_v62 = vadd.f32 %v5379_v23, %v4763_v3  ;;  %v1982_v5 = vadd.f32 %v4856_v8, %v1748_v34  ;;  %v5385_v23 = vld [vmem:[#allocation45_spill] sm:$0xff] }
 0x40e   : > { %v2774_v47 = vpack.c.bf16 %v2749_v31, %v2748_v51  ;;  %v2448_v42 = vadd.f32 %v4974_v25, %v2214_v59  ;;  %v5380_v31 = vld [vmem:[#allocation70_spill] sm:$0xff] }
 0x410   : > { %2890 = vmatmul.bf16.gmra.mxu2 %v2774_v47  ;;  %v2682_v40 = vadd.f32 %v4976_v57, %v2448_v42  ;;  %v2401_v10 = vpop.f32.mrf.mxu0  ;;  %v1749_v47 = vadd.f32 %v5380_v31, %v1515_v62 }
 0x412   : > { %v2718_v25 = vadd.f32 %v4866_v41, %v2682_v40 }
 0x413   : > { %v2157_v44 = vpop.f32.mrf.mxu3 }
 0x414   : > { %v2215_v39 = vadd.f32 %v2157_v44, %v1980_v63  ;;  %v2750_v57 = vmax.f32 %v2718_v25, 0.0  ;;  %v2638_v20 = vpop.f32.mrf.mxu1  ;;  %v1983_v63 = vadd.f32 %v4876_v17, %v1749_v47 }
 0x416   : > { %v2449_v4 = vadd.f32 %v2391_v18, %v2215_v39 }
 0x418   : > { %v2683_v9 = vadd.f32 %v2625_v61, %v2449_v4  ;;  %v5029_v61 = vpop.f32.mrf.mxu2  ;;  %v2404_v33 = vpop.f32.mrf.mxu0  ;;  %v5382_v4 = vld [vmem:[#allocation72_spill] sm:$0xff] }
 0x41a   : > { %v2719_v43 = vadd.f32 %v4866_v41, %v2683_v9  ;;  %v1517_v9 = vadd.f32 %v5383_v21, %v4774_v53  ;;  %v3731_v21 = vld [vmem:[%s4125_s15 + $0x10] sm:$0xff] }
 0x41b   : > { %v2160_v35 = vpop.f32.mrf.mxu3 }
 0x41c   : > { %v2216_v27 = vadd.f32 %v2160_v35, %v1981_v55  ;;  %v2751_v1 = vmax.f32 %v2719_v43, 0.0  ;;  %v2640_v55 = vpop.f32.mrf.mxu1 }
 0x41e   : > { %v2775_v18 = vpack.c.bf16 %v2751_v1, %v2750_v57  ;;  %v2450_v7 = vadd.f32 %v2394_v14, %v2216_v27  ;;  %v5381_v14 = vld [vmem:[#allocation39_spill] sm:$0xff]  ;;  %v3729_v57 = vld [vmem:[%s4125_s15] sm:$0xff] }
 0x41f   : > { %v1516_v0 = vadd.f32 %v5381_v14, %v4768_v16  ;;  %v5046_v16 = vld [vmem:[%s5251_s6] ss:$0 sm:$0xff] }
 0x420   : > { %2895 = vmatmul.bf16.gmra.mxu2 %v2775_v18  ;;  %v2684_v15 = vadd.f32 %v2628_v45, %v2450_v7  ;;  %v5040_v44 = vpop.f32.mrf.mxu2  ;;  %v2406_v17 = vpop.f32.mrf.mxu0  ;;  %v5384_v18 = vld [vmem:[#allocation73_spill] sm:$0xff] }
 0x421   : > { %v1751_v24 = vadd.f32 %v5384_v18, %v1517_v9 }
 0x422   : > { %v2720_v42 = vadd.f32 %v4866_v41, %v2684_v15 }
 0x423   : > { %v2162_v6 = vpop.f32.mrf.mxu3 }
 0x424   : > { %v2217_v59 = vadd.f32 %v2162_v6, %v1982_v5  ;;  %v2752_v40 = vmax.f32 %v2720_v42, 0.0  ;;  %v2643_v31 = vpop.f32.mrf.mxu1  ;;  %v5386_v42 = vld [vmem:[#allocation74_spill] sm:$0xff] }
 0x426   : > { %v2451_v51 = vadd.f32 %v2396_v30, %v2217_v59 }
 0x428   : > { %v2685_v12 = vadd.f32 %v2630_v22, %v2451_v51  ;;  %v1750_v22 = vadd.f32 %v5382_v4, %v1516_v0 }
 0x42a   : > { %v2721_v3 = vadd.f32 %v4866_v41, %v2685_v12  ;;  %v1984_v25 = vadd.f32 %v4891_v29, %v1750_v22  ;;  %v1518_v29 = vadd.f32 %v5385_v23, %v4777_v2  ;;  %v3730_v2 = vld [vmem:[%s4125_s15 + $0x8] sm:$0xff] }
 0x42b   : > { %v2165_v8 = vpop.f32.mrf.mxu3 }
 0x42c   : > { %v2218_v45 = vadd.f32 %v2165_v8, %v1983_v63  ;;  %v2753_v30 = vmax.f32 %v2721_v3, 0.0  ;;  %v1752_v14 = vadd.f32 %v5386_v42, %v1518_v29  ;;  %v5387_v63 = vld [vmem:[#allocation48_spill] sm:$0xff] }
 0x42d   : > { %v1519_v3 = vadd.f32 %v5387_v63, %v4785_v32  ;;  %v3733_v42 = vld [vmem:[%s4125_s15 + $0x20] sm:$0xff] }
 0x42e   : > { %v2776_v39 = vpack.c.bf16 %v2753_v30, %v2752_v40  ;;  %v2452_v56 = vadd.f32 %v2399_v11, %v2218_v45  ;;  %v1986_v8 = vadd.f32 %v4920_v54, %v1752_v14  ;;  %v5389_v54 = vld [vmem:[#allocation51_spill] sm:$0xff] }
 0x430   : > { %2900 = vmatmul.bf16.gmra.mxu2 %v2776_v39  ;;  %v2686_v43 = vadd.f32 %v2633_v26, %v2452_v56  ;;  %v1985_v26 = vadd.f32 %v4906_v49, %v1751_v24 }
 0x432   : > { %v2722_v53 = vadd.f32 %v4866_v41, %v2686_v43 }
 0x433   : > { %v2167_v52 = vpop.f32.mrf.mxu3  ;;  %v2861_v28 = vpop.f32.mrf.mxu2 }
 0x434   : > { %v2219_v35 = vadd.f32 %v2167_v52, %v1984_v25  ;;  %v2862_v11 = vadd.f32 %v5046_v16, %v2861_v28  ;;  %v2754_v59 = vmax.f32 %v2722_v53, 0.0  ;;  %v2645_v52 = vpop.f32.mrf.mxu1  ;;  %v5390_v53 = vld [vmem:[#allocation76_spill] sm:$0xff] }
 0x436   : > { %v2453_v27 = vadd.f32 %v2401_v10, %v2219_v35  ;;  %v2941_v1 = vadd.f32 %v3729_v57, %v2862_v11  ;;  %v1520_v35 = vadd.f32 %v5389_v54, %v4792_v50 }
 0x438   : > { %v2687_v34 = vadd.f32 %v2635_v46, %v2453_v27  ;;  %v2973_v7 = vmax.f32 %v2941_v1, 0.0  ;;  %v2409_v46 = vpop.f32.mrf.mxu0  ;;  %v1754_v23 = vadd.f32 %v5390_v53, %v1520_v35  ;;  %v3735_v53 = vld [vmem:[%s4125_s15 + $0x30] sm:$0xff] }
 0x43a   : > { %3005 = vst [vmem:[%s5059_s23] sm:$0xff] %v2973_v7  ;;  %v2723_v10 = vadd.f32 %v4866_v41, %v2687_v34 }
 0x43b   : > { %v2170_v62 = vpop.f32.mrf.mxu3  ;;  %v2863_v5 = vpop.f32.mrf.mxu2 }
 0x43c   : > { %v2220_v6 = vadd.f32 %v2170_v62, %v1985_v26  ;;  %v2864_v15 = vadd.f32 %v5046_v16, %v2863_v5  ;;  %v2755_v51 = vmax.f32 %v2723_v10, 0.0  ;;  %v5392_v10 = vld [vmem:[#allocation54_spill] sm:$0xff]  ;;  %v2648_v5 = vpop.f32.mrf.mxu1 }
 0x43e   : > { %v2942_v47 = vadd.f32 %v3730_v2, %v2864_v15  ;;  %v2777_v12 = vpack.c.bf16 %v2755_v51, %v2754_v59  ;;  %v2454_v0 = vadd.f32 %v2404_v33, %v2220_v6  ;;  %v5388_v33 = vld [vmem:[#allocation75_spill] sm:$0xff]  ;;  %v1988_v6 = vadd.f32 %v4952_v58, %v1754_v23 }
 0x43f   : > { %v1753_v25 = vadd.f32 %v5388_v33, %v1519_v3 }
 0x440   : > { %v2974_v49 = vmax.f32 %v2942_v47, 0.0  ;;  %2905 = vmatmul.bf16.gmra.mxu2 %v2777_v12  ;;  %v2688_v30 = vadd.f32 %v2638_v20, %v2454_v0  ;;  %v2411_v22 = vpop.f32.mrf.mxu0 }
 0x441   : > { %v1987_v20 = vadd.f32 %v4934_v38, %v1753_v25  ;;  %v5391_v38 = vld [vmem:[#allocation85_spill] sm:$0xff] }
 0x442   : > { %3006 = vst [vmem:[%s5059_s23 + $0x8] sm:$0xff] %v2974_v49  ;;  %v2724_v43 = vadd.f32 %v4866_v41, %v2688_v30  ;;  %v1521_v62 = vadd.f32 %v5392_v10, %v5391_v38  ;;  %v3734_v25 = vld [vmem:[%s4125_s15 + $0x28] sm:$0xff] }
 0x443   : > { %v2172_v45 = vpop.f32.mrf.mxu3  ;;  %v2866_v40 = vpop.f32.mrf.mxu2 }
 0x444   : > { %v2221_v39 = vadd.f32 %v2172_v45, %v1986_v8  ;;  %v2867_v4 = vadd.f32 %v5046_v16, %v2866_v40  ;;  %v2756_v18 = vmax.f32 %v2724_v43, 0.0  ;;  %v5394_v45 = vld [vmem:[#allocation86_spill] sm:$0xff]  ;;  %v5395_v40 = vld [vmem:[#allocation57_spill] sm:$0xff] }
 0x445   : > { %v1522_v58 = vadd.f32 %v5395_v40, %v5394_v45  ;;  %v5403_v40 = vld [vmem:[#allocation89_spill] sm:$0xff] }
 0x446   : > { %v2455_v56 = vadd.f32 %v2406_v17, %v2221_v39  ;;  %v2943_v9 = vadd.f32 %v3731_v21, %v2867_v4 }
 0x448   : > { %v2689_v28 = vadd.f32 %v2640_v55, %v2455_v56  ;;  %v2975_v32 = vmax.f32 %v2943_v9, 0.0  ;;  %v3732_v55 = vld [vmem:[%s4125_s15 + $0x18] sm:$0xff]  ;;  %v2414_v50 = vpop.f32.mrf.mxu0 }
 0x44a   : > { %3007 = vst [vmem:[%s5059_s23 + $0x10] sm:$0xff] %v2975_v32  ;;  %v2725_v11 = vadd.f32 %v4866_v41, %v2689_v28  ;;  %v5396_v32 = vld [vmem:[#allocation78_spill] sm:$0xff] }
 0x44b   : > { %v2175_v27 = vpop.f32.mrf.mxu3  ;;  %v2868_v17 = vpop.f32.mrf.mxu2  ;;  %v1756_v43 = vadd.f32 %v5396_v32, %v1522_v58  ;;  %v5404_v58 = vld [vmem:[#allocation65_spill] sm:$0xff] }
 0x44c   : > { %v2222_v57 = vadd.f32 %v2175_v27, %v1987_v20  ;;  %v2869_v1 = vadd.f32 %v5046_v16, %v2868_v17  ;;  %v2757_v24 = vmax.f32 %v2725_v11, 0.0  ;;  %v5398_v20 = vld [vmem:[#allocation60_spill] sm:$0xff] }
 0x44d   : > { %v1990_v27 = vadd.f32 %v4979_v36, %v1756_v43  ;;  %v5400_v36 = vld [vmem:[#allocation88_spill] sm:$0xff] }
 0x44e   : > { %v2944_v34 = vadd.f32 %v3732_v55, %v2869_v1  ;;  %v2778_v7 = vpack.c.bf16 %v2757_v24, %v2756_v18  ;;  %v2456_v29 = vadd.f32 %v2409_v46, %v2222_v57  ;;  %v5393_v46 = vld [vmem:[#allocation77_spill] sm:$0xff] }
 0x44f   : > { %v1755_v0 = vadd.f32 %v5393_v46, %v1521_v62  ;;  %v5401_v62 = vld [vmem:[#allocation63_spill] sm:$0xff] }
 0x450   : > { %v2976_v26 = vmax.f32 %v2944_v34, 0.0  ;;  %2910 = vmatmul.bf16.gmra.mxu2 %v2778_v7  ;;  %v2690_v51 = vadd.f32 %v2643_v31, %v2456_v29  ;;  %v2416_v8 = vpop.f32.mrf.mxu0  ;;  %v3736_v46 = vld [vmem:[%s4125_s15 + $0x38] sm:$0xff] }
 0x451   : > { %v1989_v31 = vadd.f32 %v4964_v37, %v1755_v0  ;;  %v5397_v37 = vld [vmem:[#allocation87_spill] sm:$0xff] }
 0x452   : > { %3008 = vst [vmem:[%s5059_s23 + $0x18] sm:$0xff] %v2976_v26  ;;  %v2726_v3 = vadd.f32 %v4866_v41, %v2690_v51  ;;  %v1523_v11 = vadd.f32 %v5398_v20, %v5397_v37  ;;  %v5406_v37 = vld [vmem:[#allocation90_spill] sm:$0xff] }
 0x453   : > { %v2177_v15 = vpop.f32.mrf.mxu3  ;;  %v2871_v59 = vpop.f32.mrf.mxu2 }
 0x454   : > { %v2223_v2 = vadd.f32 %v2177_v15, %v1988_v6  ;;  %v2872_v47 = vadd.f32 %v5046_v16, %v2871_v59  ;;  %v2758_v9 = vmax.f32 %v2726_v3, 0.0  ;;  %v1524_v6 = vadd.f32 %v5401_v62, %v5400_v36  ;;  %v5410_v36 = vld [vmem:[#allocation69_spill] sm:$0xff] }
 0x456   : > { %v2457_v12 = vadd.f32 %v2411_v22, %v2223_v2  ;;  %v2945_v14 = vadd.f32 %v3733_v42, %v2872_v47  ;;  %v2650_v22 = vpop.f32.mrf.mxu1 }
 0x458   : > { %v2691_v49 = vadd.f32 %v2645_v52, %v2457_v12  ;;  %v2977_v63 = vmax.f32 %v2945_v14, 0.0  ;;  %v2419_v1 = vpop.f32.mrf.mxu0 }
 0x45a   : > { %3009 = vst [vmem:[%s5059_s23 + $0x20] sm:$0xff] %v2977_v63  ;;  %v2727_v30 = vadd.f32 %v4866_v41, %v2691_v49  ;;  %v5402_v63 = vld [vmem:[#allocation80_spill] sm:$0xff] }
 0x45b   : > { %v2180_v39 = vpop.f32.mrf.mxu3  ;;  %v2873_v4 = vpop.f32.mrf.mxu2  ;;  %v1758_v3 = vadd.f32 %v5402_v63, %v1524_v6 }
 0x45c   : > { %v2224_v56 = vadd.f32 %v2180_v39, %v1989_v31  ;;  %v2874_v21 = vadd.f32 %v5046_v16, %v2873_v4  ;;  %v2759_v33 = vmax.f32 %v2727_v30, 0.0  ;;  %v1525_v31 = vadd.f32 %v5404_v58, %v5403_v40 }
 0x45d   : > { %v1992_v30 = vadd.f32 %v5001_v19, %v1758_v3  ;;  %v5407_v19 = vld [vmem:[#allocation67_spill] sm:$0xff] }
 0x45e   : > { %v2946_v52 = vadd.f32 %v3734_v25, %v2874_v21  ;;  %v2779_v28 = vpack.c.bf16 %v2759_v33, %v2758_v9  ;;  %v2458_v54 = vadd.f32 %v2414_v50, %v2224_v56  ;;  %v2653_v34 = vpop.f32.mrf.mxu1  ;;  %v5399_v50 = vld [vmem:[#allocation79_spill] sm:$0xff]  ;;  %v3737_v33 = vld [vmem:[%s4125_s15 + $0x40] sm:$0xff]  ;;  %v1526_v20 = vadd.f32 %v5407_v19, %v5406_v37 }
 0x45f   : > { %v1757_v29 = vadd.f32 %v5399_v50, %v1523_v11  ;;  %v5408_v50 = vld [vmem:[#allocation82_spill] sm:$0xff] }
 0x460   : > { %v2978_v35 = vmax.f32 %v2946_v52, 0.0  ;;  %2915 = vmatmul.bf16.gmra.mxu2 %v2779_v28  ;;  %v2692_v18 = vadd.f32 %v2648_v5, %v2458_v54  ;;  %v2421_v14 = vpop.f32.mrf.mxu0  ;;  %v5405_v52 = vld [vmem:[#allocation81_spill] sm:$0xff] }
 0x461   : > { %v1991_v5 = vadd.f32 %v4990_v13, %v1757_v29  ;;  %v1759_v28 = vadd.f32 %v5405_v52, %v1525_v31  ;;  %v1760_v29 = vadd.f32 %v5408_v50, %v1526_v20  ;;  %v5414_v52 = vld [vmem:[#allocation84_spill] sm:$0xff]  ;;  %v3742_v50 = vld [vmem:[%s4125_s15 + $0x68] sm:$0xff] }
 0x462   : > { %3010 = vst [vmem:[%s5059_s23 + $0x28] sm:$0xff] %v2978_v35  ;;  %v2728_v10 = vadd.f32 %v4866_v41, %v2692_v18 }
 0x463   : > { %v2182_v17 = vpop.f32.mrf.mxu3  ;;  %v2876_v57 = vpop.f32.mrf.mxu2  ;;  %v1994_v6 = vadd.f32 %v5021_v48, %v1760_v29 }
 0x464   : > { %v2225_v24 = vadd.f32 %v2182_v17, %v1990_v27  ;;  %v2877_v55 = vadd.f32 %v5046_v16, %v2876_v57  ;;  %v2760_v12 = vmax.f32 %v2728_v10, 0.0  ;;  %v1993_v27 = vadd.f32 %v5012_v60, %v1759_v28  ;;  %v5409_v10 = vld [vmem:[#allocation91_spill] sm:$0xff] }
 0x465   : > { %v1527_v62 = vadd.f32 %v5410_v36, %v5409_v10 }
 0x466   : > { %v2459_v7 = vadd.f32 %v2416_v8, %v2225_v24  ;;  %v2947_v23 = vadd.f32 %v3735_v53, %v2877_v55  ;;  %v2655_v8 = vpop.f32.mrf.mxu1 }
 0x468   : > { %v2693_v26 = vadd.f32 %v2650_v22, %v2459_v7  ;;  %v2979_v38 = vmax.f32 %v2947_v23, 0.0  ;;  %v2424_v32 = vpop.f32.mrf.mxu0  ;;  %v3738_v7 = vld [vmem:[%s4125_s15 + $0x48] sm:$0xff] }
 0x46a   : > { %3011 = vst [vmem:[%s5059_s23 + $0x30] sm:$0xff] %v2979_v38  ;;  %v2729_v15 = vadd.f32 %v4866_v41, %v2693_v26 }
 0x46b   : > { %v2185_v59 = vpop.f32.mrf.mxu3  ;;  %v2878_v51 = vpop.f32.mrf.mxu2 }
 0x46c   : > { %v2226_v2 = vadd.f32 %v2185_v59, %v1991_v5  ;;  %v2879_v47 = vadd.f32 %v5046_v16, %v2878_v51  ;;  %v2761_v42 = vmax.f32 %v2729_v15, 0.0 }
 0x46e   : > { %v2948_v0 = vadd.f32 %v3736_v46, %v2879_v47  ;;  %v2780_v49 = vpack.c.bf16 %v2761_v42, %v2760_v12  ;;  %v2460_v45 = vadd.f32 %v2419_v1, %v2226_v2  ;;  %v2658_v11 = vpop.f32.mrf.mxu1  ;;  %v3739_v42 = vld [vmem:[%s4125_s15 + $0x50] sm:$0xff]  ;;  %v5411_v46 = vld [vmem:[#allocation83_spill] sm:$0xff] }
 0x470   : > { %v2980_v13 = vmax.f32 %v2948_v0, 0.0  ;;  %2920 = vmatmul.bf16.gmra.mxu2 %v2780_v49  ;;  %v2694_v22 = vadd.f32 %v2653_v34, %v2460_v45  ;;  %v2426_v60 = vpop.f32.mrf.mxu0  ;;  %v1761_v0 = vadd.f32 %v5411_v46, %v1527_v62  ;;  %v5413_v45 = vld [vmem:[#allocation71_spill] sm:$0xff] }
 0x472   : > { %3012 = vst [vmem:[%s5059_s23 + $0x38] sm:$0xff] %v2980_v13  ;;  %v2730_v35 = vadd.f32 %v4866_v41, %v2694_v22  ;;  %v1995_v40 = vadd.f32 %v5029_v61, %v1761_v0 }
 0x473   : > { %v2187_v39 = vpop.f32.mrf.mxu3  ;;  %v2881_v4 = vpop.f32.mrf.mxu2 }
 0x474   : > { %v2227_v56 = vadd.f32 %v2187_v39, %v1992_v30  ;;  %v2882_v21 = vadd.f32 %v5046_v16, %v2881_v4  ;;  %v2762_v55 = vmax.f32 %v2730_v35, 0.0 }
 0x476   : > { %v2461_v9 = vadd.f32 %v2421_v14, %v2227_v56  ;;  %v2949_v25 = vadd.f32 %v3737_v33, %v2882_v21  ;;  %v2660_v47 = vpop.f32.mrf.mxu1 }
 0x478   : > { %v2695_v43 = vadd.f32 %v2655_v8, %v2461_v9  ;;  %v2981_v54 = vmax.f32 %v2949_v25, 0.0  ;;  %v5412_v8 = vld [vmem:[#allocation92_spill] sm:$0xff]  ;;  %v2429_v13 = vpop.f32.mrf.mxu0  ;;  %v3740_v9 = vld [vmem:[%s4125_s15 + $0x58] sm:$0xff] }
 0x479   : > { %v1528_v48 = vadd.f32 %v5413_v45, %v5412_v8 }
 0x47a   : > { %3013 = vst [vmem:[%s5059_s23 + $0x40] sm:$0xff] %v2981_v54  ;;  %v2731_v17 = vadd.f32 %v4866_v41, %v2695_v43 }
 0x47b   : > { %v2190_v57 = vpop.f32.mrf.mxu3  ;;  %v2883_v1 = vpop.f32.mrf.mxu2  ;;  %v1762_v28 = vadd.f32 %v5414_v52, %v1528_v48  ;;  %v3747_v48 = vld [vmem:[%s4125_s15 + $0x90] sm:$0xff] }
 0x47c   : > { %v2228_v18 = vadd.f32 %v2190_v57, %v1993_v27  ;;  %v2884_v24 = vadd.f32 %v5046_v16, %v2883_v1  ;;  %v2763_v34 = vmax.f32 %v2731_v17, 0.0  ;;  %v3741_v17 = vld [vmem:[%s4125_s15 + $0x60] sm:$0xff] }
 0x47d   : > { %v1996_v61 = vadd.f32 %v5040_v44, %v1762_v28  ;;  %v3750_v28 = vld [vmem:[%s4125_s15 + $0xa8] sm:$0xff] }
 0x47e   : > { %v2950_v53 = vadd.f32 %v3738_v7, %v2884_v24  ;;  %v2781_v23 = vpack.c.bf16 %v2763_v34, %v2762_v55  ;;  %v2462_v26 = vadd.f32 %v2424_v32, %v2228_v18  ;;  %v2663_v21 = vpop.f32.mrf.mxu1 }
 0x480   : > { %v2982_v38 = vmax.f32 %v2950_v53, 0.0  ;;  %2925 = vmatmul.bf16.gmra.mxu2 %v2781_v23  ;;  %v2696_v59 = vadd.f32 %v2658_v11, %v2462_v26  ;;  %v2431_v11 = vpop.f32.mrf.mxu0 }
 0x482   : > { %3014 = vst [vmem:[%s5059_s23 + $0x48] sm:$0xff] %v2982_v38  ;;  %v2732_v3 = vadd.f32 %v4866_v41, %v2696_v59 }
 0x483   : > { %v2192_v5 = vpop.f32.mrf.mxu3  ;;  %v2886_v15 = vpop.f32.mrf.mxu2 }
 0x484   : > { %v2229_v51 = vadd.f32 %v2192_v5, %v1994_v6  ;;  %v2887_v2 = vadd.f32 %v5046_v16, %v2886_v15  ;;  %v2764_v22 = vmax.f32 %v2732_v3, 0.0  ;;  %v3744_v15 = vld [vmem:[%s4125_s15 + $0x78] sm:$0xff] }
 0x486   : > { %v2463_v12 = vadd.f32 %v2426_v60, %v2229_v51  ;;  %v2951_v14 = vadd.f32 %v3739_v42, %v2887_v2  ;;  %v2665_v1 = vpop.f32.mrf.mxu1 }
 0x488   : > { %v2697_v49 = vadd.f32 %v2660_v47, %v2463_v12  ;;  %v2983_v63 = vmax.f32 %v2951_v14, 0.0  ;;  %v3745_v12 = vld [vmem:[%s4125_s15 + $0x80] sm:$0xff] }
 0x48a   : > { %3015 = vst [vmem:[%s5059_s23 + $0x50] sm:$0xff] %v2983_v63  ;;  %v2733_v58 = vadd.f32 %v4866_v41, %v2697_v49  ;;  %v3746_v49 = vld [vmem:[%s4125_s15 + $0x88] sm:$0xff] }
 0x48b   : > { %v2195_v31 = vpop.f32.mrf.mxu3  ;;  %v2888_v30 = vpop.f32.mrf.mxu2 }
 0x48c   : > { %v2230_v39 = vadd.f32 %v2195_v31, %v1995_v40  ;;  %v2889_v4 = vadd.f32 %v5046_v16, %v2888_v30  ;;  %v2765_v56 = vmax.f32 %v2733_v58, 0.0  ;;  %v3748_v30 = vld [vmem:[%s4125_s15 + $0x98] sm:$0xff] }
 0x48e   : > { %v2952_v33 = vadd.f32 %v3740_v9, %v2889_v4  ;;  %v2782_v25 = vpack.c.bf16 %v2765_v56, %v2764_v22  ;;  %v2464_v32 = vadd.f32 %v2429_v13, %v2230_v39 }
 0x490   : > { %v2984_v43 = vmax.f32 %v2952_v33, 0.0  ;;  %2930 = vmatmul.bf16.gmra.mxu2 %v2782_v25  ;;  %v2698_v37 = vadd.f32 %v2663_v21, %v2464_v32  ;;  %v3749_v21 = vld [vmem:[%s4125_s15 + $0xa0] sm:$0xff] }
 0x492   : > { %3016 = vst [vmem:[%s5059_s23 + $0x58] sm:$0xff] %v2984_v43  ;;  %v2734_v55 = vadd.f32 %v4866_v41, %v2698_v37 }
 0x493   : > { %v2197_v54 = vpop.f32.mrf.mxu3  ;;  %v2891_v35 = vpop.f32.mrf.mxu2 }
 0x494   : > { %v2231_v19 = vadd.f32 %v2197_v54, %v1996_v61  ;;  %v2892_v20 = vadd.f32 %v5046_v16, %v2891_v35  ;;  %v2766_v53 = vmax.f32 %v2734_v55, 0.0  ;;  %v3751_v35 = vld [vmem:[%s4125_s15 + $0xb0] sm:$0xff] }
 0x496   : > { %v2465_v27 = vadd.f32 %v2431_v11, %v2231_v19  ;;  %v2953_v57 = vadd.f32 %v3741_v17, %v2892_v20 }
 0x498   : > { %v2699_v18 = vadd.f32 %v2665_v1, %v2465_v27  ;;  %v2985_v24 = vmax.f32 %v2953_v57, 0.0  ;;  %v3752_v27 = vld [vmem:[%s4125_s15 + $0xb8] sm:$0xff] }
 0x49a   : > { %3017 = vst [vmem:[%s5059_s23 + $0x60] sm:$0xff] %v2985_v24  ;;  %v2735_v44 = vadd.f32 %v4866_v41, %v2699_v18  ;;  %v3743_v41 = vld [vmem:[%s4125_s15 + $0x70] sm:$0xff]  ;;  %v3753_v24 = vld [vmem:[%s4125_s15 + $0xc0] sm:$0xff] }
 0x49b   : > { %v2893_v34 = vpop.f32.mrf.mxu2 }
 0x49c   : > { %v2894_v7 = vadd.f32 %v5046_v16, %v2893_v34  ;;  %v2767_v23 = vmax.f32 %v2735_v44, 0.0 }
 0x49e   : > { %v2954_v29 = vadd.f32 %v3742_v50, %v2894_v7  ;;  %v2783_v26 = vpack.c.bf16 %v2767_v23, %v2766_v53  ;;  %v3754_v53 = vld [vmem:[%s4125_s15 + $0xc8] sm:$0xff] }
 0x4a0   : > { %v2986_v38 = vmax.f32 %v2954_v29, 0.0  ;;  %2935 = vmatmul.bf16.gmra.mxu2 %v2783_v26 }
 0x4a2   : > { %3018 = vst [vmem:[%s5059_s23 + $0x68] sm:$0xff] %v2986_v38  ;;  %v3755_v38 = vld [vmem:[%s4125_s15 + $0xd0] sm:$0xff] }
 0x4a3   : > { %v2896_v60 = vpop.f32.mrf.mxu2 }
 0x4a4   : > { %v2897_v10 = vadd.f32 %v5046_v16, %v2896_v60 }
 0x4a6   : > { %v2955_v36 = vadd.f32 %v3743_v41, %v2897_v10 }
 0x4a8   : > { %v2987_v62 = vmax.f32 %v2955_v36, 0.0 }
 0x4aa   : > { %3019 = vst [vmem:[%s5059_s23 + $0x70] sm:$0xff] %v2987_v62  ;;  %v3756_v62 = vld [vmem:[%s4125_s15 + $0xd8] sm:$0xff] }
 0x4ab   : > { %v2898_v6 = vpop.f32.mrf.mxu2 }
 0x4ac   : > { %v2899_v5 = vadd.f32 %v5046_v16, %v2898_v6 }
 0x4ae   : > { %v2956_v59 = vadd.f32 %v3744_v15, %v2899_v5 }
 0x4b0   : > { %v2988_v51 = vmax.f32 %v2956_v59, 0.0 }
 0x4b2   : > { %3020 = vst [vmem:[%s5059_s23 + $0x78] sm:$0xff] %v2988_v51  ;;  %v3757_v51 = vld [vmem:[%s4125_s15 + $0xe0] sm:$0xff] }
 0x4b3   : > { %v2901_v2 = vpop.f32.mrf.mxu2 }
 0x4b4   : > { %v2902_v47 = vadd.f32 %v5046_v16, %v2901_v2 }
 0x4b6   : > { %v2957_v42 = vadd.f32 %v3745_v12, %v2902_v47 }
 0x4b8   : > { %v2989_v14 = vmax.f32 %v2957_v42, 0.0 }
 0x4ba   : > { %3021 = vst [vmem:[%s5059_s23 + $0x80] sm:$0xff] %v2989_v14  ;;  %v3758_v14 = vld [vmem:[%s4125_s15 + $0xe8] sm:$0xff] }
 0x4bb   : > { %v2903_v46 = vpop.f32.mrf.mxu2 }
 0x4bc   : > { %v2904_v0 = vadd.f32 %v5046_v16, %v2903_v46 }
 0x4be   : > { %v2958_v63 = vadd.f32 %v3746_v49, %v2904_v0 }
 0x4c0   : > { %v2990_v3 = vmax.f32 %v2958_v63, 0.0 }
 0x4c2   : > { %3022 = vst [vmem:[%s5059_s23 + $0x88] sm:$0xff] %v2990_v3  ;;  %v3759_v3 = vld [vmem:[%s4125_s15 + $0xf0] sm:$0xff] }
 0x4c3   : > { %v2906_v8 = vpop.f32.mrf.mxu2 }
 0x4c4   : > { %v2907_v45 = vadd.f32 %v5046_v16, %v2906_v8 }
 0x4c6   : > { %v2959_v13 = vadd.f32 %v3747_v48, %v2907_v45 }
 0x4c8   : > { %v2991_v40 = vmax.f32 %v2959_v13, 0.0 }
 0x4ca   : > { %3023 = vst [vmem:[%s5059_s23 + $0x90] sm:$0xff] %v2991_v40  ;;  %v3760_v40 = vld [vmem:[%s4125_s15 + $0xf8] sm:$0xff] }
 0x4cb   : > { %v2908_v58 = vpop.f32.mrf.mxu2 }
 0x4cc   : > { %v2909_v31 = vadd.f32 %v5046_v16, %v2908_v58 }
 0x4ce   : > { %v2960_v39 = vadd.f32 %v3748_v30, %v2909_v31 }
 0x4d0   : > { %v2992_v4 = vmax.f32 %v2960_v39, 0.0 }
 0x4d2   : > { %3024 = vst [vmem:[%s5059_s23 + $0x98] sm:$0xff] %v2992_v4 }
 0x4d3   : > { %v2911_v22 = vpop.f32.mrf.mxu2 }
 0x4d4   : > { %v2912_v56 = vadd.f32 %v5046_v16, %v2911_v22 }
 0x4d6   : > { %v2961_v9 = vadd.f32 %v3749_v21, %v2912_v56 }
 0x4d8   : > { %v2993_v33 = vmax.f32 %v2961_v9, 0.0 }
 0x4da   : > { %3025 = vst [vmem:[%s5059_s23 + $0xa0] sm:$0xff] %v2993_v33 }
 0x4db   : > { %v2913_v25 = vpop.f32.mrf.mxu2 }
 0x4dc   : > { %v2914_v52 = vadd.f32 %v5046_v16, %v2913_v25 }
 0x4de   : > { %v2962_v32 = vadd.f32 %v3750_v28, %v2914_v52 }
 0x4e0   : > { %v2994_v43 = vmax.f32 %v2962_v32, 0.0 }
 0x4e2   : > { %3026 = vst [vmem:[%s5059_s23 + $0xa8] sm:$0xff] %v2994_v43 }
 0x4e3   : > { %v2916_v61 = vpop.f32.mrf.mxu2 }
 0x4e4   : > { %v2917_v54 = vadd.f32 %v5046_v16, %v2916_v61 }
 0x4e6   : > { %v2963_v37 = vadd.f32 %v3751_v35, %v2917_v54 }
 0x4e8   : > { %v2995_v19 = vmax.f32 %v2963_v37, 0.0 }
 0x4ea   : > { %3027 = vst [vmem:[%s5059_s23 + $0xb0] sm:$0xff] %v2995_v19 }
 0x4eb   : > { %v2918_v20 = vpop.f32.mrf.mxu2 }
 0x4ec   : > { %v2919_v11 = vadd.f32 %v5046_v16, %v2918_v20 }
 0x4ee   : > { %v2964_v17 = vadd.f32 %v3752_v27, %v2919_v11 }
 0x4f0   : > { %v2996_v57 = vmax.f32 %v2964_v17, 0.0 }
 0x4f2   : > { %3028 = vst [vmem:[%s5059_s23 + $0xb8] sm:$0xff] %v2996_v57 }
 0x4f3   : > { %v2921_v1 = vpop.f32.mrf.mxu2 }
 0x4f4   : > { %v2922_v18 = vadd.f32 %v5046_v16, %v2921_v1 }
 0x4f6   : > { %v2965_v55 = vadd.f32 %v3753_v24, %v2922_v18 }
 0x4f8   : > { %v2997_v44 = vmax.f32 %v2965_v55, 0.0 }
 0x4fa   : > { %3029 = vst [vmem:[%s5059_s23 + $0xc0] sm:$0xff] %v2997_v44 }
 0x4fb   : > { %v2923_v34 = vpop.f32.mrf.mxu2 }
 0x4fc   : > { %v2924_v7 = vadd.f32 %v5046_v16, %v2923_v34 }
 0x4fe   : > { %v2966_v23 = vadd.f32 %v3754_v53, %v2924_v7 }
 0x500   : > { %v2998_v50 = vmax.f32 %v2966_v23, 0.0 }
 0x502   : > { %3030 = vst [vmem:[%s5059_s23 + $0xc8] sm:$0xff] %v2998_v50 }
 0x503   : > { %v2926_v29 = vpop.f32.mrf.mxu2 }
 0x504   : > { %v2927_v26 = vadd.f32 %v5046_v16, %v2926_v29 }
 0x506   : > { %v2967_v60 = vadd.f32 %v3755_v38, %v2927_v26 }
 0x508   : > { %v2999_v10 = vmax.f32 %v2967_v60, 0.0 }
 0x50a   : > { %3031 = vst [vmem:[%s5059_s23 + $0xd0] sm:$0xff] %v2999_v10 }
 0x50b   : > { %v2928_v41 = vpop.f32.mrf.mxu2 }
 0x50c   : > { %v2929_v36 = vadd.f32 %v5046_v16, %v2928_v41 }
 0x50e   : > { %v2968_v6 = vadd.f32 %v3756_v62, %v2929_v36 }
 0x510   : > { %v3000_v5 = vmax.f32 %v2968_v6, 0.0 }
 0x512   : > { %3032 = vst [vmem:[%s5059_s23 + $0xd8] sm:$0xff] %v3000_v5 }
 0x513   : > { %v2931_v15 = vpop.f32.mrf.mxu2 }
 0x514   : > { %v2932_v59 = vadd.f32 %v5046_v16, %v2931_v15 }
 0x516   : > { %v2969_v2 = vadd.f32 %v3757_v51, %v2932_v59 }
 0x518   : > { %v3001_v47 = vmax.f32 %v2969_v2, 0.0 }
 0x51a   : > { %3033 = vst [vmem:[%s5059_s23 + $0xe0] sm:$0xff] %v3001_v47 }
 0x51b   : > { %v2933_v12 = vpop.f32.mrf.mxu2 }
 0x51c   : > { %v2934_v42 = vadd.f32 %v5046_v16, %v2933_v12 }
 0x51e   : > { %v2970_v46 = vadd.f32 %v3758_v14, %v2934_v42 }
 0x520   : > { %v3002_v0 = vmax.f32 %v2970_v46, 0.0 }
 0x522   : > { %3034 = vst [vmem:[%s5059_s23 + $0xe8] sm:$0xff] %v3002_v0 }
 0x523   : > { %v2936_v49 = vpop.f32.mrf.mxu2 }
 0x524   : > { %v2937_v63 = vadd.f32 %v5046_v16, %v2936_v49 }
 0x526   : > { %v2971_v8 = vadd.f32 %v3759_v3, %v2937_v63 }
 0x528   : > { %v3003_v45 = vmax.f32 %v2971_v8, 0.0 }
 0x52a   : > { %3035 = vst [vmem:[%s5059_s23 + $0xf0] sm:$0xff] %v3003_v45 }
 0x52b   : > { %v2938_v48 = vpop.f32.mrf.mxu2 }
 0x52c   : > { %v2939_v13 = vadd.f32 %v5046_v16, %v2938_v48 }
 0x52e   : > { %v2972_v58 = vadd.f32 %v3760_v40, %v2939_v13 }
 0x530   : > { %v3004_v31 = vmax.f32 %v2972_v58, 0.0 }
 0x532   : > { %3036 = vst [vmem:[%s5059_s23 + $0xf8] sm:$0xff] %v3004_v31 }
 0x533   : > { %3908 = shalt.err (!%p3905_p10)
}
 0x534   : > { %s3966_s22 = smov 128   ;;  %s3967_s15 = smov 8  }
 0x535   : > { %3655 = dma.vmem_to_hbm [thread:$0]  (%p4091_p7), %s3051_s16, 4096, %s3053_s1, %s3038_s30, %s3966_s22, %s3966_s22, %s3967_s15  }
 0x536 PF: > { %s3067_s23 = sand.u32 1, %s3943_s24   ;;  %p5415_p12 = scmp.ge.s32.totalorder %s3955_s27, 2 }
 0x537   : > { %s3068_s20 = scalar_lea.sflag [#allocation5], %s3067_s23 }
 0x538   : > { %p3672_p13 = pnand %p5415_p12, %p4043_p6 }
 0x53a   : > { %p3673_p0 = pneg %p3672_p13 }
 0x53c   : > { %3938 = dma.done.wait (%p3673_p0), %s3068_s20, 4096  }
 0x53d   : > { %3940 = vsyncadd (%p3673_p0), %s3068_s20, 4294963200  ;;  %p22_p3 = scmp.ge.s32.totalorder %s4075_s11, 4   ;;  %s5416_s24 = smov %s3947_s25 }
 0x53e   : > { %s5417_s25 = smov %s3951_s26  ;;  %s5418_s26 = smov %s4087_s17 }
 0x53f   : > { %s5419_s27 = smov %s4075_s11  ;;  %24 = sbr.rel (!%p22_p3) target bundleno = 9 (0x9), region = 116 }
 0x544   :  { %3074 = vsyncpa [#allocation4], 1 }
 0x545   :  { %3076 = vsyncpa [#allocation4 + $0x1], 1 }
 0x546   :  { %3077 = vsyncpa [#allocation7], 1 }
 0x547   :  { %3078 = vsyncpa [#allocation10], 1 }
 0x548   :  { %3079 = vsyncpa [#allocation5], 1 }
 0x549   :  { %3081 = vsyncpa [#allocation5 + $0x1], 1 }

</bundles_post_ra>
